<compile_context>
chip_gen: v7x
topology: tpu7x:2x2x1
jax: 0.10.0
libtpu: 0.0.40
codegen_flags: <defaults>
</compile_context>

<pallas_src>
import jax
import jax.numpy as jnp
from jax.experimental import pallas as pl
from jax.experimental.pallas import tpu as pltpu


OUT_FEATURES = 5
# Below this many x-elements, pallas_call launch/per-step overhead dwarfs the useful HBM
# traffic -> let XLA's fused matmul handle it.
_PALLAS_MIN_ELEMS = 1 << 20  # ~1M elements


def linear_kernel(x_ref, w_ref, b_ref, o_ref):
    # x_ref: (TM, F), w_ref: (F, OUT) pre-transposed (MXU-native K,N), b_ref: (1, OUT),
    # o_ref: (TM, OUT). Accumulate in f32 on the MXU, add bias, cast to output dtype.
    acc = jnp.dot(x_ref[...], w_ref[...], preferred_element_type=jnp.float32)
    o_ref[...] = (acc + b_ref[...].astype(jnp.float32)).astype(o_ref.dtype)


def _vmem_capacity_bytes():
    try:
        return int(pltpu.get_tpu_info().vmem_capacity_bytes)
    except Exception:
        return 64 * 1024 * 1024  # conservative default (v7x per-TC VMEM)


def _round_up(x, m):
    return ((x + m - 1) // m) * m


def _choose_tile_m(M, F, itemsize):
    """Row-tile size: ~4 MiB x tile (bandwidth regime), sublane-aligned, grid_m >= 2 friendly."""
    sublane = 8 if itemsize >= 4 else 16          # bf16 packs 16 rows per sublane group
    # Per-buffer x-tile budget; Pallas double-buffers it. ~4 MiB tiles sit at ~85%+ of HBM
    # roofline; scale down automatically on parts with less VMEM.
    x_tile_budget = min(4 * 1024 * 1024, _vmem_capacity_bytes() // 16)
    tm = (x_tile_budget // max(1, F * itemsize)) // sublane * sublane
    tm = max(sublane, tm)
    m_pad = _round_up(M, sublane)
    tm = min(tm, m_pad)
    # Keep at least 2 grid steps so the parallel M axis shards across both v7x TensorCores.
    if M > 2 * sublane:
        half = _round_up(pl.cdiv(M, 2), sublane)
        tm = min(tm, half)
    return max(sublane, tm)


def linear_pallas(x, weight, bias):
    """x: (..., F); weight: (OUT, F) (PyTorch layout); bias: (OUT,)."""
    *lead, F = x.shape
    OUT = weight.shape[0]
    M = 1
    for d in lead:
        M *= d

    # Normalize operand dtypes (avoid mixed-dtype dot in-kernel); accumulation is f32 anyway.
    weight = weight.astype(x.dtype)
    bias = bias.astype(x.dtype)

    # Small/medium problems: per-step overhead dominates; XLA's fused matmul wins.
    if M * F < _PALLAS_MIN_ELEMS:
        out = (
            jnp.einsum("mf,of->mo", x.reshape(M, F), weight,
                       preferred_element_type=jnp.float32)
            + bias.astype(jnp.float32)
        )
        return out.astype(x.dtype).reshape(*lead, OUT)

    x2d = x.reshape(M, F)
    w_t = weight.T                 # (F, OUT): one-time tiny transpose -> MXU-native operand
    b2d = bias.reshape(1, OUT)

    itemsize = jnp.dtype(x.dtype).itemsize
    TM = _choose_tile_m(M, F, itemsize)
    grid_m = pl.cdiv(M, TM)

    # Resident footprint: 2x x tile + 2x out tile (double-buffered) + W + bias, with headroom.
    footprint = 2 * (TM * F + TM * OUT) * itemsize + 2 * (F * OUT + OUT) * itemsize
    vmem_limit = int(min(48 * 1024 * 1024, max(32 * 1024 * 1024, 2 * footprint)))

    cost = pl.CostEstimate(
        flops=2 * M * F * OUT,
        transcendentals=0,
        bytes_accessed=itemsize * (M * F + F * OUT + OUT + M * OUT),
    )

    out = pl.pallas_call(
        linear_kernel,
        out_shape=jax.ShapeDtypeStruct((M, OUT), x.dtype),
        grid_spec=pltpu.PrefetchScalarGridSpec(
            num_scalar_prefetch=0,
            grid=(grid_m,),
            in_specs=[
                pl.BlockSpec((TM, F), lambda i: (i, 0)),    # x row tiles stream through VMEM
                pl.BlockSpec((F, OUT), lambda i: (0, 0)),   # W^T resident (grid-invariant)
                pl.BlockSpec((1, OUT), lambda i: (0, 0)),   # bias resident
            ],
            out_specs=pl.BlockSpec((TM, OUT), lambda i: (i, 0)),
        ),
        compiler_params=pltpu.CompilerParams(
            dimension_semantics=("parallel",),              # megacore sharding on v7x
            vmem_limit_bytes=vmem_limit,                    # needed for v5e's 16 MiB default
        ),
        cost_estimate=cost,
    )(x2d, w_t, b2d)

    return out.reshape(*lead, OUT)


class MyModuleJax:
    """Mirror of the PyTorch MyModule with lazy param init."""

    def __init__(self):
        self.weight = None
        self.bias = None

    def init_params(self, x, key):
        in_features = x.shape[-1]
        k_w, k_b = jax.random.split(key)
        # torch.nn.Linear default init: U(-1/sqrt(in), 1/sqrt(in)) for W and b
        bound = 1.0 / jnp.sqrt(jnp.float32(in_features))
        self.weight = jax.random.uniform(
            k_w, (OUT_FEATURES, in_features), jnp.float32, -bound, bound
        )
        self.bias = jax.random.uniform(
            k_b, (OUT_FEATURES,), jnp.float32, -bound, bound
        )

    def forward(self, x):
        assert self.weight is not None and self.bias is not None
        return linear_pallas(x, self.weight, self.bias)


if __name__ == "__main__":
    key = jax.random.PRNGKey(0)
    k_x1, k_x2, k_x3, k_p1, k_p2, k_p3 = jax.random.split(key, 6)

    # --- 1) tiny shape (batch=2, seq=8, hidden=32): exercises the fused-XLA fallback path ---
    x_small = jax.random.normal(k_x1, (2, 8, 32), jnp.float32)
    mod_small = MyModuleJax()
    mod_small.init_params(x_small, k_p1)
    out_small = jax.block_until_ready(mod_small.forward(x_small))
    ref_small = x_small @ mod_small.weight.T + mod_small.bias
    assert out_small.shape == (2, 8, 5)
    assert jnp.allclose(out_small, ref_small, atol=1e-3, rtol=1e-3)

    # --- 2) (8, 1024, 256): Pallas path, 2 evenly sized row tiles (megacore-friendly grid) ---
    x_mid = jax.random.normal(k_x2, (8, 1024, 256), jnp.float32)
    mod_mid = MyModuleJax()
    mod_mid.init_params(x_mid, k_p2)
    out_mid = jax.block_until_ready(mod_mid.forward(x_mid))
    ref_mid = x_mid @ mod_mid.weight.T + mod_mid.bias
    assert out_mid.shape == (8, 1024, 5)
    assert jnp.allclose(out_mid, ref_mid, atol=1e-3, rtol=1e-3)

    # --- 3) (3, 700, 512): Pallas path with a ragged final row tile (M=2100 not % TM) ---
    x_rag = jax.random.normal(k_x3, (3, 700, 512), jnp.float32)
    mod_rag = MyModuleJax()
    mod_rag.init_params(x_rag, k_p3)
    out_rag = jax.block_until_ready(mod_rag.forward(x_rag))
    ref_rag = x_rag @ mod_rag.weight.T + mod_rag.bias
    assert out_rag.shape == (3, 700, 5)
    assert jnp.allclose(out_rag, ref_rag, atol=1e-3, rtol=1e-3)

    print("KERNEL_OK")
</pallas_src>

<mosaic_0001>
module attributes {stable_mosaic.version = 11 : i64} {
  func.func @linear_kernel(%arg0: i32, %arg1: memref<4096x256xf32, #tpu.memory_space<vmem>>, %arg2: memref<256x5xf32, #tpu.memory_space<vmem>>, %arg3: memref<1x5xf32, #tpu.memory_space<vmem>>, %arg4: memref<4096x5xf32, #tpu.memory_space<vmem>>) attributes {dimension_semantics = [#tpu.dimension_semantics<parallel>], iteration_bounds = array<i64: 2>, scalar_prefetch = 0 : i64, scratch_operands = 0 : i64, tpu.core_type = #tpu.core_type<tc>, window_params = [{transform_indices = @transform_0, window_bounds = array<i64: 4096, 256>}, {pipeline_mode = #tpu.pipeline_mode<synchronous>, transform_indices = @transform_1, window_bounds = array<i64: 256, 5>}, {pipeline_mode = #tpu.pipeline_mode<synchronous>, transform_indices = @transform_2, window_bounds = array<i64: 1, 5>}, {transform_indices = @transform_3, window_bounds = array<i64: 4096, 5>}]} {
    %c0 = arith.constant 0 : index
    %c0_0 = arith.constant 0 : index
    %0 = vector.load %arg1[%c0, %c0_0] : memref<4096x256xf32, #tpu.memory_space<vmem>>, vector<4096x256xf32>
    %c0_1 = arith.constant 0 : index
    %c0_2 = arith.constant 0 : index
    %1 = vector.load %arg2[%c0_1, %c0_2] : memref<256x5xf32, #tpu.memory_space<vmem>>, vector<256x5xf32>
    %cst = arith.constant dense<0.000000e+00> : vector<4096x5xf32>
    %2 = tpu.matmul %0, %1, %cst {dimension_numbers = #tpu.dot_dimension_numbers<[1], [0], [0], [1], [0, 0, 1, 1], [], []>} : vector<4096x256xf32>, vector<256x5xf32>, vector<4096x5xf32> -> vector<4096x5xf32>
    %c0_3 = arith.constant 0 : index
    %c0_4 = arith.constant 0 : index
    %3 = vector.load %arg3[%c0_3, %c0_4] : memref<1x5xf32, #tpu.memory_space<vmem>>, vector<1x5xf32>
    %4 = vector.broadcast %3 : vector<1x5xf32> to vector<4096x5xf32>
    %5 = arith.addf %2, %4 : vector<4096x5xf32>
    %c0_5 = arith.constant 0 : index
    %c0_6 = arith.constant 0 : index
    %6 = vector.load %arg4[%c0_5, %c0_6] : memref<4096x5xf32, #tpu.memory_space<vmem>>, vector<4096x5xf32>
    tpu.vector_store %arg4[%c0_5, %c0_6], %5 {strides = array<i32>} : memref<4096x5xf32, #tpu.memory_space<vmem>>, vector<4096x5xf32>,
    return
  }
  func.func @transform_0(%arg0: i32) -> (i32, i32) {
    %c0_i32 = arith.constant 0 : i32
    %c0_i32_0 = arith.constant 0 : i32
    return %arg0, %c0_i32 : i32, i32
  }
  func.func @transform_1(%arg0: i32) -> (i32, i32) {
    %c0_i32 = arith.constant 0 : i32
    %c0_i32_0 = arith.constant 0 : i32
    %c0_i32_1 = arith.constant 0 : i32
    return %c0_i32, %c0_i32_0 : i32, i32
  }
  func.func @transform_2(%arg0: i32) -> (i32, i32) {
    %c0_i32 = arith.constant 0 : i32
    %c0_i32_0 = arith.constant 0 : i32
    %c0_i32_1 = arith.constant 0 : i32
    return %c0_i32, %c0_i32_0 : i32, i32
  }
  func.func @transform_3(%arg0: i32) -> (i32, i32) {
    %c0_i32 = arith.constant 0 : i32
    %c0_i32_0 = arith.constant 0 : i32
    return %arg0, %c0_i32 : i32, i32
  }
}

</mosaic_0001>

<bundles_post_ra>
// kernel: tpu_custom_call.1
= control target key start
LH: loop header
LB: loop body
LE: loop exit
PB: predicated region body
PF: predicated region fallthrough
CT: control target
= control target key end

     0   :  { %8 = vsyncpa [#allocation3], 0  ;;  %s7626_s0 = inlined_call_operand.hbm [shape: f32[8192,256], index: 0, kind: input, shape index: {}]   ;;  %s7627_s1 = inlined_call_operand.vmem [shape: f32[256,5], index: 1, kind: input, shape index: {}]   ;;  %s7628_s2 = inlined_call_operand.hbm [shape: f32[1,5], index: 2, kind: input, shape index: {}]   ;;  %s7629_s3 = inlined_call_operand.vmem [shape: f32[8192,5], index: 3, kind: output, shape index: {}]  }
   0x1   :  { %10 = vsyncpa [#allocation3 + $0x1], 0 }
   0x2   :  { %11 = vsyncpa [#allocation5], 0  ;;  %s4767_s12 = smov 0   ;;  %s4769_s13 = smov 0  }
   0x3   :  { %s4771_s14 = smov 0   ;;  %s4773_s15 = smov 0  }
   0x4 LB: > { %s4485_s16 = sadd.s32 4294967295, %s4740_s15   ;;  %s4787_s17 = sadd.s32 1, %s4740_s15   ;;  %s4740_s15 = sphi %s4773_s15, %s7648_s15   ;;  %s4736_s14 = sphi %s4771_s14, %s7647_s14   ;;  %s4732_s13 = sphi %s4769_s13, %s7646_s13   ;;  %s4728_s12 = sphi %s4767_s12, %s7645_s12  }
   0x5   : > { %s21_s18 = ssub.s32 %s4740_s15, %s4787_s17  ;;  %s24_s19 = sadd.s32 1, %s4736_s14 }
   0x6   : > { %p22_p0 = scmp.eq.s32.totalorder %s21_s18, 0  ;;  %p31_p1 = scmp.ne.s32.totalorder %s4736_s14, %s4732_s13 }
   0x7   : > { %p32_p2 = scmp.eq.s32.totalorder %s4740_s15, 0  ;;  %p37_p3 = scmp.ne.s32.totalorder %s4732_s13, %s4728_s12 }
   0x8   : > { %s4797_s20 = scalar_select %p22_p0, %s4736_s14, %s24_s19  }
   0x9   : > { %p4799_p4 = por %p32_p2, %p31_p1  ;;  %p4805_p5 = scmp.eq.s32.totalorder %s4485_s16, 0 }
   0xa   : > { %p4487_p6 = scmp.ge.s32.totalorder %s4740_s15, 1  ;;  %p116_p7 = scmp.lt.s32.totalorder %s4740_s15, 3 }
   0xb   : > { %s7636_s22 = scalar_select %p4805_p5, 1, 0 }
   0xc   : > { %p4813_p8 = por %p4805_p5, %p37_p3  ;;  %p4817_p9 = pnand %p4487_p6, %p116_p7 }
   0xd   : > { %s4742_s25 = smov [#allocation4]   ;;  %p4599_p11 = scmp.lt.s32.totalorder %s4740_s15, 2 }
   0xe   : > { %s7637_s23 = scalar_select %p4813_p8, 1, 0 }
   0xf   : > { %s7638_s24 = scalar_select %p4817_p9, 1, 0 }
  0x10   : > { %s132_s26 = sshll.u32 %s4742_s25, 4  ;;  %p4590_p10 = pneg %p4817_p9  ;;  %s133_s26 = int_to_ptr.vmem [resolvable:$true] %s132_s26 }
  0x11   : > { %s143_s27 = sand.u32 1, %s4736_s14   ;;  %p4833_p13 = pnand %p4599_p11, %p4799_p4 }
  0x12   : > { %p4827_p12 = pnand %p4590_p10, %p4805_p5  ;;  %s4490_s30 = sshll.u32 %s143_s27, 13 }
  0x13   : > { %s7640_s29 = scalar_select %p4833_p13, 1, 0 }
  0x14   : > { %s4644_s6 = scalar_lea.hbm %s7628_s2, 16  ;;  %p4646_p1 = pneg %p4827_p12 }
  0x15   : > { %p4645_p0 = scmp.ne.s32.totalorder %s7628_s2, %s4644_s6  ;;  %p4651_p4 = scmp.lt.u32.totalorder %s4644_s6, %s7628_s2 }
  0x17   : > { %p4647_p2 = pnand %p4646_p1, %p4645_p0 }
  0x19   : > { %p4648_p3 = pneg %p4647_p2 }
  0x1b   : > { %p4653_p6 = pnand %p4651_p4, %p4648_p3 }
  0x1d   : > { %4656 = shalt.err (!%p4653_p6)
}
  0x1e   : > { %s4657_s11 = scalar_lea.vmem %s133_s26, 16  ;;  %s4664_s12 = scalar_lea.vmem %s133_s26, 32 }
  0x1f   : > { %p4658_p7 = scmp.ne.s32.totalorder %s133_s26, %s4657_s11  ;;  %p4665_p5 = scmp.lt.s32.totalorder %s133_s26, %s133_s26 }
  0x20   : > { %p4666_p8 = scmp.lt.s32.totalorder %s4664_s12, %s4657_s11 }
  0x21   : > { %p4660_p10 = pnand %p4658_p7, %p4646_p1 }
  0x22   : > { %p4667_p9 = por %p4666_p8, %p4665_p5 }
  0x23   : > { %p4661_p11 = pneg %p4660_p10 }
  0x25   : > { %p4668_p13 = pnand %p4667_p9, %p4661_p11 }
  0x27   : > { %4671 = shalt.err (!%p4668_p13)
}
  0x28   : > { %4593 = dma.hbm_to_vmem [thread:$0]  (!%p4827_p12), %s7628_s2, 16, %s133_s26, [#allocation5]  }
  0x29   : > { %s4503_s21 = sshll.u32 %s4740_s15, 17  ;;  %s147_s6 = scalar_lea.vmem [#allocation2], %s4490_s30 }
  0x2a   : > { %s4857_s5 = scalar_lea.hbm %s7626_s0, %s4503_s21  ;;  %s155_s7 = sshll.u32 %s147_s6, 4  ;;  %s4859_s7 = int_to_ptr.vmem [resolvable:$true] %s155_s7 }
  0x2b   : > { %s4861_s28 = scalar_lea.sflag [#allocation3], %s143_s27  ;;  %s4672_s8 = scalar_lea.hbm %s4857_s5, 131072 }
  0x2c   : > { %p4673_p5 = scmp.ne.s32.totalorder %s4857_s5, %s4672_s8  ;;  %p7641_p8 = scmp.ne.s32.totalorder %s7640_s29, 0 }
  0x2d   : > { %s4677_s10 = scalar_lea.hbm %s7626_s0, 262144  ;;  %p4678_p0 = scmp.lt.u32.totalorder %s4857_s5, %s7626_s0 }
  0x2e   : > { %p4674_p9 = pneg %p7641_p8  ;;  %p4679_p1 = scmp.lt.u32.totalorder %s4677_s10, %s4672_s8 }
  0x2f   : > { %p4681_p3 = scmp.lt.u32.totalorder %s4672_s8, %s4857_s5 }
  0x30   : > { %p4675_p12 = pnand %p4674_p9, %p4673_p5  ;;  %p4680_p2 = por %p4679_p1, %p4678_p0 }
  0x32   : > { %p4676_p13 = pneg %p4675_p12  ;;  %p4682_p4 = por %p4681_p3, %p4680_p2 }
  0x34   : > { %p4683_p6 = pnand %p4682_p4, %p4676_p13 }
  0x36   : > { %4686 = shalt.err (!%p4683_p6)
}
  0x37   : > { %s4687_s27 = scalar_lea.vmem %s4859_s7, 131072  ;;  %s4743_s30 = smov [#allocation2]  }
  0x38   : > { %p4688_p7 = scmp.ne.s32.totalorder %s4859_s7, %s4687_s27  ;;  %s4692_s18 = sshll.u32 %s4743_s30, 4  ;;  %s4693_s18 = int_to_ptr.vmem [resolvable:$false] %s4692_s18 }
  0x39   : > { %s4694_s19 = scalar_lea.vmem %s4693_s18, 262144  ;;  %p4695_p5 = scmp.lt.s32.totalorder %s4859_s7, %s4693_s18 }
  0x3a   : > { %p4690_p10 = pnand %p4688_p7, %p4674_p9  ;;  %p4696_p12 = scmp.lt.s32.totalorder %s4694_s19, %s4687_s27 }
  0x3c   : > { %p4691_p11 = pneg %p4690_p10  ;;  %p4697_p0 = por %p4696_p12, %p4695_p5 }
  0x3e   : > { %p4698_p1 = pnand %p4697_p0, %p4691_p11 }
  0x40   : > { %4701 = shalt.err (!%p4698_p1)
}
  0x41   : > { %s4744_s21 = smov 256   ;;  %s4745_s25 = smov 16  }
  0x42   : > { %4597 = dma.hbm_to_vmem [thread:$0]  (!%p7641_p8), %s4857_s5, 131072, %s4859_s7, %s4861_s28, %s4744_s21, %s4744_s21, %s4745_s25  }
  0x43   : > { %p7642_p9 = scmp.ne.s32.totalorder %s7638_s24, 0 }
  0x44   : > { %s169_s4 = sand.u32 (!%p7642_p9), 1, %s4732_s13   ;;  %p7643_p13 = scmp.ne.s32.totalorder (!%p7642_p9), %s7637_s23, 0 }
  0x45   : > { %167 = sbr.rel (%p7642_p9) target bundleno = 1381 (0x565), region = 32  ;;  %s4495_s6 = sshll.u32 (!%p7642_p9), %s169_s4, 13 }
  0x46   : > { %s170_s8 = scalar_lea.sflag (!%p7642_p9), [#allocation3], %s169_s4  ;;  %s4892_s26 = scalar_lea.vmem (!%p7642_p9), [#allocation2], %s4495_s6 }
  0x4c   : > { %4719 = dma.done.wait (%p7643_p13), %s170_s8, 131072  }
  0x4d   : > { %4721 = vsyncadd (%p7643_p13), %s170_s8, 4294836224  ;;  %p7644_p2 = scmp.ne.s32.totalorder %s7636_s22, 0 }
  0x4f   : > { %4723 = dma.done.wait (%p7644_p2), [#allocation5], 16  }
  0x50   : > { %4725 = vsyncadd (%p7644_p2), [#allocation5], 4294967280  ;;  %v4746_v0 = vmov 0.0|0.0   ;;  %v1231_v1 = vld [vmem:[%s7627_s1] sm:$0xff]  ;;  %v1232_v2 = vld [vmem:[%s7627_s1 + $0x8] sm:$0xff]  ;;  %s4497_s23 = sshll.u32 %s4485_s16, 9 }
  0x51   : > { %4504 = vmatprep.subr.bf16.mxu0 %v4746_v0  ;;  %4552 = vmatprep.subr.bf16.mxu1 %v4746_v0  ;;  %v1233_v3 = vld [vmem:[%s7627_s1 + $0x10] sm:$0xff]  ;;  %v4505_v4 = vpack.c.bf16 %v1232_v2, %v1231_v1  ;;  %v1234_v5 = vld [vmem:[%s7627_s1 + $0x18] sm:$0xff]  ;;  %v1235_v7 = vld [vmem:[%s7627_s1 + $0x20] sm:$0xff]  ;;  %p202_p8 = scmp.lt.s32.totalorder %s4497_s23, 1023  ;;  %vm3895_vm0 = vcmask 39936  }
  0x52   : > { %v4508_v6 = vpack.c.bf16 %v1234_v5, %v1233_v3  ;;  %v1236_v8 = vld [vmem:[%s7627_s1 + $0x28] sm:$0xff]  ;;  %v1237_v10 = vld [vmem:[%s7627_s1 + $0x30] sm:$0xff]  ;;  %v1238_v11 = vld [vmem:[%s7627_s1 + $0x38] sm:$0xff] }
  0x53   : > { %4506 = vmatpush1.bf16.msra.mxu0 %v4505_v4  ;;  %4568 = vmatpush1.bf16.msra.mxu1 %v4505_v4  ;;  %v4511_v9 = vpack.c.bf16 %v1236_v8, %v1235_v7  ;;  %v208_v12 = vld [vmem:[%s4892_s26 + $0x8] sm:$0xff]  ;;  %v4514_v13 = vpack.c.bf16 %v1238_v11, %v1237_v10  ;;  %v1239_v15 = vld [vmem:[%s7627_s1 + $0x40] sm:$0xff]  ;;  %v1241_v18 = vld [vmem:[%s7627_s1 + $0x50] sm:$0xff]  ;;  %s7650_s23 = smov (!%p202_p8, %s4497_s23), 1023 }
  0x54   : > { %4507 = vmatprep.subr.bf16.mxu0 %v4746_v0  ;;  %4553 = vmatprep.subr.bf16.mxu1 %v4746_v0  ;;  %v720_v14 = vld [vmem:[%s4892_s26 + $0x1008] sm:$0xff]  ;;  %v1242_v19 = vld [vmem:[%s7627_s1 + $0x58] sm:$0xff]  ;;  %v1243_v21 = vld [vmem:[%s7627_s1 + $0x60] sm:$0xff]  ;;  %s4498_s15 = sshll.u32 %s7650_s23, 3 }
  0x55   : > { %v1240_v16 = vld [vmem:[%s7627_s1 + $0x48] sm:$0xff]  ;;  %1334 = vmatprep.mubr.f32.mxu0 %v208_v12  ;;  %2614 = vmatprep.mubr.f32.mxu1 %v720_v14  ;;  %v4520_v20 = vpack.c.bf16 %v1242_v19, %v1241_v18  ;;  %v1245_v24 = vld [vmem:[%s7627_s1 + $0x70] sm:$0xff]  ;;  %v1246_v25 = vld [vmem:[%s7627_s1 + $0x78] sm:$0xff]  ;;  %s5255_s22 = scalar_lea.vmem %s7629_s3, %s4498_s15 }
  0x56   : > { %v4517_v17 = vpack.c.bf16 %v1240_v16, %v1239_v15  ;;  %v1244_v22 = vld [vmem:[%s7627_s1 + $0x68] sm:$0xff]  ;;  %v4526_v26 = vpack.c.bf16 %v1246_v25, %v1245_v24  ;;  %v1247_v27 = vld [vmem:[%s7627_s1 + $0x80] sm:$0xff]  ;;  %v1249_v30 = vld [vmem:[%s7627_s1 + $0x90] sm:$0xff] }
  0x57   : > { %4509 = vmatpush1.bf16.msra.mxu0 %v4508_v6  ;;  %4569 = vmatpush1.bf16.msra.mxu1 %v4508_v6  ;;  %v4523_v23 = vpack.c.bf16 %v1244_v22, %v1243_v21  ;;  %v1248_v28 = vld [vmem:[%s7627_s1 + $0x88] sm:$0xff]  ;;  %v1250_v31 = vld [vmem:[%s7627_s1 + $0x98] sm:$0xff]  ;;  %v1251_v33 = vld [vmem:[%s7627_s1 + $0xa0] sm:$0xff] }
  0x58   : > { %4510 = vmatprep.subr.bf16.mxu0 %v4746_v0  ;;  %4554 = vmatprep.subr.bf16.mxu1 %v4746_v0  ;;  %v4529_v29 = vpack.c.bf16 %v1248_v28, %v1247_v27  ;;  %v4532_v32 = vpack.c.bf16 %v1250_v31, %v1249_v30  ;;  %v1252_v34 = vld [vmem:[%s7627_s1 + $0xa8] sm:$0xff]  ;;  %v1253_v36 = vld [vmem:[%s7627_s1 + $0xb0] sm:$0xff]  ;;  %v1254_v37 = vld [vmem:[%s7627_s1 + $0xb8] sm:$0xff] }
  0x59   : > { %v4535_v35 = vpack.c.bf16 %v1252_v34, %v1251_v33  ;;  %v4538_v38 = vpack.c.bf16 %v1254_v37, %v1253_v36  ;;  %v1255_v39 = vld [vmem:[%s7627_s1 + $0xc0] sm:$0xff]  ;;  %v1256_v40 = vld [vmem:[%s7627_s1 + $0xc8] sm:$0xff]  ;;  %v1257_v42 = vld [vmem:[%s7627_s1 + $0xd0] sm:$0xff] }
  0x5a   : > { %v4541_v41 = vpack.c.bf16 %v1256_v40, %v1255_v39  ;;  %v1258_v43 = vld [vmem:[%s7627_s1 + $0xd8] sm:$0xff]  ;;  %v1259_v45 = vld [vmem:[%s7627_s1 + $0xe0] sm:$0xff]  ;;  %v1260_v46 = vld [vmem:[%s7627_s1 + $0xe8] sm:$0xff] }
  0x5b   : > { %4512 = vmatpush1.bf16.msra.mxu0 %v4511_v9  ;;  %4570 = vmatpush1.bf16.msra.mxu1 %v4511_v9  ;;  %v4544_v44 = vpack.c.bf16 %v1258_v43, %v1257_v42  ;;  %v4547_v47 = vpack.c.bf16 %v1260_v46, %v1259_v45  ;;  %v1261_v48 = vld [vmem:[%s7627_s1 + $0xf0] sm:$0xff]  ;;  %v1262_v49 = vld [vmem:[%s7627_s1 + $0xf8] sm:$0xff]  ;;  %v207_v51 = vld [vmem:[%s4892_s26] sm:$0xff] }
  0x5c   : > { %4513 = vmatprep.subr.bf16.mxu0 %v4746_v0  ;;  %4555 = vmatprep.subr.bf16.mxu1 %v4746_v0  ;;  %v4550_v50 = vpack.c.bf16 %v1262_v49, %v1261_v48  ;;  %v719_v52 = vld [vmem:[%s4892_s26 + $0x1000] sm:$0xff]  ;;  %v210_v53 = vld [vmem:[%s4892_s26 + $0x18] sm:$0xff]  ;;  %v209_v55 = vld [vmem:[%s4892_s26 + $0x10] sm:$0xff] }
  0x5d   : > { %v722_v54 = vld [vmem:[%s4892_s26 + $0x1018] sm:$0xff]  ;;  %v721_v56 = vld [vmem:[%s4892_s26 + $0x1010] sm:$0xff]  ;;  %v212_v57 = vld [vmem:[%s4892_s26 + $0x28] sm:$0xff] }
  0x5e   : > { %v724_v58 = vld [vmem:[%s4892_s26 + $0x1028] sm:$0xff]  ;;  %v211_v59 = vld [vmem:[%s4892_s26 + $0x20] sm:$0xff]  ;;  %v214_v61 = vld [vmem:[%s4892_s26 + $0x38] sm:$0xff] }
  0x5f   : > { %4515 = vmatpush1.bf16.msra.mxu0 %v4514_v13  ;;  %4571 = vmatpush1.bf16.msra.mxu1 %v4514_v13  ;;  %v723_v60 = vld [vmem:[%s4892_s26 + $0x1020] sm:$0xff]  ;;  %v726_v62 = vld [vmem:[%s4892_s26 + $0x1038] sm:$0xff]  ;;  %v213_v63 = vld [vmem:[%s4892_s26 + $0x30] sm:$0xff] }
  0x60   : > { %4516 = vmatprep.subr.bf16.mxu0 %v4746_v0  ;;  %4556 = vmatprep.subr.bf16.mxu1 %v4746_v0  ;;  %v216_v1 = vld [vmem:[%s4892_s26 + $0x48] sm:$0xff]  ;;  %v215_v3 = vld [vmem:[%s4892_s26 + $0x40] sm:$0xff]  ;;  %v218_v5 = vld [vmem:[%s4892_s26 + $0x58] sm:$0xff] }
  0x61   : > { %v728_v2 = vld [vmem:[%s4892_s26 + $0x1048] sm:$0xff]  ;;  %v727_v4 = vld [vmem:[%s4892_s26 + $0x1040] sm:$0xff]  ;;  %v730_v6 = vld [vmem:[%s4892_s26 + $0x1058] sm:$0xff] }
  0x62   : > { %v217_v7 = vld [vmem:[%s4892_s26 + $0x50] sm:$0xff]  ;;  %v220_v9 = vld [vmem:[%s4892_s26 + $0x68] sm:$0xff]  ;;  %v219_v11 = vld [vmem:[%s4892_s26 + $0x60] sm:$0xff] }
  0x63   : > { %4518 = vmatpush1.bf16.msra.mxu0 %v4517_v17  ;;  %4572 = vmatpush1.bf16.msra.mxu1 %v4517_v17  ;;  %v729_v8 = vld [vmem:[%s4892_s26 + $0x1050] sm:$0xff]  ;;  %v732_v10 = vld [vmem:[%s4892_s26 + $0x1068] sm:$0xff]  ;;  %v731_v12 = vld [vmem:[%s4892_s26 + $0x1060] sm:$0xff] }
  0x64   : > { %4519 = vmatprep.subr.bf16.mxu0 %v4746_v0  ;;  %4557 = vmatprep.subr.bf16.mxu1 %v4746_v0  ;;  %v222_v13 = vld [vmem:[%s4892_s26 + $0x78] sm:$0xff]  ;;  %v221_v15 = vld [vmem:[%s4892_s26 + $0x70] sm:$0xff]  ;;  %v224_v17 = vld [vmem:[%s4892_s26 + $0x88] sm:$0xff] }
  0x65   : > { %v734_v14 = vld [vmem:[%s4892_s26 + $0x1078] sm:$0xff]  ;;  %v733_v16 = vld [vmem:[%s4892_s26 + $0x1070] sm:$0xff]  ;;  %v736_v18 = vld [vmem:[%s4892_s26 + $0x1088] sm:$0xff] }
  0x66   : > { %v223_v19 = vld [vmem:[%s4892_s26 + $0x80] sm:$0xff]  ;;  %v226_v21 = vld [vmem:[%s4892_s26 + $0x98] sm:$0xff]  ;;  %v737_v24 = vld [vmem:[%s4892_s26 + $0x1090] sm:$0xff] }
  0x67   : > { %4521 = vmatpush1.bf16.msra.mxu0 %v4520_v20  ;;  %4573 = vmatpush1.bf16.msra.mxu1 %v4520_v20  ;;  %v735_v20 = vld [vmem:[%s4892_s26 + $0x1080] sm:$0xff]  ;;  %v738_v22 = vld [vmem:[%s4892_s26 + $0x1098] sm:$0xff]  ;;  %v228_v25 = vld [vmem:[%s4892_s26 + $0xa8] sm:$0xff] }
  0x68   : > { %4522 = vmatprep.subr.bf16.mxu0 %v4746_v0  ;;  %4558 = vmatprep.subr.bf16.mxu1 %v4746_v0  ;;  %v227_v27 = vld [vmem:[%s4892_s26 + $0xa0] sm:$0xff]  ;;  %v742_v30 = vld [vmem:[%s4892_s26 + $0x10b8] sm:$0xff]  ;;  %v229_v31 = vld [vmem:[%s4892_s26 + $0xb0] sm:$0xff] }
  0x69   : > { %v739_v28 = vld [vmem:[%s4892_s26 + $0x10a0] sm:$0xff]  ;;  %v232_v33 = vld [vmem:[%s4892_s26 + $0xc8] sm:$0xff]  ;;  %v234_v37 = vld [vmem:[%s4892_s26 + $0xd8] sm:$0xff] }
  0x6a   : > { %v744_v34 = vld [vmem:[%s4892_s26 + $0x10c8] sm:$0xff]  ;;  %v743_v36 = vld [vmem:[%s4892_s26 + $0x10c0] sm:$0xff]  ;;  %v233_v39 = vld [vmem:[%s4892_s26 + $0xd0] sm:$0xff] }
  0x6b   : > { %4524 = vmatpush1.bf16.msra.mxu0 %v4523_v23  ;;  %4574 = vmatpush1.bf16.msra.mxu1 %v4523_v23  ;;  %v225_v23 = vld [vmem:[%s4892_s26 + $0x90] sm:$0xff]  ;;  %v748_v42 = vld [vmem:[%s4892_s26 + $0x10e8] sm:$0xff]  ;;  %v235_v43 = vld [vmem:[%s4892_s26 + $0xe0] sm:$0xff] }
  0x6c   : > { %4525 = vmatprep.subr.bf16.mxu0 %v4746_v0  ;;  %4559 = vmatprep.subr.bf16.mxu1 %v4746_v0  ;;  %v745_v40 = vld [vmem:[%s4892_s26 + $0x10d0] sm:$0xff]  ;;  %v238_v45 = vld [vmem:[%s4892_s26 + $0xf8] sm:$0xff]  ;;  %v240_v49 = vld [vmem:[%s4892_s26 + $0x108] sm:$0xff] }
  0x6d   : > { %v750_v46 = vld [vmem:[%s4892_s26 + $0x10f8] sm:$0xff]  ;;  %v749_v48 = vld [vmem:[%s4892_s26 + $0x10f0] sm:$0xff] }
  0x6f   : > { %4527 = vmatpush1.bf16.msra.mxu0 %v4526_v26  ;;  %4575 = vmatpush1.bf16.msra.mxu1 %v4526_v26  ;;  %v740_v26 = vld [vmem:[%s4892_s26 + $0x10a8] sm:$0xff] }
  0x70   : > { %4528 = vmatprep.subr.bf16.mxu0 %v4746_v0  ;;  %4560 = vmatprep.subr.bf16.mxu1 %v4746_v0 }
  0x73   : > { %4530 = vmatpush1.bf16.msra.mxu0 %v4529_v29  ;;  %4576 = vmatpush1.bf16.msra.mxu1 %v4529_v29  ;;  %v230_v29 = vld [vmem:[%s4892_s26 + $0xb8] sm:$0xff] }
  0x74   : > { %4531 = vmatprep.subr.bf16.mxu0 %v4746_v0  ;;  %4561 = vmatprep.subr.bf16.mxu1 %v4746_v0 }
  0x77   : > { %4533 = vmatpush1.bf16.msra.mxu0 %v4532_v32  ;;  %4577 = vmatpush1.bf16.msra.mxu1 %v4532_v32  ;;  %v741_v32 = vld [vmem:[%s4892_s26 + $0x10b0] sm:$0xff] }
  0x78   : > { %4534 = vmatprep.subr.bf16.mxu0 %v4746_v0  ;;  %4562 = vmatprep.subr.bf16.mxu1 %v4746_v0 }
  0x7b   : > { %4536 = vmatpush1.bf16.msra.mxu0 %v4535_v35  ;;  %4578 = vmatpush1.bf16.msra.mxu1 %v4535_v35  ;;  %v231_v35 = vld [vmem:[%s4892_s26 + $0xc0] sm:$0xff] }
  0x7c   : > { %4537 = vmatprep.subr.bf16.mxu0 %v4746_v0  ;;  %4563 = vmatprep.subr.bf16.mxu1 %v4746_v0 }
  0x7f   : > { %4539 = vmatpush1.bf16.msra.mxu0 %v4538_v38  ;;  %4579 = vmatpush1.bf16.msra.mxu1 %v4538_v38  ;;  %v746_v38 = vld [vmem:[%s4892_s26 + $0x10d8] sm:$0xff] }
  0x80   : > { %4540 = vmatprep.subr.bf16.mxu0 %v4746_v0  ;;  %4564 = vmatprep.subr.bf16.mxu1 %v4746_v0 }
  0x83   : > { %4542 = vmatpush1.bf16.msra.mxu0 %v4541_v41  ;;  %4580 = vmatpush1.bf16.msra.mxu1 %v4541_v41  ;;  %v236_v41 = vld [vmem:[%s4892_s26 + $0xe8] sm:$0xff] }
  0x84   : > { %4543 = vmatprep.subr.bf16.mxu0 %v4746_v0  ;;  %4565 = vmatprep.subr.bf16.mxu1 %v4746_v0 }
  0x87   : > { %4545 = vmatpush1.bf16.msra.mxu0 %v4544_v44  ;;  %4581 = vmatpush1.bf16.msra.mxu1 %v4544_v44  ;;  %v747_v44 = vld [vmem:[%s4892_s26 + $0x10e0] sm:$0xff] }
  0x88   : > { %4546 = vmatprep.subr.bf16.mxu0 %v4746_v0  ;;  %4566 = vmatprep.subr.bf16.mxu1 %v4746_v0 }
  0x8b   : > { %4548 = vmatpush1.bf16.msra.mxu0 %v4547_v47  ;;  %4582 = vmatpush1.bf16.msra.mxu1 %v4547_v47  ;;  %v237_v47 = vld [vmem:[%s4892_s26 + $0xf0] sm:$0xff] }
  0x8c   : > { %4549 = vmatprep.subr.bf16.mxu0 %v4746_v0  ;;  %4567 = vmatprep.subr.bf16.mxu1 %v4746_v0  ;;  %v725_v0 = vld [vmem:[%s4892_s26 + $0x1030] sm:$0xff] }
  0x8f   : > { %4551 = vmatpush1.bf16.msra.mxu0 %v4550_v50  ;;  %4583 = vmatpush1.bf16.msra.mxu1 %v4550_v50  ;;  %v752_v50 = vld [vmem:[%s4892_s26 + $0x1108] sm:$0xff] }
  0x92   : > { %1335 = vmatmul.mubr.f32.vlgmr.msra.gmra.mrb[0].mxu0 %v207_v51  ;;  %2615 = vmatmul.mubr.f32.vlgmr.msra.gmra.mrb[0].mxu1 %v719_v52  ;;  %v239_v51 = vld [vmem:[%s4892_s26 + $0x100] sm:$0xff] }
  0x93   : > { %1339 = vmatprep.mubr.f32.mxu0 %v210_v53  ;;  %2619 = vmatprep.mubr.f32.mxu1 %v722_v54  ;;  %v751_v52 = vld [vmem:[%s4892_s26 + $0x1100] sm:$0xff]  ;;  %v242_v53 = vld [vmem:[%s4892_s26 + $0x118] sm:$0xff] }
  0x94   : > { %v754_v54 = vld [vmem:[%s4892_s26 + $0x1118] sm:$0xff] }
  0x96   : > { %1340 = vmatmul.mubr.f32.gmra.mrb[2].mxu0 %v209_v55  ;;  %2620 = vmatmul.mubr.f32.gmra.mrb[2].mxu1 %v721_v56  ;;  %v241_v55 = vld [vmem:[%s4892_s26 + $0x110] sm:$0xff] }
  0x97   : > { %1344 = vmatprep.mubr.f32.mxu0 %v212_v57  ;;  %2624 = vmatprep.mubr.f32.mxu1 %v724_v58  ;;  %v753_v56 = vld [vmem:[%s4892_s26 + $0x1110] sm:$0xff]  ;;  %v244_v57 = vld [vmem:[%s4892_s26 + $0x128] sm:$0xff] }
  0x98   : > { %v756_v58 = vld [vmem:[%s4892_s26 + $0x1128] sm:$0xff] }
  0x9a   : > { %1345 = vmatmul.mubr.f32.gmra.mrb[4].mxu0 %v211_v59  ;;  %2625 = vmatmul.mubr.f32.gmra.mrb[4].mxu1 %v723_v60  ;;  %v243_v59 = vld [vmem:[%s4892_s26 + $0x120] sm:$0xff] }
  0x9b   : > { %1349 = vmatprep.mubr.f32.mxu0 %v214_v61  ;;  %2629 = vmatprep.mubr.f32.mxu1 %v726_v62  ;;  %v755_v60 = vld [vmem:[%s4892_s26 + $0x1120] sm:$0xff]  ;;  %v246_v61 = vld [vmem:[%s4892_s26 + $0x138] sm:$0xff] }
  0x9c   : > { %v758_v62 = vld [vmem:[%s4892_s26 + $0x1138] sm:$0xff] }
  0x9e   : > { %1350 = vmatmul.mubr.f32.gmra.mrb[6].mxu0 %v213_v63  ;;  %2630 = vmatmul.mubr.f32.gmra.mrb[6].mxu1 %v725_v0  ;;  %v245_v63 = vld [vmem:[%s4892_s26 + $0x130] sm:$0xff] }
  0x9f   : > { %1354 = vmatprep.mubr.f32.mxu0 %v216_v1  ;;  %2634 = vmatprep.mubr.f32.mxu1 %v728_v2  ;;  %v757_v0 = vld [vmem:[%s4892_s26 + $0x1130] sm:$0xff]  ;;  %v248_v1 = vld [vmem:[%s4892_s26 + $0x148] sm:$0xff] }
  0xa0   : > { %v760_v2 = vld [vmem:[%s4892_s26 + $0x1148] sm:$0xff] }
  0xa2   : > { %1355 = vmatmul.mubr.f32.gmra.mrb[8].mxu0 %v215_v3  ;;  %2635 = vmatmul.mubr.f32.gmra.mrb[8].mxu1 %v727_v4  ;;  %v247_v3 = vld [vmem:[%s4892_s26 + $0x140] sm:$0xff] }
  0xa3   : > { %1359 = vmatprep.mubr.f32.mxu0 %v218_v5  ;;  %2639 = vmatprep.mubr.f32.mxu1 %v730_v6  ;;  %v759_v4 = vld [vmem:[%s4892_s26 + $0x1140] sm:$0xff]  ;;  %v250_v5 = vld [vmem:[%s4892_s26 + $0x158] sm:$0xff] }
  0xa4   : > { %v762_v6 = vld [vmem:[%s4892_s26 + $0x1158] sm:$0xff] }
  0xa6   : > { %1360 = vmatmul.mubr.f32.gmra.mrb[10].mxu0 %v217_v7  ;;  %2640 = vmatmul.mubr.f32.gmra.mrb[10].mxu1 %v729_v8  ;;  %v249_v7 = vld [vmem:[%s4892_s26 + $0x150] sm:$0xff] }
  0xa7   : > { %1364 = vmatprep.mubr.f32.mxu0 %v220_v9  ;;  %2644 = vmatprep.mubr.f32.mxu1 %v732_v10  ;;  %v761_v8 = vld [vmem:[%s4892_s26 + $0x1150] sm:$0xff]  ;;  %v252_v9 = vld [vmem:[%s4892_s26 + $0x168] sm:$0xff] }
  0xa8   : > { %v764_v10 = vld [vmem:[%s4892_s26 + $0x1168] sm:$0xff] }
  0xaa   : > { %1365 = vmatmul.mubr.f32.gmra.mrb[12].mxu0 %v219_v11  ;;  %2645 = vmatmul.mubr.f32.gmra.mrb[12].mxu1 %v731_v12  ;;  %v251_v11 = vld [vmem:[%s4892_s26 + $0x160] sm:$0xff] }
  0xab   : > { %1369 = vmatprep.mubr.f32.mxu0 %v222_v13  ;;  %2649 = vmatprep.mubr.f32.mxu1 %v734_v14  ;;  %v763_v12 = vld [vmem:[%s4892_s26 + $0x1160] sm:$0xff]  ;;  %v254_v13 = vld [vmem:[%s4892_s26 + $0x178] sm:$0xff] }
  0xac   : > { %v766_v14 = vld [vmem:[%s4892_s26 + $0x1178] sm:$0xff] }
  0xae   : > { %1370 = vmatmul.mubr.f32.gmra.mrb[14].mxu0 %v221_v15  ;;  %2650 = vmatmul.mubr.f32.gmra.mrb[14].mxu1 %v733_v16  ;;  %v253_v15 = vld [vmem:[%s4892_s26 + $0x170] sm:$0xff] }
  0xaf   : > { %1374 = vmatprep.mubr.f32.mxu0 %v224_v17  ;;  %2654 = vmatprep.mubr.f32.mxu1 %v736_v18  ;;  %v765_v16 = vld [vmem:[%s4892_s26 + $0x1170] sm:$0xff]  ;;  %v256_v17 = vld [vmem:[%s4892_s26 + $0x188] sm:$0xff] }
  0xb0   : > { %v768_v18 = vld [vmem:[%s4892_s26 + $0x1188] sm:$0xff] }
  0xb2   : > { %1375 = vmatmul.mubr.f32.gmra.mrb[16].mxu0 %v223_v19  ;;  %2655 = vmatmul.mubr.f32.gmra.mrb[16].mxu1 %v735_v20  ;;  %v255_v19 = vld [vmem:[%s4892_s26 + $0x180] sm:$0xff] }
  0xb3   : > { %1379 = vmatprep.mubr.f32.mxu0 %v226_v21  ;;  %2659 = vmatprep.mubr.f32.mxu1 %v738_v22  ;;  %v767_v20 = vld [vmem:[%s4892_s26 + $0x1180] sm:$0xff]  ;;  %v258_v21 = vld [vmem:[%s4892_s26 + $0x198] sm:$0xff] }
  0xb4   : > { %v770_v22 = vld [vmem:[%s4892_s26 + $0x1198] sm:$0xff] }
  0xb6   : > { %1380 = vmatmul.mubr.f32.gmra.mrb[18].mxu0 %v225_v23  ;;  %2660 = vmatmul.mubr.f32.gmra.mrb[18].mxu1 %v737_v24  ;;  %v257_v23 = vld [vmem:[%s4892_s26 + $0x190] sm:$0xff] }
  0xb7   : > { %1384 = vmatprep.mubr.f32.mxu0 %v228_v25  ;;  %2664 = vmatprep.mubr.f32.mxu1 %v740_v26  ;;  %v769_v24 = vld [vmem:[%s4892_s26 + $0x1190] sm:$0xff]  ;;  %v260_v25 = vld [vmem:[%s4892_s26 + $0x1a8] sm:$0xff] }
  0xb8   : > { %v772_v26 = vld [vmem:[%s4892_s26 + $0x11a8] sm:$0xff] }
  0xba   : > { %1385 = vmatmul.mubr.f32.gmra.mrb[20].mxu0 %v227_v27  ;;  %2665 = vmatmul.mubr.f32.gmra.mrb[20].mxu1 %v739_v28  ;;  %v259_v27 = vld [vmem:[%s4892_s26 + $0x1a0] sm:$0xff] }
  0xbb   : > { %1389 = vmatprep.mubr.f32.mxu0 %v230_v29  ;;  %2669 = vmatprep.mubr.f32.mxu1 %v742_v30  ;;  %v771_v28 = vld [vmem:[%s4892_s26 + $0x11a0] sm:$0xff]  ;;  %v262_v29 = vld [vmem:[%s4892_s26 + $0x1b8] sm:$0xff] }
  0xbc   : > { %v774_v30 = vld [vmem:[%s4892_s26 + $0x11b8] sm:$0xff] }
  0xbe   : > { %1390 = vmatmul.mubr.f32.gmra.mrb[22].mxu0 %v229_v31  ;;  %2670 = vmatmul.mubr.f32.gmra.mrb[22].mxu1 %v741_v32  ;;  %v261_v31 = vld [vmem:[%s4892_s26 + $0x1b0] sm:$0xff] }
  0xbf   : > { %1394 = vmatprep.mubr.f32.mxu0 %v232_v33  ;;  %2674 = vmatprep.mubr.f32.mxu1 %v744_v34  ;;  %v773_v32 = vld [vmem:[%s4892_s26 + $0x11b0] sm:$0xff]  ;;  %v264_v33 = vld [vmem:[%s4892_s26 + $0x1c8] sm:$0xff] }
  0xc0   : > { %v776_v34 = vld [vmem:[%s4892_s26 + $0x11c8] sm:$0xff] }
  0xc2   : > { %1395 = vmatmul.mubr.f32.gmra.mrb[24].mxu0 %v231_v35  ;;  %2675 = vmatmul.mubr.f32.gmra.mrb[24].mxu1 %v743_v36  ;;  %v263_v35 = vld [vmem:[%s4892_s26 + $0x1c0] sm:$0xff] }
  0xc3   : > { %1399 = vmatprep.mubr.f32.mxu0 %v234_v37  ;;  %2679 = vmatprep.mubr.f32.mxu1 %v746_v38  ;;  %v775_v36 = vld [vmem:[%s4892_s26 + $0x11c0] sm:$0xff]  ;;  %v266_v37 = vld [vmem:[%s4892_s26 + $0x1d8] sm:$0xff] }
  0xc4   : > { %v778_v38 = vld [vmem:[%s4892_s26 + $0x11d8] sm:$0xff] }
  0xc6   : > { %1400 = vmatmul.mubr.f32.gmra.mrb[26].mxu0 %v233_v39  ;;  %2680 = vmatmul.mubr.f32.gmra.mrb[26].mxu1 %v745_v40  ;;  %v265_v39 = vld [vmem:[%s4892_s26 + $0x1d0] sm:$0xff] }
  0xc7   : > { %1404 = vmatprep.mubr.f32.mxu0 %v236_v41  ;;  %2684 = vmatprep.mubr.f32.mxu1 %v748_v42  ;;  %v777_v40 = vld [vmem:[%s4892_s26 + $0x11d0] sm:$0xff]  ;;  %v268_v41 = vld [vmem:[%s4892_s26 + $0x1e8] sm:$0xff] }
  0xc8   : > { %v780_v42 = vld [vmem:[%s4892_s26 + $0x11e8] sm:$0xff] }
  0xca   : > { %1405 = vmatmul.mubr.f32.gmra.mrb[28].mxu0 %v235_v43  ;;  %2685 = vmatmul.mubr.f32.gmra.mrb[28].mxu1 %v747_v44  ;;  %v267_v43 = vld [vmem:[%s4892_s26 + $0x1e0] sm:$0xff] }
  0xcb   : > { %1409 = vmatprep.mubr.f32.mxu0 %v238_v45  ;;  %2689 = vmatprep.mubr.f32.mxu1 %v750_v46  ;;  %v779_v44 = vld [vmem:[%s4892_s26 + $0x11e0] sm:$0xff]  ;;  %v270_v45 = vld [vmem:[%s4892_s26 + $0x1f8] sm:$0xff] }
  0xcc   : > { %v782_v46 = vld [vmem:[%s4892_s26 + $0x11f8] sm:$0xff] }
  0xce   : > { %1410 = vmatmul.mubr.f32.gmra.mrb[30].mxu0 %v237_v47  ;;  %2690 = vmatmul.mubr.f32.gmra.mrb[30].mxu1 %v749_v48  ;;  %v269_v47 = vld [vmem:[%s4892_s26 + $0x1f0] sm:$0xff] }
  0xcf   : > { %1414 = vmatprep.mubr.f32.mxu0 %v240_v49  ;;  %2694 = vmatprep.mubr.f32.mxu1 %v752_v50  ;;  %v781_v48 = vld [vmem:[%s4892_s26 + $0x11f0] sm:$0xff]  ;;  %v272_v49 = vld [vmem:[%s4892_s26 + $0x208] sm:$0xff] }
  0xd0   : > { %v784_v50 = vld [vmem:[%s4892_s26 + $0x1208] sm:$0xff] }
  0xd2   : > { %1415 = vmatmul.mubr.f32.gmra.mrb[32].mxu0 %v239_v51  ;;  %2695 = vmatmul.mubr.f32.gmra.mrb[32].mxu1 %v751_v52  ;;  %v271_v51 = vld [vmem:[%s4892_s26 + $0x200] sm:$0xff] }
  0xd3   : > { %1419 = vmatprep.mubr.f32.mxu0 %v242_v53  ;;  %2699 = vmatprep.mubr.f32.mxu1 %v754_v54  ;;  %v783_v52 = vld [vmem:[%s4892_s26 + $0x1200] sm:$0xff]  ;;  %v274_v53 = vld [vmem:[%s4892_s26 + $0x218] sm:$0xff] }
  0xd4   : > { %v786_v54 = vld [vmem:[%s4892_s26 + $0x1218] sm:$0xff] }
  0xd6   : > { %1420 = vmatmul.mubr.f32.gmra.mrb[34].mxu0 %v241_v55  ;;  %2700 = vmatmul.mubr.f32.gmra.mrb[34].mxu1 %v753_v56  ;;  %v273_v55 = vld [vmem:[%s4892_s26 + $0x210] sm:$0xff] }
  0xd7   : > { %1424 = vmatprep.mubr.f32.mxu0 %v244_v57  ;;  %2704 = vmatprep.mubr.f32.mxu1 %v756_v58  ;;  %v785_v56 = vld [vmem:[%s4892_s26 + $0x1210] sm:$0xff]  ;;  %v276_v57 = vld [vmem:[%s4892_s26 + $0x228] sm:$0xff] }
  0xd8   : > { %v788_v58 = vld [vmem:[%s4892_s26 + $0x1228] sm:$0xff] }
  0xda   : > { %1425 = vmatmul.mubr.f32.gmra.mrb[36].mxu0 %v243_v59  ;;  %2705 = vmatmul.mubr.f32.gmra.mrb[36].mxu1 %v755_v60  ;;  %v275_v59 = vld [vmem:[%s4892_s26 + $0x220] sm:$0xff] }
  0xdb   : > { %1429 = vmatprep.mubr.f32.mxu0 %v246_v61  ;;  %2709 = vmatprep.mubr.f32.mxu1 %v758_v62  ;;  %v787_v60 = vld [vmem:[%s4892_s26 + $0x1220] sm:$0xff]  ;;  %v278_v61 = vld [vmem:[%s4892_s26 + $0x238] sm:$0xff] }
  0xdc   : > { %v790_v62 = vld [vmem:[%s4892_s26 + $0x1238] sm:$0xff] }
  0xde   : > { %1430 = vmatmul.mubr.f32.gmra.mrb[38].mxu0 %v245_v63  ;;  %2710 = vmatmul.mubr.f32.gmra.mrb[38].mxu1 %v757_v0  ;;  %v277_v63 = vld [vmem:[%s4892_s26 + $0x230] sm:$0xff] }
  0xdf   : > { %1434 = vmatprep.mubr.f32.mxu0 %v248_v1  ;;  %2714 = vmatprep.mubr.f32.mxu1 %v760_v2  ;;  %v789_v0 = vld [vmem:[%s4892_s26 + $0x1230] sm:$0xff]  ;;  %v280_v1 = vld [vmem:[%s4892_s26 + $0x248] sm:$0xff] }
  0xe0   : > { %v792_v2 = vld [vmem:[%s4892_s26 + $0x1248] sm:$0xff] }
  0xe2   : > { %1435 = vmatmul.mubr.f32.gmra.mrb[40].mxu0 %v247_v3  ;;  %2715 = vmatmul.mubr.f32.gmra.mrb[40].mxu1 %v759_v4  ;;  %v279_v3 = vld [vmem:[%s4892_s26 + $0x240] sm:$0xff] }
  0xe3   : > { %1439 = vmatprep.mubr.f32.mxu0 %v250_v5  ;;  %2719 = vmatprep.mubr.f32.mxu1 %v762_v6  ;;  %v791_v4 = vld [vmem:[%s4892_s26 + $0x1240] sm:$0xff]  ;;  %v282_v5 = vld [vmem:[%s4892_s26 + $0x258] sm:$0xff] }
  0xe4   : > { %v794_v6 = vld [vmem:[%s4892_s26 + $0x1258] sm:$0xff] }
  0xe6   : > { %1440 = vmatmul.mubr.f32.gmra.mrb[42].mxu0 %v249_v7  ;;  %2720 = vmatmul.mubr.f32.gmra.mrb[42].mxu1 %v761_v8  ;;  %v281_v7 = vld [vmem:[%s4892_s26 + $0x250] sm:$0xff] }
  0xe7   : > { %1444 = vmatprep.mubr.f32.mxu0 %v252_v9  ;;  %2724 = vmatprep.mubr.f32.mxu1 %v764_v10  ;;  %v793_v8 = vld [vmem:[%s4892_s26 + $0x1250] sm:$0xff]  ;;  %v284_v9 = vld [vmem:[%s4892_s26 + $0x268] sm:$0xff] }
  0xe8   : > { %v796_v10 = vld [vmem:[%s4892_s26 + $0x1268] sm:$0xff] }
  0xea   : > { %1445 = vmatmul.mubr.f32.gmra.mrb[44].mxu0 %v251_v11  ;;  %2725 = vmatmul.mubr.f32.gmra.mrb[44].mxu1 %v763_v12  ;;  %v283_v11 = vld [vmem:[%s4892_s26 + $0x260] sm:$0xff] }
  0xeb   : > { %1449 = vmatprep.mubr.f32.mxu0 %v254_v13  ;;  %2729 = vmatprep.mubr.f32.mxu1 %v766_v14  ;;  %v795_v12 = vld [vmem:[%s4892_s26 + $0x1260] sm:$0xff]  ;;  %v286_v13 = vld [vmem:[%s4892_s26 + $0x278] sm:$0xff] }
  0xec   : > { %v798_v14 = vld [vmem:[%s4892_s26 + $0x1278] sm:$0xff] }
  0xee   : > { %1450 = vmatmul.mubr.f32.gmra.mrb[46].mxu0 %v253_v15  ;;  %2730 = vmatmul.mubr.f32.gmra.mrb[46].mxu1 %v765_v16  ;;  %v285_v15 = vld [vmem:[%s4892_s26 + $0x270] sm:$0xff] }
  0xef   : > { %1454 = vmatprep.mubr.f32.mxu0 %v256_v17  ;;  %2734 = vmatprep.mubr.f32.mxu1 %v768_v18  ;;  %v797_v16 = vld [vmem:[%s4892_s26 + $0x1270] sm:$0xff]  ;;  %v288_v17 = vld [vmem:[%s4892_s26 + $0x288] sm:$0xff] }
  0xf0   : > { %v800_v18 = vld [vmem:[%s4892_s26 + $0x1288] sm:$0xff] }
  0xf2   : > { %1455 = vmatmul.mubr.f32.gmra.mrb[48].mxu0 %v255_v19  ;;  %2735 = vmatmul.mubr.f32.gmra.mrb[48].mxu1 %v767_v20  ;;  %v287_v19 = vld [vmem:[%s4892_s26 + $0x280] sm:$0xff] }
  0xf3   : > { %1459 = vmatprep.mubr.f32.mxu0 %v258_v21  ;;  %2739 = vmatprep.mubr.f32.mxu1 %v770_v22  ;;  %v799_v20 = vld [vmem:[%s4892_s26 + $0x1280] sm:$0xff]  ;;  %v290_v21 = vld [vmem:[%s4892_s26 + $0x298] sm:$0xff] }
  0xf4   : > { %v802_v22 = vld [vmem:[%s4892_s26 + $0x1298] sm:$0xff] }
  0xf6   : > { %1460 = vmatmul.mubr.f32.gmra.mrb[50].mxu0 %v257_v23  ;;  %2740 = vmatmul.mubr.f32.gmra.mrb[50].mxu1 %v769_v24  ;;  %v289_v23 = vld [vmem:[%s4892_s26 + $0x290] sm:$0xff] }
  0xf7   : > { %1464 = vmatprep.mubr.f32.mxu0 %v260_v25  ;;  %2744 = vmatprep.mubr.f32.mxu1 %v772_v26  ;;  %v801_v24 = vld [vmem:[%s4892_s26 + $0x1290] sm:$0xff]  ;;  %v292_v25 = vld [vmem:[%s4892_s26 + $0x2a8] sm:$0xff] }
  0xf8   : > { %v804_v26 = vld [vmem:[%s4892_s26 + $0x12a8] sm:$0xff] }
  0xfa   : > { %1465 = vmatmul.mubr.f32.gmra.mrb[52].mxu0 %v259_v27  ;;  %2745 = vmatmul.mubr.f32.gmra.mrb[52].mxu1 %v771_v28  ;;  %v291_v27 = vld [vmem:[%s4892_s26 + $0x2a0] sm:$0xff] }
  0xfb   : > { %1469 = vmatprep.mubr.f32.mxu0 %v262_v29  ;;  %2749 = vmatprep.mubr.f32.mxu1 %v774_v30  ;;  %v803_v28 = vld [vmem:[%s4892_s26 + $0x12a0] sm:$0xff]  ;;  %v294_v29 = vld [vmem:[%s4892_s26 + $0x2b8] sm:$0xff] }
  0xfc   : > { %v806_v30 = vld [vmem:[%s4892_s26 + $0x12b8] sm:$0xff] }
  0xfe   : > { %1470 = vmatmul.mubr.f32.gmra.mrb[54].mxu0 %v261_v31  ;;  %2750 = vmatmul.mubr.f32.gmra.mrb[54].mxu1 %v773_v32  ;;  %v293_v31 = vld [vmem:[%s4892_s26 + $0x2b0] sm:$0xff] }
  0xff   : > { %1474 = vmatprep.mubr.f32.mxu0 %v264_v33  ;;  %2754 = vmatprep.mubr.f32.mxu1 %v776_v34  ;;  %v805_v32 = vld [vmem:[%s4892_s26 + $0x12b0] sm:$0xff]  ;;  %v296_v33 = vld [vmem:[%s4892_s26 + $0x2c8] sm:$0xff] }
 0x100   : > { %v808_v34 = vld [vmem:[%s4892_s26 + $0x12c8] sm:$0xff] }
 0x102   : > { %1475 = vmatmul.mubr.f32.gmra.mrb[56].mxu0 %v263_v35  ;;  %2755 = vmatmul.mubr.f32.gmra.mrb[56].mxu1 %v775_v36  ;;  %v295_v35 = vld [vmem:[%s4892_s26 + $0x2c0] sm:$0xff] }
 0x103   : > { %1479 = vmatprep.mubr.f32.mxu0 %v266_v37  ;;  %2759 = vmatprep.mubr.f32.mxu1 %v778_v38  ;;  %v807_v36 = vld [vmem:[%s4892_s26 + $0x12c0] sm:$0xff]  ;;  %v298_v37 = vld [vmem:[%s4892_s26 + $0x2d8] sm:$0xff] }
 0x104   : > { %v810_v38 = vld [vmem:[%s4892_s26 + $0x12d8] sm:$0xff] }
 0x106   : > { %1480 = vmatmul.mubr.f32.gmra.mrb[58].mxu0 %v265_v39  ;;  %2760 = vmatmul.mubr.f32.gmra.mrb[58].mxu1 %v777_v40  ;;  %v297_v39 = vld [vmem:[%s4892_s26 + $0x2d0] sm:$0xff] }
 0x107   : > { %1484 = vmatprep.mubr.f32.mxu0 %v268_v41  ;;  %2764 = vmatprep.mubr.f32.mxu1 %v780_v42  ;;  %v809_v40 = vld [vmem:[%s4892_s26 + $0x12d0] sm:$0xff]  ;;  %v300_v41 = vld [vmem:[%s4892_s26 + $0x2e8] sm:$0xff] }
 0x108   : > { %v812_v42 = vld [vmem:[%s4892_s26 + $0x12e8] sm:$0xff] }
 0x10a   : > { %1485 = vmatmul.mubr.f32.gmra.mrb[60].mxu0 %v267_v43  ;;  %2765 = vmatmul.mubr.f32.gmra.mrb[60].mxu1 %v779_v44  ;;  %v299_v43 = vld [vmem:[%s4892_s26 + $0x2e0] sm:$0xff] }
 0x10b   : > { %1489 = vmatprep.mubr.f32.mxu0 %v270_v45  ;;  %2769 = vmatprep.mubr.f32.mxu1 %v782_v46  ;;  %v811_v44 = vld [vmem:[%s4892_s26 + $0x12e0] sm:$0xff]  ;;  %v302_v45 = vld [vmem:[%s4892_s26 + $0x2f8] sm:$0xff] }
 0x10c   : > { %v814_v46 = vld [vmem:[%s4892_s26 + $0x12f8] sm:$0xff] }
 0x10e   : > { %1490 = vmatmul.mubr.f32.gmra.mrb[62].mxu0 %v269_v47  ;;  %2770 = vmatmul.mubr.f32.gmra.mrb[62].mxu1 %v781_v48  ;;  %v301_v47 = vld [vmem:[%s4892_s26 + $0x2f0] sm:$0xff] }
 0x10f   : > { %1494 = vmatprep.mubr.f32.mxu0 %v272_v49  ;;  %2774 = vmatprep.mubr.f32.mxu1 %v784_v50  ;;  %v813_v48 = vld [vmem:[%s4892_s26 + $0x12f0] sm:$0xff]  ;;  %v304_v49 = vld [vmem:[%s4892_s26 + $0x308] sm:$0xff] }
 0x110   : > { %v816_v50 = vld [vmem:[%s4892_s26 + $0x1308] sm:$0xff] }
 0x112   : > { %1495 = vmatmul.mubr.f32.gmra.mrb[64].mxu0 %v271_v51  ;;  %2775 = vmatmul.mubr.f32.gmra.mrb[64].mxu1 %v783_v52  ;;  %v303_v51 = vld [vmem:[%s4892_s26 + $0x300] sm:$0xff] }
 0x113   : > { %1499 = vmatprep.mubr.f32.mxu0 %v274_v53  ;;  %2779 = vmatprep.mubr.f32.mxu1 %v786_v54  ;;  %v815_v52 = vld [vmem:[%s4892_s26 + $0x1300] sm:$0xff]  ;;  %v306_v53 = vld [vmem:[%s4892_s26 + $0x318] sm:$0xff] }
 0x114   : > { %v818_v54 = vld [vmem:[%s4892_s26 + $0x1318] sm:$0xff] }
 0x116   : > { %1500 = vmatmul.mubr.f32.gmra.mrb[66].mxu0 %v273_v55  ;;  %2780 = vmatmul.mubr.f32.gmra.mrb[66].mxu1 %v785_v56  ;;  %v305_v55 = vld [vmem:[%s4892_s26 + $0x310] sm:$0xff] }
 0x117   : > { %1504 = vmatprep.mubr.f32.mxu0 %v276_v57  ;;  %2784 = vmatprep.mubr.f32.mxu1 %v788_v58  ;;  %v817_v56 = vld [vmem:[%s4892_s26 + $0x1310] sm:$0xff]  ;;  %v308_v57 = vld [vmem:[%s4892_s26 + $0x328] sm:$0xff] }
 0x118   : > { %v820_v58 = vld [vmem:[%s4892_s26 + $0x1328] sm:$0xff] }
 0x11a   : > { %1505 = vmatmul.mubr.f32.gmra.mrb[68].mxu0 %v275_v59  ;;  %2785 = vmatmul.mubr.f32.gmra.mrb[68].mxu1 %v787_v60  ;;  %v307_v59 = vld [vmem:[%s4892_s26 + $0x320] sm:$0xff] }
 0x11b   : > { %1509 = vmatprep.mubr.f32.mxu0 %v278_v61  ;;  %2789 = vmatprep.mubr.f32.mxu1 %v790_v62  ;;  %v819_v60 = vld [vmem:[%s4892_s26 + $0x1320] sm:$0xff]  ;;  %v310_v61 = vld [vmem:[%s4892_s26 + $0x338] sm:$0xff] }
 0x11c   : > { %v822_v62 = vld [vmem:[%s4892_s26 + $0x1338] sm:$0xff] }
 0x11e   : > { %1510 = vmatmul.mubr.f32.gmra.mrb[70].mxu0 %v277_v63  ;;  %2790 = vmatmul.mubr.f32.gmra.mrb[70].mxu1 %v789_v0  ;;  %v309_v63 = vld [vmem:[%s4892_s26 + $0x330] sm:$0xff] }
 0x11f   : > { %1514 = vmatprep.mubr.f32.mxu0 %v280_v1  ;;  %2794 = vmatprep.mubr.f32.mxu1 %v792_v2  ;;  %v821_v0 = vld [vmem:[%s4892_s26 + $0x1330] sm:$0xff]  ;;  %v312_v1 = vld [vmem:[%s4892_s26 + $0x348] sm:$0xff] }
 0x120   : > { %v824_v2 = vld [vmem:[%s4892_s26 + $0x1348] sm:$0xff] }
 0x122   : > { %1515 = vmatmul.mubr.f32.gmra.mrb[72].mxu0 %v279_v3  ;;  %2795 = vmatmul.mubr.f32.gmra.mrb[72].mxu1 %v791_v4  ;;  %v311_v3 = vld [vmem:[%s4892_s26 + $0x340] sm:$0xff] }
 0x123   : > { %1519 = vmatprep.mubr.f32.mxu0 %v282_v5  ;;  %2799 = vmatprep.mubr.f32.mxu1 %v794_v6  ;;  %v823_v4 = vld [vmem:[%s4892_s26 + $0x1340] sm:$0xff]  ;;  %v314_v5 = vld [vmem:[%s4892_s26 + $0x358] sm:$0xff] }
 0x124   : > { %v826_v6 = vld [vmem:[%s4892_s26 + $0x1358] sm:$0xff] }
 0x126   : > { %1520 = vmatmul.mubr.f32.gmra.mrb[74].mxu0 %v281_v7  ;;  %2800 = vmatmul.mubr.f32.gmra.mrb[74].mxu1 %v793_v8  ;;  %v5246_v7 = vld [vmem:[#allocation4] ss:$0 sm:$0xff]  ;;  %v313_v8 = vld [vmem:[%s4892_s26 + $0x350] sm:$0xff] }
 0x127   : > { %1524 = vmatprep.mubr.f32.mxu0 %v284_v9  ;;  %2804 = vmatprep.mubr.f32.mxu1 %v796_v10  ;;  %v825_v9 = vld [vmem:[%s4892_s26 + $0x1350] sm:$0xff]  ;;  %v316_v10 = vld [vmem:[%s4892_s26 + $0x368] sm:$0xff] }
 0x12a   : > { %1525 = vmatmul.mubr.f32.gmra.mrb[76].mxu0 %v283_v11  ;;  %2805 = vmatmul.mubr.f32.gmra.mrb[76].mxu1 %v795_v12  ;;  %v828_v11 = vld [vmem:[%s4892_s26 + $0x1368] sm:$0xff] }
 0x12b   : > { %1529 = vmatprep.mubr.f32.mxu0 %v286_v13  ;;  %2809 = vmatprep.mubr.f32.mxu1 %v798_v14 }
 0x12e   : > { %1530 = vmatmul.mubr.f32.gmra.mrb[78].mxu0 %v285_v15  ;;  %2810 = vmatmul.mubr.f32.gmra.mrb[78].mxu1 %v797_v16 }
 0x12f   : > { %1534 = vmatprep.mubr.f32.mxu0 %v288_v17  ;;  %2814 = vmatprep.mubr.f32.mxu1 %v800_v18  ;;  %v315_v18 = vld [vmem:[%s4892_s26 + $0x360] sm:$0xff] }
 0x132   : > { %1535 = vmatmul.mubr.f32.gmra.mrb[80].mxu0 %v287_v19  ;;  %2815 = vmatmul.mubr.f32.gmra.mrb[80].mxu1 %v799_v20  ;;  %v827_v19 = vld [vmem:[%s4892_s26 + $0x1360] sm:$0xff]  ;;  %v318_v20 = vld [vmem:[%s4892_s26 + $0x378] sm:$0xff] }
 0x133   : > { %1539 = vmatprep.mubr.f32.mxu0 %v290_v21  ;;  %2819 = vmatprep.mubr.f32.mxu1 %v802_v22  ;;  %v830_v21 = vld [vmem:[%s4892_s26 + $0x1378] sm:$0xff] }
 0x136   : > { %1540 = vmatmul.mubr.f32.gmra.mrb[82].mxu0 %v289_v23  ;;  %2820 = vmatmul.mubr.f32.gmra.mrb[82].mxu1 %v801_v24 }
 0x137   : > { %1544 = vmatprep.mubr.f32.mxu0 %v292_v25  ;;  %2824 = vmatprep.mubr.f32.mxu1 %v804_v26 }
 0x13a   : > { %1545 = vmatmul.mubr.f32.gmra.mrb[84].mxu0 %v291_v27  ;;  %2825 = vmatmul.mubr.f32.gmra.mrb[84].mxu1 %v803_v28  ;;  %v317_v28 = vld [vmem:[%s4892_s26 + $0x370] sm:$0xff] }
 0x13b   : > { %1549 = vmatprep.mubr.f32.mxu0 %v294_v29  ;;  %2829 = vmatprep.mubr.f32.mxu1 %v806_v30  ;;  %v829_v29 = vld [vmem:[%s4892_s26 + $0x1370] sm:$0xff]  ;;  %v320_v30 = vld [vmem:[%s4892_s26 + $0x388] sm:$0xff] }
 0x13e   : > { %1550 = vmatmul.mubr.f32.gmra.mrb[86].mxu0 %v293_v31  ;;  %2830 = vmatmul.mubr.f32.gmra.mrb[86].mxu1 %v805_v32  ;;  %v832_v31 = vld [vmem:[%s4892_s26 + $0x1388] sm:$0xff] }
 0x13f   : > { %1554 = vmatprep.mubr.f32.mxu0 %v296_v33  ;;  %2834 = vmatprep.mubr.f32.mxu1 %v808_v34 }
 0x142   : > { %1555 = vmatmul.mubr.f32.gmra.mrb[88].mxu0 %v295_v35  ;;  %2835 = vmatmul.mubr.f32.gmra.mrb[88].mxu1 %v807_v36 }
 0x143   : > { %1559 = vmatprep.mubr.f32.mxu0 %v298_v37  ;;  %2839 = vmatprep.mubr.f32.mxu1 %v810_v38  ;;  %v319_v38 = vld [vmem:[%s4892_s26 + $0x380] sm:$0xff] }
 0x146   : > { %1560 = vmatmul.mubr.f32.gmra.mrb[90].mxu0 %v297_v39  ;;  %2840 = vmatmul.mubr.f32.gmra.mrb[90].mxu1 %v809_v40  ;;  %v831_v39 = vld [vmem:[%s4892_s26 + $0x1380] sm:$0xff]  ;;  %v322_v40 = vld [vmem:[%s4892_s26 + $0x398] sm:$0xff] }
 0x147   : > { %1564 = vmatprep.mubr.f32.mxu0 %v300_v41  ;;  %2844 = vmatprep.mubr.f32.mxu1 %v812_v42  ;;  %v834_v41 = vld [vmem:[%s4892_s26 + $0x1398] sm:$0xff] }
 0x14a   : > { %1565 = vmatmul.mubr.f32.gmra.mrb[92].mxu0 %v299_v43  ;;  %2845 = vmatmul.mubr.f32.gmra.mrb[92].mxu1 %v811_v44 }
 0x14b   : > { %1569 = vmatprep.mubr.f32.mxu0 %v302_v45  ;;  %2849 = vmatprep.mubr.f32.mxu1 %v814_v46 }
 0x14e   : > { %1570 = vmatmul.mubr.f32.gmra.mrb[94].mxu0 %v301_v47  ;;  %2850 = vmatmul.mubr.f32.gmra.mrb[94].mxu1 %v813_v48  ;;  %v321_v48 = vld [vmem:[%s4892_s26 + $0x390] sm:$0xff] }
 0x14f   : > { %1574 = vmatprep.mubr.f32.mxu0 %v304_v49  ;;  %2854 = vmatprep.mubr.f32.mxu1 %v816_v50  ;;  %v833_v49 = vld [vmem:[%s4892_s26 + $0x1390] sm:$0xff]  ;;  %v324_v50 = vld [vmem:[%s4892_s26 + $0x3a8] sm:$0xff] }
 0x152   : > { %1575 = vmatmul.mubr.f32.gmra.mrb[96].mxu0 %v303_v51  ;;  %2855 = vmatmul.mubr.f32.gmra.mrb[96].mxu1 %v815_v52  ;;  %v836_v51 = vld [vmem:[%s4892_s26 + $0x13a8] sm:$0xff] }
 0x153   : > { %1579 = vmatprep.mubr.f32.mxu0 %v306_v53  ;;  %2859 = vmatprep.mubr.f32.mxu1 %v818_v54 }
 0x156   : > { %1580 = vmatmul.mubr.f32.gmra.mrb[98].mxu0 %v305_v55  ;;  %2860 = vmatmul.mubr.f32.gmra.mrb[98].mxu1 %v817_v56 }
 0x157   : > { %1584 = vmatprep.mubr.f32.mxu0 %v308_v57  ;;  %2864 = vmatprep.mubr.f32.mxu1 %v820_v58  ;;  %v323_v58 = vld [vmem:[%s4892_s26 + $0x3a0] sm:$0xff] }
 0x15a   : > { %1585 = vmatmul.mubr.f32.gmra.mrb[100].mxu0 %v307_v59  ;;  %2865 = vmatmul.mubr.f32.gmra.mrb[100].mxu1 %v819_v60  ;;  %v835_v59 = vld [vmem:[%s4892_s26 + $0x13a0] sm:$0xff]  ;;  %v326_v60 = vld [vmem:[%s4892_s26 + $0x3b8] sm:$0xff] }
 0x15b   : > { %1589 = vmatprep.mubr.f32.mxu0 %v310_v61  ;;  %2869 = vmatprep.mubr.f32.mxu1 %v822_v62  ;;  %v838_v61 = vld [vmem:[%s4892_s26 + $0x13b8] sm:$0xff] }
 0x15e   : > { %1590 = vmatmul.mubr.f32.gmra.mrb[102].mxu0 %v309_v63  ;;  %2870 = vmatmul.mubr.f32.gmra.mrb[102].mxu1 %v821_v0 }
 0x15f   : > { %1594 = vmatprep.mubr.f32.mxu0 %v312_v1  ;;  %2874 = vmatprep.mubr.f32.mxu1 %v824_v2 }
 0x162   : > { %1595 = vmatmul.mubr.f32.gmra.mrb[104].mxu0 %v311_v3  ;;  %2875 = vmatmul.mubr.f32.gmra.mrb[104].mxu1 %v823_v4  ;;  %v325_v4 = vld [vmem:[%s4892_s26 + $0x3b0] sm:$0xff] }
 0x163   : > { %1599 = vmatprep.mubr.f32.mxu0 %v314_v5  ;;  %2879 = vmatprep.mubr.f32.mxu1 %v826_v6  ;;  %v837_v5 = vld [vmem:[%s4892_s26 + $0x13b0] sm:$0xff]  ;;  %v328_v6 = vld [vmem:[%s4892_s26 + $0x3c8] sm:$0xff] }
 0x165   : > { %v1336_v12 = vpop.f32.mrb[0].mxu0  ;;  %v2616_v13 = vpop.f32.mrb[0].mxu1 }
 0x166   : > { %v1337_v14 = vadd.f32 %v5246_v7, %v1336_v12  ;;  %v2617_v15 = vadd.f32 %v5246_v7, %v2616_v13  ;;  %v1338_v16 = vpop.f32.mrb[1].mxu0  ;;  %1600 = vmatmul.mubr.f32.gmra.mrb[106].mxu0 %v313_v8  ;;  %v2618_v17 = vpop.f32.mrb[1].mxu1  ;;  %2880 = vmatmul.mubr.f32.gmra.mrb[106].mxu1 %v825_v9  ;;  %v840_v8 = vld [vmem:[%s4892_s26 + $0x13c8] sm:$0xff] }
 0x167   : > { %1604 = vmatprep.mubr.f32.mxu0 %v316_v10  ;;  %2884 = vmatprep.mubr.f32.mxu1 %v828_v11  ;;  %v839_v16 = vld [vmem:[%s4892_s26 + $0x13c0] sm:$0xff]  ;;  %v330_v17 = vld [vmem:[%s4892_s26 + $0x3d8] sm:$0xff] }
 0x168   : > { %3896 = vst.msk [vmem:[%s5255_s22] sm:$0xff] %vm3895_vm0, %v1337_v14  ;;  %4152 = vst.msk [vmem:[%s5255_s22 + $0x800] sm:$0xff] %vm3895_vm0, %v2617_v15  ;;  %v327_v15 = vld [vmem:[%s4892_s26 + $0x3c0] sm:$0xff] }
 0x169   : > { %v1341_v22 = vpop.f32.mrb[2].mxu0  ;;  %v2621_v23 = vpop.f32.mrb[2].mxu1 }
 0x16a   : > { %v1342_v24 = vadd.f32 %v5246_v7, %v1341_v22  ;;  %v2622_v25 = vadd.f32 %v5246_v7, %v2621_v23  ;;  %v1343_v26 = vpop.f32.mrb[3].mxu0  ;;  %1605 = vmatmul.mubr.f32.gmra.mrb[108].mxu0 %v315_v18  ;;  %v2623_v27 = vpop.f32.mrb[3].mxu1  ;;  %2885 = vmatmul.mubr.f32.gmra.mrb[108].mxu1 %v827_v19  ;;  %v842_v18 = vld [vmem:[%s4892_s26 + $0x13d8] sm:$0xff] }
 0x16b   : > { %1609 = vmatprep.mubr.f32.mxu0 %v318_v20  ;;  %2889 = vmatprep.mubr.f32.mxu1 %v830_v21  ;;  %v841_v26 = vld [vmem:[%s4892_s26 + $0x13d0] sm:$0xff]  ;;  %v332_v27 = vld [vmem:[%s4892_s26 + $0x3e8] sm:$0xff] }
 0x16c   : > { %3897 = vst.msk [vmem:[%s5255_s22 + $0x8] sm:$0xff] %vm3895_vm0, %v1342_v24  ;;  %4153 = vst.msk [vmem:[%s5255_s22 + $0x808] sm:$0xff] %vm3895_vm0, %v2622_v25  ;;  %v329_v25 = vld [vmem:[%s4892_s26 + $0x3d0] sm:$0xff] }
 0x16d   : > { %v1346_v32 = vpop.f32.mrb[4].mxu0  ;;  %v2626_v33 = vpop.f32.mrb[4].mxu1 }
 0x16e   : > { %v1347_v34 = vadd.f32 %v5246_v7, %v1346_v32  ;;  %v2627_v35 = vadd.f32 %v5246_v7, %v2626_v33  ;;  %v1348_v36 = vpop.f32.mrb[5].mxu0  ;;  %1610 = vmatmul.mubr.f32.gmra.mrb[110].mxu0 %v317_v28  ;;  %v2628_v37 = vpop.f32.mrb[5].mxu1  ;;  %2890 = vmatmul.mubr.f32.gmra.mrb[110].mxu1 %v829_v29  ;;  %v844_v28 = vld [vmem:[%s4892_s26 + $0x13e8] sm:$0xff] }
 0x16f   : > { %1614 = vmatprep.mubr.f32.mxu0 %v320_v30  ;;  %2894 = vmatprep.mubr.f32.mxu1 %v832_v31  ;;  %v843_v36 = vld [vmem:[%s4892_s26 + $0x13e0] sm:$0xff]  ;;  %v334_v37 = vld [vmem:[%s4892_s26 + $0x3f8] sm:$0xff] }
 0x170   : > { %3898 = vst.msk [vmem:[%s5255_s22 + $0x10] sm:$0xff] %vm3895_vm0, %v1347_v34  ;;  %4154 = vst.msk [vmem:[%s5255_s22 + $0x810] sm:$0xff] %vm3895_vm0, %v2627_v35  ;;  %v331_v35 = vld [vmem:[%s4892_s26 + $0x3e0] sm:$0xff] }
 0x171   : > { %v1351_v42 = vpop.f32.mrb[6].mxu0  ;;  %v2631_v43 = vpop.f32.mrb[6].mxu1 }
 0x172   : > { %v1352_v44 = vadd.f32 %v5246_v7, %v1351_v42  ;;  %v2632_v45 = vadd.f32 %v5246_v7, %v2631_v43  ;;  %v1353_v46 = vpop.f32.mrb[7].mxu0  ;;  %1615 = vmatmul.mubr.f32.gmra.mrb[112].mxu0 %v319_v38  ;;  %v2633_v47 = vpop.f32.mrb[7].mxu1  ;;  %2895 = vmatmul.mubr.f32.gmra.mrb[112].mxu1 %v831_v39  ;;  %v846_v38 = vld [vmem:[%s4892_s26 + $0x13f8] sm:$0xff] }
 0x173   : > { %1619 = vmatprep.mubr.f32.mxu0 %v322_v40  ;;  %2899 = vmatprep.mubr.f32.mxu1 %v834_v41  ;;  %v845_v46 = vld [vmem:[%s4892_s26 + $0x13f0] sm:$0xff]  ;;  %v336_v47 = vld [vmem:[%s4892_s26 + $0x408] sm:$0xff] }
 0x174   : > { %3899 = vst.msk [vmem:[%s5255_s22 + $0x18] sm:$0xff] %vm3895_vm0, %v1352_v44  ;;  %4155 = vst.msk [vmem:[%s5255_s22 + $0x818] sm:$0xff] %vm3895_vm0, %v2632_v45  ;;  %v333_v45 = vld [vmem:[%s4892_s26 + $0x3f0] sm:$0xff] }
 0x175   : > { %v1356_v52 = vpop.f32.mrb[8].mxu0  ;;  %v2636_v53 = vpop.f32.mrb[8].mxu1 }
 0x176   : > { %v1357_v54 = vadd.f32 %v5246_v7, %v1356_v52  ;;  %v2637_v55 = vadd.f32 %v5246_v7, %v2636_v53  ;;  %v1358_v56 = vpop.f32.mrb[9].mxu0  ;;  %1620 = vmatmul.mubr.f32.gmra.mrb[114].mxu0 %v321_v48  ;;  %v2638_v57 = vpop.f32.mrb[9].mxu1  ;;  %2900 = vmatmul.mubr.f32.gmra.mrb[114].mxu1 %v833_v49  ;;  %v848_v48 = vld [vmem:[%s4892_s26 + $0x1408] sm:$0xff] }
 0x177   : > { %1624 = vmatprep.mubr.f32.mxu0 %v324_v50  ;;  %2904 = vmatprep.mubr.f32.mxu1 %v836_v51  ;;  %v847_v56 = vld [vmem:[%s4892_s26 + $0x1400] sm:$0xff]  ;;  %v338_v57 = vld [vmem:[%s4892_s26 + $0x418] sm:$0xff] }
 0x178   : > { %3900 = vst.msk [vmem:[%s5255_s22 + $0x20] sm:$0xff] %vm3895_vm0, %v1357_v54  ;;  %4156 = vst.msk [vmem:[%s5255_s22 + $0x820] sm:$0xff] %vm3895_vm0, %v2637_v55  ;;  %v335_v55 = vld [vmem:[%s4892_s26 + $0x400] sm:$0xff] }
 0x179   : > { %v1361_v62 = vpop.f32.mrb[10].mxu0  ;;  %v2641_v63 = vpop.f32.mrb[10].mxu1 }
 0x17a   : > { %v1362_v0 = vadd.f32 %v5246_v7, %v1361_v62  ;;  %v2642_v1 = vadd.f32 %v5246_v7, %v2641_v63  ;;  %v1363_v2 = vpop.f32.mrb[11].mxu0  ;;  %1625 = vmatmul.mubr.f32.gmra.mrb[116].mxu0 %v323_v58  ;;  %v2643_v3 = vpop.f32.mrb[11].mxu1  ;;  %2905 = vmatmul.mubr.f32.gmra.mrb[116].mxu1 %v835_v59  ;;  %v850_v58 = vld [vmem:[%s4892_s26 + $0x1418] sm:$0xff] }
 0x17b   : > { %1629 = vmatprep.mubr.f32.mxu0 %v326_v60  ;;  %2909 = vmatprep.mubr.f32.mxu1 %v838_v61  ;;  %v849_v2 = vld [vmem:[%s4892_s26 + $0x1410] sm:$0xff]  ;;  %v340_v3 = vld [vmem:[%s4892_s26 + $0x428] sm:$0xff] }
 0x17c   : > { %3901 = vst.msk [vmem:[%s5255_s22 + $0x28] sm:$0xff] %vm3895_vm0, %v1362_v0  ;;  %4157 = vst.msk [vmem:[%s5255_s22 + $0x828] sm:$0xff] %vm3895_vm0, %v2642_v1  ;;  %v337_v1 = vld [vmem:[%s4892_s26 + $0x410] sm:$0xff] }
 0x17d   : > { %v1366_v9 = vpop.f32.mrb[12].mxu0  ;;  %v2646_v10 = vpop.f32.mrb[12].mxu1 }
 0x17e   : > { %v1367_v11 = vadd.f32 %v5246_v7, %v1366_v9  ;;  %v2647_v12 = vadd.f32 %v5246_v7, %v2646_v10  ;;  %v1368_v13 = vpop.f32.mrb[13].mxu0  ;;  %1630 = vmatmul.mubr.f32.gmra.mrb[118].mxu0 %v325_v4  ;;  %v2648_v14 = vpop.f32.mrb[13].mxu1  ;;  %2910 = vmatmul.mubr.f32.gmra.mrb[118].mxu1 %v837_v5  ;;  %v852_v4 = vld [vmem:[%s4892_s26 + $0x1428] sm:$0xff] }
 0x17f   : > { %1634 = vmatprep.mubr.f32.mxu0 %v328_v6  ;;  %2914 = vmatprep.mubr.f32.mxu1 %v840_v8  ;;  %v851_v13 = vld [vmem:[%s4892_s26 + $0x1420] sm:$0xff]  ;;  %v342_v14 = vld [vmem:[%s4892_s26 + $0x438] sm:$0xff] }
 0x180   : > { %3902 = vst.msk [vmem:[%s5255_s22 + $0x30] sm:$0xff] %vm3895_vm0, %v1367_v11  ;;  %4158 = vst.msk [vmem:[%s5255_s22 + $0x830] sm:$0xff] %vm3895_vm0, %v2647_v12  ;;  %v339_v12 = vld [vmem:[%s4892_s26 + $0x420] sm:$0xff] }
 0x181   : > { %v1371_v19 = vpop.f32.mrb[14].mxu0  ;;  %v2651_v20 = vpop.f32.mrb[14].mxu1 }
 0x182   : > { %v1372_v21 = vadd.f32 %v5246_v7, %v1371_v19  ;;  %v2652_v22 = vadd.f32 %v5246_v7, %v2651_v20  ;;  %v1373_v23 = vpop.f32.mrb[15].mxu0  ;;  %1635 = vmatmul.mubr.f32.gmra.mrb[120].mxu0 %v327_v15  ;;  %v2653_v24 = vpop.f32.mrb[15].mxu1  ;;  %2915 = vmatmul.mubr.f32.gmra.mrb[120].mxu1 %v839_v16  ;;  %v854_v15 = vld [vmem:[%s4892_s26 + $0x1438] sm:$0xff] }
 0x183   : > { %1639 = vmatprep.mubr.f32.mxu0 %v330_v17  ;;  %2919 = vmatprep.mubr.f32.mxu1 %v842_v18  ;;  %v853_v23 = vld [vmem:[%s4892_s26 + $0x1430] sm:$0xff]  ;;  %v344_v24 = vld [vmem:[%s4892_s26 + $0x448] sm:$0xff] }
 0x184   : > { %3903 = vst.msk [vmem:[%s5255_s22 + $0x38] sm:$0xff] %vm3895_vm0, %v1372_v21  ;;  %4159 = vst.msk [vmem:[%s5255_s22 + $0x838] sm:$0xff] %vm3895_vm0, %v2652_v22  ;;  %v341_v22 = vld [vmem:[%s4892_s26 + $0x430] sm:$0xff] }
 0x185   : > { %v1376_v29 = vpop.f32.mrb[16].mxu0  ;;  %v2656_v30 = vpop.f32.mrb[16].mxu1 }
 0x186   : > { %v1377_v31 = vadd.f32 %v5246_v7, %v1376_v29  ;;  %v2657_v32 = vadd.f32 %v5246_v7, %v2656_v30  ;;  %v1378_v33 = vpop.f32.mrb[17].mxu0  ;;  %1640 = vmatmul.mubr.f32.gmra.mrb[122].mxu0 %v329_v25  ;;  %v2658_v34 = vpop.f32.mrb[17].mxu1  ;;  %2920 = vmatmul.mubr.f32.gmra.mrb[122].mxu1 %v841_v26  ;;  %v856_v25 = vld [vmem:[%s4892_s26 + $0x1448] sm:$0xff] }
 0x187   : > { %1644 = vmatprep.mubr.f32.mxu0 %v332_v27  ;;  %2924 = vmatprep.mubr.f32.mxu1 %v844_v28  ;;  %v855_v33 = vld [vmem:[%s4892_s26 + $0x1440] sm:$0xff]  ;;  %v346_v34 = vld [vmem:[%s4892_s26 + $0x458] sm:$0xff] }
 0x188   : > { %3904 = vst.msk [vmem:[%s5255_s22 + $0x40] sm:$0xff] %vm3895_vm0, %v1377_v31  ;;  %4160 = vst.msk [vmem:[%s5255_s22 + $0x840] sm:$0xff] %vm3895_vm0, %v2657_v32  ;;  %v343_v32 = vld [vmem:[%s4892_s26 + $0x440] sm:$0xff] }
 0x189   : > { %v1381_v39 = vpop.f32.mrb[18].mxu0  ;;  %v2661_v40 = vpop.f32.mrb[18].mxu1 }
 0x18a   : > { %v1382_v41 = vadd.f32 %v5246_v7, %v1381_v39  ;;  %v2662_v42 = vadd.f32 %v5246_v7, %v2661_v40  ;;  %v1383_v43 = vpop.f32.mrb[19].mxu0  ;;  %1645 = vmatmul.mubr.f32.gmra.mrb[124].mxu0 %v331_v35  ;;  %v2663_v44 = vpop.f32.mrb[19].mxu1  ;;  %2925 = vmatmul.mubr.f32.gmra.mrb[124].mxu1 %v843_v36  ;;  %v858_v35 = vld [vmem:[%s4892_s26 + $0x1458] sm:$0xff] }
 0x18b   : > { %1649 = vmatprep.mubr.f32.mxu0 %v334_v37  ;;  %2929 = vmatprep.mubr.f32.mxu1 %v846_v38  ;;  %v857_v43 = vld [vmem:[%s4892_s26 + $0x1450] sm:$0xff]  ;;  %v348_v44 = vld [vmem:[%s4892_s26 + $0x468] sm:$0xff] }
 0x18c   : > { %3905 = vst.msk [vmem:[%s5255_s22 + $0x48] sm:$0xff] %vm3895_vm0, %v1382_v41  ;;  %4161 = vst.msk [vmem:[%s5255_s22 + $0x848] sm:$0xff] %vm3895_vm0, %v2662_v42  ;;  %v345_v42 = vld [vmem:[%s4892_s26 + $0x450] sm:$0xff] }
 0x18d   : > { %v1386_v49 = vpop.f32.mrb[20].mxu0  ;;  %v2666_v50 = vpop.f32.mrb[20].mxu1 }
 0x18e   : > { %v1387_v51 = vadd.f32 %v5246_v7, %v1386_v49  ;;  %v2667_v52 = vadd.f32 %v5246_v7, %v2666_v50  ;;  %v1388_v53 = vpop.f32.mrb[21].mxu0  ;;  %1650 = vmatmul.mubr.f32.gmra.mrb[126].mxu0 %v333_v45  ;;  %v2668_v54 = vpop.f32.mrb[21].mxu1  ;;  %2930 = vmatmul.mubr.f32.gmra.mrb[126].mxu1 %v845_v46  ;;  %v860_v45 = vld [vmem:[%s4892_s26 + $0x1468] sm:$0xff] }
 0x18f   : > { %1654 = vmatprep.mubr.f32.mxu0 %v336_v47  ;;  %2934 = vmatprep.mubr.f32.mxu1 %v848_v48  ;;  %v859_v53 = vld [vmem:[%s4892_s26 + $0x1460] sm:$0xff]  ;;  %v350_v54 = vld [vmem:[%s4892_s26 + $0x478] sm:$0xff] }
 0x190   : > { %3906 = vst.msk [vmem:[%s5255_s22 + $0x50] sm:$0xff] %vm3895_vm0, %v1387_v51  ;;  %4162 = vst.msk [vmem:[%s5255_s22 + $0x850] sm:$0xff] %vm3895_vm0, %v2667_v52  ;;  %v347_v52 = vld [vmem:[%s4892_s26 + $0x460] sm:$0xff] }
 0x191   : > { %v1391_v59 = vpop.f32.mrb[22].mxu0  ;;  %v2671_v60 = vpop.f32.mrb[22].mxu1 }
 0x192   : > { %v1392_v61 = vadd.f32 %v5246_v7, %v1391_v59  ;;  %v2672_v62 = vadd.f32 %v5246_v7, %v2671_v60  ;;  %v1393_v63 = vpop.f32.mrb[23].mxu0  ;;  %1655 = vmatmul.mubr.f32.gmra.mrb[128].mxu0 %v335_v55  ;;  %v2673_v0 = vpop.f32.mrb[23].mxu1  ;;  %2935 = vmatmul.mubr.f32.gmra.mrb[128].mxu1 %v847_v56  ;;  %v862_v55 = vld [vmem:[%s4892_s26 + $0x1478] sm:$0xff] }
 0x193   : > { %1659 = vmatprep.mubr.f32.mxu0 %v338_v57  ;;  %2939 = vmatprep.mubr.f32.mxu1 %v850_v58  ;;  %v861_v63 = vld [vmem:[%s4892_s26 + $0x1470] sm:$0xff]  ;;  %v352_v0 = vld [vmem:[%s4892_s26 + $0x488] sm:$0xff] }
 0x194   : > { %3907 = vst.msk [vmem:[%s5255_s22 + $0x58] sm:$0xff] %vm3895_vm0, %v1392_v61  ;;  %4163 = vst.msk [vmem:[%s5255_s22 + $0x858] sm:$0xff] %vm3895_vm0, %v2672_v62  ;;  %v349_v62 = vld [vmem:[%s4892_s26 + $0x470] sm:$0xff] }
 0x195   : > { %v1396_v5 = vpop.f32.mrb[24].mxu0  ;;  %v2676_v6 = vpop.f32.mrb[24].mxu1 }
 0x196   : > { %v1397_v8 = vadd.f32 %v5246_v7, %v1396_v5  ;;  %v2677_v9 = vadd.f32 %v5246_v7, %v2676_v6  ;;  %v1398_v10 = vpop.f32.mrb[25].mxu0  ;;  %1660 = vmatmul.mubr.f32.gmra.mrb[130].mxu0 %v337_v1  ;;  %v2678_v11 = vpop.f32.mrb[25].mxu1  ;;  %2940 = vmatmul.mubr.f32.gmra.mrb[130].mxu1 %v849_v2  ;;  %v864_v1 = vld [vmem:[%s4892_s26 + $0x1488] sm:$0xff] }
 0x197   : > { %1664 = vmatprep.mubr.f32.mxu0 %v340_v3  ;;  %2944 = vmatprep.mubr.f32.mxu1 %v852_v4  ;;  %v863_v10 = vld [vmem:[%s4892_s26 + $0x1480] sm:$0xff]  ;;  %v354_v11 = vld [vmem:[%s4892_s26 + $0x498] sm:$0xff] }
 0x198   : > { %3908 = vst.msk [vmem:[%s5255_s22 + $0x60] sm:$0xff] %vm3895_vm0, %v1397_v8  ;;  %4164 = vst.msk [vmem:[%s5255_s22 + $0x860] sm:$0xff] %vm3895_vm0, %v2677_v9  ;;  %v351_v9 = vld [vmem:[%s4892_s26 + $0x480] sm:$0xff] }
 0x199   : > { %v1401_v16 = vpop.f32.mrb[26].mxu0  ;;  %v2681_v17 = vpop.f32.mrb[26].mxu1 }
 0x19a   : > { %v1402_v18 = vadd.f32 %v5246_v7, %v1401_v16  ;;  %v2682_v19 = vadd.f32 %v5246_v7, %v2681_v17  ;;  %v1403_v20 = vpop.f32.mrb[27].mxu0  ;;  %1665 = vmatmul.mubr.f32.gmra.mrb[132].mxu0 %v339_v12  ;;  %v2683_v21 = vpop.f32.mrb[27].mxu1  ;;  %2945 = vmatmul.mubr.f32.gmra.mrb[132].mxu1 %v851_v13  ;;  %v866_v12 = vld [vmem:[%s4892_s26 + $0x1498] sm:$0xff] }
 0x19b   : > { %1669 = vmatprep.mubr.f32.mxu0 %v342_v14  ;;  %2949 = vmatprep.mubr.f32.mxu1 %v854_v15  ;;  %v865_v20 = vld [vmem:[%s4892_s26 + $0x1490] sm:$0xff]  ;;  %v356_v21 = vld [vmem:[%s4892_s26 + $0x4a8] sm:$0xff] }
 0x19c   : > { %3909 = vst.msk [vmem:[%s5255_s22 + $0x68] sm:$0xff] %vm3895_vm0, %v1402_v18  ;;  %4165 = vst.msk [vmem:[%s5255_s22 + $0x868] sm:$0xff] %vm3895_vm0, %v2682_v19  ;;  %v353_v19 = vld [vmem:[%s4892_s26 + $0x490] sm:$0xff] }
 0x19d   : > { %v1406_v26 = vpop.f32.mrb[28].mxu0  ;;  %v2686_v27 = vpop.f32.mrb[28].mxu1 }
 0x19e   : > { %v1407_v28 = vadd.f32 %v5246_v7, %v1406_v26  ;;  %v2687_v29 = vadd.f32 %v5246_v7, %v2686_v27  ;;  %v1408_v30 = vpop.f32.mrb[29].mxu0  ;;  %1670 = vmatmul.mubr.f32.gmra.mrb[134].mxu0 %v341_v22  ;;  %v2688_v31 = vpop.f32.mrb[29].mxu1  ;;  %2950 = vmatmul.mubr.f32.gmra.mrb[134].mxu1 %v853_v23  ;;  %v868_v22 = vld [vmem:[%s4892_s26 + $0x14a8] sm:$0xff] }
 0x19f   : > { %1674 = vmatprep.mubr.f32.mxu0 %v344_v24  ;;  %2954 = vmatprep.mubr.f32.mxu1 %v856_v25  ;;  %v867_v30 = vld [vmem:[%s4892_s26 + $0x14a0] sm:$0xff]  ;;  %v358_v31 = vld [vmem:[%s4892_s26 + $0x4b8] sm:$0xff] }
 0x1a0   : > { %3910 = vst.msk [vmem:[%s5255_s22 + $0x70] sm:$0xff] %vm3895_vm0, %v1407_v28  ;;  %4166 = vst.msk [vmem:[%s5255_s22 + $0x870] sm:$0xff] %vm3895_vm0, %v2687_v29  ;;  %v355_v29 = vld [vmem:[%s4892_s26 + $0x4a0] sm:$0xff] }
 0x1a1   : > { %v1411_v36 = vpop.f32.mrb[30].mxu0  ;;  %v2691_v37 = vpop.f32.mrb[30].mxu1 }
 0x1a2   : > { %v1412_v38 = vadd.f32 %v5246_v7, %v1411_v36  ;;  %v2692_v39 = vadd.f32 %v5246_v7, %v2691_v37  ;;  %v1413_v40 = vpop.f32.mrb[31].mxu0  ;;  %1675 = vmatmul.mubr.f32.gmra.mrb[136].mxu0 %v343_v32  ;;  %v2693_v41 = vpop.f32.mrb[31].mxu1  ;;  %2955 = vmatmul.mubr.f32.gmra.mrb[136].mxu1 %v855_v33  ;;  %v870_v32 = vld [vmem:[%s4892_s26 + $0x14b8] sm:$0xff] }
 0x1a3   : > { %1679 = vmatprep.mubr.f32.mxu0 %v346_v34  ;;  %2959 = vmatprep.mubr.f32.mxu1 %v858_v35  ;;  %v869_v40 = vld [vmem:[%s4892_s26 + $0x14b0] sm:$0xff]  ;;  %v360_v41 = vld [vmem:[%s4892_s26 + $0x4c8] sm:$0xff] }
 0x1a4   : > { %3911 = vst.msk [vmem:[%s5255_s22 + $0x78] sm:$0xff] %vm3895_vm0, %v1412_v38  ;;  %4167 = vst.msk [vmem:[%s5255_s22 + $0x878] sm:$0xff] %vm3895_vm0, %v2692_v39  ;;  %v357_v39 = vld [vmem:[%s4892_s26 + $0x4b0] sm:$0xff] }
 0x1a5   : > { %v1416_v46 = vpop.f32.mrb[32].mxu0  ;;  %v2696_v47 = vpop.f32.mrb[32].mxu1 }
 0x1a6   : > { %v1417_v48 = vadd.f32 %v5246_v7, %v1416_v46  ;;  %v2697_v49 = vadd.f32 %v5246_v7, %v2696_v47  ;;  %v1418_v50 = vpop.f32.mrb[33].mxu0  ;;  %1680 = vmatmul.mubr.f32.gmra.mrb[138].mxu0 %v345_v42  ;;  %v2698_v51 = vpop.f32.mrb[33].mxu1  ;;  %2960 = vmatmul.mubr.f32.gmra.mrb[138].mxu1 %v857_v43  ;;  %v872_v42 = vld [vmem:[%s4892_s26 + $0x14c8] sm:$0xff] }
 0x1a7   : > { %1684 = vmatprep.mubr.f32.mxu0 %v348_v44  ;;  %2964 = vmatprep.mubr.f32.mxu1 %v860_v45  ;;  %v871_v50 = vld [vmem:[%s4892_s26 + $0x14c0] sm:$0xff]  ;;  %v362_v51 = vld [vmem:[%s4892_s26 + $0x4d8] sm:$0xff] }
 0x1a8   : > { %3912 = vst.msk [vmem:[%s5255_s22 + $0x80] sm:$0xff] %vm3895_vm0, %v1417_v48  ;;  %4168 = vst.msk [vmem:[%s5255_s22 + $0x880] sm:$0xff] %vm3895_vm0, %v2697_v49  ;;  %v359_v49 = vld [vmem:[%s4892_s26 + $0x4c0] sm:$0xff] }
 0x1a9   : > { %v1421_v56 = vpop.f32.mrb[34].mxu0  ;;  %v2701_v57 = vpop.f32.mrb[34].mxu1 }
 0x1aa   : > { %v1422_v58 = vadd.f32 %v5246_v7, %v1421_v56  ;;  %v2702_v59 = vadd.f32 %v5246_v7, %v2701_v57  ;;  %v1423_v60 = vpop.f32.mrb[35].mxu0  ;;  %1685 = vmatmul.mubr.f32.gmra.mrb[140].mxu0 %v347_v52  ;;  %v2703_v61 = vpop.f32.mrb[35].mxu1  ;;  %2965 = vmatmul.mubr.f32.gmra.mrb[140].mxu1 %v859_v53  ;;  %v874_v52 = vld [vmem:[%s4892_s26 + $0x14d8] sm:$0xff] }
 0x1ab   : > { %1689 = vmatprep.mubr.f32.mxu0 %v350_v54  ;;  %2969 = vmatprep.mubr.f32.mxu1 %v862_v55  ;;  %v873_v60 = vld [vmem:[%s4892_s26 + $0x14d0] sm:$0xff]  ;;  %v364_v61 = vld [vmem:[%s4892_s26 + $0x4e8] sm:$0xff] }
 0x1ac   : > { %3913 = vst.msk [vmem:[%s5255_s22 + $0x88] sm:$0xff] %vm3895_vm0, %v1422_v58  ;;  %4169 = vst.msk [vmem:[%s5255_s22 + $0x888] sm:$0xff] %vm3895_vm0, %v2702_v59  ;;  %v361_v59 = vld [vmem:[%s4892_s26 + $0x4d0] sm:$0xff] }
 0x1ad   : > { %v1426_v2 = vpop.f32.mrb[36].mxu0  ;;  %v2706_v3 = vpop.f32.mrb[36].mxu1 }
 0x1ae   : > { %v1427_v4 = vadd.f32 %v5246_v7, %v1426_v2  ;;  %v2707_v5 = vadd.f32 %v5246_v7, %v2706_v3  ;;  %v1428_v6 = vpop.f32.mrb[37].mxu0  ;;  %1690 = vmatmul.mubr.f32.gmra.mrb[142].mxu0 %v349_v62  ;;  %v2708_v8 = vpop.f32.mrb[37].mxu1  ;;  %2970 = vmatmul.mubr.f32.gmra.mrb[142].mxu1 %v861_v63  ;;  %v876_v62 = vld [vmem:[%s4892_s26 + $0x14e8] sm:$0xff] }
 0x1af   : > { %1694 = vmatprep.mubr.f32.mxu0 %v352_v0  ;;  %2974 = vmatprep.mubr.f32.mxu1 %v864_v1  ;;  %v875_v6 = vld [vmem:[%s4892_s26 + $0x14e0] sm:$0xff]  ;;  %v366_v8 = vld [vmem:[%s4892_s26 + $0x4f8] sm:$0xff] }
 0x1b0   : > { %3914 = vst.msk [vmem:[%s5255_s22 + $0x90] sm:$0xff] %vm3895_vm0, %v1427_v4  ;;  %4170 = vst.msk [vmem:[%s5255_s22 + $0x890] sm:$0xff] %vm3895_vm0, %v2707_v5  ;;  %v363_v5 = vld [vmem:[%s4892_s26 + $0x4e0] sm:$0xff] }
 0x1b1   : > { %v1431_v13 = vpop.f32.mrb[38].mxu0  ;;  %v2711_v14 = vpop.f32.mrb[38].mxu1 }
 0x1b2   : > { %v1432_v15 = vadd.f32 %v5246_v7, %v1431_v13  ;;  %v2712_v16 = vadd.f32 %v5246_v7, %v2711_v14  ;;  %v1433_v17 = vpop.f32.mrb[39].mxu0  ;;  %1695 = vmatmul.mubr.f32.gmra.mrb[144].mxu0 %v351_v9  ;;  %v2713_v18 = vpop.f32.mrb[39].mxu1  ;;  %2975 = vmatmul.mubr.f32.gmra.mrb[144].mxu1 %v863_v10  ;;  %v878_v9 = vld [vmem:[%s4892_s26 + $0x14f8] sm:$0xff] }
 0x1b3   : > { %1699 = vmatprep.mubr.f32.mxu0 %v354_v11  ;;  %2979 = vmatprep.mubr.f32.mxu1 %v866_v12  ;;  %v877_v17 = vld [vmem:[%s4892_s26 + $0x14f0] sm:$0xff]  ;;  %v368_v18 = vld [vmem:[%s4892_s26 + $0x508] sm:$0xff] }
 0x1b4   : > { %3915 = vst.msk [vmem:[%s5255_s22 + $0x98] sm:$0xff] %vm3895_vm0, %v1432_v15  ;;  %4171 = vst.msk [vmem:[%s5255_s22 + $0x898] sm:$0xff] %vm3895_vm0, %v2712_v16  ;;  %v365_v16 = vld [vmem:[%s4892_s26 + $0x4f0] sm:$0xff] }
 0x1b5   : > { %v1436_v23 = vpop.f32.mrb[40].mxu0  ;;  %v2716_v24 = vpop.f32.mrb[40].mxu1 }
 0x1b6   : > { %v1437_v25 = vadd.f32 %v5246_v7, %v1436_v23  ;;  %v2717_v26 = vadd.f32 %v5246_v7, %v2716_v24  ;;  %v1438_v27 = vpop.f32.mrb[41].mxu0  ;;  %1700 = vmatmul.mubr.f32.gmra.mrb[146].mxu0 %v353_v19  ;;  %v2718_v28 = vpop.f32.mrb[41].mxu1  ;;  %2980 = vmatmul.mubr.f32.gmra.mrb[146].mxu1 %v865_v20  ;;  %v880_v19 = vld [vmem:[%s4892_s26 + $0x1508] sm:$0xff] }
 0x1b7   : > { %1704 = vmatprep.mubr.f32.mxu0 %v356_v21  ;;  %2984 = vmatprep.mubr.f32.mxu1 %v868_v22  ;;  %v879_v27 = vld [vmem:[%s4892_s26 + $0x1500] sm:$0xff]  ;;  %v370_v28 = vld [vmem:[%s4892_s26 + $0x518] sm:$0xff] }
 0x1b8   : > { %3916 = vst.msk [vmem:[%s5255_s22 + $0xa0] sm:$0xff] %vm3895_vm0, %v1437_v25  ;;  %4172 = vst.msk [vmem:[%s5255_s22 + $0x8a0] sm:$0xff] %vm3895_vm0, %v2717_v26  ;;  %v367_v26 = vld [vmem:[%s4892_s26 + $0x500] sm:$0xff] }
 0x1b9   : > { %v1441_v33 = vpop.f32.mrb[42].mxu0  ;;  %v2721_v34 = vpop.f32.mrb[42].mxu1 }
 0x1ba   : > { %v1442_v35 = vadd.f32 %v5246_v7, %v1441_v33  ;;  %v2722_v36 = vadd.f32 %v5246_v7, %v2721_v34  ;;  %v1443_v37 = vpop.f32.mrb[43].mxu0  ;;  %1705 = vmatmul.mubr.f32.gmra.mrb[148].mxu0 %v355_v29  ;;  %v2723_v38 = vpop.f32.mrb[43].mxu1  ;;  %2985 = vmatmul.mubr.f32.gmra.mrb[148].mxu1 %v867_v30  ;;  %v882_v29 = vld [vmem:[%s4892_s26 + $0x1518] sm:$0xff] }
 0x1bb   : > { %1709 = vmatprep.mubr.f32.mxu0 %v358_v31  ;;  %2989 = vmatprep.mubr.f32.mxu1 %v870_v32  ;;  %v881_v37 = vld [vmem:[%s4892_s26 + $0x1510] sm:$0xff]  ;;  %v372_v38 = vld [vmem:[%s4892_s26 + $0x528] sm:$0xff] }
 0x1bc   : > { %3917 = vst.msk [vmem:[%s5255_s22 + $0xa8] sm:$0xff] %vm3895_vm0, %v1442_v35  ;;  %4173 = vst.msk [vmem:[%s5255_s22 + $0x8a8] sm:$0xff] %vm3895_vm0, %v2722_v36  ;;  %v369_v36 = vld [vmem:[%s4892_s26 + $0x510] sm:$0xff] }
 0x1bd   : > { %v1446_v43 = vpop.f32.mrb[44].mxu0  ;;  %v2726_v44 = vpop.f32.mrb[44].mxu1 }
 0x1be   : > { %v1447_v45 = vadd.f32 %v5246_v7, %v1446_v43  ;;  %v2727_v46 = vadd.f32 %v5246_v7, %v2726_v44  ;;  %v1448_v47 = vpop.f32.mrb[45].mxu0  ;;  %1710 = vmatmul.mubr.f32.gmra.mrb[150].mxu0 %v357_v39  ;;  %v2728_v48 = vpop.f32.mrb[45].mxu1  ;;  %2990 = vmatmul.mubr.f32.gmra.mrb[150].mxu1 %v869_v40  ;;  %v884_v39 = vld [vmem:[%s4892_s26 + $0x1528] sm:$0xff] }
 0x1bf   : > { %1714 = vmatprep.mubr.f32.mxu0 %v360_v41  ;;  %2994 = vmatprep.mubr.f32.mxu1 %v872_v42  ;;  %v883_v47 = vld [vmem:[%s4892_s26 + $0x1520] sm:$0xff]  ;;  %v374_v48 = vld [vmem:[%s4892_s26 + $0x538] sm:$0xff] }
 0x1c0   : > { %3918 = vst.msk [vmem:[%s5255_s22 + $0xb0] sm:$0xff] %vm3895_vm0, %v1447_v45  ;;  %4174 = vst.msk [vmem:[%s5255_s22 + $0x8b0] sm:$0xff] %vm3895_vm0, %v2727_v46  ;;  %v371_v46 = vld [vmem:[%s4892_s26 + $0x520] sm:$0xff] }
 0x1c1   : > { %v1451_v53 = vpop.f32.mrb[46].mxu0  ;;  %v2731_v54 = vpop.f32.mrb[46].mxu1 }
 0x1c2   : > { %v1452_v55 = vadd.f32 %v5246_v7, %v1451_v53  ;;  %v2732_v56 = vadd.f32 %v5246_v7, %v2731_v54  ;;  %v1453_v57 = vpop.f32.mrb[47].mxu0  ;;  %1715 = vmatmul.mubr.f32.gmra.mrb[152].mxu0 %v359_v49  ;;  %v2733_v58 = vpop.f32.mrb[47].mxu1  ;;  %2995 = vmatmul.mubr.f32.gmra.mrb[152].mxu1 %v871_v50  ;;  %v886_v49 = vld [vmem:[%s4892_s26 + $0x1538] sm:$0xff] }
 0x1c3   : > { %1719 = vmatprep.mubr.f32.mxu0 %v362_v51  ;;  %2999 = vmatprep.mubr.f32.mxu1 %v874_v52  ;;  %v885_v57 = vld [vmem:[%s4892_s26 + $0x1530] sm:$0xff]  ;;  %v376_v58 = vld [vmem:[%s4892_s26 + $0x548] sm:$0xff] }
 0x1c4   : > { %3919 = vst.msk [vmem:[%s5255_s22 + $0xb8] sm:$0xff] %vm3895_vm0, %v1452_v55  ;;  %4175 = vst.msk [vmem:[%s5255_s22 + $0x8b8] sm:$0xff] %vm3895_vm0, %v2732_v56  ;;  %v373_v56 = vld [vmem:[%s4892_s26 + $0x530] sm:$0xff] }
 0x1c5   : > { %v1456_v63 = vpop.f32.mrb[48].mxu0  ;;  %v2736_v0 = vpop.f32.mrb[48].mxu1 }
 0x1c6   : > { %v1457_v1 = vadd.f32 %v5246_v7, %v1456_v63  ;;  %v2737_v2 = vadd.f32 %v5246_v7, %v2736_v0  ;;  %v1458_v3 = vpop.f32.mrb[49].mxu0  ;;  %1720 = vmatmul.mubr.f32.gmra.mrb[154].mxu0 %v361_v59  ;;  %v2738_v4 = vpop.f32.mrb[49].mxu1  ;;  %3000 = vmatmul.mubr.f32.gmra.mrb[154].mxu1 %v873_v60  ;;  %v888_v59 = vld [vmem:[%s4892_s26 + $0x1548] sm:$0xff] }
 0x1c7   : > { %1724 = vmatprep.mubr.f32.mxu0 %v364_v61  ;;  %3004 = vmatprep.mubr.f32.mxu1 %v876_v62  ;;  %v887_v3 = vld [vmem:[%s4892_s26 + $0x1540] sm:$0xff]  ;;  %v378_v4 = vld [vmem:[%s4892_s26 + $0x558] sm:$0xff] }
 0x1c8   : > { %3920 = vst.msk [vmem:[%s5255_s22 + $0xc0] sm:$0xff] %vm3895_vm0, %v1457_v1  ;;  %4176 = vst.msk [vmem:[%s5255_s22 + $0x8c0] sm:$0xff] %vm3895_vm0, %v2737_v2  ;;  %v375_v2 = vld [vmem:[%s4892_s26 + $0x540] sm:$0xff] }
 0x1c9   : > { %v1461_v10 = vpop.f32.mrb[50].mxu0  ;;  %v2741_v11 = vpop.f32.mrb[50].mxu1 }
 0x1ca   : > { %v1462_v12 = vadd.f32 %v5246_v7, %v1461_v10  ;;  %v2742_v13 = vadd.f32 %v5246_v7, %v2741_v11  ;;  %v1463_v14 = vpop.f32.mrb[51].mxu0  ;;  %1725 = vmatmul.mubr.f32.gmra.mrb[156].mxu0 %v363_v5  ;;  %v2743_v15 = vpop.f32.mrb[51].mxu1  ;;  %3005 = vmatmul.mubr.f32.gmra.mrb[156].mxu1 %v875_v6  ;;  %v890_v5 = vld [vmem:[%s4892_s26 + $0x1558] sm:$0xff] }
 0x1cb   : > { %1729 = vmatprep.mubr.f32.mxu0 %v366_v8  ;;  %3009 = vmatprep.mubr.f32.mxu1 %v878_v9  ;;  %v889_v14 = vld [vmem:[%s4892_s26 + $0x1550] sm:$0xff]  ;;  %v380_v15 = vld [vmem:[%s4892_s26 + $0x568] sm:$0xff] }
 0x1cc   : > { %3921 = vst.msk [vmem:[%s5255_s22 + $0xc8] sm:$0xff] %vm3895_vm0, %v1462_v12  ;;  %4177 = vst.msk [vmem:[%s5255_s22 + $0x8c8] sm:$0xff] %vm3895_vm0, %v2742_v13  ;;  %v377_v13 = vld [vmem:[%s4892_s26 + $0x550] sm:$0xff] }
 0x1cd   : > { %v1466_v20 = vpop.f32.mrb[52].mxu0  ;;  %v2746_v21 = vpop.f32.mrb[52].mxu1 }
 0x1ce   : > { %v1467_v22 = vadd.f32 %v5246_v7, %v1466_v20  ;;  %v2747_v23 = vadd.f32 %v5246_v7, %v2746_v21  ;;  %v1468_v24 = vpop.f32.mrb[53].mxu0  ;;  %1730 = vmatmul.mubr.f32.gmra.mrb[158].mxu0 %v365_v16  ;;  %v2748_v25 = vpop.f32.mrb[53].mxu1  ;;  %3010 = vmatmul.mubr.f32.gmra.mrb[158].mxu1 %v877_v17  ;;  %v892_v16 = vld [vmem:[%s4892_s26 + $0x1568] sm:$0xff] }
 0x1cf   : > { %1734 = vmatprep.mubr.f32.mxu0 %v368_v18  ;;  %3014 = vmatprep.mubr.f32.mxu1 %v880_v19  ;;  %v5577_v18 = vld [vmem:[#allocation4] ss:$0 sm:$0xff]  ;;  %v382_v25 = vld [vmem:[%s4892_s26 + $0x578] sm:$0xff] }
 0x1d0   : > { %3922 = vst.msk [vmem:[%s5255_s22 + $0xd0] sm:$0xff] %vm3895_vm0, %v1467_v22  ;;  %4178 = vst.msk [vmem:[%s5255_s22 + $0x8d0] sm:$0xff] %vm3895_vm0, %v2747_v23  ;;  %v379_v23 = vld [vmem:[%s4892_s26 + $0x560] sm:$0xff] }
 0x1d1   : > { %v1471_v30 = vpop.f32.mrb[54].mxu0  ;;  %v2751_v31 = vpop.f32.mrb[54].mxu1  ;;  %v891_v24 = vld [vmem:[%s4892_s26 + $0x1560] sm:$0xff] }
 0x1d2   : > { %v1472_v32 = vadd.f32 %v5246_v7, %v1471_v30  ;;  %v2752_v33 = vadd.f32 %v5246_v7, %v2751_v31  ;;  %v1473_v34 = vpop.f32.mrb[55].mxu0  ;;  %1735 = vmatmul.mubr.f32.gmra.mrb[160].mxu0 %v367_v26  ;;  %v2753_v35 = vpop.f32.mrb[55].mxu1  ;;  %3015 = vmatmul.mubr.f32.gmra.mrb[160].mxu1 %v879_v27  ;;  %v894_v26 = vld [vmem:[%s4892_s26 + $0x1578] sm:$0xff] }
 0x1d3   : > { %1739 = vmatprep.mubr.f32.mxu0 %v370_v28  ;;  %3019 = vmatprep.mubr.f32.mxu1 %v882_v29  ;;  %v893_v34 = vld [vmem:[%s4892_s26 + $0x1570] sm:$0xff]  ;;  %v384_v35 = vld [vmem:[%s4892_s26 + $0x588] sm:$0xff] }
 0x1d4   : > { %3923 = vst.msk [vmem:[%s5255_s22 + $0xd8] sm:$0xff] %vm3895_vm0, %v1472_v32  ;;  %4179 = vst.msk [vmem:[%s5255_s22 + $0x8d8] sm:$0xff] %vm3895_vm0, %v2752_v33  ;;  %v381_v33 = vld [vmem:[%s4892_s26 + $0x570] sm:$0xff] }
 0x1d5   : > { %v1476_v40 = vpop.f32.mrb[56].mxu0  ;;  %v2756_v41 = vpop.f32.mrb[56].mxu1 }
 0x1d6   : > { %v1477_v42 = vadd.f32 %v5246_v7, %v1476_v40  ;;  %v2757_v43 = vadd.f32 %v5246_v7, %v2756_v41  ;;  %v1478_v44 = vpop.f32.mrb[57].mxu0  ;;  %1740 = vmatmul.mubr.f32.gmra.mrb[162].mxu0 %v369_v36  ;;  %v2758_v45 = vpop.f32.mrb[57].mxu1  ;;  %3020 = vmatmul.mubr.f32.gmra.mrb[162].mxu1 %v881_v37  ;;  %v896_v36 = vld [vmem:[%s4892_s26 + $0x1588] sm:$0xff] }
 0x1d7   : > { %1744 = vmatprep.mubr.f32.mxu0 %v372_v38  ;;  %3024 = vmatprep.mubr.f32.mxu1 %v884_v39  ;;  %v895_v44 = vld [vmem:[%s4892_s26 + $0x1580] sm:$0xff]  ;;  %v386_v45 = vld [vmem:[%s4892_s26 + $0x598] sm:$0xff] }
 0x1d8   : > { %3924 = vst.msk [vmem:[%s5255_s22 + $0xe0] sm:$0xff] %vm3895_vm0, %v1477_v42  ;;  %4180 = vst.msk [vmem:[%s5255_s22 + $0x8e0] sm:$0xff] %vm3895_vm0, %v2757_v43  ;;  %v383_v43 = vld [vmem:[%s4892_s26 + $0x580] sm:$0xff] }
 0x1d9   : > { %v1481_v50 = vpop.f32.mrb[58].mxu0  ;;  %v2761_v51 = vpop.f32.mrb[58].mxu1 }
 0x1da   : > { %v1482_v52 = vadd.f32 %v5246_v7, %v1481_v50  ;;  %v2762_v53 = vadd.f32 %v5246_v7, %v2761_v51  ;;  %v1483_v54 = vpop.f32.mrb[59].mxu0  ;;  %1745 = vmatmul.mubr.f32.gmra.mrb[164].mxu0 %v371_v46  ;;  %v2763_v55 = vpop.f32.mrb[59].mxu1  ;;  %3025 = vmatmul.mubr.f32.gmra.mrb[164].mxu1 %v883_v47  ;;  %v898_v46 = vld [vmem:[%s4892_s26 + $0x1598] sm:$0xff] }
 0x1db   : > { %1749 = vmatprep.mubr.f32.mxu0 %v374_v48  ;;  %3029 = vmatprep.mubr.f32.mxu1 %v886_v49  ;;  %v897_v54 = vld [vmem:[%s4892_s26 + $0x1590] sm:$0xff]  ;;  %v388_v55 = vld [vmem:[%s4892_s26 + $0x5a8] sm:$0xff] }
 0x1dc   : > { %3925 = vst.msk [vmem:[%s5255_s22 + $0xe8] sm:$0xff] %vm3895_vm0, %v1482_v52  ;;  %4181 = vst.msk [vmem:[%s5255_s22 + $0x8e8] sm:$0xff] %vm3895_vm0, %v2762_v53  ;;  %v385_v53 = vld [vmem:[%s4892_s26 + $0x590] sm:$0xff] }
 0x1dd   : > { %v1486_v60 = vpop.f32.mrb[60].mxu0  ;;  %v2766_v61 = vpop.f32.mrb[60].mxu1 }
 0x1de   : > { %v1487_v62 = vadd.f32 %v5246_v7, %v1486_v60  ;;  %v2767_v63 = vadd.f32 %v5246_v7, %v2766_v61  ;;  %v1488_v0 = vpop.f32.mrb[61].mxu0  ;;  %1750 = vmatmul.mubr.f32.gmra.mrb[166].mxu0 %v373_v56  ;;  %v2768_v1 = vpop.f32.mrb[61].mxu1  ;;  %3030 = vmatmul.mubr.f32.gmra.mrb[166].mxu1 %v885_v57  ;;  %v900_v56 = vld [vmem:[%s4892_s26 + $0x15a8] sm:$0xff] }
 0x1df   : > { %1754 = vmatprep.mubr.f32.mxu0 %v376_v58  ;;  %3034 = vmatprep.mubr.f32.mxu1 %v888_v59  ;;  %v899_v0 = vld [vmem:[%s4892_s26 + $0x15a0] sm:$0xff]  ;;  %v390_v1 = vld [vmem:[%s4892_s26 + $0x5b8] sm:$0xff] }
 0x1e0   : > { %3926 = vst.msk [vmem:[%s5255_s22 + $0xf0] sm:$0xff] %vm3895_vm0, %v1487_v62  ;;  %4182 = vst.msk [vmem:[%s5255_s22 + $0x8f0] sm:$0xff] %vm3895_vm0, %v2767_v63  ;;  %v387_v63 = vld [vmem:[%s4892_s26 + $0x5a0] sm:$0xff] }
 0x1e1   : > { %v1491_v6 = vpop.f32.mrb[62].mxu0  ;;  %v2771_v8 = vpop.f32.mrb[62].mxu1 }
 0x1e2   : > { %v1492_v9 = vadd.f32 %v5246_v7, %v1491_v6  ;;  %v2772_v10 = vadd.f32 %v5246_v7, %v2771_v8  ;;  %v1493_v11 = vpop.f32.mrb[63].mxu0  ;;  %1755 = vmatmul.mubr.f32.gmra.mrb[168].mxu0 %v375_v2  ;;  %v2773_v12 = vpop.f32.mrb[63].mxu1  ;;  %3035 = vmatmul.mubr.f32.gmra.mrb[168].mxu1 %v887_v3  ;;  %v902_v2 = vld [vmem:[%s4892_s26 + $0x15b8] sm:$0xff] }
 0x1e3   : > { %1759 = vmatprep.mubr.f32.mxu0 %v378_v4  ;;  %3039 = vmatprep.mubr.f32.mxu1 %v890_v5  ;;  %v901_v11 = vld [vmem:[%s4892_s26 + $0x15b0] sm:$0xff]  ;;  %v392_v12 = vld [vmem:[%s4892_s26 + $0x5c8] sm:$0xff] }
 0x1e4   : > { %3927 = vst.msk [vmem:[%s5255_s22 + $0xf8] sm:$0xff] %vm3895_vm0, %v1492_v9  ;;  %4183 = vst.msk [vmem:[%s5255_s22 + $0x8f8] sm:$0xff] %vm3895_vm0, %v2772_v10  ;;  %v389_v10 = vld [vmem:[%s4892_s26 + $0x5b0] sm:$0xff] }
 0x1e5   : > { %v1496_v7 = vpop.f32.mrb[64].mxu0  ;;  %v2776_v17 = vpop.f32.mrb[64].mxu1 }
 0x1e6   : > { %v1497_v19 = vadd.f32 %v5577_v18, %v1496_v7  ;;  %v2777_v20 = vadd.f32 %v5577_v18, %v2776_v17  ;;  %v1498_v21 = vpop.f32.mrb[65].mxu0  ;;  %1760 = vmatmul.mubr.f32.gmra.mrb[170].mxu0 %v377_v13  ;;  %v2778_v22 = vpop.f32.mrb[65].mxu1  ;;  %3040 = vmatmul.mubr.f32.gmra.mrb[170].mxu1 %v889_v14  ;;  %v904_v13 = vld [vmem:[%s4892_s26 + $0x15c8] sm:$0xff] }
 0x1e7   : > { %1764 = vmatprep.mubr.f32.mxu0 %v380_v15  ;;  %3044 = vmatprep.mubr.f32.mxu1 %v892_v16  ;;  %v903_v21 = vld [vmem:[%s4892_s26 + $0x15c0] sm:$0xff]  ;;  %v394_v22 = vld [vmem:[%s4892_s26 + $0x5d8] sm:$0xff] }
 0x1e8   : > { %3928 = vst.msk [vmem:[%s5255_s22 + $0x100] sm:$0xff] %vm3895_vm0, %v1497_v19  ;;  %4184 = vst.msk [vmem:[%s5255_s22 + $0x900] sm:$0xff] %vm3895_vm0, %v2777_v20  ;;  %v391_v20 = vld [vmem:[%s4892_s26 + $0x5c0] sm:$0xff] }
 0x1e9   : > { %v1501_v27 = vpop.f32.mrb[66].mxu0  ;;  %v2781_v28 = vpop.f32.mrb[66].mxu1 }
 0x1ea   : > { %v1502_v29 = vadd.f32 %v5577_v18, %v1501_v27  ;;  %v2782_v30 = vadd.f32 %v5577_v18, %v2781_v28  ;;  %v1503_v31 = vpop.f32.mrb[67].mxu0  ;;  %1765 = vmatmul.mubr.f32.gmra.mrb[172].mxu0 %v379_v23  ;;  %v2783_v32 = vpop.f32.mrb[67].mxu1  ;;  %3045 = vmatmul.mubr.f32.gmra.mrb[172].mxu1 %v891_v24  ;;  %v906_v23 = vld [vmem:[%s4892_s26 + $0x15d8] sm:$0xff] }
 0x1eb   : > { %1769 = vmatprep.mubr.f32.mxu0 %v382_v25  ;;  %3049 = vmatprep.mubr.f32.mxu1 %v894_v26  ;;  %v905_v31 = vld [vmem:[%s4892_s26 + $0x15d0] sm:$0xff]  ;;  %v396_v32 = vld [vmem:[%s4892_s26 + $0x5e8] sm:$0xff] }
 0x1ec   : > { %3929 = vst.msk [vmem:[%s5255_s22 + $0x108] sm:$0xff] %vm3895_vm0, %v1502_v29  ;;  %4185 = vst.msk [vmem:[%s5255_s22 + $0x908] sm:$0xff] %vm3895_vm0, %v2782_v30  ;;  %v393_v30 = vld [vmem:[%s4892_s26 + $0x5d0] sm:$0xff] }
 0x1ed   : > { %v1506_v37 = vpop.f32.mrb[68].mxu0  ;;  %v2786_v38 = vpop.f32.mrb[68].mxu1 }
 0x1ee   : > { %v1507_v39 = vadd.f32 %v5577_v18, %v1506_v37  ;;  %v2787_v40 = vadd.f32 %v5577_v18, %v2786_v38  ;;  %v1508_v41 = vpop.f32.mrb[69].mxu0  ;;  %1770 = vmatmul.mubr.f32.gmra.mrb[174].mxu0 %v381_v33  ;;  %v2788_v42 = vpop.f32.mrb[69].mxu1  ;;  %3050 = vmatmul.mubr.f32.gmra.mrb[174].mxu1 %v893_v34  ;;  %v908_v33 = vld [vmem:[%s4892_s26 + $0x15e8] sm:$0xff] }
 0x1ef   : > { %1774 = vmatprep.mubr.f32.mxu0 %v384_v35  ;;  %3054 = vmatprep.mubr.f32.mxu1 %v896_v36  ;;  %v907_v41 = vld [vmem:[%s4892_s26 + $0x15e0] sm:$0xff]  ;;  %v398_v42 = vld [vmem:[%s4892_s26 + $0x5f8] sm:$0xff] }
 0x1f0   : > { %3930 = vst.msk [vmem:[%s5255_s22 + $0x110] sm:$0xff] %vm3895_vm0, %v1507_v39  ;;  %4186 = vst.msk [vmem:[%s5255_s22 + $0x910] sm:$0xff] %vm3895_vm0, %v2787_v40  ;;  %v395_v40 = vld [vmem:[%s4892_s26 + $0x5e0] sm:$0xff] }
 0x1f1   : > { %v1511_v47 = vpop.f32.mrb[70].mxu0  ;;  %v2791_v48 = vpop.f32.mrb[70].mxu1 }
 0x1f2   : > { %v1512_v49 = vadd.f32 %v5577_v18, %v1511_v47  ;;  %v2792_v50 = vadd.f32 %v5577_v18, %v2791_v48  ;;  %v1513_v51 = vpop.f32.mrb[71].mxu0  ;;  %1775 = vmatmul.mubr.f32.gmra.mrb[176].mxu0 %v383_v43  ;;  %v2793_v52 = vpop.f32.mrb[71].mxu1  ;;  %3055 = vmatmul.mubr.f32.gmra.mrb[176].mxu1 %v895_v44  ;;  %v910_v43 = vld [vmem:[%s4892_s26 + $0x15f8] sm:$0xff] }
 0x1f3   : > { %1779 = vmatprep.mubr.f32.mxu0 %v386_v45  ;;  %3059 = vmatprep.mubr.f32.mxu1 %v898_v46  ;;  %v909_v51 = vld [vmem:[%s4892_s26 + $0x15f0] sm:$0xff]  ;;  %v400_v52 = vld [vmem:[%s4892_s26 + $0x608] sm:$0xff] }
 0x1f4   : > { %3931 = vst.msk [vmem:[%s5255_s22 + $0x118] sm:$0xff] %vm3895_vm0, %v1512_v49  ;;  %4187 = vst.msk [vmem:[%s5255_s22 + $0x918] sm:$0xff] %vm3895_vm0, %v2792_v50  ;;  %v397_v50 = vld [vmem:[%s4892_s26 + $0x5f0] sm:$0xff] }
 0x1f5   : > { %v1516_v57 = vpop.f32.mrb[72].mxu0  ;;  %v2796_v58 = vpop.f32.mrb[72].mxu1 }
 0x1f6   : > { %v1517_v59 = vadd.f32 %v5577_v18, %v1516_v57  ;;  %v2797_v60 = vadd.f32 %v5577_v18, %v2796_v58  ;;  %v1518_v61 = vpop.f32.mrb[73].mxu0  ;;  %1780 = vmatmul.mubr.f32.gmra.mrb[178].mxu0 %v385_v53  ;;  %v2798_v62 = vpop.f32.mrb[73].mxu1  ;;  %3060 = vmatmul.mubr.f32.gmra.mrb[178].mxu1 %v897_v54  ;;  %v912_v53 = vld [vmem:[%s4892_s26 + $0x1608] sm:$0xff] }
 0x1f7   : > { %1784 = vmatprep.mubr.f32.mxu0 %v388_v55  ;;  %3064 = vmatprep.mubr.f32.mxu1 %v900_v56  ;;  %v911_v61 = vld [vmem:[%s4892_s26 + $0x1600] sm:$0xff]  ;;  %v402_v62 = vld [vmem:[%s4892_s26 + $0x618] sm:$0xff] }
 0x1f8   : > { %3932 = vst.msk [vmem:[%s5255_s22 + $0x120] sm:$0xff] %vm3895_vm0, %v1517_v59  ;;  %4188 = vst.msk [vmem:[%s5255_s22 + $0x920] sm:$0xff] %vm3895_vm0, %v2797_v60  ;;  %v399_v60 = vld [vmem:[%s4892_s26 + $0x600] sm:$0xff] }
 0x1f9   : > { %v1521_v3 = vpop.f32.mrb[74].mxu0  ;;  %v2801_v4 = vpop.f32.mrb[74].mxu1 }
 0x1fa   : > { %v1522_v5 = vadd.f32 %v5577_v18, %v1521_v3  ;;  %v2802_v6 = vadd.f32 %v5577_v18, %v2801_v4  ;;  %v1523_v8 = vpop.f32.mrb[75].mxu0  ;;  %1785 = vmatmul.mubr.f32.gmra.mrb[180].mxu0 %v387_v63  ;;  %v2803_v9 = vpop.f32.mrb[75].mxu1  ;;  %3065 = vmatmul.mubr.f32.gmra.mrb[180].mxu1 %v899_v0  ;;  %v914_v63 = vld [vmem:[%s4892_s26 + $0x1618] sm:$0xff] }
 0x1fb   : > { %1789 = vmatprep.mubr.f32.mxu0 %v390_v1  ;;  %3069 = vmatprep.mubr.f32.mxu1 %v902_v2  ;;  %v913_v8 = vld [vmem:[%s4892_s26 + $0x1610] sm:$0xff]  ;;  %v404_v9 = vld [vmem:[%s4892_s26 + $0x628] sm:$0xff] }
 0x1fc   : > { %3933 = vst.msk [vmem:[%s5255_s22 + $0x128] sm:$0xff] %vm3895_vm0, %v1522_v5  ;;  %4189 = vst.msk [vmem:[%s5255_s22 + $0x928] sm:$0xff] %vm3895_vm0, %v2802_v6  ;;  %v401_v6 = vld [vmem:[%s4892_s26 + $0x610] sm:$0xff] }
 0x1fd   : > { %v1526_v14 = vpop.f32.mrb[76].mxu0  ;;  %v2806_v15 = vpop.f32.mrb[76].mxu1 }
 0x1fe   : > { %v1527_v16 = vadd.f32 %v5577_v18, %v1526_v14  ;;  %v2807_v7 = vadd.f32 %v5577_v18, %v2806_v15  ;;  %v1528_v17 = vpop.f32.mrb[77].mxu0  ;;  %1790 = vmatmul.mubr.f32.gmra.mrb[182].mxu0 %v389_v10  ;;  %v2808_v19 = vpop.f32.mrb[77].mxu1  ;;  %3070 = vmatmul.mubr.f32.gmra.mrb[182].mxu1 %v901_v11  ;;  %v916_v10 = vld [vmem:[%s4892_s26 + $0x1628] sm:$0xff] }
 0x1ff   : > { %1794 = vmatprep.mubr.f32.mxu0 %v392_v12  ;;  %3074 = vmatprep.mubr.f32.mxu1 %v904_v13  ;;  %v915_v17 = vld [vmem:[%s4892_s26 + $0x1620] sm:$0xff]  ;;  %v406_v19 = vld [vmem:[%s4892_s26 + $0x638] sm:$0xff] }
 0x200   : > { %3934 = vst.msk [vmem:[%s5255_s22 + $0x130] sm:$0xff] %vm3895_vm0, %v1527_v16  ;;  %4190 = vst.msk [vmem:[%s5255_s22 + $0x930] sm:$0xff] %vm3895_vm0, %v2807_v7  ;;  %v403_v7 = vld [vmem:[%s4892_s26 + $0x620] sm:$0xff] }
 0x201   : > { %v1531_v24 = vpop.f32.mrb[78].mxu0  ;;  %v2811_v25 = vpop.f32.mrb[78].mxu1 }
 0x202   : > { %v1532_v26 = vadd.f32 %v5577_v18, %v1531_v24  ;;  %v2812_v27 = vadd.f32 %v5577_v18, %v2811_v25  ;;  %v1533_v28 = vpop.f32.mrb[79].mxu0  ;;  %1795 = vmatmul.mubr.f32.gmra.mrb[184].mxu0 %v391_v20  ;;  %v2813_v29 = vpop.f32.mrb[79].mxu1  ;;  %3075 = vmatmul.mubr.f32.gmra.mrb[184].mxu1 %v903_v21  ;;  %v918_v20 = vld [vmem:[%s4892_s26 + $0x1638] sm:$0xff] }
 0x203   : > { %1799 = vmatprep.mubr.f32.mxu0 %v394_v22  ;;  %3079 = vmatprep.mubr.f32.mxu1 %v906_v23  ;;  %v917_v28 = vld [vmem:[%s4892_s26 + $0x1630] sm:$0xff]  ;;  %v408_v29 = vld [vmem:[%s4892_s26 + $0x648] sm:$0xff] }
 0x204   : > { %3935 = vst.msk [vmem:[%s5255_s22 + $0x138] sm:$0xff] %vm3895_vm0, %v1532_v26  ;;  %4191 = vst.msk [vmem:[%s5255_s22 + $0x938] sm:$0xff] %vm3895_vm0, %v2812_v27  ;;  %v405_v27 = vld [vmem:[%s4892_s26 + $0x630] sm:$0xff] }
 0x205   : > { %v1536_v34 = vpop.f32.mrb[80].mxu0  ;;  %v2816_v35 = vpop.f32.mrb[80].mxu1 }
 0x206   : > { %v1537_v36 = vadd.f32 %v5577_v18, %v1536_v34  ;;  %v2817_v37 = vadd.f32 %v5577_v18, %v2816_v35  ;;  %v1538_v38 = vpop.f32.mrb[81].mxu0  ;;  %1800 = vmatmul.mubr.f32.gmra.mrb[186].mxu0 %v393_v30  ;;  %v2818_v39 = vpop.f32.mrb[81].mxu1  ;;  %3080 = vmatmul.mubr.f32.gmra.mrb[186].mxu1 %v905_v31  ;;  %v920_v30 = vld [vmem:[%s4892_s26 + $0x1648] sm:$0xff] }
 0x207   : > { %1804 = vmatprep.mubr.f32.mxu0 %v396_v32  ;;  %3084 = vmatprep.mubr.f32.mxu1 %v908_v33  ;;  %v919_v38 = vld [vmem:[%s4892_s26 + $0x1640] sm:$0xff]  ;;  %v410_v39 = vld [vmem:[%s4892_s26 + $0x658] sm:$0xff] }
 0x208   : > { %3936 = vst.msk [vmem:[%s5255_s22 + $0x140] sm:$0xff] %vm3895_vm0, %v1537_v36  ;;  %4192 = vst.msk [vmem:[%s5255_s22 + $0x940] sm:$0xff] %vm3895_vm0, %v2817_v37  ;;  %v407_v37 = vld [vmem:[%s4892_s26 + $0x640] sm:$0xff] }
 0x209   : > { %v1541_v44 = vpop.f32.mrb[82].mxu0  ;;  %v2821_v45 = vpop.f32.mrb[82].mxu1 }
 0x20a   : > { %v1542_v46 = vadd.f32 %v5577_v18, %v1541_v44  ;;  %v2822_v47 = vadd.f32 %v5577_v18, %v2821_v45  ;;  %v1543_v48 = vpop.f32.mrb[83].mxu0  ;;  %1805 = vmatmul.mubr.f32.gmra.mrb[188].mxu0 %v395_v40  ;;  %v2823_v49 = vpop.f32.mrb[83].mxu1  ;;  %3085 = vmatmul.mubr.f32.gmra.mrb[188].mxu1 %v907_v41  ;;  %v922_v40 = vld [vmem:[%s4892_s26 + $0x1658] sm:$0xff] }
 0x20b   : > { %1809 = vmatprep.mubr.f32.mxu0 %v398_v42  ;;  %3089 = vmatprep.mubr.f32.mxu1 %v910_v43  ;;  %v921_v48 = vld [vmem:[%s4892_s26 + $0x1650] sm:$0xff]  ;;  %v412_v49 = vld [vmem:[%s4892_s26 + $0x668] sm:$0xff] }
 0x20c   : > { %3937 = vst.msk [vmem:[%s5255_s22 + $0x148] sm:$0xff] %vm3895_vm0, %v1542_v46  ;;  %4193 = vst.msk [vmem:[%s5255_s22 + $0x948] sm:$0xff] %vm3895_vm0, %v2822_v47  ;;  %v409_v47 = vld [vmem:[%s4892_s26 + $0x650] sm:$0xff] }
 0x20d   : > { %v1546_v54 = vpop.f32.mrb[84].mxu0  ;;  %v2826_v55 = vpop.f32.mrb[84].mxu1 }
 0x20e   : > { %v1547_v56 = vadd.f32 %v5577_v18, %v1546_v54  ;;  %v2827_v57 = vadd.f32 %v5577_v18, %v2826_v55  ;;  %v1548_v58 = vpop.f32.mrb[85].mxu0  ;;  %1810 = vmatmul.mubr.f32.gmra.mrb[190].mxu0 %v397_v50  ;;  %v2828_v59 = vpop.f32.mrb[85].mxu1  ;;  %3090 = vmatmul.mubr.f32.gmra.mrb[190].mxu1 %v909_v51  ;;  %v924_v50 = vld [vmem:[%s4892_s26 + $0x1668] sm:$0xff] }
 0x20f   : > { %1814 = vmatprep.mubr.f32.mxu0 %v400_v52  ;;  %3094 = vmatprep.mubr.f32.mxu1 %v912_v53  ;;  %v923_v58 = vld [vmem:[%s4892_s26 + $0x1660] sm:$0xff]  ;;  %v414_v59 = vld [vmem:[%s4892_s26 + $0x678] sm:$0xff] }
 0x210   : > { %3938 = vst.msk [vmem:[%s5255_s22 + $0x150] sm:$0xff] %vm3895_vm0, %v1547_v56  ;;  %4194 = vst.msk [vmem:[%s5255_s22 + $0x950] sm:$0xff] %vm3895_vm0, %v2827_v57  ;;  %v411_v57 = vld [vmem:[%s4892_s26 + $0x660] sm:$0xff] }
 0x211   : > { %v1551_v0 = vpop.f32.mrb[86].mxu0  ;;  %v2831_v1 = vpop.f32.mrb[86].mxu1 }
 0x212   : > { %v1552_v2 = vadd.f32 %v5577_v18, %v1551_v0  ;;  %v2832_v3 = vadd.f32 %v5577_v18, %v2831_v1  ;;  %v1553_v4 = vpop.f32.mrb[87].mxu0  ;;  %1815 = vmatmul.mubr.f32.gmra.mrb[192].mxu0 %v399_v60  ;;  %v2833_v5 = vpop.f32.mrb[87].mxu1  ;;  %3095 = vmatmul.mubr.f32.gmra.mrb[192].mxu1 %v911_v61  ;;  %v926_v60 = vld [vmem:[%s4892_s26 + $0x1678] sm:$0xff] }
 0x213   : > { %1819 = vmatprep.mubr.f32.mxu0 %v402_v62  ;;  %3099 = vmatprep.mubr.f32.mxu1 %v914_v63  ;;  %v925_v4 = vld [vmem:[%s4892_s26 + $0x1670] sm:$0xff]  ;;  %v416_v5 = vld [vmem:[%s4892_s26 + $0x688] sm:$0xff] }
 0x214   : > { %3939 = vst.msk [vmem:[%s5255_s22 + $0x158] sm:$0xff] %vm3895_vm0, %v1552_v2  ;;  %4195 = vst.msk [vmem:[%s5255_s22 + $0x958] sm:$0xff] %vm3895_vm0, %v2832_v3  ;;  %v413_v3 = vld [vmem:[%s4892_s26 + $0x670] sm:$0xff] }
 0x215   : > { %v1556_v11 = vpop.f32.mrb[88].mxu0  ;;  %v2836_v12 = vpop.f32.mrb[88].mxu1 }
 0x216   : > { %v1557_v13 = vadd.f32 %v5577_v18, %v1556_v11  ;;  %v2837_v14 = vadd.f32 %v5577_v18, %v2836_v12  ;;  %v1558_v15 = vpop.f32.mrb[89].mxu0  ;;  %1820 = vmatmul.mubr.f32.gmra.mrb[194].mxu0 %v401_v6  ;;  %v2838_v16 = vpop.f32.mrb[89].mxu1  ;;  %3100 = vmatmul.mubr.f32.gmra.mrb[194].mxu1 %v913_v8  ;;  %v928_v6 = vld [vmem:[%s4892_s26 + $0x1688] sm:$0xff] }
 0x217   : > { %1824 = vmatprep.mubr.f32.mxu0 %v404_v9  ;;  %3104 = vmatprep.mubr.f32.mxu1 %v916_v10  ;;  %v927_v15 = vld [vmem:[%s4892_s26 + $0x1680] sm:$0xff]  ;;  %v418_v16 = vld [vmem:[%s4892_s26 + $0x698] sm:$0xff] }
 0x218   : > { %3940 = vst.msk [vmem:[%s5255_s22 + $0x160] sm:$0xff] %vm3895_vm0, %v1557_v13  ;;  %4196 = vst.msk [vmem:[%s5255_s22 + $0x960] sm:$0xff] %vm3895_vm0, %v2837_v14  ;;  %v415_v14 = vld [vmem:[%s4892_s26 + $0x680] sm:$0xff] }
 0x219   : > { %v1561_v21 = vpop.f32.mrb[90].mxu0  ;;  %v2841_v22 = vpop.f32.mrb[90].mxu1 }
 0x21a   : > { %v1562_v23 = vadd.f32 %v5577_v18, %v1561_v21  ;;  %v2842_v24 = vadd.f32 %v5577_v18, %v2841_v22  ;;  %v1563_v25 = vpop.f32.mrb[91].mxu0  ;;  %1825 = vmatmul.mubr.f32.gmra.mrb[196].mxu0 %v403_v7  ;;  %v2843_v26 = vpop.f32.mrb[91].mxu1  ;;  %3105 = vmatmul.mubr.f32.gmra.mrb[196].mxu1 %v915_v17  ;;  %v930_v7 = vld [vmem:[%s4892_s26 + $0x1698] sm:$0xff] }
 0x21b   : > { %1829 = vmatprep.mubr.f32.mxu0 %v406_v19  ;;  %3109 = vmatprep.mubr.f32.mxu1 %v918_v20  ;;  %v929_v25 = vld [vmem:[%s4892_s26 + $0x1690] sm:$0xff]  ;;  %v420_v26 = vld [vmem:[%s4892_s26 + $0x6a8] sm:$0xff] }
 0x21c   : > { %3941 = vst.msk [vmem:[%s5255_s22 + $0x168] sm:$0xff] %vm3895_vm0, %v1562_v23  ;;  %4197 = vst.msk [vmem:[%s5255_s22 + $0x968] sm:$0xff] %vm3895_vm0, %v2842_v24  ;;  %v417_v24 = vld [vmem:[%s4892_s26 + $0x690] sm:$0xff] }
 0x21d   : > { %v1566_v31 = vpop.f32.mrb[92].mxu0  ;;  %v2846_v32 = vpop.f32.mrb[92].mxu1 }
 0x21e   : > { %v1567_v33 = vadd.f32 %v5577_v18, %v1566_v31  ;;  %v2847_v34 = vadd.f32 %v5577_v18, %v2846_v32  ;;  %v1568_v35 = vpop.f32.mrb[93].mxu0  ;;  %1830 = vmatmul.mubr.f32.gmra.mrb[198].mxu0 %v405_v27  ;;  %v2848_v36 = vpop.f32.mrb[93].mxu1  ;;  %3110 = vmatmul.mubr.f32.gmra.mrb[198].mxu1 %v917_v28  ;;  %v932_v27 = vld [vmem:[%s4892_s26 + $0x16a8] sm:$0xff] }
 0x21f   : > { %1834 = vmatprep.mubr.f32.mxu0 %v408_v29  ;;  %3114 = vmatprep.mubr.f32.mxu1 %v920_v30  ;;  %v931_v35 = vld [vmem:[%s4892_s26 + $0x16a0] sm:$0xff]  ;;  %v422_v36 = vld [vmem:[%s4892_s26 + $0x6b8] sm:$0xff] }
 0x220   : > { %3942 = vst.msk [vmem:[%s5255_s22 + $0x170] sm:$0xff] %vm3895_vm0, %v1567_v33  ;;  %4198 = vst.msk [vmem:[%s5255_s22 + $0x970] sm:$0xff] %vm3895_vm0, %v2847_v34  ;;  %v419_v34 = vld [vmem:[%s4892_s26 + $0x6a0] sm:$0xff] }
 0x221   : > { %v1571_v41 = vpop.f32.mrb[94].mxu0  ;;  %v2851_v42 = vpop.f32.mrb[94].mxu1 }
 0x222   : > { %v1572_v43 = vadd.f32 %v5577_v18, %v1571_v41  ;;  %v2852_v44 = vadd.f32 %v5577_v18, %v2851_v42  ;;  %v1573_v45 = vpop.f32.mrb[95].mxu0  ;;  %1835 = vmatmul.mubr.f32.gmra.mrb[200].mxu0 %v407_v37  ;;  %v2853_v46 = vpop.f32.mrb[95].mxu1  ;;  %3115 = vmatmul.mubr.f32.gmra.mrb[200].mxu1 %v919_v38  ;;  %v934_v37 = vld [vmem:[%s4892_s26 + $0x16b8] sm:$0xff] }
 0x223   : > { %1839 = vmatprep.mubr.f32.mxu0 %v410_v39  ;;  %3119 = vmatprep.mubr.f32.mxu1 %v922_v40  ;;  %v933_v45 = vld [vmem:[%s4892_s26 + $0x16b0] sm:$0xff]  ;;  %v424_v46 = vld [vmem:[%s4892_s26 + $0x6c8] sm:$0xff] }
 0x224   : > { %3943 = vst.msk [vmem:[%s5255_s22 + $0x178] sm:$0xff] %vm3895_vm0, %v1572_v43  ;;  %4199 = vst.msk [vmem:[%s5255_s22 + $0x978] sm:$0xff] %vm3895_vm0, %v2852_v44  ;;  %v421_v44 = vld [vmem:[%s4892_s26 + $0x6b0] sm:$0xff] }
 0x225   : > { %v1576_v51 = vpop.f32.mrb[96].mxu0  ;;  %v2856_v52 = vpop.f32.mrb[96].mxu1 }
 0x226   : > { %v1577_v53 = vadd.f32 %v5577_v18, %v1576_v51  ;;  %v2857_v54 = vadd.f32 %v5577_v18, %v2856_v52  ;;  %v1578_v55 = vpop.f32.mrb[97].mxu0  ;;  %1840 = vmatmul.mubr.f32.gmra.mrb[202].mxu0 %v409_v47  ;;  %v2858_v56 = vpop.f32.mrb[97].mxu1  ;;  %3120 = vmatmul.mubr.f32.gmra.mrb[202].mxu1 %v921_v48  ;;  %v936_v47 = vld [vmem:[%s4892_s26 + $0x16c8] sm:$0xff] }
 0x227   : > { %1844 = vmatprep.mubr.f32.mxu0 %v412_v49  ;;  %3124 = vmatprep.mubr.f32.mxu1 %v924_v50  ;;  %v935_v55 = vld [vmem:[%s4892_s26 + $0x16c0] sm:$0xff]  ;;  %v426_v56 = vld [vmem:[%s4892_s26 + $0x6d8] sm:$0xff] }
 0x228   : > { %3944 = vst.msk [vmem:[%s5255_s22 + $0x180] sm:$0xff] %vm3895_vm0, %v1577_v53  ;;  %4200 = vst.msk [vmem:[%s5255_s22 + $0x980] sm:$0xff] %vm3895_vm0, %v2857_v54  ;;  %v423_v54 = vld [vmem:[%s4892_s26 + $0x6c0] sm:$0xff] }
 0x229   : > { %v1581_v61 = vpop.f32.mrb[98].mxu0  ;;  %v2861_v62 = vpop.f32.mrb[98].mxu1 }
 0x22a   : > { %v1582_v63 = vadd.f32 %v5577_v18, %v1581_v61  ;;  %v2862_v0 = vadd.f32 %v5577_v18, %v2861_v62  ;;  %v1583_v1 = vpop.f32.mrb[99].mxu0  ;;  %1845 = vmatmul.mubr.f32.gmra.mrb[204].mxu0 %v411_v57  ;;  %v2863_v2 = vpop.f32.mrb[99].mxu1  ;;  %3125 = vmatmul.mubr.f32.gmra.mrb[204].mxu1 %v923_v58  ;;  %v938_v57 = vld [vmem:[%s4892_s26 + $0x16d8] sm:$0xff] }
 0x22b   : > { %1849 = vmatprep.mubr.f32.mxu0 %v414_v59  ;;  %3129 = vmatprep.mubr.f32.mxu1 %v926_v60  ;;  %v937_v1 = vld [vmem:[%s4892_s26 + $0x16d0] sm:$0xff]  ;;  %v428_v2 = vld [vmem:[%s4892_s26 + $0x6e8] sm:$0xff] }
 0x22c   : > { %3945 = vst.msk [vmem:[%s5255_s22 + $0x188] sm:$0xff] %vm3895_vm0, %v1582_v63  ;;  %4201 = vst.msk [vmem:[%s5255_s22 + $0x988] sm:$0xff] %vm3895_vm0, %v2862_v0  ;;  %v425_v0 = vld [vmem:[%s4892_s26 + $0x6d0] sm:$0xff] }
 0x22d   : > { %v1586_v8 = vpop.f32.mrb[100].mxu0  ;;  %v2866_v9 = vpop.f32.mrb[100].mxu1 }
 0x22e   : > { %v1587_v10 = vadd.f32 %v5577_v18, %v1586_v8  ;;  %v2867_v11 = vadd.f32 %v5577_v18, %v2866_v9  ;;  %v1588_v12 = vpop.f32.mrb[101].mxu0  ;;  %1850 = vmatmul.mubr.f32.gmra.mrb[206].mxu0 %v413_v3  ;;  %v2868_v13 = vpop.f32.mrb[101].mxu1  ;;  %3130 = vmatmul.mubr.f32.gmra.mrb[206].mxu1 %v925_v4  ;;  %v940_v3 = vld [vmem:[%s4892_s26 + $0x16e8] sm:$0xff] }
 0x22f   : > { %1854 = vmatprep.mubr.f32.mxu0 %v416_v5  ;;  %3134 = vmatprep.mubr.f32.mxu1 %v928_v6  ;;  %v939_v12 = vld [vmem:[%s4892_s26 + $0x16e0] sm:$0xff]  ;;  %v430_v13 = vld [vmem:[%s4892_s26 + $0x6f8] sm:$0xff] }
 0x230   : > { %3946 = vst.msk [vmem:[%s5255_s22 + $0x190] sm:$0xff] %vm3895_vm0, %v1587_v10  ;;  %4202 = vst.msk [vmem:[%s5255_s22 + $0x990] sm:$0xff] %vm3895_vm0, %v2867_v11  ;;  %v427_v11 = vld [vmem:[%s4892_s26 + $0x6e0] sm:$0xff] }
 0x231   : > { %v1591_v17 = vpop.f32.mrb[102].mxu0  ;;  %v2871_v19 = vpop.f32.mrb[102].mxu1 }
 0x232   : > { %v1592_v20 = vadd.f32 %v5577_v18, %v1591_v17  ;;  %v2872_v21 = vadd.f32 %v5577_v18, %v2871_v19  ;;  %v1593_v22 = vpop.f32.mrb[103].mxu0  ;;  %1855 = vmatmul.mubr.f32.gmra.mrb[208].mxu0 %v415_v14  ;;  %v2873_v23 = vpop.f32.mrb[103].mxu1  ;;  %3135 = vmatmul.mubr.f32.gmra.mrb[208].mxu1 %v927_v15  ;;  %v942_v14 = vld [vmem:[%s4892_s26 + $0x16f8] sm:$0xff] }
 0x233   : > { %1859 = vmatprep.mubr.f32.mxu0 %v418_v16  ;;  %3139 = vmatprep.mubr.f32.mxu1 %v930_v7  ;;  %v941_v22 = vld [vmem:[%s4892_s26 + $0x16f0] sm:$0xff]  ;;  %v432_v23 = vld [vmem:[%s4892_s26 + $0x708] sm:$0xff] }
 0x234   : > { %3947 = vst.msk [vmem:[%s5255_s22 + $0x198] sm:$0xff] %vm3895_vm0, %v1592_v20  ;;  %4203 = vst.msk [vmem:[%s5255_s22 + $0x998] sm:$0xff] %vm3895_vm0, %v2872_v21  ;;  %v429_v21 = vld [vmem:[%s4892_s26 + $0x6f0] sm:$0xff] }
 0x235   : > { %v1596_v28 = vpop.f32.mrb[104].mxu0  ;;  %v2876_v29 = vpop.f32.mrb[104].mxu1 }
 0x236   : > { %v1597_v30 = vadd.f32 %v5577_v18, %v1596_v28  ;;  %v2877_v31 = vadd.f32 %v5577_v18, %v2876_v29  ;;  %v1598_v32 = vpop.f32.mrb[105].mxu0  ;;  %1860 = vmatmul.mubr.f32.gmra.mrb[210].mxu0 %v417_v24  ;;  %v2878_v33 = vpop.f32.mrb[105].mxu1  ;;  %3140 = vmatmul.mubr.f32.gmra.mrb[210].mxu1 %v929_v25  ;;  %v944_v24 = vld [vmem:[%s4892_s26 + $0x1708] sm:$0xff] }
 0x237   : > { %1864 = vmatprep.mubr.f32.mxu0 %v420_v26  ;;  %3144 = vmatprep.mubr.f32.mxu1 %v932_v27  ;;  %v943_v32 = vld [vmem:[%s4892_s26 + $0x1700] sm:$0xff]  ;;  %v434_v33 = vld [vmem:[%s4892_s26 + $0x718] sm:$0xff] }
 0x238   : > { %3948 = vst.msk [vmem:[%s5255_s22 + $0x1a0] sm:$0xff] %vm3895_vm0, %v1597_v30  ;;  %4204 = vst.msk [vmem:[%s5255_s22 + $0x9a0] sm:$0xff] %vm3895_vm0, %v2877_v31  ;;  %v431_v31 = vld [vmem:[%s4892_s26 + $0x700] sm:$0xff] }
 0x239   : > { %v1601_v38 = vpop.f32.mrb[106].mxu0  ;;  %v2881_v39 = vpop.f32.mrb[106].mxu1 }
 0x23a   : > { %v1602_v40 = vadd.f32 %v5577_v18, %v1601_v38  ;;  %v2882_v41 = vadd.f32 %v5577_v18, %v2881_v39  ;;  %v1603_v42 = vpop.f32.mrb[107].mxu0  ;;  %1865 = vmatmul.mubr.f32.gmra.mrb[212].mxu0 %v419_v34  ;;  %v2883_v43 = vpop.f32.mrb[107].mxu1  ;;  %3145 = vmatmul.mubr.f32.gmra.mrb[212].mxu1 %v931_v35  ;;  %v946_v34 = vld [vmem:[%s4892_s26 + $0x1718] sm:$0xff] }
 0x23b   : > { %1869 = vmatprep.mubr.f32.mxu0 %v422_v36  ;;  %3149 = vmatprep.mubr.f32.mxu1 %v934_v37  ;;  %v945_v42 = vld [vmem:[%s4892_s26 + $0x1710] sm:$0xff]  ;;  %v436_v43 = vld [vmem:[%s4892_s26 + $0x728] sm:$0xff] }
 0x23c   : > { %3949 = vst.msk [vmem:[%s5255_s22 + $0x1a8] sm:$0xff] %vm3895_vm0, %v1602_v40  ;;  %4205 = vst.msk [vmem:[%s5255_s22 + $0x9a8] sm:$0xff] %vm3895_vm0, %v2882_v41  ;;  %v433_v41 = vld [vmem:[%s4892_s26 + $0x710] sm:$0xff] }
 0x23d   : > { %v1606_v48 = vpop.f32.mrb[108].mxu0  ;;  %v2886_v49 = vpop.f32.mrb[108].mxu1 }
 0x23e   : > { %v1607_v50 = vadd.f32 %v5577_v18, %v1606_v48  ;;  %v2887_v51 = vadd.f32 %v5577_v18, %v2886_v49  ;;  %v1608_v52 = vpop.f32.mrb[109].mxu0  ;;  %1870 = vmatmul.mubr.f32.gmra.mrb[214].mxu0 %v421_v44  ;;  %v2888_v53 = vpop.f32.mrb[109].mxu1  ;;  %3150 = vmatmul.mubr.f32.gmra.mrb[214].mxu1 %v933_v45  ;;  %v948_v44 = vld [vmem:[%s4892_s26 + $0x1728] sm:$0xff] }
 0x23f   : > { %1874 = vmatprep.mubr.f32.mxu0 %v424_v46  ;;  %3154 = vmatprep.mubr.f32.mxu1 %v936_v47  ;;  %v947_v52 = vld [vmem:[%s4892_s26 + $0x1720] sm:$0xff]  ;;  %v438_v53 = vld [vmem:[%s4892_s26 + $0x738] sm:$0xff] }
 0x240   : > { %3950 = vst.msk [vmem:[%s5255_s22 + $0x1b0] sm:$0xff] %vm3895_vm0, %v1607_v50  ;;  %4206 = vst.msk [vmem:[%s5255_s22 + $0x9b0] sm:$0xff] %vm3895_vm0, %v2887_v51  ;;  %v435_v51 = vld [vmem:[%s4892_s26 + $0x720] sm:$0xff] }
 0x241   : > { %v1611_v58 = vpop.f32.mrb[110].mxu0  ;;  %v2891_v59 = vpop.f32.mrb[110].mxu1 }
 0x242   : > { %v1612_v60 = vadd.f32 %v5577_v18, %v1611_v58  ;;  %v2892_v61 = vadd.f32 %v5577_v18, %v2891_v59  ;;  %v1613_v62 = vpop.f32.mrb[111].mxu0  ;;  %1875 = vmatmul.mubr.f32.gmra.mrb[216].mxu0 %v423_v54  ;;  %v2893_v63 = vpop.f32.mrb[111].mxu1  ;;  %3155 = vmatmul.mubr.f32.gmra.mrb[216].mxu1 %v935_v55  ;;  %v950_v54 = vld [vmem:[%s4892_s26 + $0x1738] sm:$0xff] }
 0x243   : > { %1879 = vmatprep.mubr.f32.mxu0 %v426_v56  ;;  %3159 = vmatprep.mubr.f32.mxu1 %v938_v57  ;;  %v949_v62 = vld [vmem:[%s4892_s26 + $0x1730] sm:$0xff]  ;;  %v440_v63 = vld [vmem:[%s4892_s26 + $0x748] sm:$0xff] }
 0x244   : > { %3951 = vst.msk [vmem:[%s5255_s22 + $0x1b8] sm:$0xff] %vm3895_vm0, %v1612_v60  ;;  %4207 = vst.msk [vmem:[%s5255_s22 + $0x9b8] sm:$0xff] %vm3895_vm0, %v2892_v61  ;;  %v437_v61 = vld [vmem:[%s4892_s26 + $0x730] sm:$0xff] }
 0x245   : > { %v1616_v4 = vpop.f32.mrb[112].mxu0  ;;  %v2896_v5 = vpop.f32.mrb[112].mxu1 }
 0x246   : > { %v1617_v6 = vadd.f32 %v5577_v18, %v1616_v4  ;;  %v2897_v8 = vadd.f32 %v5577_v18, %v2896_v5  ;;  %v1618_v9 = vpop.f32.mrb[113].mxu0  ;;  %1880 = vmatmul.mubr.f32.gmra.mrb[218].mxu0 %v425_v0  ;;  %v2898_v10 = vpop.f32.mrb[113].mxu1  ;;  %3160 = vmatmul.mubr.f32.gmra.mrb[218].mxu1 %v937_v1  ;;  %v952_v0 = vld [vmem:[%s4892_s26 + $0x1748] sm:$0xff] }
 0x247   : > { %1884 = vmatprep.mubr.f32.mxu0 %v428_v2  ;;  %3164 = vmatprep.mubr.f32.mxu1 %v940_v3  ;;  %v951_v9 = vld [vmem:[%s4892_s26 + $0x1740] sm:$0xff]  ;;  %v442_v10 = vld [vmem:[%s4892_s26 + $0x758] sm:$0xff] }
 0x248   : > { %3952 = vst.msk [vmem:[%s5255_s22 + $0x1c0] sm:$0xff] %vm3895_vm0, %v1617_v6  ;;  %4208 = vst.msk [vmem:[%s5255_s22 + $0x9c0] sm:$0xff] %vm3895_vm0, %v2897_v8  ;;  %v439_v8 = vld [vmem:[%s4892_s26 + $0x740] sm:$0xff] }
 0x249   : > { %v1621_v15 = vpop.f32.mrb[114].mxu0  ;;  %v2901_v16 = vpop.f32.mrb[114].mxu1 }
 0x24a   : > { %v1622_v7 = vadd.f32 %v5577_v18, %v1621_v15  ;;  %v2902_v17 = vadd.f32 %v5577_v18, %v2901_v16  ;;  %v1623_v19 = vpop.f32.mrb[115].mxu0  ;;  %1885 = vmatmul.mubr.f32.gmra.mrb[220].mxu0 %v427_v11  ;;  %v2903_v20 = vpop.f32.mrb[115].mxu1  ;;  %3165 = vmatmul.mubr.f32.gmra.mrb[220].mxu1 %v939_v12  ;;  %v954_v11 = vld [vmem:[%s4892_s26 + $0x1758] sm:$0xff] }
 0x24b   : > { %1889 = vmatprep.mubr.f32.mxu0 %v430_v13  ;;  %3169 = vmatprep.mubr.f32.mxu1 %v942_v14  ;;  %v953_v19 = vld [vmem:[%s4892_s26 + $0x1750] sm:$0xff]  ;;  %v444_v20 = vld [vmem:[%s4892_s26 + $0x768] sm:$0xff] }
 0x24c   : > { %3953 = vst.msk [vmem:[%s5255_s22 + $0x1c8] sm:$0xff] %vm3895_vm0, %v1622_v7  ;;  %4209 = vst.msk [vmem:[%s5255_s22 + $0x9c8] sm:$0xff] %vm3895_vm0, %v2902_v17  ;;  %v441_v17 = vld [vmem:[%s4892_s26 + $0x750] sm:$0xff] }
 0x24d   : > { %v1626_v25 = vpop.f32.mrb[116].mxu0  ;;  %v2906_v26 = vpop.f32.mrb[116].mxu1 }
 0x24e   : > { %v1627_v27 = vadd.f32 %v5577_v18, %v1626_v25  ;;  %v2907_v28 = vadd.f32 %v5577_v18, %v2906_v26  ;;  %v1628_v29 = vpop.f32.mrb[117].mxu0  ;;  %1890 = vmatmul.mubr.f32.gmra.mrb[222].mxu0 %v429_v21  ;;  %v2908_v30 = vpop.f32.mrb[117].mxu1  ;;  %3170 = vmatmul.mubr.f32.gmra.mrb[222].mxu1 %v941_v22  ;;  %v956_v21 = vld [vmem:[%s4892_s26 + $0x1768] sm:$0xff] }
 0x24f   : > { %1894 = vmatprep.mubr.f32.mxu0 %v432_v23  ;;  %3174 = vmatprep.mubr.f32.mxu1 %v944_v24  ;;  %v5899_v23 = vld [vmem:[#allocation4] ss:$0 sm:$0xff]  ;;  %v446_v30 = vld [vmem:[%s4892_s26 + $0x778] sm:$0xff] }
 0x250   : > { %3954 = vst.msk [vmem:[%s5255_s22 + $0x1d0] sm:$0xff] %vm3895_vm0, %v1627_v27  ;;  %4210 = vst.msk [vmem:[%s5255_s22 + $0x9d0] sm:$0xff] %vm3895_vm0, %v2907_v28  ;;  %v443_v28 = vld [vmem:[%s4892_s26 + $0x760] sm:$0xff] }
 0x251   : > { %v1631_v35 = vpop.f32.mrb[118].mxu0  ;;  %v2911_v36 = vpop.f32.mrb[118].mxu1  ;;  %v955_v29 = vld [vmem:[%s4892_s26 + $0x1760] sm:$0xff] }
 0x252   : > { %v1632_v37 = vadd.f32 %v5577_v18, %v1631_v35  ;;  %v2912_v38 = vadd.f32 %v5577_v18, %v2911_v36  ;;  %v1633_v39 = vpop.f32.mrb[119].mxu0  ;;  %1895 = vmatmul.mubr.f32.gmra.mrb[224].mxu0 %v431_v31  ;;  %v2913_v40 = vpop.f32.mrb[119].mxu1  ;;  %3175 = vmatmul.mubr.f32.gmra.mrb[224].mxu1 %v943_v32  ;;  %v958_v31 = vld [vmem:[%s4892_s26 + $0x1778] sm:$0xff] }
 0x253   : > { %1899 = vmatprep.mubr.f32.mxu0 %v434_v33  ;;  %3179 = vmatprep.mubr.f32.mxu1 %v946_v34  ;;  %v957_v39 = vld [vmem:[%s4892_s26 + $0x1770] sm:$0xff]  ;;  %v448_v40 = vld [vmem:[%s4892_s26 + $0x788] sm:$0xff] }
 0x254   : > { %3955 = vst.msk [vmem:[%s5255_s22 + $0x1d8] sm:$0xff] %vm3895_vm0, %v1632_v37  ;;  %4211 = vst.msk [vmem:[%s5255_s22 + $0x9d8] sm:$0xff] %vm3895_vm0, %v2912_v38  ;;  %v445_v38 = vld [vmem:[%s4892_s26 + $0x770] sm:$0xff] }
 0x255   : > { %v1636_v45 = vpop.f32.mrb[120].mxu0  ;;  %v2916_v46 = vpop.f32.mrb[120].mxu1 }
 0x256   : > { %v1637_v47 = vadd.f32 %v5577_v18, %v1636_v45  ;;  %v2917_v48 = vadd.f32 %v5577_v18, %v2916_v46  ;;  %v1638_v49 = vpop.f32.mrb[121].mxu0  ;;  %1900 = vmatmul.mubr.f32.gmra.mrb[226].mxu0 %v433_v41  ;;  %v2918_v50 = vpop.f32.mrb[121].mxu1  ;;  %3180 = vmatmul.mubr.f32.gmra.mrb[226].mxu1 %v945_v42  ;;  %v960_v41 = vld [vmem:[%s4892_s26 + $0x1788] sm:$0xff] }
 0x257   : > { %1904 = vmatprep.mubr.f32.mxu0 %v436_v43  ;;  %3184 = vmatprep.mubr.f32.mxu1 %v948_v44  ;;  %v959_v49 = vld [vmem:[%s4892_s26 + $0x1780] sm:$0xff]  ;;  %v450_v50 = vld [vmem:[%s4892_s26 + $0x798] sm:$0xff] }
 0x258   : > { %3956 = vst.msk [vmem:[%s5255_s22 + $0x1e0] sm:$0xff] %vm3895_vm0, %v1637_v47  ;;  %4212 = vst.msk [vmem:[%s5255_s22 + $0x9e0] sm:$0xff] %vm3895_vm0, %v2917_v48  ;;  %v447_v48 = vld [vmem:[%s4892_s26 + $0x780] sm:$0xff] }
 0x259   : > { %v1641_v55 = vpop.f32.mrb[122].mxu0  ;;  %v2921_v56 = vpop.f32.mrb[122].mxu1 }
 0x25a   : > { %v1642_v57 = vadd.f32 %v5577_v18, %v1641_v55  ;;  %v2922_v58 = vadd.f32 %v5577_v18, %v2921_v56  ;;  %v1643_v59 = vpop.f32.mrb[123].mxu0  ;;  %1905 = vmatmul.mubr.f32.gmra.mrb[228].mxu0 %v435_v51  ;;  %v2923_v60 = vpop.f32.mrb[123].mxu1  ;;  %3185 = vmatmul.mubr.f32.gmra.mrb[228].mxu1 %v947_v52  ;;  %v962_v51 = vld [vmem:[%s4892_s26 + $0x1798] sm:$0xff] }
 0x25b   : > { %1909 = vmatprep.mubr.f32.mxu0 %v438_v53  ;;  %3189 = vmatprep.mubr.f32.mxu1 %v950_v54  ;;  %v961_v59 = vld [vmem:[%s4892_s26 + $0x1790] sm:$0xff]  ;;  %v452_v60 = vld [vmem:[%s4892_s26 + $0x7a8] sm:$0xff] }
 0x25c   : > { %3957 = vst.msk [vmem:[%s5255_s22 + $0x1e8] sm:$0xff] %vm3895_vm0, %v1642_v57  ;;  %4213 = vst.msk [vmem:[%s5255_s22 + $0x9e8] sm:$0xff] %vm3895_vm0, %v2922_v58  ;;  %v449_v58 = vld [vmem:[%s4892_s26 + $0x790] sm:$0xff] }
 0x25d   : > { %v1646_v1 = vpop.f32.mrb[124].mxu0  ;;  %v2926_v2 = vpop.f32.mrb[124].mxu1 }
 0x25e   : > { %v1647_v3 = vadd.f32 %v5577_v18, %v1646_v1  ;;  %v2927_v4 = vadd.f32 %v5577_v18, %v2926_v2  ;;  %v1648_v5 = vpop.f32.mrb[125].mxu0  ;;  %1910 = vmatmul.mubr.f32.gmra.mrb[230].mxu0 %v437_v61  ;;  %v2928_v6 = vpop.f32.mrb[125].mxu1  ;;  %3190 = vmatmul.mubr.f32.gmra.mrb[230].mxu1 %v949_v62  ;;  %v964_v61 = vld [vmem:[%s4892_s26 + $0x17a8] sm:$0xff] }
 0x25f   : > { %1914 = vmatprep.mubr.f32.mxu0 %v440_v63  ;;  %3194 = vmatprep.mubr.f32.mxu1 %v952_v0  ;;  %v963_v5 = vld [vmem:[%s4892_s26 + $0x17a0] sm:$0xff]  ;;  %v454_v6 = vld [vmem:[%s4892_s26 + $0x7b8] sm:$0xff] }
 0x260   : > { %3958 = vst.msk [vmem:[%s5255_s22 + $0x1f0] sm:$0xff] %vm3895_vm0, %v1647_v3  ;;  %4214 = vst.msk [vmem:[%s5255_s22 + $0x9f0] sm:$0xff] %vm3895_vm0, %v2927_v4  ;;  %v451_v4 = vld [vmem:[%s4892_s26 + $0x7a0] sm:$0xff] }
 0x261   : > { %v1651_v12 = vpop.f32.mrb[126].mxu0  ;;  %v2931_v13 = vpop.f32.mrb[126].mxu1 }
 0x262   : > { %v1652_v14 = vadd.f32 %v5577_v18, %v1651_v12  ;;  %v2932_v15 = vadd.f32 %v5577_v18, %v2931_v13  ;;  %v1653_v16 = vpop.f32.mrb[127].mxu0  ;;  %1915 = vmatmul.mubr.f32.gmra.mrb[232].mxu0 %v439_v8  ;;  %v2933_v7 = vpop.f32.mrb[127].mxu1  ;;  %3195 = vmatmul.mubr.f32.gmra.mrb[232].mxu1 %v951_v9  ;;  %v966_v8 = vld [vmem:[%s4892_s26 + $0x17b8] sm:$0xff] }
 0x263   : > { %1919 = vmatprep.mubr.f32.mxu0 %v442_v10  ;;  %3199 = vmatprep.mubr.f32.mxu1 %v954_v11  ;;  %v965_v16 = vld [vmem:[%s4892_s26 + $0x17b0] sm:$0xff]  ;;  %v456_v7 = vld [vmem:[%s4892_s26 + $0x7c8] sm:$0xff] }
 0x264   : > { %3959 = vst.msk [vmem:[%s5255_s22 + $0x1f8] sm:$0xff] %vm3895_vm0, %v1652_v14  ;;  %4215 = vst.msk [vmem:[%s5255_s22 + $0x9f8] sm:$0xff] %vm3895_vm0, %v2932_v15  ;;  %v453_v15 = vld [vmem:[%s4892_s26 + $0x7b0] sm:$0xff] }
 0x265   : > { %v1656_v18 = vpop.f32.mrb[128].mxu0  ;;  %v2936_v22 = vpop.f32.mrb[128].mxu1 }
 0x266   : > { %v1657_v24 = vadd.f32 %v5899_v23, %v1656_v18  ;;  %v2937_v25 = vadd.f32 %v5899_v23, %v2936_v22  ;;  %v1658_v26 = vpop.f32.mrb[129].mxu0  ;;  %1920 = vmatmul.mubr.f32.gmra.mrb[234].mxu0 %v441_v17  ;;  %v2938_v27 = vpop.f32.mrb[129].mxu1  ;;  %3200 = vmatmul.mubr.f32.gmra.mrb[234].mxu1 %v953_v19  ;;  %v968_v17 = vld [vmem:[%s4892_s26 + $0x17c8] sm:$0xff] }
 0x267   : > { %1924 = vmatprep.mubr.f32.mxu0 %v444_v20  ;;  %3204 = vmatprep.mubr.f32.mxu1 %v956_v21  ;;  %v967_v26 = vld [vmem:[%s4892_s26 + $0x17c0] sm:$0xff]  ;;  %v458_v27 = vld [vmem:[%s4892_s26 + $0x7d8] sm:$0xff] }
 0x268   : > { %3960 = vst.msk [vmem:[%s5255_s22 + $0x200] sm:$0xff] %vm3895_vm0, %v1657_v24  ;;  %4216 = vst.msk [vmem:[%s5255_s22 + $0xa00] sm:$0xff] %vm3895_vm0, %v2937_v25  ;;  %v455_v25 = vld [vmem:[%s4892_s26 + $0x7c0] sm:$0xff] }
 0x269   : > { %v1661_v32 = vpop.f32.mrb[130].mxu0  ;;  %v2941_v33 = vpop.f32.mrb[130].mxu1 }
 0x26a   : > { %v1662_v34 = vadd.f32 %v5899_v23, %v1661_v32  ;;  %v2942_v35 = vadd.f32 %v5899_v23, %v2941_v33  ;;  %v1663_v36 = vpop.f32.mrb[131].mxu0  ;;  %1925 = vmatmul.mubr.f32.gmra.mrb[236].mxu0 %v443_v28  ;;  %v2943_v37 = vpop.f32.mrb[131].mxu1  ;;  %3205 = vmatmul.mubr.f32.gmra.mrb[236].mxu1 %v955_v29  ;;  %v970_v28 = vld [vmem:[%s4892_s26 + $0x17d8] sm:$0xff] }
 0x26b   : > { %1929 = vmatprep.mubr.f32.mxu0 %v446_v30  ;;  %3209 = vmatprep.mubr.f32.mxu1 %v958_v31  ;;  %v969_v36 = vld [vmem:[%s4892_s26 + $0x17d0] sm:$0xff]  ;;  %v460_v37 = vld [vmem:[%s4892_s26 + $0x7e8] sm:$0xff] }
 0x26c   : > { %3961 = vst.msk [vmem:[%s5255_s22 + $0x208] sm:$0xff] %vm3895_vm0, %v1662_v34  ;;  %4217 = vst.msk [vmem:[%s5255_s22 + $0xa08] sm:$0xff] %vm3895_vm0, %v2942_v35  ;;  %v457_v35 = vld [vmem:[%s4892_s26 + $0x7d0] sm:$0xff] }
 0x26d   : > { %v1666_v42 = vpop.f32.mrb[132].mxu0  ;;  %v2946_v43 = vpop.f32.mrb[132].mxu1 }
 0x26e   : > { %v1667_v44 = vadd.f32 %v5899_v23, %v1666_v42  ;;  %v2947_v45 = vadd.f32 %v5899_v23, %v2946_v43  ;;  %v1668_v46 = vpop.f32.mrb[133].mxu0  ;;  %1930 = vmatmul.mubr.f32.gmra.mrb[238].mxu0 %v445_v38  ;;  %v2948_v47 = vpop.f32.mrb[133].mxu1  ;;  %3210 = vmatmul.mubr.f32.gmra.mrb[238].mxu1 %v957_v39  ;;  %v972_v38 = vld [vmem:[%s4892_s26 + $0x17e8] sm:$0xff] }
 0x26f   : > { %1934 = vmatprep.mubr.f32.mxu0 %v448_v40  ;;  %3214 = vmatprep.mubr.f32.mxu1 %v960_v41  ;;  %v971_v46 = vld [vmem:[%s4892_s26 + $0x17e0] sm:$0xff]  ;;  %v462_v47 = vld [vmem:[%s4892_s26 + $0x7f8] sm:$0xff] }
 0x270   : > { %3962 = vst.msk [vmem:[%s5255_s22 + $0x210] sm:$0xff] %vm3895_vm0, %v1667_v44  ;;  %4218 = vst.msk [vmem:[%s5255_s22 + $0xa10] sm:$0xff] %vm3895_vm0, %v2947_v45  ;;  %v459_v45 = vld [vmem:[%s4892_s26 + $0x7e0] sm:$0xff] }
 0x271   : > { %v1671_v52 = vpop.f32.mrb[134].mxu0  ;;  %v2951_v53 = vpop.f32.mrb[134].mxu1 }
 0x272   : > { %v1672_v54 = vadd.f32 %v5899_v23, %v1671_v52  ;;  %v2952_v55 = vadd.f32 %v5899_v23, %v2951_v53  ;;  %v1673_v56 = vpop.f32.mrb[135].mxu0  ;;  %1935 = vmatmul.mubr.f32.gmra.mrb[240].mxu0 %v447_v48  ;;  %v2953_v57 = vpop.f32.mrb[135].mxu1  ;;  %3215 = vmatmul.mubr.f32.gmra.mrb[240].mxu1 %v959_v49  ;;  %v974_v48 = vld [vmem:[%s4892_s26 + $0x17f8] sm:$0xff] }
 0x273   : > { %1939 = vmatprep.mubr.f32.mxu0 %v450_v50  ;;  %3219 = vmatprep.mubr.f32.mxu1 %v962_v51  ;;  %v973_v56 = vld [vmem:[%s4892_s26 + $0x17f0] sm:$0xff]  ;;  %v464_v57 = vld [vmem:[%s4892_s26 + $0x808] sm:$0xff] }
 0x274   : > { %3963 = vst.msk [vmem:[%s5255_s22 + $0x218] sm:$0xff] %vm3895_vm0, %v1672_v54  ;;  %4219 = vst.msk [vmem:[%s5255_s22 + $0xa18] sm:$0xff] %vm3895_vm0, %v2952_v55  ;;  %v461_v55 = vld [vmem:[%s4892_s26 + $0x7f0] sm:$0xff] }
 0x275   : > { %v1676_v62 = vpop.f32.mrb[136].mxu0  ;;  %v2956_v63 = vpop.f32.mrb[136].mxu1 }
 0x276   : > { %v1677_v0 = vadd.f32 %v5899_v23, %v1676_v62  ;;  %v2957_v1 = vadd.f32 %v5899_v23, %v2956_v63  ;;  %v1678_v2 = vpop.f32.mrb[137].mxu0  ;;  %1940 = vmatmul.mubr.f32.gmra.mrb[242].mxu0 %v449_v58  ;;  %v2958_v3 = vpop.f32.mrb[137].mxu1  ;;  %3220 = vmatmul.mubr.f32.gmra.mrb[242].mxu1 %v961_v59  ;;  %v976_v58 = vld [vmem:[%s4892_s26 + $0x1808] sm:$0xff] }
 0x277   : > { %1944 = vmatprep.mubr.f32.mxu0 %v452_v60  ;;  %3224 = vmatprep.mubr.f32.mxu1 %v964_v61  ;;  %v975_v2 = vld [vmem:[%s4892_s26 + $0x1800] sm:$0xff]  ;;  %v466_v3 = vld [vmem:[%s4892_s26 + $0x818] sm:$0xff] }
 0x278   : > { %3964 = vst.msk [vmem:[%s5255_s22 + $0x220] sm:$0xff] %vm3895_vm0, %v1677_v0  ;;  %4220 = vst.msk [vmem:[%s5255_s22 + $0xa20] sm:$0xff] %vm3895_vm0, %v2957_v1  ;;  %v463_v1 = vld [vmem:[%s4892_s26 + $0x800] sm:$0xff] }
 0x279   : > { %v1681_v9 = vpop.f32.mrb[138].mxu0  ;;  %v2961_v10 = vpop.f32.mrb[138].mxu1 }
 0x27a   : > { %v1682_v11 = vadd.f32 %v5899_v23, %v1681_v9  ;;  %v2962_v12 = vadd.f32 %v5899_v23, %v2961_v10  ;;  %v1683_v13 = vpop.f32.mrb[139].mxu0  ;;  %1945 = vmatmul.mubr.f32.gmra.mrb[244].mxu0 %v451_v4  ;;  %v2963_v14 = vpop.f32.mrb[139].mxu1  ;;  %3225 = vmatmul.mubr.f32.gmra.mrb[244].mxu1 %v963_v5  ;;  %v978_v4 = vld [vmem:[%s4892_s26 + $0x1818] sm:$0xff] }
 0x27b   : > { %1949 = vmatprep.mubr.f32.mxu0 %v454_v6  ;;  %3229 = vmatprep.mubr.f32.mxu1 %v966_v8  ;;  %v977_v13 = vld [vmem:[%s4892_s26 + $0x1810] sm:$0xff]  ;;  %v468_v14 = vld [vmem:[%s4892_s26 + $0x828] sm:$0xff] }
 0x27c   : > { %3965 = vst.msk [vmem:[%s5255_s22 + $0x228] sm:$0xff] %vm3895_vm0, %v1682_v11  ;;  %4221 = vst.msk [vmem:[%s5255_s22 + $0xa28] sm:$0xff] %vm3895_vm0, %v2962_v12  ;;  %v465_v12 = vld [vmem:[%s4892_s26 + $0x810] sm:$0xff] }
 0x27d   : > { %v1686_v19 = vpop.f32.mrb[140].mxu0  ;;  %v2966_v20 = vpop.f32.mrb[140].mxu1 }
 0x27e   : > { %v1687_v21 = vadd.f32 %v5899_v23, %v1686_v19  ;;  %v2967_v18 = vadd.f32 %v5899_v23, %v2966_v20  ;;  %v1688_v22 = vpop.f32.mrb[141].mxu0  ;;  %1950 = vmatmul.mubr.f32.gmra.mrb[246].mxu0 %v453_v15  ;;  %v2968_v24 = vpop.f32.mrb[141].mxu1  ;;  %3230 = vmatmul.mubr.f32.gmra.mrb[246].mxu1 %v965_v16  ;;  %v980_v15 = vld [vmem:[%s4892_s26 + $0x1828] sm:$0xff] }
 0x27f   : > { %1954 = vmatprep.mubr.f32.mxu0 %v456_v7  ;;  %3234 = vmatprep.mubr.f32.mxu1 %v968_v17  ;;  %v979_v22 = vld [vmem:[%s4892_s26 + $0x1820] sm:$0xff]  ;;  %v470_v24 = vld [vmem:[%s4892_s26 + $0x838] sm:$0xff] }
 0x280   : > { %3966 = vst.msk [vmem:[%s5255_s22 + $0x230] sm:$0xff] %vm3895_vm0, %v1687_v21  ;;  %4222 = vst.msk [vmem:[%s5255_s22 + $0xa30] sm:$0xff] %vm3895_vm0, %v2967_v18  ;;  %v467_v18 = vld [vmem:[%s4892_s26 + $0x820] sm:$0xff] }
 0x281   : > { %v1691_v29 = vpop.f32.mrb[142].mxu0  ;;  %v2971_v30 = vpop.f32.mrb[142].mxu1 }
 0x282   : > { %v1692_v31 = vadd.f32 %v5899_v23, %v1691_v29  ;;  %v2972_v32 = vadd.f32 %v5899_v23, %v2971_v30  ;;  %v1693_v33 = vpop.f32.mrb[143].mxu0  ;;  %1955 = vmatmul.mubr.f32.gmra.mrb[248].mxu0 %v455_v25  ;;  %v2973_v34 = vpop.f32.mrb[143].mxu1  ;;  %3235 = vmatmul.mubr.f32.gmra.mrb[248].mxu1 %v967_v26  ;;  %v982_v25 = vld [vmem:[%s4892_s26 + $0x1838] sm:$0xff] }
 0x283   : > { %1959 = vmatprep.mubr.f32.mxu0 %v458_v27  ;;  %3239 = vmatprep.mubr.f32.mxu1 %v970_v28  ;;  %v981_v33 = vld [vmem:[%s4892_s26 + $0x1830] sm:$0xff]  ;;  %v472_v34 = vld [vmem:[%s4892_s26 + $0x848] sm:$0xff] }
 0x284   : > { %3967 = vst.msk [vmem:[%s5255_s22 + $0x238] sm:$0xff] %vm3895_vm0, %v1692_v31  ;;  %4223 = vst.msk [vmem:[%s5255_s22 + $0xa38] sm:$0xff] %vm3895_vm0, %v2972_v32  ;;  %v469_v32 = vld [vmem:[%s4892_s26 + $0x830] sm:$0xff] }
 0x285   : > { %v1696_v39 = vpop.f32.mrb[144].mxu0  ;;  %v2976_v40 = vpop.f32.mrb[144].mxu1 }
 0x286   : > { %v1697_v41 = vadd.f32 %v5899_v23, %v1696_v39  ;;  %v2977_v42 = vadd.f32 %v5899_v23, %v2976_v40  ;;  %v1698_v43 = vpop.f32.mrb[145].mxu0  ;;  %1960 = vmatmul.mubr.f32.gmra.mrb[250].mxu0 %v457_v35  ;;  %v2978_v44 = vpop.f32.mrb[145].mxu1  ;;  %3240 = vmatmul.mubr.f32.gmra.mrb[250].mxu1 %v969_v36  ;;  %v984_v35 = vld [vmem:[%s4892_s26 + $0x1848] sm:$0xff] }
 0x287   : > { %1964 = vmatprep.mubr.f32.mxu0 %v460_v37  ;;  %3244 = vmatprep.mubr.f32.mxu1 %v972_v38  ;;  %v983_v43 = vld [vmem:[%s4892_s26 + $0x1840] sm:$0xff]  ;;  %v474_v44 = vld [vmem:[%s4892_s26 + $0x858] sm:$0xff] }
 0x288   : > { %3968 = vst.msk [vmem:[%s5255_s22 + $0x240] sm:$0xff] %vm3895_vm0, %v1697_v41  ;;  %4224 = vst.msk [vmem:[%s5255_s22 + $0xa40] sm:$0xff] %vm3895_vm0, %v2977_v42  ;;  %v471_v42 = vld [vmem:[%s4892_s26 + $0x840] sm:$0xff] }
 0x289   : > { %v1701_v49 = vpop.f32.mrb[146].mxu0  ;;  %v2981_v50 = vpop.f32.mrb[146].mxu1 }
 0x28a   : > { %v1702_v51 = vadd.f32 %v5899_v23, %v1701_v49  ;;  %v2982_v52 = vadd.f32 %v5899_v23, %v2981_v50  ;;  %v1703_v53 = vpop.f32.mrb[147].mxu0  ;;  %1965 = vmatmul.mubr.f32.gmra.mrb[252].mxu0 %v459_v45  ;;  %v2983_v54 = vpop.f32.mrb[147].mxu1  ;;  %3245 = vmatmul.mubr.f32.gmra.mrb[252].mxu1 %v971_v46  ;;  %v986_v45 = vld [vmem:[%s4892_s26 + $0x1858] sm:$0xff] }
 0x28b   : > { %1969 = vmatprep.mubr.f32.mxu0 %v462_v47  ;;  %3249 = vmatprep.mubr.f32.mxu1 %v974_v48  ;;  %v985_v53 = vld [vmem:[%s4892_s26 + $0x1850] sm:$0xff]  ;;  %v476_v54 = vld [vmem:[%s4892_s26 + $0x868] sm:$0xff] }
 0x28c   : > { %3969 = vst.msk [vmem:[%s5255_s22 + $0x248] sm:$0xff] %vm3895_vm0, %v1702_v51  ;;  %4225 = vst.msk [vmem:[%s5255_s22 + $0xa48] sm:$0xff] %vm3895_vm0, %v2982_v52  ;;  %v473_v52 = vld [vmem:[%s4892_s26 + $0x850] sm:$0xff] }
 0x28d   : > { %v1706_v59 = vpop.f32.mrb[148].mxu0  ;;  %v2986_v60 = vpop.f32.mrb[148].mxu1 }
 0x28e   : > { %v1707_v61 = vadd.f32 %v5899_v23, %v1706_v59  ;;  %v2987_v62 = vadd.f32 %v5899_v23, %v2986_v60  ;;  %v1708_v63 = vpop.f32.mrb[149].mxu0  ;;  %1970 = vmatmul.mubr.f32.gmra.mrb[254].mxu0 %v461_v55  ;;  %v2988_v0 = vpop.f32.mrb[149].mxu1  ;;  %3250 = vmatmul.mubr.f32.gmra.mrb[254].mxu1 %v973_v56  ;;  %v988_v55 = vld [vmem:[%s4892_s26 + $0x1868] sm:$0xff] }
 0x28f   : > { %1974 = vmatprep.mubr.f32.mxu0 %v464_v57  ;;  %3254 = vmatprep.mubr.f32.mxu1 %v976_v58  ;;  %v987_v63 = vld [vmem:[%s4892_s26 + $0x1860] sm:$0xff]  ;;  %v478_v0 = vld [vmem:[%s4892_s26 + $0x878] sm:$0xff] }
 0x290   : > { %3970 = vst.msk [vmem:[%s5255_s22 + $0x250] sm:$0xff] %vm3895_vm0, %v1707_v61  ;;  %4226 = vst.msk [vmem:[%s5255_s22 + $0xa50] sm:$0xff] %vm3895_vm0, %v2987_v62  ;;  %v475_v62 = vld [vmem:[%s4892_s26 + $0x860] sm:$0xff] }
 0x291   : > { %v1711_v5 = vpop.f32.mrb[150].mxu0  ;;  %v2991_v6 = vpop.f32.mrb[150].mxu1 }
 0x292   : > { %v1712_v8 = vadd.f32 %v5899_v23, %v1711_v5  ;;  %v2992_v9 = vadd.f32 %v5899_v23, %v2991_v6  ;;  %v1713_v10 = vpop.f32.mrb[151].mxu0  ;;  %1975 = vmatmul.mubr.f32.gmra.mrb[0].mxu0 %v463_v1  ;;  %v2993_v11 = vpop.f32.mrb[151].mxu1  ;;  %3255 = vmatmul.mubr.f32.gmra.mrb[0].mxu1 %v975_v2  ;;  %v990_v1 = vld [vmem:[%s4892_s26 + $0x1878] sm:$0xff] }
 0x293   : > { %1979 = vmatprep.mubr.f32.mxu0 %v466_v3  ;;  %3259 = vmatprep.mubr.f32.mxu1 %v978_v4  ;;  %v989_v10 = vld [vmem:[%s4892_s26 + $0x1870] sm:$0xff]  ;;  %v480_v11 = vld [vmem:[%s4892_s26 + $0x888] sm:$0xff] }
 0x294   : > { %3971 = vst.msk [vmem:[%s5255_s22 + $0x258] sm:$0xff] %vm3895_vm0, %v1712_v8  ;;  %4227 = vst.msk [vmem:[%s5255_s22 + $0xa58] sm:$0xff] %vm3895_vm0, %v2992_v9  ;;  %v477_v9 = vld [vmem:[%s4892_s26 + $0x870] sm:$0xff] }
 0x295   : > { %v1716_v16 = vpop.f32.mrb[152].mxu0  ;;  %v2996_v7 = vpop.f32.mrb[152].mxu1 }
 0x296   : > { %v1717_v17 = vadd.f32 %v5899_v23, %v1716_v16  ;;  %v2997_v19 = vadd.f32 %v5899_v23, %v2996_v7  ;;  %v1718_v20 = vpop.f32.mrb[153].mxu0  ;;  %1980 = vmatmul.mubr.f32.gmra.mrb[2].mxu0 %v465_v12  ;;  %v2998_v21 = vpop.f32.mrb[153].mxu1  ;;  %3260 = vmatmul.mubr.f32.gmra.mrb[2].mxu1 %v977_v13  ;;  %v992_v12 = vld [vmem:[%s4892_s26 + $0x1888] sm:$0xff] }
 0x297   : > { %1984 = vmatprep.mubr.f32.mxu0 %v468_v14  ;;  %3264 = vmatprep.mubr.f32.mxu1 %v980_v15  ;;  %v991_v20 = vld [vmem:[%s4892_s26 + $0x1880] sm:$0xff]  ;;  %v482_v21 = vld [vmem:[%s4892_s26 + $0x898] sm:$0xff] }
 0x298   : > { %3972 = vst.msk [vmem:[%s5255_s22 + $0x260] sm:$0xff] %vm3895_vm0, %v1717_v17  ;;  %4228 = vst.msk [vmem:[%s5255_s22 + $0xa60] sm:$0xff] %vm3895_vm0, %v2997_v19  ;;  %v479_v19 = vld [vmem:[%s4892_s26 + $0x880] sm:$0xff] }
 0x299   : > { %v1721_v26 = vpop.f32.mrb[154].mxu0  ;;  %v3001_v27 = vpop.f32.mrb[154].mxu1 }
 0x29a   : > { %v1722_v28 = vadd.f32 %v5899_v23, %v1721_v26  ;;  %v3002_v29 = vadd.f32 %v5899_v23, %v3001_v27  ;;  %v1723_v30 = vpop.f32.mrb[155].mxu0  ;;  %1985 = vmatmul.mubr.f32.gmra.mrb[4].mxu0 %v467_v18  ;;  %v3003_v31 = vpop.f32.mrb[155].mxu1  ;;  %3265 = vmatmul.mubr.f32.gmra.mrb[4].mxu1 %v979_v22  ;;  %v994_v18 = vld [vmem:[%s4892_s26 + $0x1898] sm:$0xff] }
 0x29b   : > { %1989 = vmatprep.mubr.f32.mxu0 %v470_v24  ;;  %3269 = vmatprep.mubr.f32.mxu1 %v982_v25  ;;  %v993_v30 = vld [vmem:[%s4892_s26 + $0x1890] sm:$0xff]  ;;  %v484_v31 = vld [vmem:[%s4892_s26 + $0x8a8] sm:$0xff] }
 0x29c   : > { %3973 = vst.msk [vmem:[%s5255_s22 + $0x268] sm:$0xff] %vm3895_vm0, %v1722_v28  ;;  %4229 = vst.msk [vmem:[%s5255_s22 + $0xa68] sm:$0xff] %vm3895_vm0, %v3002_v29  ;;  %v481_v29 = vld [vmem:[%s4892_s26 + $0x890] sm:$0xff] }
 0x29d   : > { %v1726_v36 = vpop.f32.mrb[156].mxu0  ;;  %v3006_v37 = vpop.f32.mrb[156].mxu1 }
 0x29e   : > { %v1727_v38 = vadd.f32 %v5899_v23, %v1726_v36  ;;  %v3007_v39 = vadd.f32 %v5899_v23, %v3006_v37  ;;  %v1728_v40 = vpop.f32.mrb[157].mxu0  ;;  %1990 = vmatmul.mubr.f32.gmra.mrb[6].mxu0 %v469_v32  ;;  %v3008_v41 = vpop.f32.mrb[157].mxu1  ;;  %3270 = vmatmul.mubr.f32.gmra.mrb[6].mxu1 %v981_v33  ;;  %v996_v32 = vld [vmem:[%s4892_s26 + $0x18a8] sm:$0xff] }
 0x29f   : > { %1994 = vmatprep.mubr.f32.mxu0 %v472_v34  ;;  %3274 = vmatprep.mubr.f32.mxu1 %v984_v35  ;;  %v995_v40 = vld [vmem:[%s4892_s26 + $0x18a0] sm:$0xff]  ;;  %v486_v41 = vld [vmem:[%s4892_s26 + $0x8b8] sm:$0xff] }
 0x2a0   : > { %3974 = vst.msk [vmem:[%s5255_s22 + $0x270] sm:$0xff] %vm3895_vm0, %v1727_v38  ;;  %4230 = vst.msk [vmem:[%s5255_s22 + $0xa70] sm:$0xff] %vm3895_vm0, %v3007_v39  ;;  %v483_v39 = vld [vmem:[%s4892_s26 + $0x8a0] sm:$0xff] }
 0x2a1   : > { %v1731_v46 = vpop.f32.mrb[158].mxu0  ;;  %v3011_v47 = vpop.f32.mrb[158].mxu1 }
 0x2a2   : > { %v1732_v48 = vadd.f32 %v5899_v23, %v1731_v46  ;;  %v3012_v49 = vadd.f32 %v5899_v23, %v3011_v47  ;;  %v1733_v50 = vpop.f32.mrb[159].mxu0  ;;  %1995 = vmatmul.mubr.f32.gmra.mrb[8].mxu0 %v471_v42  ;;  %v3013_v51 = vpop.f32.mrb[159].mxu1  ;;  %3275 = vmatmul.mubr.f32.gmra.mrb[8].mxu1 %v983_v43  ;;  %v998_v42 = vld [vmem:[%s4892_s26 + $0x18b8] sm:$0xff] }
 0x2a3   : > { %1999 = vmatprep.mubr.f32.mxu0 %v474_v44  ;;  %3279 = vmatprep.mubr.f32.mxu1 %v986_v45  ;;  %v997_v50 = vld [vmem:[%s4892_s26 + $0x18b0] sm:$0xff]  ;;  %v488_v51 = vld [vmem:[%s4892_s26 + $0x8c8] sm:$0xff] }
 0x2a4   : > { %3975 = vst.msk [vmem:[%s5255_s22 + $0x278] sm:$0xff] %vm3895_vm0, %v1732_v48  ;;  %4231 = vst.msk [vmem:[%s5255_s22 + $0xa78] sm:$0xff] %vm3895_vm0, %v3012_v49  ;;  %v485_v49 = vld [vmem:[%s4892_s26 + $0x8b0] sm:$0xff] }
 0x2a5   : > { %v1736_v56 = vpop.f32.mrb[160].mxu0  ;;  %v3016_v57 = vpop.f32.mrb[160].mxu1 }
 0x2a6   : > { %v1737_v58 = vadd.f32 %v5899_v23, %v1736_v56  ;;  %v3017_v59 = vadd.f32 %v5899_v23, %v3016_v57  ;;  %v1738_v60 = vpop.f32.mrb[161].mxu0  ;;  %2000 = vmatmul.mubr.f32.gmra.mrb[10].mxu0 %v473_v52  ;;  %v3018_v61 = vpop.f32.mrb[161].mxu1  ;;  %3280 = vmatmul.mubr.f32.gmra.mrb[10].mxu1 %v985_v53  ;;  %v1000_v52 = vld [vmem:[%s4892_s26 + $0x18c8] sm:$0xff] }
 0x2a7   : > { %2004 = vmatprep.mubr.f32.mxu0 %v476_v54  ;;  %3284 = vmatprep.mubr.f32.mxu1 %v988_v55  ;;  %v999_v60 = vld [vmem:[%s4892_s26 + $0x18c0] sm:$0xff]  ;;  %v490_v61 = vld [vmem:[%s4892_s26 + $0x8d8] sm:$0xff] }
 0x2a8   : > { %3976 = vst.msk [vmem:[%s5255_s22 + $0x280] sm:$0xff] %vm3895_vm0, %v1737_v58  ;;  %4232 = vst.msk [vmem:[%s5255_s22 + $0xa80] sm:$0xff] %vm3895_vm0, %v3017_v59  ;;  %v487_v59 = vld [vmem:[%s4892_s26 + $0x8c0] sm:$0xff] }
 0x2a9   : > { %v1741_v2 = vpop.f32.mrb[162].mxu0  ;;  %v3021_v3 = vpop.f32.mrb[162].mxu1 }
 0x2aa   : > { %v1742_v4 = vadd.f32 %v5899_v23, %v1741_v2  ;;  %v3022_v5 = vadd.f32 %v5899_v23, %v3021_v3  ;;  %v1743_v6 = vpop.f32.mrb[163].mxu0  ;;  %2005 = vmatmul.mubr.f32.gmra.mrb[12].mxu0 %v475_v62  ;;  %v3023_v8 = vpop.f32.mrb[163].mxu1  ;;  %3285 = vmatmul.mubr.f32.gmra.mrb[12].mxu1 %v987_v63  ;;  %v1002_v62 = vld [vmem:[%s4892_s26 + $0x18d8] sm:$0xff] }
 0x2ab   : > { %2009 = vmatprep.mubr.f32.mxu0 %v478_v0  ;;  %3289 = vmatprep.mubr.f32.mxu1 %v990_v1  ;;  %v1001_v6 = vld [vmem:[%s4892_s26 + $0x18d0] sm:$0xff]  ;;  %v492_v8 = vld [vmem:[%s4892_s26 + $0x8e8] sm:$0xff] }
 0x2ac   : > { %3977 = vst.msk [vmem:[%s5255_s22 + $0x288] sm:$0xff] %vm3895_vm0, %v1742_v4  ;;  %4233 = vst.msk [vmem:[%s5255_s22 + $0xa88] sm:$0xff] %vm3895_vm0, %v3022_v5  ;;  %v489_v5 = vld [vmem:[%s4892_s26 + $0x8d0] sm:$0xff] }
 0x2ad   : > { %v1746_v13 = vpop.f32.mrb[164].mxu0  ;;  %v3026_v14 = vpop.f32.mrb[164].mxu1 }
 0x2ae   : > { %v1747_v15 = vadd.f32 %v5899_v23, %v1746_v13  ;;  %v3027_v16 = vadd.f32 %v5899_v23, %v3026_v14  ;;  %v1748_v7 = vpop.f32.mrb[165].mxu0  ;;  %2010 = vmatmul.mubr.f32.gmra.mrb[14].mxu0 %v477_v9  ;;  %v3028_v17 = vpop.f32.mrb[165].mxu1  ;;  %3290 = vmatmul.mubr.f32.gmra.mrb[14].mxu1 %v989_v10  ;;  %v1004_v9 = vld [vmem:[%s4892_s26 + $0x18e8] sm:$0xff] }
 0x2af   : > { %2014 = vmatprep.mubr.f32.mxu0 %v480_v11  ;;  %3294 = vmatprep.mubr.f32.mxu1 %v992_v12  ;;  %v1003_v7 = vld [vmem:[%s4892_s26 + $0x18e0] sm:$0xff]  ;;  %v494_v17 = vld [vmem:[%s4892_s26 + $0x8f8] sm:$0xff] }
 0x2b0   : > { %3978 = vst.msk [vmem:[%s5255_s22 + $0x290] sm:$0xff] %vm3895_vm0, %v1747_v15  ;;  %4234 = vst.msk [vmem:[%s5255_s22 + $0xa90] sm:$0xff] %vm3895_vm0, %v3027_v16  ;;  %v491_v16 = vld [vmem:[%s4892_s26 + $0x8e0] sm:$0xff] }
 0x2b1   : > { %v1751_v22 = vpop.f32.mrb[166].mxu0  ;;  %v3031_v24 = vpop.f32.mrb[166].mxu1 }
 0x2b2   : > { %v1752_v25 = vadd.f32 %v5899_v23, %v1751_v22  ;;  %v3032_v26 = vadd.f32 %v5899_v23, %v3031_v24  ;;  %v1753_v27 = vpop.f32.mrb[167].mxu0  ;;  %2015 = vmatmul.mubr.f32.gmra.mrb[16].mxu0 %v479_v19  ;;  %v3033_v28 = vpop.f32.mrb[167].mxu1  ;;  %3295 = vmatmul.mubr.f32.gmra.mrb[16].mxu1 %v991_v20  ;;  %v1006_v19 = vld [vmem:[%s4892_s26 + $0x18f8] sm:$0xff] }
 0x2b3   : > { %2019 = vmatprep.mubr.f32.mxu0 %v482_v21  ;;  %3299 = vmatprep.mubr.f32.mxu1 %v994_v18  ;;  %v1005_v27 = vld [vmem:[%s4892_s26 + $0x18f0] sm:$0xff]  ;;  %v496_v28 = vld [vmem:[%s4892_s26 + $0x908] sm:$0xff] }
 0x2b4   : > { %3979 = vst.msk [vmem:[%s5255_s22 + $0x298] sm:$0xff] %vm3895_vm0, %v1752_v25  ;;  %4235 = vst.msk [vmem:[%s5255_s22 + $0xa98] sm:$0xff] %vm3895_vm0, %v3032_v26  ;;  %v493_v26 = vld [vmem:[%s4892_s26 + $0x8f0] sm:$0xff] }
 0x2b5   : > { %v1756_v33 = vpop.f32.mrb[168].mxu0  ;;  %v3036_v34 = vpop.f32.mrb[168].mxu1 }
 0x2b6   : > { %v1757_v35 = vadd.f32 %v5899_v23, %v1756_v33  ;;  %v3037_v36 = vadd.f32 %v5899_v23, %v3036_v34  ;;  %v1758_v37 = vpop.f32.mrb[169].mxu0  ;;  %2020 = vmatmul.mubr.f32.gmra.mrb[18].mxu0 %v481_v29  ;;  %v3038_v38 = vpop.f32.mrb[169].mxu1  ;;  %3300 = vmatmul.mubr.f32.gmra.mrb[18].mxu1 %v993_v30  ;;  %v1008_v29 = vld [vmem:[%s4892_s26 + $0x1908] sm:$0xff] }
 0x2b7   : > { %2024 = vmatprep.mubr.f32.mxu0 %v484_v31  ;;  %3304 = vmatprep.mubr.f32.mxu1 %v996_v32  ;;  %v1007_v37 = vld [vmem:[%s4892_s26 + $0x1900] sm:$0xff]  ;;  %v498_v38 = vld [vmem:[%s4892_s26 + $0x918] sm:$0xff] }
 0x2b8   : > { %3980 = vst.msk [vmem:[%s5255_s22 + $0x2a0] sm:$0xff] %vm3895_vm0, %v1757_v35  ;;  %4236 = vst.msk [vmem:[%s5255_s22 + $0xaa0] sm:$0xff] %vm3895_vm0, %v3037_v36  ;;  %v495_v36 = vld [vmem:[%s4892_s26 + $0x900] sm:$0xff] }
 0x2b9   : > { %v1761_v43 = vpop.f32.mrb[170].mxu0  ;;  %v3041_v44 = vpop.f32.mrb[170].mxu1 }
 0x2ba   : > { %v1762_v45 = vadd.f32 %v5899_v23, %v1761_v43  ;;  %v3042_v46 = vadd.f32 %v5899_v23, %v3041_v44  ;;  %v1763_v47 = vpop.f32.mrb[171].mxu0  ;;  %2025 = vmatmul.mubr.f32.gmra.mrb[20].mxu0 %v483_v39  ;;  %v3043_v48 = vpop.f32.mrb[171].mxu1  ;;  %3305 = vmatmul.mubr.f32.gmra.mrb[20].mxu1 %v995_v40  ;;  %v1010_v39 = vld [vmem:[%s4892_s26 + $0x1918] sm:$0xff] }
 0x2bb   : > { %2029 = vmatprep.mubr.f32.mxu0 %v486_v41  ;;  %3309 = vmatprep.mubr.f32.mxu1 %v998_v42  ;;  %v1009_v47 = vld [vmem:[%s4892_s26 + $0x1910] sm:$0xff]  ;;  %v500_v48 = vld [vmem:[%s4892_s26 + $0x928] sm:$0xff] }
 0x2bc   : > { %3981 = vst.msk [vmem:[%s5255_s22 + $0x2a8] sm:$0xff] %vm3895_vm0, %v1762_v45  ;;  %4237 = vst.msk [vmem:[%s5255_s22 + $0xaa8] sm:$0xff] %vm3895_vm0, %v3042_v46  ;;  %v497_v46 = vld [vmem:[%s4892_s26 + $0x910] sm:$0xff] }
 0x2bd   : > { %v1766_v53 = vpop.f32.mrb[172].mxu0  ;;  %v3046_v54 = vpop.f32.mrb[172].mxu1 }
 0x2be   : > { %v1767_v55 = vadd.f32 %v5899_v23, %v1766_v53  ;;  %v3047_v56 = vadd.f32 %v5899_v23, %v3046_v54  ;;  %v1768_v57 = vpop.f32.mrb[173].mxu0  ;;  %2030 = vmatmul.mubr.f32.gmra.mrb[22].mxu0 %v485_v49  ;;  %v3048_v58 = vpop.f32.mrb[173].mxu1  ;;  %3310 = vmatmul.mubr.f32.gmra.mrb[22].mxu1 %v997_v50  ;;  %v1012_v49 = vld [vmem:[%s4892_s26 + $0x1928] sm:$0xff] }
 0x2bf   : > { %2034 = vmatprep.mubr.f32.mxu0 %v488_v51  ;;  %3314 = vmatprep.mubr.f32.mxu1 %v1000_v52  ;;  %v1011_v57 = vld [vmem:[%s4892_s26 + $0x1920] sm:$0xff]  ;;  %v502_v58 = vld [vmem:[%s4892_s26 + $0x938] sm:$0xff] }
 0x2c0   : > { %3982 = vst.msk [vmem:[%s5255_s22 + $0x2b0] sm:$0xff] %vm3895_vm0, %v1767_v55  ;;  %4238 = vst.msk [vmem:[%s5255_s22 + $0xab0] sm:$0xff] %vm3895_vm0, %v3047_v56  ;;  %v499_v56 = vld [vmem:[%s4892_s26 + $0x920] sm:$0xff] }
 0x2c1   : > { %v1771_v63 = vpop.f32.mrb[174].mxu0  ;;  %v3051_v0 = vpop.f32.mrb[174].mxu1 }
 0x2c2   : > { %v1772_v1 = vadd.f32 %v5899_v23, %v1771_v63  ;;  %v3052_v2 = vadd.f32 %v5899_v23, %v3051_v0  ;;  %v1773_v3 = vpop.f32.mrb[175].mxu0  ;;  %2035 = vmatmul.mubr.f32.gmra.mrb[24].mxu0 %v487_v59  ;;  %v3053_v4 = vpop.f32.mrb[175].mxu1  ;;  %3315 = vmatmul.mubr.f32.gmra.mrb[24].mxu1 %v999_v60  ;;  %v1014_v59 = vld [vmem:[%s4892_s26 + $0x1938] sm:$0xff] }
 0x2c3   : > { %2039 = vmatprep.mubr.f32.mxu0 %v490_v61  ;;  %3319 = vmatprep.mubr.f32.mxu1 %v1002_v62  ;;  %v1013_v3 = vld [vmem:[%s4892_s26 + $0x1930] sm:$0xff]  ;;  %v504_v4 = vld [vmem:[%s4892_s26 + $0x948] sm:$0xff] }
 0x2c4   : > { %3983 = vst.msk [vmem:[%s5255_s22 + $0x2b8] sm:$0xff] %vm3895_vm0, %v1772_v1  ;;  %4239 = vst.msk [vmem:[%s5255_s22 + $0xab8] sm:$0xff] %vm3895_vm0, %v3052_v2  ;;  %v501_v2 = vld [vmem:[%s4892_s26 + $0x930] sm:$0xff] }
 0x2c5   : > { %v1776_v10 = vpop.f32.mrb[176].mxu0  ;;  %v3056_v11 = vpop.f32.mrb[176].mxu1 }
 0x2c6   : > { %v1777_v12 = vadd.f32 %v5899_v23, %v1776_v10  ;;  %v3057_v13 = vadd.f32 %v5899_v23, %v3056_v11  ;;  %v1778_v14 = vpop.f32.mrb[177].mxu0  ;;  %2040 = vmatmul.mubr.f32.gmra.mrb[26].mxu0 %v489_v5  ;;  %v3058_v15 = vpop.f32.mrb[177].mxu1  ;;  %3320 = vmatmul.mubr.f32.gmra.mrb[26].mxu1 %v1001_v6  ;;  %v1016_v5 = vld [vmem:[%s4892_s26 + $0x1948] sm:$0xff] }
 0x2c7   : > { %2044 = vmatprep.mubr.f32.mxu0 %v492_v8  ;;  %3324 = vmatprep.mubr.f32.mxu1 %v1004_v9  ;;  %v1015_v14 = vld [vmem:[%s4892_s26 + $0x1940] sm:$0xff]  ;;  %v506_v15 = vld [vmem:[%s4892_s26 + $0x958] sm:$0xff] }
 0x2c8   : > { %3984 = vst.msk [vmem:[%s5255_s22 + $0x2c0] sm:$0xff] %vm3895_vm0, %v1777_v12  ;;  %4240 = vst.msk [vmem:[%s5255_s22 + $0xac0] sm:$0xff] %vm3895_vm0, %v3057_v13  ;;  %v503_v13 = vld [vmem:[%s4892_s26 + $0x940] sm:$0xff] }
 0x2c9   : > { %v1781_v20 = vpop.f32.mrb[178].mxu0  ;;  %v3061_v21 = vpop.f32.mrb[178].mxu1 }
 0x2ca   : > { %v1782_v18 = vadd.f32 %v5899_v23, %v1781_v20  ;;  %v3062_v22 = vadd.f32 %v5899_v23, %v3061_v21  ;;  %v1783_v24 = vpop.f32.mrb[179].mxu0  ;;  %2045 = vmatmul.mubr.f32.gmra.mrb[28].mxu0 %v491_v16  ;;  %v3063_v25 = vpop.f32.mrb[179].mxu1  ;;  %3325 = vmatmul.mubr.f32.gmra.mrb[28].mxu1 %v1003_v7  ;;  %v1018_v16 = vld [vmem:[%s4892_s26 + $0x1958] sm:$0xff] }
 0x2cb   : > { %2049 = vmatprep.mubr.f32.mxu0 %v494_v17  ;;  %3329 = vmatprep.mubr.f32.mxu1 %v1006_v19  ;;  %v1017_v24 = vld [vmem:[%s4892_s26 + $0x1950] sm:$0xff]  ;;  %v508_v25 = vld [vmem:[%s4892_s26 + $0x968] sm:$0xff] }
 0x2cc   : > { %3985 = vst.msk [vmem:[%s5255_s22 + $0x2c8] sm:$0xff] %vm3895_vm0, %v1782_v18  ;;  %4241 = vst.msk [vmem:[%s5255_s22 + $0xac8] sm:$0xff] %vm3895_vm0, %v3062_v22  ;;  %v505_v22 = vld [vmem:[%s4892_s26 + $0x950] sm:$0xff] }
 0x2cd   : > { %v1786_v30 = vpop.f32.mrb[180].mxu0  ;;  %v3066_v31 = vpop.f32.mrb[180].mxu1 }
 0x2ce   : > { %v1787_v32 = vadd.f32 %v5899_v23, %v1786_v30  ;;  %v3067_v33 = vadd.f32 %v5899_v23, %v3066_v31  ;;  %v1788_v34 = vpop.f32.mrb[181].mxu0  ;;  %2050 = vmatmul.mubr.f32.gmra.mrb[30].mxu0 %v493_v26  ;;  %v3068_v35 = vpop.f32.mrb[181].mxu1  ;;  %3330 = vmatmul.mubr.f32.gmra.mrb[30].mxu1 %v1005_v27  ;;  %v1020_v26 = vld [vmem:[%s4892_s26 + $0x1968] sm:$0xff] }
 0x2cf   : > { %2054 = vmatprep.mubr.f32.mxu0 %v496_v28  ;;  %3334 = vmatprep.mubr.f32.mxu1 %v1008_v29  ;;  %v6221_v28 = vld [vmem:[#allocation4] ss:$0 sm:$0xff]  ;;  %v510_v35 = vld [vmem:[%s4892_s26 + $0x978] sm:$0xff] }
 0x2d0   : > { %3986 = vst.msk [vmem:[%s5255_s22 + $0x2d0] sm:$0xff] %vm3895_vm0, %v1787_v32  ;;  %4242 = vst.msk [vmem:[%s5255_s22 + $0xad0] sm:$0xff] %vm3895_vm0, %v3067_v33  ;;  %v507_v33 = vld [vmem:[%s4892_s26 + $0x960] sm:$0xff] }
 0x2d1   : > { %v1791_v40 = vpop.f32.mrb[182].mxu0  ;;  %v3071_v41 = vpop.f32.mrb[182].mxu1  ;;  %v1019_v34 = vld [vmem:[%s4892_s26 + $0x1960] sm:$0xff] }
 0x2d2   : > { %v1792_v42 = vadd.f32 %v5899_v23, %v1791_v40  ;;  %v3072_v43 = vadd.f32 %v5899_v23, %v3071_v41  ;;  %v1793_v44 = vpop.f32.mrb[183].mxu0  ;;  %2055 = vmatmul.mubr.f32.gmra.mrb[32].mxu0 %v495_v36  ;;  %v3073_v45 = vpop.f32.mrb[183].mxu1  ;;  %3335 = vmatmul.mubr.f32.gmra.mrb[32].mxu1 %v1007_v37  ;;  %v1022_v36 = vld [vmem:[%s4892_s26 + $0x1978] sm:$0xff] }
 0x2d3   : > { %2059 = vmatprep.mubr.f32.mxu0 %v498_v38  ;;  %3339 = vmatprep.mubr.f32.mxu1 %v1010_v39  ;;  %v1021_v44 = vld [vmem:[%s4892_s26 + $0x1970] sm:$0xff]  ;;  %v512_v45 = vld [vmem:[%s4892_s26 + $0x988] sm:$0xff] }
 0x2d4   : > { %3987 = vst.msk [vmem:[%s5255_s22 + $0x2d8] sm:$0xff] %vm3895_vm0, %v1792_v42  ;;  %4243 = vst.msk [vmem:[%s5255_s22 + $0xad8] sm:$0xff] %vm3895_vm0, %v3072_v43  ;;  %v509_v43 = vld [vmem:[%s4892_s26 + $0x970] sm:$0xff] }
 0x2d5   : > { %v1796_v50 = vpop.f32.mrb[184].mxu0  ;;  %v3076_v51 = vpop.f32.mrb[184].mxu1 }
 0x2d6   : > { %v1797_v52 = vadd.f32 %v5899_v23, %v1796_v50  ;;  %v3077_v53 = vadd.f32 %v5899_v23, %v3076_v51  ;;  %v1798_v54 = vpop.f32.mrb[185].mxu0  ;;  %2060 = vmatmul.mubr.f32.gmra.mrb[34].mxu0 %v497_v46  ;;  %v3078_v55 = vpop.f32.mrb[185].mxu1  ;;  %3340 = vmatmul.mubr.f32.gmra.mrb[34].mxu1 %v1009_v47  ;;  %v1024_v46 = vld [vmem:[%s4892_s26 + $0x1988] sm:$0xff] }
 0x2d7   : > { %2064 = vmatprep.mubr.f32.mxu0 %v500_v48  ;;  %3344 = vmatprep.mubr.f32.mxu1 %v1012_v49  ;;  %v1023_v54 = vld [vmem:[%s4892_s26 + $0x1980] sm:$0xff]  ;;  %v514_v55 = vld [vmem:[%s4892_s26 + $0x998] sm:$0xff] }
 0x2d8   : > { %3988 = vst.msk [vmem:[%s5255_s22 + $0x2e0] sm:$0xff] %vm3895_vm0, %v1797_v52  ;;  %4244 = vst.msk [vmem:[%s5255_s22 + $0xae0] sm:$0xff] %vm3895_vm0, %v3077_v53  ;;  %v511_v53 = vld [vmem:[%s4892_s26 + $0x980] sm:$0xff] }
 0x2d9   : > { %v1801_v60 = vpop.f32.mrb[186].mxu0  ;;  %v3081_v61 = vpop.f32.mrb[186].mxu1 }
 0x2da   : > { %v1802_v62 = vadd.f32 %v5899_v23, %v1801_v60  ;;  %v3082_v63 = vadd.f32 %v5899_v23, %v3081_v61  ;;  %v1803_v0 = vpop.f32.mrb[187].mxu0  ;;  %2065 = vmatmul.mubr.f32.gmra.mrb[36].mxu0 %v499_v56  ;;  %v3083_v1 = vpop.f32.mrb[187].mxu1  ;;  %3345 = vmatmul.mubr.f32.gmra.mrb[36].mxu1 %v1011_v57  ;;  %v1026_v56 = vld [vmem:[%s4892_s26 + $0x1998] sm:$0xff] }
 0x2db   : > { %2069 = vmatprep.mubr.f32.mxu0 %v502_v58  ;;  %3349 = vmatprep.mubr.f32.mxu1 %v1014_v59  ;;  %v1025_v0 = vld [vmem:[%s4892_s26 + $0x1990] sm:$0xff]  ;;  %v516_v1 = vld [vmem:[%s4892_s26 + $0x9a8] sm:$0xff] }
 0x2dc   : > { %3989 = vst.msk [vmem:[%s5255_s22 + $0x2e8] sm:$0xff] %vm3895_vm0, %v1802_v62  ;;  %4245 = vst.msk [vmem:[%s5255_s22 + $0xae8] sm:$0xff] %vm3895_vm0, %v3082_v63  ;;  %v513_v63 = vld [vmem:[%s4892_s26 + $0x990] sm:$0xff] }
 0x2dd   : > { %v1806_v6 = vpop.f32.mrb[188].mxu0  ;;  %v3086_v8 = vpop.f32.mrb[188].mxu1 }
 0x2de   : > { %v1807_v9 = vadd.f32 %v5899_v23, %v1806_v6  ;;  %v3087_v10 = vadd.f32 %v5899_v23, %v3086_v8  ;;  %v1808_v11 = vpop.f32.mrb[189].mxu0  ;;  %2070 = vmatmul.mubr.f32.gmra.mrb[38].mxu0 %v501_v2  ;;  %v3088_v12 = vpop.f32.mrb[189].mxu1  ;;  %3350 = vmatmul.mubr.f32.gmra.mrb[38].mxu1 %v1013_v3  ;;  %v1028_v2 = vld [vmem:[%s4892_s26 + $0x19a8] sm:$0xff] }
 0x2df   : > { %2074 = vmatprep.mubr.f32.mxu0 %v504_v4  ;;  %3354 = vmatprep.mubr.f32.mxu1 %v1016_v5  ;;  %v1027_v11 = vld [vmem:[%s4892_s26 + $0x19a0] sm:$0xff]  ;;  %v518_v12 = vld [vmem:[%s4892_s26 + $0x9b8] sm:$0xff] }
 0x2e0   : > { %3990 = vst.msk [vmem:[%s5255_s22 + $0x2f0] sm:$0xff] %vm3895_vm0, %v1807_v9  ;;  %4246 = vst.msk [vmem:[%s5255_s22 + $0xaf0] sm:$0xff] %vm3895_vm0, %v3087_v10  ;;  %v515_v10 = vld [vmem:[%s4892_s26 + $0x9a0] sm:$0xff] }
 0x2e1   : > { %v1811_v7 = vpop.f32.mrb[190].mxu0  ;;  %v3091_v17 = vpop.f32.mrb[190].mxu1 }
 0x2e2   : > { %v1812_v19 = vadd.f32 %v5899_v23, %v1811_v7  ;;  %v3092_v20 = vadd.f32 %v5899_v23, %v3091_v17  ;;  %v1813_v21 = vpop.f32.mrb[191].mxu0  ;;  %2075 = vmatmul.mubr.f32.gmra.mrb[40].mxu0 %v503_v13  ;;  %v3093_v18 = vpop.f32.mrb[191].mxu1  ;;  %3355 = vmatmul.mubr.f32.gmra.mrb[40].mxu1 %v1015_v14  ;;  %v1030_v13 = vld [vmem:[%s4892_s26 + $0x19b8] sm:$0xff] }
 0x2e3   : > { %2079 = vmatprep.mubr.f32.mxu0 %v506_v15  ;;  %3359 = vmatprep.mubr.f32.mxu1 %v1018_v16  ;;  %v1029_v21 = vld [vmem:[%s4892_s26 + $0x19b0] sm:$0xff]  ;;  %v520_v18 = vld [vmem:[%s4892_s26 + $0x9c8] sm:$0xff] }
 0x2e4   : > { %3991 = vst.msk [vmem:[%s5255_s22 + $0x2f8] sm:$0xff] %vm3895_vm0, %v1812_v19  ;;  %4247 = vst.msk [vmem:[%s5255_s22 + $0xaf8] sm:$0xff] %vm3895_vm0, %v3092_v20  ;;  %v517_v20 = vld [vmem:[%s4892_s26 + $0x9b0] sm:$0xff] }
 0x2e5   : > { %v1816_v23 = vpop.f32.mrb[192].mxu0  ;;  %v3096_v27 = vpop.f32.mrb[192].mxu1 }
 0x2e6   : > { %v1817_v29 = vadd.f32 %v6221_v28, %v1816_v23  ;;  %v3097_v30 = vadd.f32 %v6221_v28, %v3096_v27  ;;  %v1818_v31 = vpop.f32.mrb[193].mxu0  ;;  %2080 = vmatmul.mubr.f32.gmra.mrb[42].mxu0 %v505_v22  ;;  %v3098_v32 = vpop.f32.mrb[193].mxu1  ;;  %3360 = vmatmul.mubr.f32.gmra.mrb[42].mxu1 %v1017_v24  ;;  %v1032_v22 = vld [vmem:[%s4892_s26 + $0x19c8] sm:$0xff] }
 0x2e7   : > { %2084 = vmatprep.mubr.f32.mxu0 %v508_v25  ;;  %3364 = vmatprep.mubr.f32.mxu1 %v1020_v26  ;;  %v1031_v31 = vld [vmem:[%s4892_s26 + $0x19c0] sm:$0xff]  ;;  %v522_v32 = vld [vmem:[%s4892_s26 + $0x9d8] sm:$0xff] }
 0x2e8   : > { %3992 = vst.msk [vmem:[%s5255_s22 + $0x300] sm:$0xff] %vm3895_vm0, %v1817_v29  ;;  %4248 = vst.msk [vmem:[%s5255_s22 + $0xb00] sm:$0xff] %vm3895_vm0, %v3097_v30  ;;  %v519_v30 = vld [vmem:[%s4892_s26 + $0x9c0] sm:$0xff] }
 0x2e9   : > { %v1821_v37 = vpop.f32.mrb[194].mxu0  ;;  %v3101_v38 = vpop.f32.mrb[194].mxu1 }
 0x2ea   : > { %v1822_v39 = vadd.f32 %v6221_v28, %v1821_v37  ;;  %v3102_v40 = vadd.f32 %v6221_v28, %v3101_v38  ;;  %v1823_v41 = vpop.f32.mrb[195].mxu0  ;;  %2085 = vmatmul.mubr.f32.gmra.mrb[44].mxu0 %v507_v33  ;;  %v3103_v42 = vpop.f32.mrb[195].mxu1  ;;  %3365 = vmatmul.mubr.f32.gmra.mrb[44].mxu1 %v1019_v34  ;;  %v1034_v33 = vld [vmem:[%s4892_s26 + $0x19d8] sm:$0xff] }
 0x2eb   : > { %2089 = vmatprep.mubr.f32.mxu0 %v510_v35  ;;  %3369 = vmatprep.mubr.f32.mxu1 %v1022_v36  ;;  %v1033_v41 = vld [vmem:[%s4892_s26 + $0x19d0] sm:$0xff]  ;;  %v524_v42 = vld [vmem:[%s4892_s26 + $0x9e8] sm:$0xff] }
 0x2ec   : > { %3993 = vst.msk [vmem:[%s5255_s22 + $0x308] sm:$0xff] %vm3895_vm0, %v1822_v39  ;;  %4249 = vst.msk [vmem:[%s5255_s22 + $0xb08] sm:$0xff] %vm3895_vm0, %v3102_v40  ;;  %v521_v40 = vld [vmem:[%s4892_s26 + $0x9d0] sm:$0xff] }
 0x2ed   : > { %v1826_v47 = vpop.f32.mrb[196].mxu0  ;;  %v3106_v48 = vpop.f32.mrb[196].mxu1 }
 0x2ee   : > { %v1827_v49 = vadd.f32 %v6221_v28, %v1826_v47  ;;  %v3107_v50 = vadd.f32 %v6221_v28, %v3106_v48  ;;  %v1828_v51 = vpop.f32.mrb[197].mxu0  ;;  %2090 = vmatmul.mubr.f32.gmra.mrb[46].mxu0 %v509_v43  ;;  %v3108_v52 = vpop.f32.mrb[197].mxu1  ;;  %3370 = vmatmul.mubr.f32.gmra.mrb[46].mxu1 %v1021_v44  ;;  %v1036_v43 = vld [vmem:[%s4892_s26 + $0x19e8] sm:$0xff] }
 0x2ef   : > { %2094 = vmatprep.mubr.f32.mxu0 %v512_v45  ;;  %3374 = vmatprep.mubr.f32.mxu1 %v1024_v46  ;;  %v1035_v51 = vld [vmem:[%s4892_s26 + $0x19e0] sm:$0xff]  ;;  %v526_v52 = vld [vmem:[%s4892_s26 + $0x9f8] sm:$0xff] }
 0x2f0   : > { %3994 = vst.msk [vmem:[%s5255_s22 + $0x310] sm:$0xff] %vm3895_vm0, %v1827_v49  ;;  %4250 = vst.msk [vmem:[%s5255_s22 + $0xb10] sm:$0xff] %vm3895_vm0, %v3107_v50  ;;  %v523_v50 = vld [vmem:[%s4892_s26 + $0x9e0] sm:$0xff] }
 0x2f1   : > { %v1831_v57 = vpop.f32.mrb[198].mxu0  ;;  %v3111_v58 = vpop.f32.mrb[198].mxu1 }
 0x2f2   : > { %v1832_v59 = vadd.f32 %v6221_v28, %v1831_v57  ;;  %v3112_v60 = vadd.f32 %v6221_v28, %v3111_v58  ;;  %v1833_v61 = vpop.f32.mrb[199].mxu0  ;;  %2095 = vmatmul.mubr.f32.gmra.mrb[48].mxu0 %v511_v53  ;;  %v3113_v62 = vpop.f32.mrb[199].mxu1  ;;  %3375 = vmatmul.mubr.f32.gmra.mrb[48].mxu1 %v1023_v54  ;;  %v1038_v53 = vld [vmem:[%s4892_s26 + $0x19f8] sm:$0xff] }
 0x2f3   : > { %2099 = vmatprep.mubr.f32.mxu0 %v514_v55  ;;  %3379 = vmatprep.mubr.f32.mxu1 %v1026_v56  ;;  %v1037_v61 = vld [vmem:[%s4892_s26 + $0x19f0] sm:$0xff]  ;;  %v528_v62 = vld [vmem:[%s4892_s26 + $0xa08] sm:$0xff] }
 0x2f4   : > { %3995 = vst.msk [vmem:[%s5255_s22 + $0x318] sm:$0xff] %vm3895_vm0, %v1832_v59  ;;  %4251 = vst.msk [vmem:[%s5255_s22 + $0xb18] sm:$0xff] %vm3895_vm0, %v3112_v60  ;;  %v525_v60 = vld [vmem:[%s4892_s26 + $0x9f0] sm:$0xff] }
 0x2f5   : > { %v1836_v3 = vpop.f32.mrb[200].mxu0  ;;  %v3116_v4 = vpop.f32.mrb[200].mxu1 }
 0x2f6   : > { %v1837_v5 = vadd.f32 %v6221_v28, %v1836_v3  ;;  %v3117_v6 = vadd.f32 %v6221_v28, %v3116_v4  ;;  %v1838_v8 = vpop.f32.mrb[201].mxu0  ;;  %2100 = vmatmul.mubr.f32.gmra.mrb[50].mxu0 %v513_v63  ;;  %v3118_v9 = vpop.f32.mrb[201].mxu1  ;;  %3380 = vmatmul.mubr.f32.gmra.mrb[50].mxu1 %v1025_v0  ;;  %v1040_v63 = vld [vmem:[%s4892_s26 + $0x1a08] sm:$0xff] }
 0x2f7   : > { %2104 = vmatprep.mubr.f32.mxu0 %v516_v1  ;;  %3384 = vmatprep.mubr.f32.mxu1 %v1028_v2  ;;  %v1039_v8 = vld [vmem:[%s4892_s26 + $0x1a00] sm:$0xff]  ;;  %v530_v9 = vld [vmem:[%s4892_s26 + $0xa18] sm:$0xff] }
 0x2f8   : > { %3996 = vst.msk [vmem:[%s5255_s22 + $0x320] sm:$0xff] %vm3895_vm0, %v1837_v5  ;;  %4252 = vst.msk [vmem:[%s5255_s22 + $0xb20] sm:$0xff] %vm3895_vm0, %v3117_v6  ;;  %v527_v6 = vld [vmem:[%s4892_s26 + $0xa00] sm:$0xff] }
 0x2f9   : > { %v1841_v14 = vpop.f32.mrb[202].mxu0  ;;  %v3121_v15 = vpop.f32.mrb[202].mxu1 }
 0x2fa   : > { %v1842_v16 = vadd.f32 %v6221_v28, %v1841_v14  ;;  %v3122_v7 = vadd.f32 %v6221_v28, %v3121_v15  ;;  %v1843_v17 = vpop.f32.mrb[203].mxu0  ;;  %2105 = vmatmul.mubr.f32.gmra.mrb[52].mxu0 %v515_v10  ;;  %v3123_v19 = vpop.f32.mrb[203].mxu1  ;;  %3385 = vmatmul.mubr.f32.gmra.mrb[52].mxu1 %v1027_v11  ;;  %v1042_v10 = vld [vmem:[%s4892_s26 + $0x1a18] sm:$0xff] }
 0x2fb   : > { %2109 = vmatprep.mubr.f32.mxu0 %v518_v12  ;;  %3389 = vmatprep.mubr.f32.mxu1 %v1030_v13  ;;  %v1041_v17 = vld [vmem:[%s4892_s26 + $0x1a10] sm:$0xff]  ;;  %v532_v19 = vld [vmem:[%s4892_s26 + $0xa28] sm:$0xff] }
 0x2fc   : > { %3997 = vst.msk [vmem:[%s5255_s22 + $0x328] sm:$0xff] %vm3895_vm0, %v1842_v16  ;;  %4253 = vst.msk [vmem:[%s5255_s22 + $0xb28] sm:$0xff] %vm3895_vm0, %v3122_v7  ;;  %v529_v7 = vld [vmem:[%s4892_s26 + $0xa10] sm:$0xff] }
 0x2fd   : > { %v1846_v24 = vpop.f32.mrb[204].mxu0  ;;  %v3126_v25 = vpop.f32.mrb[204].mxu1 }
 0x2fe   : > { %v1847_v26 = vadd.f32 %v6221_v28, %v1846_v24  ;;  %v3127_v23 = vadd.f32 %v6221_v28, %v3126_v25  ;;  %v1848_v27 = vpop.f32.mrb[205].mxu0  ;;  %2110 = vmatmul.mubr.f32.gmra.mrb[54].mxu0 %v517_v20  ;;  %v3128_v29 = vpop.f32.mrb[205].mxu1  ;;  %3390 = vmatmul.mubr.f32.gmra.mrb[54].mxu1 %v1029_v21  ;;  %v1044_v20 = vld [vmem:[%s4892_s26 + $0x1a28] sm:$0xff] }
 0x2ff   : > { %2114 = vmatprep.mubr.f32.mxu0 %v520_v18  ;;  %3394 = vmatprep.mubr.f32.mxu1 %v1032_v22  ;;  %v1043_v27 = vld [vmem:[%s4892_s26 + $0x1a20] sm:$0xff]  ;;  %v534_v29 = vld [vmem:[%s4892_s26 + $0xa38] sm:$0xff] }
 0x300   : > { %3998 = vst.msk [vmem:[%s5255_s22 + $0x330] sm:$0xff] %vm3895_vm0, %v1847_v26  ;;  %4254 = vst.msk [vmem:[%s5255_s22 + $0xb30] sm:$0xff] %vm3895_vm0, %v3127_v23  ;;  %v531_v23 = vld [vmem:[%s4892_s26 + $0xa20] sm:$0xff] }
 0x301   : > { %v1851_v34 = vpop.f32.mrb[206].mxu0  ;;  %v3131_v35 = vpop.f32.mrb[206].mxu1 }
 0x302   : > { %v1852_v36 = vadd.f32 %v6221_v28, %v1851_v34  ;;  %v3132_v37 = vadd.f32 %v6221_v28, %v3131_v35  ;;  %v1853_v38 = vpop.f32.mrb[207].mxu0  ;;  %2115 = vmatmul.mubr.f32.gmra.mrb[56].mxu0 %v519_v30  ;;  %v3133_v39 = vpop.f32.mrb[207].mxu1  ;;  %3395 = vmatmul.mubr.f32.gmra.mrb[56].mxu1 %v1031_v31  ;;  %v1046_v30 = vld [vmem:[%s4892_s26 + $0x1a38] sm:$0xff] }
 0x303   : > { %2119 = vmatprep.mubr.f32.mxu0 %v522_v32  ;;  %3399 = vmatprep.mubr.f32.mxu1 %v1034_v33  ;;  %v1045_v38 = vld [vmem:[%s4892_s26 + $0x1a30] sm:$0xff]  ;;  %v536_v39 = vld [vmem:[%s4892_s26 + $0xa48] sm:$0xff] }
 0x304   : > { %3999 = vst.msk [vmem:[%s5255_s22 + $0x338] sm:$0xff] %vm3895_vm0, %v1852_v36  ;;  %4255 = vst.msk [vmem:[%s5255_s22 + $0xb38] sm:$0xff] %vm3895_vm0, %v3132_v37  ;;  %v533_v37 = vld [vmem:[%s4892_s26 + $0xa30] sm:$0xff] }
 0x305   : > { %v1856_v44 = vpop.f32.mrb[208].mxu0  ;;  %v3136_v45 = vpop.f32.mrb[208].mxu1 }
 0x306   : > { %v1857_v46 = vadd.f32 %v6221_v28, %v1856_v44  ;;  %v3137_v47 = vadd.f32 %v6221_v28, %v3136_v45  ;;  %v1858_v48 = vpop.f32.mrb[209].mxu0  ;;  %2120 = vmatmul.mubr.f32.gmra.mrb[58].mxu0 %v521_v40  ;;  %v3138_v49 = vpop.f32.mrb[209].mxu1  ;;  %3400 = vmatmul.mubr.f32.gmra.mrb[58].mxu1 %v1033_v41  ;;  %v1048_v40 = vld [vmem:[%s4892_s26 + $0x1a48] sm:$0xff] }
 0x307   : > { %2124 = vmatprep.mubr.f32.mxu0 %v524_v42  ;;  %3404 = vmatprep.mubr.f32.mxu1 %v1036_v43  ;;  %v1047_v48 = vld [vmem:[%s4892_s26 + $0x1a40] sm:$0xff]  ;;  %v538_v49 = vld [vmem:[%s4892_s26 + $0xa58] sm:$0xff] }
 0x308   : > { %4000 = vst.msk [vmem:[%s5255_s22 + $0x340] sm:$0xff] %vm3895_vm0, %v1857_v46  ;;  %4256 = vst.msk [vmem:[%s5255_s22 + $0xb40] sm:$0xff] %vm3895_vm0, %v3137_v47  ;;  %v535_v47 = vld [vmem:[%s4892_s26 + $0xa40] sm:$0xff] }
 0x309   : > { %v1861_v54 = vpop.f32.mrb[210].mxu0  ;;  %v3141_v55 = vpop.f32.mrb[210].mxu1 }
 0x30a   : > { %v1862_v56 = vadd.f32 %v6221_v28, %v1861_v54  ;;  %v3142_v57 = vadd.f32 %v6221_v28, %v3141_v55  ;;  %v1863_v58 = vpop.f32.mrb[211].mxu0  ;;  %2125 = vmatmul.mubr.f32.gmra.mrb[60].mxu0 %v523_v50  ;;  %v3143_v59 = vpop.f32.mrb[211].mxu1  ;;  %3405 = vmatmul.mubr.f32.gmra.mrb[60].mxu1 %v1035_v51  ;;  %v1050_v50 = vld [vmem:[%s4892_s26 + $0x1a58] sm:$0xff] }
 0x30b   : > { %2129 = vmatprep.mubr.f32.mxu0 %v526_v52  ;;  %3409 = vmatprep.mubr.f32.mxu1 %v1038_v53  ;;  %v1049_v58 = vld [vmem:[%s4892_s26 + $0x1a50] sm:$0xff]  ;;  %v540_v59 = vld [vmem:[%s4892_s26 + $0xa68] sm:$0xff] }
 0x30c   : > { %4001 = vst.msk [vmem:[%s5255_s22 + $0x348] sm:$0xff] %vm3895_vm0, %v1862_v56  ;;  %4257 = vst.msk [vmem:[%s5255_s22 + $0xb48] sm:$0xff] %vm3895_vm0, %v3142_v57  ;;  %v537_v57 = vld [vmem:[%s4892_s26 + $0xa50] sm:$0xff] }
 0x30d   : > { %v1866_v0 = vpop.f32.mrb[212].mxu0  ;;  %v3146_v1 = vpop.f32.mrb[212].mxu1 }
 0x30e   : > { %v1867_v2 = vadd.f32 %v6221_v28, %v1866_v0  ;;  %v3147_v3 = vadd.f32 %v6221_v28, %v3146_v1  ;;  %v1868_v4 = vpop.f32.mrb[213].mxu0  ;;  %2130 = vmatmul.mubr.f32.gmra.mrb[62].mxu0 %v525_v60  ;;  %v3148_v5 = vpop.f32.mrb[213].mxu1  ;;  %3410 = vmatmul.mubr.f32.gmra.mrb[62].mxu1 %v1037_v61  ;;  %v1052_v60 = vld [vmem:[%s4892_s26 + $0x1a68] sm:$0xff] }
 0x30f   : > { %2134 = vmatprep.mubr.f32.mxu0 %v528_v62  ;;  %3414 = vmatprep.mubr.f32.mxu1 %v1040_v63  ;;  %v1051_v4 = vld [vmem:[%s4892_s26 + $0x1a60] sm:$0xff]  ;;  %v542_v5 = vld [vmem:[%s4892_s26 + $0xa78] sm:$0xff] }
 0x310   : > { %4002 = vst.msk [vmem:[%s5255_s22 + $0x350] sm:$0xff] %vm3895_vm0, %v1867_v2  ;;  %4258 = vst.msk [vmem:[%s5255_s22 + $0xb50] sm:$0xff] %vm3895_vm0, %v3147_v3  ;;  %v539_v3 = vld [vmem:[%s4892_s26 + $0xa60] sm:$0xff] }
 0x311   : > { %v1871_v11 = vpop.f32.mrb[214].mxu0  ;;  %v3151_v12 = vpop.f32.mrb[214].mxu1 }
 0x312   : > { %v1872_v13 = vadd.f32 %v6221_v28, %v1871_v11  ;;  %v3152_v14 = vadd.f32 %v6221_v28, %v3151_v12  ;;  %v1873_v15 = vpop.f32.mrb[215].mxu0  ;;  %2135 = vmatmul.mubr.f32.gmra.mrb[64].mxu0 %v527_v6  ;;  %v3153_v16 = vpop.f32.mrb[215].mxu1  ;;  %3415 = vmatmul.mubr.f32.gmra.mrb[64].mxu1 %v1039_v8  ;;  %v1054_v6 = vld [vmem:[%s4892_s26 + $0x1a78] sm:$0xff] }
 0x313   : > { %2139 = vmatprep.mubr.f32.mxu0 %v530_v9  ;;  %3419 = vmatprep.mubr.f32.mxu1 %v1042_v10  ;;  %v1053_v15 = vld [vmem:[%s4892_s26 + $0x1a70] sm:$0xff]  ;;  %v544_v16 = vld [vmem:[%s4892_s26 + $0xa88] sm:$0xff] }
 0x314   : > { %4003 = vst.msk [vmem:[%s5255_s22 + $0x358] sm:$0xff] %vm3895_vm0, %v1872_v13  ;;  %4259 = vst.msk [vmem:[%s5255_s22 + $0xb58] sm:$0xff] %vm3895_vm0, %v3152_v14  ;;  %v541_v14 = vld [vmem:[%s4892_s26 + $0xa70] sm:$0xff] }
 0x315   : > { %v1876_v21 = vpop.f32.mrb[216].mxu0  ;;  %v3156_v18 = vpop.f32.mrb[216].mxu1 }
 0x316   : > { %v1877_v22 = vadd.f32 %v6221_v28, %v1876_v21  ;;  %v3157_v24 = vadd.f32 %v6221_v28, %v3156_v18  ;;  %v1878_v25 = vpop.f32.mrb[217].mxu0  ;;  %2140 = vmatmul.mubr.f32.gmra.mrb[66].mxu0 %v529_v7  ;;  %v3158_v26 = vpop.f32.mrb[217].mxu1  ;;  %3420 = vmatmul.mubr.f32.gmra.mrb[66].mxu1 %v1041_v17  ;;  %v1056_v7 = vld [vmem:[%s4892_s26 + $0x1a88] sm:$0xff] }
 0x317   : > { %2144 = vmatprep.mubr.f32.mxu0 %v532_v19  ;;  %3424 = vmatprep.mubr.f32.mxu1 %v1044_v20  ;;  %v1055_v25 = vld [vmem:[%s4892_s26 + $0x1a80] sm:$0xff]  ;;  %v546_v26 = vld [vmem:[%s4892_s26 + $0xa98] sm:$0xff] }
 0x318   : > { %4004 = vst.msk [vmem:[%s5255_s22 + $0x360] sm:$0xff] %vm3895_vm0, %v1877_v22  ;;  %4260 = vst.msk [vmem:[%s5255_s22 + $0xb60] sm:$0xff] %vm3895_vm0, %v3157_v24  ;;  %v543_v24 = vld [vmem:[%s4892_s26 + $0xa80] sm:$0xff] }
 0x319   : > { %v1881_v31 = vpop.f32.mrb[218].mxu0  ;;  %v3161_v32 = vpop.f32.mrb[218].mxu1 }
 0x31a   : > { %v1882_v33 = vadd.f32 %v6221_v28, %v1881_v31  ;;  %v3162_v34 = vadd.f32 %v6221_v28, %v3161_v32  ;;  %v1883_v35 = vpop.f32.mrb[219].mxu0  ;;  %2145 = vmatmul.mubr.f32.gmra.mrb[68].mxu0 %v531_v23  ;;  %v3163_v36 = vpop.f32.mrb[219].mxu1  ;;  %3425 = vmatmul.mubr.f32.gmra.mrb[68].mxu1 %v1043_v27  ;;  %v1058_v23 = vld [vmem:[%s4892_s26 + $0x1a98] sm:$0xff] }
 0x31b   : > { %2149 = vmatprep.mubr.f32.mxu0 %v534_v29  ;;  %3429 = vmatprep.mubr.f32.mxu1 %v1046_v30  ;;  %v1057_v35 = vld [vmem:[%s4892_s26 + $0x1a90] sm:$0xff]  ;;  %v548_v36 = vld [vmem:[%s4892_s26 + $0xaa8] sm:$0xff] }
 0x31c   : > { %4005 = vst.msk [vmem:[%s5255_s22 + $0x368] sm:$0xff] %vm3895_vm0, %v1882_v33  ;;  %4261 = vst.msk [vmem:[%s5255_s22 + $0xb68] sm:$0xff] %vm3895_vm0, %v3162_v34  ;;  %v545_v34 = vld [vmem:[%s4892_s26 + $0xa90] sm:$0xff] }
 0x31d   : > { %v1886_v41 = vpop.f32.mrb[220].mxu0  ;;  %v3166_v42 = vpop.f32.mrb[220].mxu1 }
 0x31e   : > { %v1887_v43 = vadd.f32 %v6221_v28, %v1886_v41  ;;  %v3167_v44 = vadd.f32 %v6221_v28, %v3166_v42  ;;  %v1888_v45 = vpop.f32.mrb[221].mxu0  ;;  %2150 = vmatmul.mubr.f32.gmra.mrb[70].mxu0 %v533_v37  ;;  %v3168_v46 = vpop.f32.mrb[221].mxu1  ;;  %3430 = vmatmul.mubr.f32.gmra.mrb[70].mxu1 %v1045_v38  ;;  %v1060_v37 = vld [vmem:[%s4892_s26 + $0x1aa8] sm:$0xff] }
 0x31f   : > { %2154 = vmatprep.mubr.f32.mxu0 %v536_v39  ;;  %3434 = vmatprep.mubr.f32.mxu1 %v1048_v40  ;;  %v1059_v45 = vld [vmem:[%s4892_s26 + $0x1aa0] sm:$0xff]  ;;  %v550_v46 = vld [vmem:[%s4892_s26 + $0xab8] sm:$0xff] }
 0x320   : > { %4006 = vst.msk [vmem:[%s5255_s22 + $0x370] sm:$0xff] %vm3895_vm0, %v1887_v43  ;;  %4262 = vst.msk [vmem:[%s5255_s22 + $0xb70] sm:$0xff] %vm3895_vm0, %v3167_v44  ;;  %v547_v44 = vld [vmem:[%s4892_s26 + $0xaa0] sm:$0xff] }
 0x321   : > { %v1891_v51 = vpop.f32.mrb[222].mxu0  ;;  %v3171_v52 = vpop.f32.mrb[222].mxu1 }
 0x322   : > { %v1892_v53 = vadd.f32 %v6221_v28, %v1891_v51  ;;  %v3172_v54 = vadd.f32 %v6221_v28, %v3171_v52  ;;  %v1893_v55 = vpop.f32.mrb[223].mxu0  ;;  %2155 = vmatmul.mubr.f32.gmra.mrb[72].mxu0 %v535_v47  ;;  %v3173_v56 = vpop.f32.mrb[223].mxu1  ;;  %3435 = vmatmul.mubr.f32.gmra.mrb[72].mxu1 %v1047_v48  ;;  %v1062_v47 = vld [vmem:[%s4892_s26 + $0x1ab8] sm:$0xff] }
 0x323   : > { %2159 = vmatprep.mubr.f32.mxu0 %v538_v49  ;;  %3439 = vmatprep.mubr.f32.mxu1 %v1050_v50  ;;  %v1061_v55 = vld [vmem:[%s4892_s26 + $0x1ab0] sm:$0xff]  ;;  %v552_v56 = vld [vmem:[%s4892_s26 + $0xac8] sm:$0xff] }
 0x324   : > { %4007 = vst.msk [vmem:[%s5255_s22 + $0x378] sm:$0xff] %vm3895_vm0, %v1892_v53  ;;  %4263 = vst.msk [vmem:[%s5255_s22 + $0xb78] sm:$0xff] %vm3895_vm0, %v3172_v54  ;;  %v549_v54 = vld [vmem:[%s4892_s26 + $0xab0] sm:$0xff] }
 0x325   : > { %v1896_v61 = vpop.f32.mrb[224].mxu0  ;;  %v3176_v62 = vpop.f32.mrb[224].mxu1 }
 0x326   : > { %v1897_v63 = vadd.f32 %v6221_v28, %v1896_v61  ;;  %v3177_v0 = vadd.f32 %v6221_v28, %v3176_v62  ;;  %v1898_v1 = vpop.f32.mrb[225].mxu0  ;;  %2160 = vmatmul.mubr.f32.gmra.mrb[74].mxu0 %v537_v57  ;;  %v3178_v2 = vpop.f32.mrb[225].mxu1  ;;  %3440 = vmatmul.mubr.f32.gmra.mrb[74].mxu1 %v1049_v58  ;;  %v1064_v57 = vld [vmem:[%s4892_s26 + $0x1ac8] sm:$0xff] }
 0x327   : > { %2164 = vmatprep.mubr.f32.mxu0 %v540_v59  ;;  %3444 = vmatprep.mubr.f32.mxu1 %v1052_v60  ;;  %v1063_v1 = vld [vmem:[%s4892_s26 + $0x1ac0] sm:$0xff]  ;;  %v554_v2 = vld [vmem:[%s4892_s26 + $0xad8] sm:$0xff] }
 0x328   : > { %4008 = vst.msk [vmem:[%s5255_s22 + $0x380] sm:$0xff] %vm3895_vm0, %v1897_v63  ;;  %4264 = vst.msk [vmem:[%s5255_s22 + $0xb80] sm:$0xff] %vm3895_vm0, %v3177_v0  ;;  %v551_v0 = vld [vmem:[%s4892_s26 + $0xac0] sm:$0xff] }
 0x329   : > { %v1901_v8 = vpop.f32.mrb[226].mxu0  ;;  %v3181_v9 = vpop.f32.mrb[226].mxu1 }
 0x32a   : > { %v1902_v10 = vadd.f32 %v6221_v28, %v1901_v8  ;;  %v3182_v11 = vadd.f32 %v6221_v28, %v3181_v9  ;;  %v1903_v12 = vpop.f32.mrb[227].mxu0  ;;  %2165 = vmatmul.mubr.f32.gmra.mrb[76].mxu0 %v539_v3  ;;  %v3183_v13 = vpop.f32.mrb[227].mxu1  ;;  %3445 = vmatmul.mubr.f32.gmra.mrb[76].mxu1 %v1051_v4  ;;  %v1066_v3 = vld [vmem:[%s4892_s26 + $0x1ad8] sm:$0xff] }
 0x32b   : > { %2169 = vmatprep.mubr.f32.mxu0 %v542_v5  ;;  %3449 = vmatprep.mubr.f32.mxu1 %v1054_v6  ;;  %v1065_v12 = vld [vmem:[%s4892_s26 + $0x1ad0] sm:$0xff]  ;;  %v556_v13 = vld [vmem:[%s4892_s26 + $0xae8] sm:$0xff] }
 0x32c   : > { %4009 = vst.msk [vmem:[%s5255_s22 + $0x388] sm:$0xff] %vm3895_vm0, %v1902_v10  ;;  %4265 = vst.msk [vmem:[%s5255_s22 + $0xb88] sm:$0xff] %vm3895_vm0, %v3182_v11  ;;  %v553_v11 = vld [vmem:[%s4892_s26 + $0xad0] sm:$0xff] }
 0x32d   : > { %v1906_v17 = vpop.f32.mrb[228].mxu0  ;;  %v3186_v19 = vpop.f32.mrb[228].mxu1 }
 0x32e   : > { %v1907_v20 = vadd.f32 %v6221_v28, %v1906_v17  ;;  %v3187_v21 = vadd.f32 %v6221_v28, %v3186_v19  ;;  %v1908_v18 = vpop.f32.mrb[229].mxu0  ;;  %2170 = vmatmul.mubr.f32.gmra.mrb[78].mxu0 %v541_v14  ;;  %v3188_v22 = vpop.f32.mrb[229].mxu1  ;;  %3450 = vmatmul.mubr.f32.gmra.mrb[78].mxu1 %v1053_v15  ;;  %v1068_v14 = vld [vmem:[%s4892_s26 + $0x1ae8] sm:$0xff] }
 0x32f   : > { %2174 = vmatprep.mubr.f32.mxu0 %v544_v16  ;;  %3454 = vmatprep.mubr.f32.mxu1 %v1056_v7  ;;  %v1067_v18 = vld [vmem:[%s4892_s26 + $0x1ae0] sm:$0xff]  ;;  %v558_v22 = vld [vmem:[%s4892_s26 + $0xaf8] sm:$0xff] }
 0x330   : > { %4010 = vst.msk [vmem:[%s5255_s22 + $0x390] sm:$0xff] %vm3895_vm0, %v1907_v20  ;;  %4266 = vst.msk [vmem:[%s5255_s22 + $0xb90] sm:$0xff] %vm3895_vm0, %v3187_v21  ;;  %v555_v21 = vld [vmem:[%s4892_s26 + $0xae0] sm:$0xff] }
 0x331   : > { %v1911_v27 = vpop.f32.mrb[230].mxu0  ;;  %v3191_v29 = vpop.f32.mrb[230].mxu1 }
 0x332   : > { %v1912_v30 = vadd.f32 %v6221_v28, %v1911_v27  ;;  %v3192_v31 = vadd.f32 %v6221_v28, %v3191_v29  ;;  %v1913_v32 = vpop.f32.mrb[231].mxu0  ;;  %2175 = vmatmul.mubr.f32.gmra.mrb[80].mxu0 %v543_v24  ;;  %v3193_v33 = vpop.f32.mrb[231].mxu1  ;;  %3455 = vmatmul.mubr.f32.gmra.mrb[80].mxu1 %v1055_v25  ;;  %v1070_v24 = vld [vmem:[%s4892_s26 + $0x1af8] sm:$0xff] }
 0x333   : > { %2179 = vmatprep.mubr.f32.mxu0 %v546_v26  ;;  %3459 = vmatprep.mubr.f32.mxu1 %v1058_v23  ;;  %v1069_v32 = vld [vmem:[%s4892_s26 + $0x1af0] sm:$0xff]  ;;  %v560_v33 = vld [vmem:[%s4892_s26 + $0xb08] sm:$0xff] }
 0x334   : > { %4011 = vst.msk [vmem:[%s5255_s22 + $0x398] sm:$0xff] %vm3895_vm0, %v1912_v30  ;;  %4267 = vst.msk [vmem:[%s5255_s22 + $0xb98] sm:$0xff] %vm3895_vm0, %v3192_v31  ;;  %v557_v31 = vld [vmem:[%s4892_s26 + $0xaf0] sm:$0xff] }
 0x335   : > { %v1916_v38 = vpop.f32.mrb[232].mxu0  ;;  %v3196_v39 = vpop.f32.mrb[232].mxu1 }
 0x336   : > { %v1917_v40 = vadd.f32 %v6221_v28, %v1916_v38  ;;  %v3197_v41 = vadd.f32 %v6221_v28, %v3196_v39  ;;  %v1918_v42 = vpop.f32.mrb[233].mxu0  ;;  %2180 = vmatmul.mubr.f32.gmra.mrb[82].mxu0 %v545_v34  ;;  %v3198_v43 = vpop.f32.mrb[233].mxu1  ;;  %3460 = vmatmul.mubr.f32.gmra.mrb[82].mxu1 %v1057_v35  ;;  %v1072_v34 = vld [vmem:[%s4892_s26 + $0x1b08] sm:$0xff] }
 0x337   : > { %2184 = vmatprep.mubr.f32.mxu0 %v548_v36  ;;  %3464 = vmatprep.mubr.f32.mxu1 %v1060_v37  ;;  %v1071_v42 = vld [vmem:[%s4892_s26 + $0x1b00] sm:$0xff]  ;;  %v562_v43 = vld [vmem:[%s4892_s26 + $0xb18] sm:$0xff] }
 0x338   : > { %4012 = vst.msk [vmem:[%s5255_s22 + $0x3a0] sm:$0xff] %vm3895_vm0, %v1917_v40  ;;  %4268 = vst.msk [vmem:[%s5255_s22 + $0xba0] sm:$0xff] %vm3895_vm0, %v3197_v41  ;;  %v559_v41 = vld [vmem:[%s4892_s26 + $0xb00] sm:$0xff] }
 0x339   : > { %v1921_v48 = vpop.f32.mrb[234].mxu0  ;;  %v3201_v49 = vpop.f32.mrb[234].mxu1 }
 0x33a   : > { %v1922_v50 = vadd.f32 %v6221_v28, %v1921_v48  ;;  %v3202_v51 = vadd.f32 %v6221_v28, %v3201_v49  ;;  %v1923_v52 = vpop.f32.mrb[235].mxu0  ;;  %2185 = vmatmul.mubr.f32.gmra.mrb[84].mxu0 %v547_v44  ;;  %v3203_v53 = vpop.f32.mrb[235].mxu1  ;;  %3465 = vmatmul.mubr.f32.gmra.mrb[84].mxu1 %v1059_v45  ;;  %v1074_v44 = vld [vmem:[%s4892_s26 + $0x1b18] sm:$0xff] }
 0x33b   : > { %2189 = vmatprep.mubr.f32.mxu0 %v550_v46  ;;  %3469 = vmatprep.mubr.f32.mxu1 %v1062_v47  ;;  %v1073_v52 = vld [vmem:[%s4892_s26 + $0x1b10] sm:$0xff]  ;;  %v564_v53 = vld [vmem:[%s4892_s26 + $0xb28] sm:$0xff] }
 0x33c   : > { %4013 = vst.msk [vmem:[%s5255_s22 + $0x3a8] sm:$0xff] %vm3895_vm0, %v1922_v50  ;;  %4269 = vst.msk [vmem:[%s5255_s22 + $0xba8] sm:$0xff] %vm3895_vm0, %v3202_v51  ;;  %v561_v51 = vld [vmem:[%s4892_s26 + $0xb10] sm:$0xff] }
 0x33d   : > { %v1926_v58 = vpop.f32.mrb[236].mxu0  ;;  %v3206_v59 = vpop.f32.mrb[236].mxu1 }
 0x33e   : > { %v1927_v60 = vadd.f32 %v6221_v28, %v1926_v58  ;;  %v3207_v61 = vadd.f32 %v6221_v28, %v3206_v59  ;;  %v1928_v62 = vpop.f32.mrb[237].mxu0  ;;  %2190 = vmatmul.mubr.f32.gmra.mrb[86].mxu0 %v549_v54  ;;  %v3208_v63 = vpop.f32.mrb[237].mxu1  ;;  %3470 = vmatmul.mubr.f32.gmra.mrb[86].mxu1 %v1061_v55  ;;  %v1076_v54 = vld [vmem:[%s4892_s26 + $0x1b28] sm:$0xff] }
 0x33f   : > { %2194 = vmatprep.mubr.f32.mxu0 %v552_v56  ;;  %3474 = vmatprep.mubr.f32.mxu1 %v1064_v57  ;;  %v1075_v62 = vld [vmem:[%s4892_s26 + $0x1b20] sm:$0xff]  ;;  %v566_v63 = vld [vmem:[%s4892_s26 + $0xb38] sm:$0xff] }
 0x340   : > { %4014 = vst.msk [vmem:[%s5255_s22 + $0x3b0] sm:$0xff] %vm3895_vm0, %v1927_v60  ;;  %4270 = vst.msk [vmem:[%s5255_s22 + $0xbb0] sm:$0xff] %vm3895_vm0, %v3207_v61  ;;  %v563_v61 = vld [vmem:[%s4892_s26 + $0xb20] sm:$0xff] }
 0x341   : > { %v1931_v4 = vpop.f32.mrb[238].mxu0  ;;  %v3211_v5 = vpop.f32.mrb[238].mxu1 }
 0x342   : > { %v1932_v6 = vadd.f32 %v6221_v28, %v1931_v4  ;;  %v3212_v8 = vadd.f32 %v6221_v28, %v3211_v5  ;;  %v1933_v9 = vpop.f32.mrb[239].mxu0  ;;  %2195 = vmatmul.mubr.f32.gmra.mrb[88].mxu0 %v551_v0  ;;  %v3213_v10 = vpop.f32.mrb[239].mxu1  ;;  %3475 = vmatmul.mubr.f32.gmra.mrb[88].mxu1 %v1063_v1  ;;  %v1078_v0 = vld [vmem:[%s4892_s26 + $0x1b38] sm:$0xff] }
 0x343   : > { %2199 = vmatprep.mubr.f32.mxu0 %v554_v2  ;;  %3479 = vmatprep.mubr.f32.mxu1 %v1066_v3  ;;  %v1077_v9 = vld [vmem:[%s4892_s26 + $0x1b30] sm:$0xff]  ;;  %v568_v10 = vld [vmem:[%s4892_s26 + $0xb48] sm:$0xff] }
 0x344   : > { %4015 = vst.msk [vmem:[%s5255_s22 + $0x3b8] sm:$0xff] %vm3895_vm0, %v1932_v6  ;;  %4271 = vst.msk [vmem:[%s5255_s22 + $0xbb8] sm:$0xff] %vm3895_vm0, %v3212_v8  ;;  %v565_v8 = vld [vmem:[%s4892_s26 + $0xb30] sm:$0xff] }
 0x345   : > { %v1936_v15 = vpop.f32.mrb[240].mxu0  ;;  %v3216_v16 = vpop.f32.mrb[240].mxu1 }
 0x346   : > { %v1937_v7 = vadd.f32 %v6221_v28, %v1936_v15  ;;  %v3217_v17 = vadd.f32 %v6221_v28, %v3216_v16  ;;  %v1938_v19 = vpop.f32.mrb[241].mxu0  ;;  %2200 = vmatmul.mubr.f32.gmra.mrb[90].mxu0 %v553_v11  ;;  %v3218_v20 = vpop.f32.mrb[241].mxu1  ;;  %3480 = vmatmul.mubr.f32.gmra.mrb[90].mxu1 %v1065_v12  ;;  %v1080_v11 = vld [vmem:[%s4892_s26 + $0x1b48] sm:$0xff] }
 0x347   : > { %2204 = vmatprep.mubr.f32.mxu0 %v556_v13  ;;  %3484 = vmatprep.mubr.f32.mxu1 %v1068_v14  ;;  %v1079_v19 = vld [vmem:[%s4892_s26 + $0x1b40] sm:$0xff]  ;;  %v570_v20 = vld [vmem:[%s4892_s26 + $0xb58] sm:$0xff] }
 0x348   : > { %4016 = vst.msk [vmem:[%s5255_s22 + $0x3c0] sm:$0xff] %vm3895_vm0, %v1937_v7  ;;  %4272 = vst.msk [vmem:[%s5255_s22 + $0xbc0] sm:$0xff] %vm3895_vm0, %v3217_v17  ;;  %v567_v17 = vld [vmem:[%s4892_s26 + $0xb40] sm:$0xff] }
 0x349   : > { %v1941_v25 = vpop.f32.mrb[242].mxu0  ;;  %v3221_v26 = vpop.f32.mrb[242].mxu1 }
 0x34a   : > { %v1942_v23 = vadd.f32 %v6221_v28, %v1941_v25  ;;  %v3222_v27 = vadd.f32 %v6221_v28, %v3221_v26  ;;  %v1943_v29 = vpop.f32.mrb[243].mxu0  ;;  %2205 = vmatmul.mubr.f32.gmra.mrb[92].mxu0 %v555_v21  ;;  %v3223_v30 = vpop.f32.mrb[243].mxu1  ;;  %3485 = vmatmul.mubr.f32.gmra.mrb[92].mxu1 %v1067_v18  ;;  %v1082_v21 = vld [vmem:[%s4892_s26 + $0x1b58] sm:$0xff] }
 0x34b   : > { %2209 = vmatprep.mubr.f32.mxu0 %v558_v22  ;;  %3489 = vmatprep.mubr.f32.mxu1 %v1070_v24  ;;  %v1081_v29 = vld [vmem:[%s4892_s26 + $0x1b50] sm:$0xff]  ;;  %v572_v30 = vld [vmem:[%s4892_s26 + $0xb68] sm:$0xff] }
 0x34c   : > { %4017 = vst.msk [vmem:[%s5255_s22 + $0x3c8] sm:$0xff] %vm3895_vm0, %v1942_v23  ;;  %4273 = vst.msk [vmem:[%s5255_s22 + $0xbc8] sm:$0xff] %vm3895_vm0, %v3222_v27  ;;  %v569_v27 = vld [vmem:[%s4892_s26 + $0xb50] sm:$0xff] }
 0x34d   : > { %v1946_v35 = vpop.f32.mrb[244].mxu0  ;;  %v3226_v36 = vpop.f32.mrb[244].mxu1 }
 0x34e   : > { %v1947_v37 = vadd.f32 %v6221_v28, %v1946_v35  ;;  %v3227_v38 = vadd.f32 %v6221_v28, %v3226_v36  ;;  %v1948_v39 = vpop.f32.mrb[245].mxu0  ;;  %2210 = vmatmul.mubr.f32.gmra.mrb[94].mxu0 %v557_v31  ;;  %v3228_v40 = vpop.f32.mrb[245].mxu1  ;;  %3490 = vmatmul.mubr.f32.gmra.mrb[94].mxu1 %v1069_v32  ;;  %v1084_v31 = vld [vmem:[%s4892_s26 + $0x1b68] sm:$0xff] }
 0x34f   : > { %2214 = vmatprep.mubr.f32.mxu0 %v560_v33  ;;  %3494 = vmatprep.mubr.f32.mxu1 %v1072_v34  ;;  %v6543_v33 = vld [vmem:[#allocation4] ss:$0 sm:$0xff]  ;;  %v574_v40 = vld [vmem:[%s4892_s26 + $0xb78] sm:$0xff] }
 0x350   : > { %4018 = vst.msk [vmem:[%s5255_s22 + $0x3d0] sm:$0xff] %vm3895_vm0, %v1947_v37  ;;  %4274 = vst.msk [vmem:[%s5255_s22 + $0xbd0] sm:$0xff] %vm3895_vm0, %v3227_v38  ;;  %v571_v38 = vld [vmem:[%s4892_s26 + $0xb60] sm:$0xff] }
 0x351   : > { %v1951_v45 = vpop.f32.mrb[246].mxu0  ;;  %v3231_v46 = vpop.f32.mrb[246].mxu1  ;;  %v1083_v39 = vld [vmem:[%s4892_s26 + $0x1b60] sm:$0xff] }
 0x352   : > { %v1952_v47 = vadd.f32 %v6221_v28, %v1951_v45  ;;  %v3232_v48 = vadd.f32 %v6221_v28, %v3231_v46  ;;  %v1953_v49 = vpop.f32.mrb[247].mxu0  ;;  %2215 = vmatmul.mubr.f32.gmra.mrb[96].mxu0 %v559_v41  ;;  %v3233_v50 = vpop.f32.mrb[247].mxu1  ;;  %3495 = vmatmul.mubr.f32.gmra.mrb[96].mxu1 %v1071_v42  ;;  %v1086_v41 = vld [vmem:[%s4892_s26 + $0x1b78] sm:$0xff] }
 0x353   : > { %2219 = vmatprep.mubr.f32.mxu0 %v562_v43  ;;  %3499 = vmatprep.mubr.f32.mxu1 %v1074_v44  ;;  %v1085_v49 = vld [vmem:[%s4892_s26 + $0x1b70] sm:$0xff]  ;;  %v576_v50 = vld [vmem:[%s4892_s26 + $0xb88] sm:$0xff] }
 0x354   : > { %4019 = vst.msk [vmem:[%s5255_s22 + $0x3d8] sm:$0xff] %vm3895_vm0, %v1952_v47  ;;  %4275 = vst.msk [vmem:[%s5255_s22 + $0xbd8] sm:$0xff] %vm3895_vm0, %v3232_v48  ;;  %v573_v48 = vld [vmem:[%s4892_s26 + $0xb70] sm:$0xff] }
 0x355   : > { %v1956_v55 = vpop.f32.mrb[248].mxu0  ;;  %v3236_v56 = vpop.f32.mrb[248].mxu1 }
 0x356   : > { %v1957_v57 = vadd.f32 %v6221_v28, %v1956_v55  ;;  %v3237_v58 = vadd.f32 %v6221_v28, %v3236_v56  ;;  %v1958_v59 = vpop.f32.mrb[249].mxu0  ;;  %2220 = vmatmul.mubr.f32.gmra.mrb[98].mxu0 %v561_v51  ;;  %v3238_v60 = vpop.f32.mrb[249].mxu1  ;;  %3500 = vmatmul.mubr.f32.gmra.mrb[98].mxu1 %v1073_v52  ;;  %v1088_v51 = vld [vmem:[%s4892_s26 + $0x1b88] sm:$0xff] }
 0x357   : > { %2224 = vmatprep.mubr.f32.mxu0 %v564_v53  ;;  %3504 = vmatprep.mubr.f32.mxu1 %v1076_v54  ;;  %v1087_v59 = vld [vmem:[%s4892_s26 + $0x1b80] sm:$0xff]  ;;  %v578_v60 = vld [vmem:[%s4892_s26 + $0xb98] sm:$0xff] }
 0x358   : > { %4020 = vst.msk [vmem:[%s5255_s22 + $0x3e0] sm:$0xff] %vm3895_vm0, %v1957_v57  ;;  %4276 = vst.msk [vmem:[%s5255_s22 + $0xbe0] sm:$0xff] %vm3895_vm0, %v3237_v58  ;;  %v575_v58 = vld [vmem:[%s4892_s26 + $0xb80] sm:$0xff] }
 0x359   : > { %v1961_v1 = vpop.f32.mrb[250].mxu0  ;;  %v3241_v2 = vpop.f32.mrb[250].mxu1 }
 0x35a   : > { %v1962_v3 = vadd.f32 %v6221_v28, %v1961_v1  ;;  %v3242_v4 = vadd.f32 %v6221_v28, %v3241_v2  ;;  %v1963_v5 = vpop.f32.mrb[251].mxu0  ;;  %2225 = vmatmul.mubr.f32.gmra.mrb[100].mxu0 %v563_v61  ;;  %v3243_v6 = vpop.f32.mrb[251].mxu1  ;;  %3505 = vmatmul.mubr.f32.gmra.mrb[100].mxu1 %v1075_v62  ;;  %v1090_v61 = vld [vmem:[%s4892_s26 + $0x1b98] sm:$0xff] }
 0x35b   : > { %2229 = vmatprep.mubr.f32.mxu0 %v566_v63  ;;  %3509 = vmatprep.mubr.f32.mxu1 %v1078_v0  ;;  %v1089_v5 = vld [vmem:[%s4892_s26 + $0x1b90] sm:$0xff]  ;;  %v580_v6 = vld [vmem:[%s4892_s26 + $0xba8] sm:$0xff] }
 0x35c   : > { %4021 = vst.msk [vmem:[%s5255_s22 + $0x3e8] sm:$0xff] %vm3895_vm0, %v1962_v3  ;;  %4277 = vst.msk [vmem:[%s5255_s22 + $0xbe8] sm:$0xff] %vm3895_vm0, %v3242_v4  ;;  %v577_v4 = vld [vmem:[%s4892_s26 + $0xb90] sm:$0xff] }
 0x35d   : > { %v1966_v12 = vpop.f32.mrb[252].mxu0  ;;  %v3246_v13 = vpop.f32.mrb[252].mxu1 }
 0x35e   : > { %v1967_v14 = vadd.f32 %v6221_v28, %v1966_v12  ;;  %v3247_v15 = vadd.f32 %v6221_v28, %v3246_v13  ;;  %v1968_v16 = vpop.f32.mrb[253].mxu0  ;;  %2230 = vmatmul.mubr.f32.gmra.mrb[102].mxu0 %v565_v8  ;;  %v3248_v7 = vpop.f32.mrb[253].mxu1  ;;  %3510 = vmatmul.mubr.f32.gmra.mrb[102].mxu1 %v1077_v9  ;;  %v1092_v8 = vld [vmem:[%s4892_s26 + $0x1ba8] sm:$0xff] }
 0x35f   : > { %2234 = vmatprep.mubr.f32.mxu0 %v568_v10  ;;  %3514 = vmatprep.mubr.f32.mxu1 %v1080_v11  ;;  %v1091_v16 = vld [vmem:[%s4892_s26 + $0x1ba0] sm:$0xff]  ;;  %v582_v7 = vld [vmem:[%s4892_s26 + $0xbb8] sm:$0xff] }
 0x360   : > { %4022 = vst.msk [vmem:[%s5255_s22 + $0x3f0] sm:$0xff] %vm3895_vm0, %v1967_v14  ;;  %4278 = vst.msk [vmem:[%s5255_s22 + $0xbf0] sm:$0xff] %vm3895_vm0, %v3247_v15  ;;  %v579_v15 = vld [vmem:[%s4892_s26 + $0xba0] sm:$0xff] }
 0x361   : > { %v1971_v18 = vpop.f32.mrb[254].mxu0  ;;  %v3251_v22 = vpop.f32.mrb[254].mxu1 }
 0x362   : > { %v1972_v24 = vadd.f32 %v6221_v28, %v1971_v18  ;;  %v3252_v25 = vadd.f32 %v6221_v28, %v3251_v22  ;;  %v1973_v26 = vpop.f32.mrb[255].mxu0  ;;  %2235 = vmatmul.mubr.f32.gmra.mrb[104].mxu0 %v567_v17  ;;  %v3253_v23 = vpop.f32.mrb[255].mxu1  ;;  %3515 = vmatmul.mubr.f32.gmra.mrb[104].mxu1 %v1079_v19  ;;  %v1094_v17 = vld [vmem:[%s4892_s26 + $0x1bb8] sm:$0xff] }
 0x363   : > { %2239 = vmatprep.mubr.f32.mxu0 %v570_v20  ;;  %3519 = vmatprep.mubr.f32.mxu1 %v1082_v21  ;;  %v1093_v26 = vld [vmem:[%s4892_s26 + $0x1bb0] sm:$0xff]  ;;  %v584_v23 = vld [vmem:[%s4892_s26 + $0xbc8] sm:$0xff] }
 0x364   : > { %4023 = vst.msk [vmem:[%s5255_s22 + $0x3f8] sm:$0xff] %vm3895_vm0, %v1972_v24  ;;  %4279 = vst.msk [vmem:[%s5255_s22 + $0xbf8] sm:$0xff] %vm3895_vm0, %v3252_v25  ;;  %v581_v25 = vld [vmem:[%s4892_s26 + $0xbb0] sm:$0xff] }
 0x365   : > { %v1976_v28 = vpop.f32.mrb[0].mxu0  ;;  %v3256_v32 = vpop.f32.mrb[0].mxu1 }
 0x366   : > { %v1977_v34 = vadd.f32 %v6543_v33, %v1976_v28  ;;  %v3257_v35 = vadd.f32 %v6543_v33, %v3256_v32  ;;  %v1978_v36 = vpop.f32.mrb[1].mxu0  ;;  %2240 = vmatmul.mubr.f32.gmra.mrb[106].mxu0 %v569_v27  ;;  %v3258_v37 = vpop.f32.mrb[1].mxu1  ;;  %3520 = vmatmul.mubr.f32.gmra.mrb[106].mxu1 %v1081_v29  ;;  %v1096_v27 = vld [vmem:[%s4892_s26 + $0x1bc8] sm:$0xff] }
 0x367   : > { %2244 = vmatprep.mubr.f32.mxu0 %v572_v30  ;;  %3524 = vmatprep.mubr.f32.mxu1 %v1084_v31  ;;  %v1095_v36 = vld [vmem:[%s4892_s26 + $0x1bc0] sm:$0xff]  ;;  %v586_v37 = vld [vmem:[%s4892_s26 + $0xbd8] sm:$0xff] }
 0x368   : > { %4024 = vst.msk [vmem:[%s5255_s22 + $0x400] sm:$0xff] %vm3895_vm0, %v1977_v34  ;;  %4280 = vst.msk [vmem:[%s5255_s22 + $0xc00] sm:$0xff] %vm3895_vm0, %v3257_v35  ;;  %v583_v35 = vld [vmem:[%s4892_s26 + $0xbc0] sm:$0xff] }
 0x369   : > { %v1981_v42 = vpop.f32.mrb[2].mxu0  ;;  %v3261_v43 = vpop.f32.mrb[2].mxu1 }
 0x36a   : > { %v1982_v44 = vadd.f32 %v6543_v33, %v1981_v42  ;;  %v3262_v45 = vadd.f32 %v6543_v33, %v3261_v43  ;;  %v1983_v46 = vpop.f32.mrb[3].mxu0  ;;  %2245 = vmatmul.mubr.f32.gmra.mrb[108].mxu0 %v571_v38  ;;  %v3263_v47 = vpop.f32.mrb[3].mxu1  ;;  %3525 = vmatmul.mubr.f32.gmra.mrb[108].mxu1 %v1083_v39  ;;  %v1098_v38 = vld [vmem:[%s4892_s26 + $0x1bd8] sm:$0xff] }
 0x36b   : > { %2249 = vmatprep.mubr.f32.mxu0 %v574_v40  ;;  %3529 = vmatprep.mubr.f32.mxu1 %v1086_v41  ;;  %v1097_v46 = vld [vmem:[%s4892_s26 + $0x1bd0] sm:$0xff]  ;;  %v588_v47 = vld [vmem:[%s4892_s26 + $0xbe8] sm:$0xff] }
 0x36c   : > { %4025 = vst.msk [vmem:[%s5255_s22 + $0x408] sm:$0xff] %vm3895_vm0, %v1982_v44  ;;  %4281 = vst.msk [vmem:[%s5255_s22 + $0xc08] sm:$0xff] %vm3895_vm0, %v3262_v45  ;;  %v585_v45 = vld [vmem:[%s4892_s26 + $0xbd0] sm:$0xff] }
 0x36d   : > { %v1986_v52 = vpop.f32.mrb[4].mxu0  ;;  %v3266_v53 = vpop.f32.mrb[4].mxu1 }
 0x36e   : > { %v1987_v54 = vadd.f32 %v6543_v33, %v1986_v52  ;;  %v3267_v55 = vadd.f32 %v6543_v33, %v3266_v53  ;;  %v1988_v56 = vpop.f32.mrb[5].mxu0  ;;  %2250 = vmatmul.mubr.f32.gmra.mrb[110].mxu0 %v573_v48  ;;  %v3268_v57 = vpop.f32.mrb[5].mxu1  ;;  %3530 = vmatmul.mubr.f32.gmra.mrb[110].mxu1 %v1085_v49  ;;  %v1100_v48 = vld [vmem:[%s4892_s26 + $0x1be8] sm:$0xff] }
 0x36f   : > { %2254 = vmatprep.mubr.f32.mxu0 %v576_v50  ;;  %3534 = vmatprep.mubr.f32.mxu1 %v1088_v51  ;;  %v1099_v56 = vld [vmem:[%s4892_s26 + $0x1be0] sm:$0xff]  ;;  %v590_v57 = vld [vmem:[%s4892_s26 + $0xbf8] sm:$0xff] }
 0x370   : > { %4026 = vst.msk [vmem:[%s5255_s22 + $0x410] sm:$0xff] %vm3895_vm0, %v1987_v54  ;;  %4282 = vst.msk [vmem:[%s5255_s22 + $0xc10] sm:$0xff] %vm3895_vm0, %v3267_v55  ;;  %v587_v55 = vld [vmem:[%s4892_s26 + $0xbe0] sm:$0xff] }
 0x371   : > { %v1991_v62 = vpop.f32.mrb[6].mxu0  ;;  %v3271_v63 = vpop.f32.mrb[6].mxu1 }
 0x372   : > { %v1992_v0 = vadd.f32 %v6543_v33, %v1991_v62  ;;  %v3272_v1 = vadd.f32 %v6543_v33, %v3271_v63  ;;  %v1993_v2 = vpop.f32.mrb[7].mxu0  ;;  %2255 = vmatmul.mubr.f32.gmra.mrb[112].mxu0 %v575_v58  ;;  %v3273_v3 = vpop.f32.mrb[7].mxu1  ;;  %3535 = vmatmul.mubr.f32.gmra.mrb[112].mxu1 %v1087_v59  ;;  %v1102_v58 = vld [vmem:[%s4892_s26 + $0x1bf8] sm:$0xff] }
 0x373   : > { %2259 = vmatprep.mubr.f32.mxu0 %v578_v60  ;;  %3539 = vmatprep.mubr.f32.mxu1 %v1090_v61  ;;  %v1101_v2 = vld [vmem:[%s4892_s26 + $0x1bf0] sm:$0xff]  ;;  %v592_v3 = vld [vmem:[%s4892_s26 + $0xc08] sm:$0xff] }
 0x374   : > { %4027 = vst.msk [vmem:[%s5255_s22 + $0x418] sm:$0xff] %vm3895_vm0, %v1992_v0  ;;  %4283 = vst.msk [vmem:[%s5255_s22 + $0xc18] sm:$0xff] %vm3895_vm0, %v3272_v1  ;;  %v589_v1 = vld [vmem:[%s4892_s26 + $0xbf0] sm:$0xff] }
 0x375   : > { %v1996_v9 = vpop.f32.mrb[8].mxu0  ;;  %v3276_v10 = vpop.f32.mrb[8].mxu1 }
 0x376   : > { %v1997_v11 = vadd.f32 %v6543_v33, %v1996_v9  ;;  %v3277_v12 = vadd.f32 %v6543_v33, %v3276_v10  ;;  %v1998_v13 = vpop.f32.mrb[9].mxu0  ;;  %2260 = vmatmul.mubr.f32.gmra.mrb[114].mxu0 %v577_v4  ;;  %v3278_v14 = vpop.f32.mrb[9].mxu1  ;;  %3540 = vmatmul.mubr.f32.gmra.mrb[114].mxu1 %v1089_v5  ;;  %v1104_v4 = vld [vmem:[%s4892_s26 + $0x1c08] sm:$0xff] }
 0x377   : > { %2264 = vmatprep.mubr.f32.mxu0 %v580_v6  ;;  %3544 = vmatprep.mubr.f32.mxu1 %v1092_v8  ;;  %v1103_v13 = vld [vmem:[%s4892_s26 + $0x1c00] sm:$0xff]  ;;  %v594_v14 = vld [vmem:[%s4892_s26 + $0xc18] sm:$0xff] }
 0x378   : > { %4028 = vst.msk [vmem:[%s5255_s22 + $0x420] sm:$0xff] %vm3895_vm0, %v1997_v11  ;;  %4284 = vst.msk [vmem:[%s5255_s22 + $0xc20] sm:$0xff] %vm3895_vm0, %v3277_v12  ;;  %v591_v12 = vld [vmem:[%s4892_s26 + $0xc00] sm:$0xff] }
 0x379   : > { %v2001_v19 = vpop.f32.mrb[10].mxu0  ;;  %v3281_v20 = vpop.f32.mrb[10].mxu1 }
 0x37a   : > { %v2002_v21 = vadd.f32 %v6543_v33, %v2001_v19  ;;  %v3282_v18 = vadd.f32 %v6543_v33, %v3281_v20  ;;  %v2003_v22 = vpop.f32.mrb[11].mxu0  ;;  %2265 = vmatmul.mubr.f32.gmra.mrb[116].mxu0 %v579_v15  ;;  %v3283_v24 = vpop.f32.mrb[11].mxu1  ;;  %3545 = vmatmul.mubr.f32.gmra.mrb[116].mxu1 %v1091_v16  ;;  %v1106_v15 = vld [vmem:[%s4892_s26 + $0x1c18] sm:$0xff] }
 0x37b   : > { %2269 = vmatprep.mubr.f32.mxu0 %v582_v7  ;;  %3549 = vmatprep.mubr.f32.mxu1 %v1094_v17  ;;  %v1105_v22 = vld [vmem:[%s4892_s26 + $0x1c10] sm:$0xff]  ;;  %v596_v24 = vld [vmem:[%s4892_s26 + $0xc28] sm:$0xff] }
 0x37c   : > { %4029 = vst.msk [vmem:[%s5255_s22 + $0x428] sm:$0xff] %vm3895_vm0, %v2002_v21  ;;  %4285 = vst.msk [vmem:[%s5255_s22 + $0xc28] sm:$0xff] %vm3895_vm0, %v3282_v18  ;;  %v593_v18 = vld [vmem:[%s4892_s26 + $0xc10] sm:$0xff] }
 0x37d   : > { %v2006_v29 = vpop.f32.mrb[12].mxu0  ;;  %v3286_v30 = vpop.f32.mrb[12].mxu1 }
 0x37e   : > { %v2007_v31 = vadd.f32 %v6543_v33, %v2006_v29  ;;  %v3287_v28 = vadd.f32 %v6543_v33, %v3286_v30  ;;  %v2008_v32 = vpop.f32.mrb[13].mxu0  ;;  %2270 = vmatmul.mubr.f32.gmra.mrb[118].mxu0 %v581_v25  ;;  %v3288_v34 = vpop.f32.mrb[13].mxu1  ;;  %3550 = vmatmul.mubr.f32.gmra.mrb[118].mxu1 %v1093_v26  ;;  %v1108_v25 = vld [vmem:[%s4892_s26 + $0x1c28] sm:$0xff] }
 0x37f   : > { %2274 = vmatprep.mubr.f32.mxu0 %v584_v23  ;;  %3554 = vmatprep.mubr.f32.mxu1 %v1096_v27  ;;  %v1107_v32 = vld [vmem:[%s4892_s26 + $0x1c20] sm:$0xff]  ;;  %v598_v34 = vld [vmem:[%s4892_s26 + $0xc38] sm:$0xff] }
 0x380   : > { %4030 = vst.msk [vmem:[%s5255_s22 + $0x430] sm:$0xff] %vm3895_vm0, %v2007_v31  ;;  %4286 = vst.msk [vmem:[%s5255_s22 + $0xc30] sm:$0xff] %vm3895_vm0, %v3287_v28  ;;  %v595_v28 = vld [vmem:[%s4892_s26 + $0xc20] sm:$0xff] }
 0x381   : > { %v2011_v39 = vpop.f32.mrb[14].mxu0  ;;  %v3291_v40 = vpop.f32.mrb[14].mxu1 }
 0x382   : > { %v2012_v41 = vadd.f32 %v6543_v33, %v2011_v39  ;;  %v3292_v42 = vadd.f32 %v6543_v33, %v3291_v40  ;;  %v2013_v43 = vpop.f32.mrb[15].mxu0  ;;  %2275 = vmatmul.mubr.f32.gmra.mrb[120].mxu0 %v583_v35  ;;  %v3293_v44 = vpop.f32.mrb[15].mxu1  ;;  %3555 = vmatmul.mubr.f32.gmra.mrb[120].mxu1 %v1095_v36  ;;  %v1110_v35 = vld [vmem:[%s4892_s26 + $0x1c38] sm:$0xff] }
 0x383   : > { %2279 = vmatprep.mubr.f32.mxu0 %v586_v37  ;;  %3559 = vmatprep.mubr.f32.mxu1 %v1098_v38  ;;  %v1109_v43 = vld [vmem:[%s4892_s26 + $0x1c30] sm:$0xff]  ;;  %v600_v44 = vld [vmem:[%s4892_s26 + $0xc48] sm:$0xff] }
 0x384   : > { %4031 = vst.msk [vmem:[%s5255_s22 + $0x438] sm:$0xff] %vm3895_vm0, %v2012_v41  ;;  %4287 = vst.msk [vmem:[%s5255_s22 + $0xc38] sm:$0xff] %vm3895_vm0, %v3292_v42  ;;  %v597_v42 = vld [vmem:[%s4892_s26 + $0xc30] sm:$0xff] }
 0x385   : > { %v2016_v49 = vpop.f32.mrb[16].mxu0  ;;  %v3296_v50 = vpop.f32.mrb[16].mxu1 }
 0x386   : > { %v2017_v51 = vadd.f32 %v6543_v33, %v2016_v49  ;;  %v3297_v52 = vadd.f32 %v6543_v33, %v3296_v50  ;;  %v2018_v53 = vpop.f32.mrb[17].mxu0  ;;  %2280 = vmatmul.mubr.f32.gmra.mrb[122].mxu0 %v585_v45  ;;  %v3298_v54 = vpop.f32.mrb[17].mxu1  ;;  %3560 = vmatmul.mubr.f32.gmra.mrb[122].mxu1 %v1097_v46  ;;  %v1112_v45 = vld [vmem:[%s4892_s26 + $0x1c48] sm:$0xff] }
 0x387   : > { %2284 = vmatprep.mubr.f32.mxu0 %v588_v47  ;;  %3564 = vmatprep.mubr.f32.mxu1 %v1100_v48  ;;  %v1111_v53 = vld [vmem:[%s4892_s26 + $0x1c40] sm:$0xff]  ;;  %v602_v54 = vld [vmem:[%s4892_s26 + $0xc58] sm:$0xff] }
 0x388   : > { %4032 = vst.msk [vmem:[%s5255_s22 + $0x440] sm:$0xff] %vm3895_vm0, %v2017_v51  ;;  %4288 = vst.msk [vmem:[%s5255_s22 + $0xc40] sm:$0xff] %vm3895_vm0, %v3297_v52  ;;  %v599_v52 = vld [vmem:[%s4892_s26 + $0xc40] sm:$0xff] }
 0x389   : > { %v2021_v59 = vpop.f32.mrb[18].mxu0  ;;  %v3301_v60 = vpop.f32.mrb[18].mxu1 }
 0x38a   : > { %v2022_v61 = vadd.f32 %v6543_v33, %v2021_v59  ;;  %v3302_v62 = vadd.f32 %v6543_v33, %v3301_v60  ;;  %v2023_v63 = vpop.f32.mrb[19].mxu0  ;;  %2285 = vmatmul.mubr.f32.gmra.mrb[124].mxu0 %v587_v55  ;;  %v3303_v0 = vpop.f32.mrb[19].mxu1  ;;  %3565 = vmatmul.mubr.f32.gmra.mrb[124].mxu1 %v1099_v56  ;;  %v1114_v55 = vld [vmem:[%s4892_s26 + $0x1c58] sm:$0xff] }
 0x38b   : > { %2289 = vmatprep.mubr.f32.mxu0 %v590_v57  ;;  %3569 = vmatprep.mubr.f32.mxu1 %v1102_v58  ;;  %v1113_v63 = vld [vmem:[%s4892_s26 + $0x1c50] sm:$0xff]  ;;  %v604_v0 = vld [vmem:[%s4892_s26 + $0xc68] sm:$0xff] }
 0x38c   : > { %4033 = vst.msk [vmem:[%s5255_s22 + $0x448] sm:$0xff] %vm3895_vm0, %v2022_v61  ;;  %4289 = vst.msk [vmem:[%s5255_s22 + $0xc48] sm:$0xff] %vm3895_vm0, %v3302_v62  ;;  %v601_v62 = vld [vmem:[%s4892_s26 + $0xc50] sm:$0xff] }
 0x38d   : > { %v2026_v5 = vpop.f32.mrb[20].mxu0  ;;  %v3306_v6 = vpop.f32.mrb[20].mxu1 }
 0x38e   : > { %v2027_v8 = vadd.f32 %v6543_v33, %v2026_v5  ;;  %v3307_v9 = vadd.f32 %v6543_v33, %v3306_v6  ;;  %v2028_v10 = vpop.f32.mrb[21].mxu0  ;;  %2290 = vmatmul.mubr.f32.gmra.mrb[126].mxu0 %v589_v1  ;;  %v3308_v11 = vpop.f32.mrb[21].mxu1  ;;  %3570 = vmatmul.mubr.f32.gmra.mrb[126].mxu1 %v1101_v2  ;;  %v1116_v1 = vld [vmem:[%s4892_s26 + $0x1c68] sm:$0xff] }
 0x38f   : > { %2294 = vmatprep.mubr.f32.mxu0 %v592_v3  ;;  %3574 = vmatprep.mubr.f32.mxu1 %v1104_v4  ;;  %v1115_v10 = vld [vmem:[%s4892_s26 + $0x1c60] sm:$0xff]  ;;  %v606_v11 = vld [vmem:[%s4892_s26 + $0xc78] sm:$0xff] }
 0x390   : > { %4034 = vst.msk [vmem:[%s5255_s22 + $0x450] sm:$0xff] %vm3895_vm0, %v2027_v8  ;;  %4290 = vst.msk [vmem:[%s5255_s22 + $0xc50] sm:$0xff] %vm3895_vm0, %v3307_v9  ;;  %v603_v9 = vld [vmem:[%s4892_s26 + $0xc60] sm:$0xff] }
 0x391   : > { %v2031_v16 = vpop.f32.mrb[22].mxu0  ;;  %v3311_v7 = vpop.f32.mrb[22].mxu1 }
 0x392   : > { %v2032_v17 = vadd.f32 %v6543_v33, %v2031_v16  ;;  %v3312_v19 = vadd.f32 %v6543_v33, %v3311_v7  ;;  %v2033_v20 = vpop.f32.mrb[23].mxu0  ;;  %2295 = vmatmul.mubr.f32.gmra.mrb[128].mxu0 %v591_v12  ;;  %v3313_v21 = vpop.f32.mrb[23].mxu1  ;;  %3575 = vmatmul.mubr.f32.gmra.mrb[128].mxu1 %v1103_v13  ;;  %v1118_v12 = vld [vmem:[%s4892_s26 + $0x1c78] sm:$0xff] }
 0x393   : > { %2299 = vmatprep.mubr.f32.mxu0 %v594_v14  ;;  %3579 = vmatprep.mubr.f32.mxu1 %v1106_v15  ;;  %v1117_v20 = vld [vmem:[%s4892_s26 + $0x1c70] sm:$0xff]  ;;  %v608_v21 = vld [vmem:[%s4892_s26 + $0xc88] sm:$0xff] }
 0x394   : > { %4035 = vst.msk [vmem:[%s5255_s22 + $0x458] sm:$0xff] %vm3895_vm0, %v2032_v17  ;;  %4291 = vst.msk [vmem:[%s5255_s22 + $0xc58] sm:$0xff] %vm3895_vm0, %v3312_v19  ;;  %v605_v19 = vld [vmem:[%s4892_s26 + $0xc70] sm:$0xff] }
 0x395   : > { %v2036_v26 = vpop.f32.mrb[24].mxu0  ;;  %v3316_v23 = vpop.f32.mrb[24].mxu1 }
 0x396   : > { %v2037_v27 = vadd.f32 %v6543_v33, %v2036_v26  ;;  %v3317_v29 = vadd.f32 %v6543_v33, %v3316_v23  ;;  %v2038_v30 = vpop.f32.mrb[25].mxu0  ;;  %2300 = vmatmul.mubr.f32.gmra.mrb[130].mxu0 %v593_v18  ;;  %v3318_v31 = vpop.f32.mrb[25].mxu1  ;;  %3580 = vmatmul.mubr.f32.gmra.mrb[130].mxu1 %v1105_v22  ;;  %v1120_v18 = vld [vmem:[%s4892_s26 + $0x1c88] sm:$0xff] }
 0x397   : > { %2304 = vmatprep.mubr.f32.mxu0 %v596_v24  ;;  %3584 = vmatprep.mubr.f32.mxu1 %v1108_v25  ;;  %v1119_v30 = vld [vmem:[%s4892_s26 + $0x1c80] sm:$0xff]  ;;  %v610_v31 = vld [vmem:[%s4892_s26 + $0xc98] sm:$0xff] }
 0x398   : > { %4036 = vst.msk [vmem:[%s5255_s22 + $0x460] sm:$0xff] %vm3895_vm0, %v2037_v27  ;;  %4292 = vst.msk [vmem:[%s5255_s22 + $0xc60] sm:$0xff] %vm3895_vm0, %v3317_v29  ;;  %v607_v29 = vld [vmem:[%s4892_s26 + $0xc80] sm:$0xff] }
 0x399   : > { %v2041_v36 = vpop.f32.mrb[26].mxu0  ;;  %v3321_v37 = vpop.f32.mrb[26].mxu1 }
 0x39a   : > { %v2042_v38 = vadd.f32 %v6543_v33, %v2041_v36  ;;  %v3322_v39 = vadd.f32 %v6543_v33, %v3321_v37  ;;  %v2043_v40 = vpop.f32.mrb[27].mxu0  ;;  %2305 = vmatmul.mubr.f32.gmra.mrb[132].mxu0 %v595_v28  ;;  %v3323_v41 = vpop.f32.mrb[27].mxu1  ;;  %3585 = vmatmul.mubr.f32.gmra.mrb[132].mxu1 %v1107_v32  ;;  %v1122_v28 = vld [vmem:[%s4892_s26 + $0x1c98] sm:$0xff] }
 0x39b   : > { %2309 = vmatprep.mubr.f32.mxu0 %v598_v34  ;;  %3589 = vmatprep.mubr.f32.mxu1 %v1110_v35  ;;  %v1121_v40 = vld [vmem:[%s4892_s26 + $0x1c90] sm:$0xff]  ;;  %v612_v41 = vld [vmem:[%s4892_s26 + $0xca8] sm:$0xff] }
 0x39c   : > { %4037 = vst.msk [vmem:[%s5255_s22 + $0x468] sm:$0xff] %vm3895_vm0, %v2042_v38  ;;  %4293 = vst.msk [vmem:[%s5255_s22 + $0xc68] sm:$0xff] %vm3895_vm0, %v3322_v39  ;;  %v609_v39 = vld [vmem:[%s4892_s26 + $0xc90] sm:$0xff] }
 0x39d   : > { %v2046_v46 = vpop.f32.mrb[28].mxu0  ;;  %v3326_v47 = vpop.f32.mrb[28].mxu1 }
 0x39e   : > { %v2047_v48 = vadd.f32 %v6543_v33, %v2046_v46  ;;  %v3327_v49 = vadd.f32 %v6543_v33, %v3326_v47  ;;  %v2048_v50 = vpop.f32.mrb[29].mxu0  ;;  %2310 = vmatmul.mubr.f32.gmra.mrb[134].mxu0 %v597_v42  ;;  %v3328_v51 = vpop.f32.mrb[29].mxu1  ;;  %3590 = vmatmul.mubr.f32.gmra.mrb[134].mxu1 %v1109_v43  ;;  %v1124_v42 = vld [vmem:[%s4892_s26 + $0x1ca8] sm:$0xff] }
 0x39f   : > { %2314 = vmatprep.mubr.f32.mxu0 %v600_v44  ;;  %3594 = vmatprep.mubr.f32.mxu1 %v1112_v45  ;;  %v1123_v50 = vld [vmem:[%s4892_s26 + $0x1ca0] sm:$0xff]  ;;  %v614_v51 = vld [vmem:[%s4892_s26 + $0xcb8] sm:$0xff] }
 0x3a0   : > { %4038 = vst.msk [vmem:[%s5255_s22 + $0x470] sm:$0xff] %vm3895_vm0, %v2047_v48  ;;  %4294 = vst.msk [vmem:[%s5255_s22 + $0xc70] sm:$0xff] %vm3895_vm0, %v3327_v49  ;;  %v611_v49 = vld [vmem:[%s4892_s26 + $0xca0] sm:$0xff] }
 0x3a1   : > { %v2051_v56 = vpop.f32.mrb[30].mxu0  ;;  %v3331_v57 = vpop.f32.mrb[30].mxu1 }
 0x3a2   : > { %v2052_v58 = vadd.f32 %v6543_v33, %v2051_v56  ;;  %v3332_v59 = vadd.f32 %v6543_v33, %v3331_v57  ;;  %v2053_v60 = vpop.f32.mrb[31].mxu0  ;;  %2315 = vmatmul.mubr.f32.gmra.mrb[136].mxu0 %v599_v52  ;;  %v3333_v61 = vpop.f32.mrb[31].mxu1  ;;  %3595 = vmatmul.mubr.f32.gmra.mrb[136].mxu1 %v1111_v53  ;;  %v1126_v52 = vld [vmem:[%s4892_s26 + $0x1cb8] sm:$0xff] }
 0x3a3   : > { %2319 = vmatprep.mubr.f32.mxu0 %v602_v54  ;;  %3599 = vmatprep.mubr.f32.mxu1 %v1114_v55  ;;  %v1125_v60 = vld [vmem:[%s4892_s26 + $0x1cb0] sm:$0xff]  ;;  %v616_v61 = vld [vmem:[%s4892_s26 + $0xcc8] sm:$0xff] }
 0x3a4   : > { %4039 = vst.msk [vmem:[%s5255_s22 + $0x478] sm:$0xff] %vm3895_vm0, %v2052_v58  ;;  %4295 = vst.msk [vmem:[%s5255_s22 + $0xc78] sm:$0xff] %vm3895_vm0, %v3332_v59  ;;  %v613_v59 = vld [vmem:[%s4892_s26 + $0xcb0] sm:$0xff] }
 0x3a5   : > { %v2056_v2 = vpop.f32.mrb[32].mxu0  ;;  %v3336_v3 = vpop.f32.mrb[32].mxu1 }
 0x3a6   : > { %v2057_v4 = vadd.f32 %v6543_v33, %v2056_v2  ;;  %v3337_v5 = vadd.f32 %v6543_v33, %v3336_v3  ;;  %v2058_v6 = vpop.f32.mrb[33].mxu0  ;;  %2320 = vmatmul.mubr.f32.gmra.mrb[138].mxu0 %v601_v62  ;;  %v3338_v8 = vpop.f32.mrb[33].mxu1  ;;  %3600 = vmatmul.mubr.f32.gmra.mrb[138].mxu1 %v1113_v63  ;;  %v1128_v62 = vld [vmem:[%s4892_s26 + $0x1cc8] sm:$0xff] }
 0x3a7   : > { %2324 = vmatprep.mubr.f32.mxu0 %v604_v0  ;;  %3604 = vmatprep.mubr.f32.mxu1 %v1116_v1  ;;  %v1127_v6 = vld [vmem:[%s4892_s26 + $0x1cc0] sm:$0xff]  ;;  %v618_v8 = vld [vmem:[%s4892_s26 + $0xcd8] sm:$0xff] }
 0x3a8   : > { %4040 = vst.msk [vmem:[%s5255_s22 + $0x480] sm:$0xff] %vm3895_vm0, %v2057_v4  ;;  %4296 = vst.msk [vmem:[%s5255_s22 + $0xc80] sm:$0xff] %vm3895_vm0, %v3337_v5  ;;  %v615_v5 = vld [vmem:[%s4892_s26 + $0xcc0] sm:$0xff] }
 0x3a9   : > { %v2061_v13 = vpop.f32.mrb[34].mxu0  ;;  %v3341_v14 = vpop.f32.mrb[34].mxu1 }
 0x3aa   : > { %v2062_v15 = vadd.f32 %v6543_v33, %v2061_v13  ;;  %v3342_v16 = vadd.f32 %v6543_v33, %v3341_v14  ;;  %v2063_v7 = vpop.f32.mrb[35].mxu0  ;;  %2325 = vmatmul.mubr.f32.gmra.mrb[140].mxu0 %v603_v9  ;;  %v3343_v17 = vpop.f32.mrb[35].mxu1  ;;  %3605 = vmatmul.mubr.f32.gmra.mrb[140].mxu1 %v1115_v10  ;;  %v1130_v9 = vld [vmem:[%s4892_s26 + $0x1cd8] sm:$0xff] }
 0x3ab   : > { %2329 = vmatprep.mubr.f32.mxu0 %v606_v11  ;;  %3609 = vmatprep.mubr.f32.mxu1 %v1118_v12  ;;  %v1129_v7 = vld [vmem:[%s4892_s26 + $0x1cd0] sm:$0xff]  ;;  %v620_v17 = vld [vmem:[%s4892_s26 + $0xce8] sm:$0xff] }
 0x3ac   : > { %4041 = vst.msk [vmem:[%s5255_s22 + $0x488] sm:$0xff] %vm3895_vm0, %v2062_v15  ;;  %4297 = vst.msk [vmem:[%s5255_s22 + $0xc88] sm:$0xff] %vm3895_vm0, %v3342_v16  ;;  %v617_v16 = vld [vmem:[%s4892_s26 + $0xcd0] sm:$0xff] }
 0x3ad   : > { %v2066_v22 = vpop.f32.mrb[36].mxu0  ;;  %v3346_v24 = vpop.f32.mrb[36].mxu1 }
 0x3ae   : > { %v2067_v25 = vadd.f32 %v6543_v33, %v2066_v22  ;;  %v3347_v26 = vadd.f32 %v6543_v33, %v3346_v24  ;;  %v2068_v23 = vpop.f32.mrb[37].mxu0  ;;  %2330 = vmatmul.mubr.f32.gmra.mrb[142].mxu0 %v605_v19  ;;  %v3348_v27 = vpop.f32.mrb[37].mxu1  ;;  %3610 = vmatmul.mubr.f32.gmra.mrb[142].mxu1 %v1117_v20  ;;  %v1132_v19 = vld [vmem:[%s4892_s26 + $0x1ce8] sm:$0xff] }
 0x3af   : > { %2334 = vmatprep.mubr.f32.mxu0 %v608_v21  ;;  %3614 = vmatprep.mubr.f32.mxu1 %v1120_v18  ;;  %v1131_v23 = vld [vmem:[%s4892_s26 + $0x1ce0] sm:$0xff]  ;;  %v622_v27 = vld [vmem:[%s4892_s26 + $0xcf8] sm:$0xff] }
 0x3b0   : > { %4042 = vst.msk [vmem:[%s5255_s22 + $0x490] sm:$0xff] %vm3895_vm0, %v2067_v25  ;;  %4298 = vst.msk [vmem:[%s5255_s22 + $0xc90] sm:$0xff] %vm3895_vm0, %v3347_v26  ;;  %v619_v26 = vld [vmem:[%s4892_s26 + $0xce0] sm:$0xff] }
 0x3b1   : > { %v2071_v32 = vpop.f32.mrb[38].mxu0  ;;  %v3351_v34 = vpop.f32.mrb[38].mxu1 }
 0x3b2   : > { %v2072_v35 = vadd.f32 %v6543_v33, %v2071_v32  ;;  %v3352_v36 = vadd.f32 %v6543_v33, %v3351_v34  ;;  %v2073_v37 = vpop.f32.mrb[39].mxu0  ;;  %2335 = vmatmul.mubr.f32.gmra.mrb[144].mxu0 %v607_v29  ;;  %v3353_v38 = vpop.f32.mrb[39].mxu1  ;;  %3615 = vmatmul.mubr.f32.gmra.mrb[144].mxu1 %v1119_v30  ;;  %v1134_v29 = vld [vmem:[%s4892_s26 + $0x1cf8] sm:$0xff] }
 0x3b3   : > { %2339 = vmatprep.mubr.f32.mxu0 %v610_v31  ;;  %3619 = vmatprep.mubr.f32.mxu1 %v1122_v28  ;;  %v1133_v37 = vld [vmem:[%s4892_s26 + $0x1cf0] sm:$0xff]  ;;  %v624_v38 = vld [vmem:[%s4892_s26 + $0xd08] sm:$0xff] }
 0x3b4   : > { %4043 = vst.msk [vmem:[%s5255_s22 + $0x498] sm:$0xff] %vm3895_vm0, %v2072_v35  ;;  %4299 = vst.msk [vmem:[%s5255_s22 + $0xc98] sm:$0xff] %vm3895_vm0, %v3352_v36  ;;  %v621_v36 = vld [vmem:[%s4892_s26 + $0xcf0] sm:$0xff] }
 0x3b5   : > { %v2076_v43 = vpop.f32.mrb[40].mxu0  ;;  %v3356_v44 = vpop.f32.mrb[40].mxu1 }
 0x3b6   : > { %v2077_v45 = vadd.f32 %v6543_v33, %v2076_v43  ;;  %v3357_v46 = vadd.f32 %v6543_v33, %v3356_v44  ;;  %v2078_v47 = vpop.f32.mrb[41].mxu0  ;;  %2340 = vmatmul.mubr.f32.gmra.mrb[146].mxu0 %v609_v39  ;;  %v3358_v48 = vpop.f32.mrb[41].mxu1  ;;  %3620 = vmatmul.mubr.f32.gmra.mrb[146].mxu1 %v1121_v40  ;;  %v1136_v39 = vld [vmem:[%s4892_s26 + $0x1d08] sm:$0xff] }
 0x3b7   : > { %2344 = vmatprep.mubr.f32.mxu0 %v612_v41  ;;  %3624 = vmatprep.mubr.f32.mxu1 %v1124_v42  ;;  %v1135_v47 = vld [vmem:[%s4892_s26 + $0x1d00] sm:$0xff]  ;;  %v626_v48 = vld [vmem:[%s4892_s26 + $0xd18] sm:$0xff] }
 0x3b8   : > { %4044 = vst.msk [vmem:[%s5255_s22 + $0x4a0] sm:$0xff] %vm3895_vm0, %v2077_v45  ;;  %4300 = vst.msk [vmem:[%s5255_s22 + $0xca0] sm:$0xff] %vm3895_vm0, %v3357_v46  ;;  %v623_v46 = vld [vmem:[%s4892_s26 + $0xd00] sm:$0xff] }
 0x3b9   : > { %v2081_v53 = vpop.f32.mrb[42].mxu0  ;;  %v3361_v54 = vpop.f32.mrb[42].mxu1 }
 0x3ba   : > { %v2082_v55 = vadd.f32 %v6543_v33, %v2081_v53  ;;  %v3362_v56 = vadd.f32 %v6543_v33, %v3361_v54  ;;  %v2083_v57 = vpop.f32.mrb[43].mxu0  ;;  %2345 = vmatmul.mubr.f32.gmra.mrb[148].mxu0 %v611_v49  ;;  %v3363_v58 = vpop.f32.mrb[43].mxu1  ;;  %3625 = vmatmul.mubr.f32.gmra.mrb[148].mxu1 %v1123_v50  ;;  %v1138_v49 = vld [vmem:[%s4892_s26 + $0x1d18] sm:$0xff] }
 0x3bb   : > { %2349 = vmatprep.mubr.f32.mxu0 %v614_v51  ;;  %3629 = vmatprep.mubr.f32.mxu1 %v1126_v52  ;;  %v1137_v57 = vld [vmem:[%s4892_s26 + $0x1d10] sm:$0xff]  ;;  %v628_v58 = vld [vmem:[%s4892_s26 + $0xd28] sm:$0xff] }
 0x3bc   : > { %4045 = vst.msk [vmem:[%s5255_s22 + $0x4a8] sm:$0xff] %vm3895_vm0, %v2082_v55  ;;  %4301 = vst.msk [vmem:[%s5255_s22 + $0xca8] sm:$0xff] %vm3895_vm0, %v3362_v56  ;;  %v625_v56 = vld [vmem:[%s4892_s26 + $0xd10] sm:$0xff] }
 0x3bd   : > { %v2086_v63 = vpop.f32.mrb[44].mxu0  ;;  %v3366_v0 = vpop.f32.mrb[44].mxu1 }
 0x3be   : > { %v2087_v1 = vadd.f32 %v6543_v33, %v2086_v63  ;;  %v3367_v2 = vadd.f32 %v6543_v33, %v3366_v0  ;;  %v2088_v3 = vpop.f32.mrb[45].mxu0  ;;  %2350 = vmatmul.mubr.f32.gmra.mrb[150].mxu0 %v613_v59  ;;  %v3368_v4 = vpop.f32.mrb[45].mxu1  ;;  %3630 = vmatmul.mubr.f32.gmra.mrb[150].mxu1 %v1125_v60  ;;  %v1140_v59 = vld [vmem:[%s4892_s26 + $0x1d28] sm:$0xff] }
 0x3bf   : > { %2354 = vmatprep.mubr.f32.mxu0 %v616_v61  ;;  %3634 = vmatprep.mubr.f32.mxu1 %v1128_v62  ;;  %v1139_v3 = vld [vmem:[%s4892_s26 + $0x1d20] sm:$0xff]  ;;  %v630_v4 = vld [vmem:[%s4892_s26 + $0xd38] sm:$0xff] }
 0x3c0   : > { %4046 = vst.msk [vmem:[%s5255_s22 + $0x4b0] sm:$0xff] %vm3895_vm0, %v2087_v1  ;;  %4302 = vst.msk [vmem:[%s5255_s22 + $0xcb0] sm:$0xff] %vm3895_vm0, %v3367_v2  ;;  %v627_v2 = vld [vmem:[%s4892_s26 + $0xd20] sm:$0xff] }
 0x3c1   : > { %v2091_v10 = vpop.f32.mrb[46].mxu0  ;;  %v3371_v11 = vpop.f32.mrb[46].mxu1 }
 0x3c2   : > { %v2092_v12 = vadd.f32 %v6543_v33, %v2091_v10  ;;  %v3372_v13 = vadd.f32 %v6543_v33, %v3371_v11  ;;  %v2093_v14 = vpop.f32.mrb[47].mxu0  ;;  %2355 = vmatmul.mubr.f32.gmra.mrb[152].mxu0 %v615_v5  ;;  %v3373_v15 = vpop.f32.mrb[47].mxu1  ;;  %3635 = vmatmul.mubr.f32.gmra.mrb[152].mxu1 %v1127_v6  ;;  %v1142_v5 = vld [vmem:[%s4892_s26 + $0x1d38] sm:$0xff] }
 0x3c3   : > { %2359 = vmatprep.mubr.f32.mxu0 %v618_v8  ;;  %3639 = vmatprep.mubr.f32.mxu1 %v1130_v9  ;;  %v1141_v14 = vld [vmem:[%s4892_s26 + $0x1d30] sm:$0xff]  ;;  %v632_v15 = vld [vmem:[%s4892_s26 + $0xd48] sm:$0xff] }
 0x3c4   : > { %4047 = vst.msk [vmem:[%s5255_s22 + $0x4b8] sm:$0xff] %vm3895_vm0, %v2092_v12  ;;  %4303 = vst.msk [vmem:[%s5255_s22 + $0xcb8] sm:$0xff] %vm3895_vm0, %v3372_v13  ;;  %v629_v13 = vld [vmem:[%s4892_s26 + $0xd30] sm:$0xff] }
 0x3c5   : > { %v2096_v20 = vpop.f32.mrb[48].mxu0  ;;  %v3376_v21 = vpop.f32.mrb[48].mxu1 }
 0x3c6   : > { %v2097_v18 = vadd.f32 %v6543_v33, %v2096_v20  ;;  %v3377_v22 = vadd.f32 %v6543_v33, %v3376_v21  ;;  %v2098_v24 = vpop.f32.mrb[49].mxu0  ;;  %2360 = vmatmul.mubr.f32.gmra.mrb[154].mxu0 %v617_v16  ;;  %v3378_v25 = vpop.f32.mrb[49].mxu1  ;;  %3640 = vmatmul.mubr.f32.gmra.mrb[154].mxu1 %v1129_v7  ;;  %v1144_v16 = vld [vmem:[%s4892_s26 + $0x1d48] sm:$0xff] }
 0x3c7   : > { %2364 = vmatprep.mubr.f32.mxu0 %v620_v17  ;;  %3644 = vmatprep.mubr.f32.mxu1 %v1132_v19  ;;  %v1143_v24 = vld [vmem:[%s4892_s26 + $0x1d40] sm:$0xff]  ;;  %v634_v25 = vld [vmem:[%s4892_s26 + $0xd58] sm:$0xff] }
 0x3c8   : > { %4048 = vst.msk [vmem:[%s5255_s22 + $0x4c0] sm:$0xff] %vm3895_vm0, %v2097_v18  ;;  %4304 = vst.msk [vmem:[%s5255_s22 + $0xcc0] sm:$0xff] %vm3895_vm0, %v3377_v22  ;;  %v631_v22 = vld [vmem:[%s4892_s26 + $0xd40] sm:$0xff] }
 0x3c9   : > { %v2101_v30 = vpop.f32.mrb[50].mxu0  ;;  %v3381_v31 = vpop.f32.mrb[50].mxu1 }
 0x3ca   : > { %v2102_v28 = vadd.f32 %v6543_v33, %v2101_v30  ;;  %v3382_v32 = vadd.f32 %v6543_v33, %v3381_v31  ;;  %v2103_v34 = vpop.f32.mrb[51].mxu0  ;;  %2365 = vmatmul.mubr.f32.gmra.mrb[156].mxu0 %v619_v26  ;;  %v3383_v35 = vpop.f32.mrb[51].mxu1  ;;  %3645 = vmatmul.mubr.f32.gmra.mrb[156].mxu1 %v1131_v23  ;;  %v1146_v26 = vld [vmem:[%s4892_s26 + $0x1d58] sm:$0xff] }
 0x3cb   : > { %2369 = vmatprep.mubr.f32.mxu0 %v622_v27  ;;  %3649 = vmatprep.mubr.f32.mxu1 %v1134_v29  ;;  %v1145_v34 = vld [vmem:[%s4892_s26 + $0x1d50] sm:$0xff]  ;;  %v636_v35 = vld [vmem:[%s4892_s26 + $0xd68] sm:$0xff] }
 0x3cc   : > { %4049 = vst.msk [vmem:[%s5255_s22 + $0x4c8] sm:$0xff] %vm3895_vm0, %v2102_v28  ;;  %4305 = vst.msk [vmem:[%s5255_s22 + $0xcc8] sm:$0xff] %vm3895_vm0, %v3382_v32  ;;  %v633_v32 = vld [vmem:[%s4892_s26 + $0xd50] sm:$0xff] }
 0x3cd   : > { %v2106_v40 = vpop.f32.mrb[52].mxu0  ;;  %v3386_v41 = vpop.f32.mrb[52].mxu1 }
 0x3ce   : > { %v2107_v42 = vadd.f32 %v6543_v33, %v2106_v40  ;;  %v3387_v43 = vadd.f32 %v6543_v33, %v3386_v41  ;;  %v2108_v44 = vpop.f32.mrb[53].mxu0  ;;  %2370 = vmatmul.mubr.f32.gmra.mrb[158].mxu0 %v621_v36  ;;  %v3388_v45 = vpop.f32.mrb[53].mxu1  ;;  %3650 = vmatmul.mubr.f32.gmra.mrb[158].mxu1 %v1133_v37  ;;  %v1148_v36 = vld [vmem:[%s4892_s26 + $0x1d68] sm:$0xff] }
 0x3cf   : > { %2374 = vmatprep.mubr.f32.mxu0 %v624_v38  ;;  %3654 = vmatprep.mubr.f32.mxu1 %v1136_v39  ;;  %v6865_v38 = vld [vmem:[#allocation4] ss:$0 sm:$0xff]  ;;  %v638_v45 = vld [vmem:[%s4892_s26 + $0xd78] sm:$0xff] }
 0x3d0   : > { %4050 = vst.msk [vmem:[%s5255_s22 + $0x4d0] sm:$0xff] %vm3895_vm0, %v2107_v42  ;;  %4306 = vst.msk [vmem:[%s5255_s22 + $0xcd0] sm:$0xff] %vm3895_vm0, %v3387_v43  ;;  %v635_v43 = vld [vmem:[%s4892_s26 + $0xd60] sm:$0xff] }
 0x3d1   : > { %v2111_v50 = vpop.f32.mrb[54].mxu0  ;;  %v3391_v51 = vpop.f32.mrb[54].mxu1  ;;  %v1147_v44 = vld [vmem:[%s4892_s26 + $0x1d60] sm:$0xff] }
 0x3d2   : > { %v2112_v52 = vadd.f32 %v6543_v33, %v2111_v50  ;;  %v3392_v53 = vadd.f32 %v6543_v33, %v3391_v51  ;;  %v2113_v54 = vpop.f32.mrb[55].mxu0  ;;  %2375 = vmatmul.mubr.f32.gmra.mrb[160].mxu0 %v623_v46  ;;  %v3393_v55 = vpop.f32.mrb[55].mxu1  ;;  %3655 = vmatmul.mubr.f32.gmra.mrb[160].mxu1 %v1135_v47  ;;  %v1150_v46 = vld [vmem:[%s4892_s26 + $0x1d78] sm:$0xff] }
 0x3d3   : > { %2379 = vmatprep.mubr.f32.mxu0 %v626_v48  ;;  %3659 = vmatprep.mubr.f32.mxu1 %v1138_v49  ;;  %v1149_v54 = vld [vmem:[%s4892_s26 + $0x1d70] sm:$0xff]  ;;  %v640_v55 = vld [vmem:[%s4892_s26 + $0xd88] sm:$0xff] }
 0x3d4   : > { %4051 = vst.msk [vmem:[%s5255_s22 + $0x4d8] sm:$0xff] %vm3895_vm0, %v2112_v52  ;;  %4307 = vst.msk [vmem:[%s5255_s22 + $0xcd8] sm:$0xff] %vm3895_vm0, %v3392_v53  ;;  %v637_v53 = vld [vmem:[%s4892_s26 + $0xd70] sm:$0xff] }
 0x3d5   : > { %v2116_v60 = vpop.f32.mrb[56].mxu0  ;;  %v3396_v61 = vpop.f32.mrb[56].mxu1 }
 0x3d6   : > { %v2117_v62 = vadd.f32 %v6543_v33, %v2116_v60  ;;  %v3397_v63 = vadd.f32 %v6543_v33, %v3396_v61  ;;  %v2118_v0 = vpop.f32.mrb[57].mxu0  ;;  %2380 = vmatmul.mubr.f32.gmra.mrb[162].mxu0 %v625_v56  ;;  %v3398_v1 = vpop.f32.mrb[57].mxu1  ;;  %3660 = vmatmul.mubr.f32.gmra.mrb[162].mxu1 %v1137_v57  ;;  %v1152_v56 = vld [vmem:[%s4892_s26 + $0x1d88] sm:$0xff] }
 0x3d7   : > { %2384 = vmatprep.mubr.f32.mxu0 %v628_v58  ;;  %3664 = vmatprep.mubr.f32.mxu1 %v1140_v59  ;;  %v1151_v0 = vld [vmem:[%s4892_s26 + $0x1d80] sm:$0xff]  ;;  %v642_v1 = vld [vmem:[%s4892_s26 + $0xd98] sm:$0xff] }
 0x3d8   : > { %4052 = vst.msk [vmem:[%s5255_s22 + $0x4e0] sm:$0xff] %vm3895_vm0, %v2117_v62  ;;  %4308 = vst.msk [vmem:[%s5255_s22 + $0xce0] sm:$0xff] %vm3895_vm0, %v3397_v63  ;;  %v639_v63 = vld [vmem:[%s4892_s26 + $0xd80] sm:$0xff] }
 0x3d9   : > { %v2121_v6 = vpop.f32.mrb[58].mxu0  ;;  %v3401_v8 = vpop.f32.mrb[58].mxu1 }
 0x3da   : > { %v2122_v9 = vadd.f32 %v6543_v33, %v2121_v6  ;;  %v3402_v10 = vadd.f32 %v6543_v33, %v3401_v8  ;;  %v2123_v11 = vpop.f32.mrb[59].mxu0  ;;  %2385 = vmatmul.mubr.f32.gmra.mrb[164].mxu0 %v627_v2  ;;  %v3403_v12 = vpop.f32.mrb[59].mxu1  ;;  %3665 = vmatmul.mubr.f32.gmra.mrb[164].mxu1 %v1139_v3  ;;  %v1154_v2 = vld [vmem:[%s4892_s26 + $0x1d98] sm:$0xff] }
 0x3db   : > { %2389 = vmatprep.mubr.f32.mxu0 %v630_v4  ;;  %3669 = vmatprep.mubr.f32.mxu1 %v1142_v5  ;;  %v1153_v11 = vld [vmem:[%s4892_s26 + $0x1d90] sm:$0xff]  ;;  %v644_v12 = vld [vmem:[%s4892_s26 + $0xda8] sm:$0xff] }
 0x3dc   : > { %4053 = vst.msk [vmem:[%s5255_s22 + $0x4e8] sm:$0xff] %vm3895_vm0, %v2122_v9  ;;  %4309 = vst.msk [vmem:[%s5255_s22 + $0xce8] sm:$0xff] %vm3895_vm0, %v3402_v10  ;;  %v641_v10 = vld [vmem:[%s4892_s26 + $0xd90] sm:$0xff] }
 0x3dd   : > { %v2126_v7 = vpop.f32.mrb[60].mxu0  ;;  %v3406_v17 = vpop.f32.mrb[60].mxu1 }
 0x3de   : > { %v2127_v19 = vadd.f32 %v6543_v33, %v2126_v7  ;;  %v3407_v20 = vadd.f32 %v6543_v33, %v3406_v17  ;;  %v2128_v21 = vpop.f32.mrb[61].mxu0  ;;  %2390 = vmatmul.mubr.f32.gmra.mrb[166].mxu0 %v629_v13  ;;  %v3408_v18 = vpop.f32.mrb[61].mxu1  ;;  %3670 = vmatmul.mubr.f32.gmra.mrb[166].mxu1 %v1141_v14  ;;  %v1156_v13 = vld [vmem:[%s4892_s26 + $0x1da8] sm:$0xff] }
 0x3df   : > { %2394 = vmatprep.mubr.f32.mxu0 %v632_v15  ;;  %3674 = vmatprep.mubr.f32.mxu1 %v1144_v16  ;;  %v1155_v21 = vld [vmem:[%s4892_s26 + $0x1da0] sm:$0xff]  ;;  %v646_v18 = vld [vmem:[%s4892_s26 + $0xdb8] sm:$0xff] }
 0x3e0   : > { %4054 = vst.msk [vmem:[%s5255_s22 + $0x4f0] sm:$0xff] %vm3895_vm0, %v2127_v19  ;;  %4310 = vst.msk [vmem:[%s5255_s22 + $0xcf0] sm:$0xff] %vm3895_vm0, %v3407_v20  ;;  %v643_v20 = vld [vmem:[%s4892_s26 + $0xda0] sm:$0xff] }
 0x3e1   : > { %v2131_v23 = vpop.f32.mrb[62].mxu0  ;;  %v3411_v27 = vpop.f32.mrb[62].mxu1 }
 0x3e2   : > { %v2132_v29 = vadd.f32 %v6543_v33, %v2131_v23  ;;  %v3412_v30 = vadd.f32 %v6543_v33, %v3411_v27  ;;  %v2133_v31 = vpop.f32.mrb[63].mxu0  ;;  %2395 = vmatmul.mubr.f32.gmra.mrb[168].mxu0 %v631_v22  ;;  %v3413_v28 = vpop.f32.mrb[63].mxu1  ;;  %3675 = vmatmul.mubr.f32.gmra.mrb[168].mxu1 %v1143_v24  ;;  %v1158_v22 = vld [vmem:[%s4892_s26 + $0x1db8] sm:$0xff] }
 0x3e3   : > { %2399 = vmatprep.mubr.f32.mxu0 %v634_v25  ;;  %3679 = vmatprep.mubr.f32.mxu1 %v1146_v26  ;;  %v1157_v31 = vld [vmem:[%s4892_s26 + $0x1db0] sm:$0xff]  ;;  %v648_v28 = vld [vmem:[%s4892_s26 + $0xdc8] sm:$0xff] }
 0x3e4   : > { %4055 = vst.msk [vmem:[%s5255_s22 + $0x4f8] sm:$0xff] %vm3895_vm0, %v2132_v29  ;;  %4311 = vst.msk [vmem:[%s5255_s22 + $0xcf8] sm:$0xff] %vm3895_vm0, %v3412_v30  ;;  %v645_v30 = vld [vmem:[%s4892_s26 + $0xdb0] sm:$0xff] }
 0x3e5   : > { %v2136_v33 = vpop.f32.mrb[64].mxu0  ;;  %v3416_v37 = vpop.f32.mrb[64].mxu1 }
 0x3e6   : > { %v2137_v39 = vadd.f32 %v6865_v38, %v2136_v33  ;;  %v3417_v40 = vadd.f32 %v6865_v38, %v3416_v37  ;;  %v2138_v41 = vpop.f32.mrb[65].mxu0  ;;  %2400 = vmatmul.mubr.f32.gmra.mrb[170].mxu0 %v633_v32  ;;  %v3418_v42 = vpop.f32.mrb[65].mxu1  ;;  %3680 = vmatmul.mubr.f32.gmra.mrb[170].mxu1 %v1145_v34  ;;  %v1160_v32 = vld [vmem:[%s4892_s26 + $0x1dc8] sm:$0xff] }
 0x3e7   : > { %2404 = vmatprep.mubr.f32.mxu0 %v636_v35  ;;  %3684 = vmatprep.mubr.f32.mxu1 %v1148_v36  ;;  %v1159_v41 = vld [vmem:[%s4892_s26 + $0x1dc0] sm:$0xff]  ;;  %v650_v42 = vld [vmem:[%s4892_s26 + $0xdd8] sm:$0xff] }
 0x3e8   : > { %4056 = vst.msk [vmem:[%s5255_s22 + $0x500] sm:$0xff] %vm3895_vm0, %v2137_v39  ;;  %4312 = vst.msk [vmem:[%s5255_s22 + $0xd00] sm:$0xff] %vm3895_vm0, %v3417_v40  ;;  %v647_v40 = vld [vmem:[%s4892_s26 + $0xdc0] sm:$0xff] }
 0x3e9   : > { %v2141_v47 = vpop.f32.mrb[66].mxu0  ;;  %v3421_v48 = vpop.f32.mrb[66].mxu1 }
 0x3ea   : > { %v2142_v49 = vadd.f32 %v6865_v38, %v2141_v47  ;;  %v3422_v50 = vadd.f32 %v6865_v38, %v3421_v48  ;;  %v2143_v51 = vpop.f32.mrb[67].mxu0  ;;  %2405 = vmatmul.mubr.f32.gmra.mrb[172].mxu0 %v635_v43  ;;  %v3423_v52 = vpop.f32.mrb[67].mxu1  ;;  %3685 = vmatmul.mubr.f32.gmra.mrb[172].mxu1 %v1147_v44  ;;  %v1162_v43 = vld [vmem:[%s4892_s26 + $0x1dd8] sm:$0xff] }
 0x3eb   : > { %2409 = vmatprep.mubr.f32.mxu0 %v638_v45  ;;  %3689 = vmatprep.mubr.f32.mxu1 %v1150_v46  ;;  %v1161_v51 = vld [vmem:[%s4892_s26 + $0x1dd0] sm:$0xff]  ;;  %v652_v52 = vld [vmem:[%s4892_s26 + $0xde8] sm:$0xff] }
 0x3ec   : > { %4057 = vst.msk [vmem:[%s5255_s22 + $0x508] sm:$0xff] %vm3895_vm0, %v2142_v49  ;;  %4313 = vst.msk [vmem:[%s5255_s22 + $0xd08] sm:$0xff] %vm3895_vm0, %v3422_v50  ;;  %v649_v50 = vld [vmem:[%s4892_s26 + $0xdd0] sm:$0xff] }
 0x3ed   : > { %v2146_v57 = vpop.f32.mrb[68].mxu0  ;;  %v3426_v58 = vpop.f32.mrb[68].mxu1 }
 0x3ee   : > { %v2147_v59 = vadd.f32 %v6865_v38, %v2146_v57  ;;  %v3427_v60 = vadd.f32 %v6865_v38, %v3426_v58  ;;  %v2148_v61 = vpop.f32.mrb[69].mxu0  ;;  %2410 = vmatmul.mubr.f32.gmra.mrb[174].mxu0 %v637_v53  ;;  %v3428_v62 = vpop.f32.mrb[69].mxu1  ;;  %3690 = vmatmul.mubr.f32.gmra.mrb[174].mxu1 %v1149_v54  ;;  %v1164_v53 = vld [vmem:[%s4892_s26 + $0x1de8] sm:$0xff] }
 0x3ef   : > { %2414 = vmatprep.mubr.f32.mxu0 %v640_v55  ;;  %3694 = vmatprep.mubr.f32.mxu1 %v1152_v56  ;;  %v1163_v61 = vld [vmem:[%s4892_s26 + $0x1de0] sm:$0xff]  ;;  %v654_v62 = vld [vmem:[%s4892_s26 + $0xdf8] sm:$0xff] }
 0x3f0   : > { %4058 = vst.msk [vmem:[%s5255_s22 + $0x510] sm:$0xff] %vm3895_vm0, %v2147_v59  ;;  %4314 = vst.msk [vmem:[%s5255_s22 + $0xd10] sm:$0xff] %vm3895_vm0, %v3427_v60  ;;  %v651_v60 = vld [vmem:[%s4892_s26 + $0xde0] sm:$0xff] }
 0x3f1   : > { %v2151_v3 = vpop.f32.mrb[70].mxu0  ;;  %v3431_v4 = vpop.f32.mrb[70].mxu1 }
 0x3f2   : > { %v2152_v5 = vadd.f32 %v6865_v38, %v2151_v3  ;;  %v3432_v6 = vadd.f32 %v6865_v38, %v3431_v4  ;;  %v2153_v8 = vpop.f32.mrb[71].mxu0  ;;  %2415 = vmatmul.mubr.f32.gmra.mrb[176].mxu0 %v639_v63  ;;  %v3433_v9 = vpop.f32.mrb[71].mxu1  ;;  %3695 = vmatmul.mubr.f32.gmra.mrb[176].mxu1 %v1151_v0  ;;  %v1166_v63 = vld [vmem:[%s4892_s26 + $0x1df8] sm:$0xff] }
 0x3f3   : > { %2419 = vmatprep.mubr.f32.mxu0 %v642_v1  ;;  %3699 = vmatprep.mubr.f32.mxu1 %v1154_v2  ;;  %v1165_v8 = vld [vmem:[%s4892_s26 + $0x1df0] sm:$0xff]  ;;  %v656_v9 = vld [vmem:[%s4892_s26 + $0xe08] sm:$0xff] }
 0x3f4   : > { %4059 = vst.msk [vmem:[%s5255_s22 + $0x518] sm:$0xff] %vm3895_vm0, %v2152_v5  ;;  %4315 = vst.msk [vmem:[%s5255_s22 + $0xd18] sm:$0xff] %vm3895_vm0, %v3432_v6  ;;  %v653_v6 = vld [vmem:[%s4892_s26 + $0xdf0] sm:$0xff] }
 0x3f5   : > { %v2156_v14 = vpop.f32.mrb[72].mxu0  ;;  %v3436_v15 = vpop.f32.mrb[72].mxu1 }
 0x3f6   : > { %v2157_v16 = vadd.f32 %v6865_v38, %v2156_v14  ;;  %v3437_v7 = vadd.f32 %v6865_v38, %v3436_v15  ;;  %v2158_v17 = vpop.f32.mrb[73].mxu0  ;;  %2420 = vmatmul.mubr.f32.gmra.mrb[178].mxu0 %v641_v10  ;;  %v3438_v19 = vpop.f32.mrb[73].mxu1  ;;  %3700 = vmatmul.mubr.f32.gmra.mrb[178].mxu1 %v1153_v11  ;;  %v1168_v10 = vld [vmem:[%s4892_s26 + $0x1e08] sm:$0xff] }
 0x3f7   : > { %2424 = vmatprep.mubr.f32.mxu0 %v644_v12  ;;  %3704 = vmatprep.mubr.f32.mxu1 %v1156_v13  ;;  %v1167_v17 = vld [vmem:[%s4892_s26 + $0x1e00] sm:$0xff]  ;;  %v658_v19 = vld [vmem:[%s4892_s26 + $0xe18] sm:$0xff] }
 0x3f8   : > { %4060 = vst.msk [vmem:[%s5255_s22 + $0x520] sm:$0xff] %vm3895_vm0, %v2157_v16  ;;  %4316 = vst.msk [vmem:[%s5255_s22 + $0xd20] sm:$0xff] %vm3895_vm0, %v3437_v7  ;;  %v655_v7 = vld [vmem:[%s4892_s26 + $0xe00] sm:$0xff] }
 0x3f9   : > { %v2161_v24 = vpop.f32.mrb[74].mxu0  ;;  %v3441_v25 = vpop.f32.mrb[74].mxu1 }
 0x3fa   : > { %v2162_v26 = vadd.f32 %v6865_v38, %v2161_v24  ;;  %v3442_v23 = vadd.f32 %v6865_v38, %v3441_v25  ;;  %v2163_v27 = vpop.f32.mrb[75].mxu0  ;;  %2425 = vmatmul.mubr.f32.gmra.mrb[180].mxu0 %v643_v20  ;;  %v3443_v29 = vpop.f32.mrb[75].mxu1  ;;  %3705 = vmatmul.mubr.f32.gmra.mrb[180].mxu1 %v1155_v21  ;;  %v1170_v20 = vld [vmem:[%s4892_s26 + $0x1e18] sm:$0xff] }
 0x3fb   : > { %2429 = vmatprep.mubr.f32.mxu0 %v646_v18  ;;  %3709 = vmatprep.mubr.f32.mxu1 %v1158_v22  ;;  %v1169_v27 = vld [vmem:[%s4892_s26 + $0x1e10] sm:$0xff]  ;;  %v660_v29 = vld [vmem:[%s4892_s26 + $0xe28] sm:$0xff] }
 0x3fc   : > { %4061 = vst.msk [vmem:[%s5255_s22 + $0x528] sm:$0xff] %vm3895_vm0, %v2162_v26  ;;  %4317 = vst.msk [vmem:[%s5255_s22 + $0xd28] sm:$0xff] %vm3895_vm0, %v3442_v23  ;;  %v657_v23 = vld [vmem:[%s4892_s26 + $0xe10] sm:$0xff] }
 0x3fd   : > { %v2166_v34 = vpop.f32.mrb[76].mxu0  ;;  %v3446_v35 = vpop.f32.mrb[76].mxu1 }
 0x3fe   : > { %v2167_v36 = vadd.f32 %v6865_v38, %v2166_v34  ;;  %v3447_v33 = vadd.f32 %v6865_v38, %v3446_v35  ;;  %v2168_v37 = vpop.f32.mrb[77].mxu0  ;;  %2430 = vmatmul.mubr.f32.gmra.mrb[182].mxu0 %v645_v30  ;;  %v3448_v39 = vpop.f32.mrb[77].mxu1  ;;  %3710 = vmatmul.mubr.f32.gmra.mrb[182].mxu1 %v1157_v31  ;;  %v1172_v30 = vld [vmem:[%s4892_s26 + $0x1e28] sm:$0xff] }
 0x3ff   : > { %2434 = vmatprep.mubr.f32.mxu0 %v648_v28  ;;  %3714 = vmatprep.mubr.f32.mxu1 %v1160_v32  ;;  %v1171_v37 = vld [vmem:[%s4892_s26 + $0x1e20] sm:$0xff]  ;;  %v662_v39 = vld [vmem:[%s4892_s26 + $0xe38] sm:$0xff] }
 0x400   : > { %4062 = vst.msk [vmem:[%s5255_s22 + $0x530] sm:$0xff] %vm3895_vm0, %v2167_v36  ;;  %4318 = vst.msk [vmem:[%s5255_s22 + $0xd30] sm:$0xff] %vm3895_vm0, %v3447_v33  ;;  %v659_v33 = vld [vmem:[%s4892_s26 + $0xe20] sm:$0xff] }
 0x401   : > { %v2171_v44 = vpop.f32.mrb[78].mxu0  ;;  %v3451_v45 = vpop.f32.mrb[78].mxu1 }
 0x402   : > { %v2172_v46 = vadd.f32 %v6865_v38, %v2171_v44  ;;  %v3452_v47 = vadd.f32 %v6865_v38, %v3451_v45  ;;  %v2173_v48 = vpop.f32.mrb[79].mxu0  ;;  %2435 = vmatmul.mubr.f32.gmra.mrb[184].mxu0 %v647_v40  ;;  %v3453_v49 = vpop.f32.mrb[79].mxu1  ;;  %3715 = vmatmul.mubr.f32.gmra.mrb[184].mxu1 %v1159_v41  ;;  %v1174_v40 = vld [vmem:[%s4892_s26 + $0x1e38] sm:$0xff] }
 0x403   : > { %2439 = vmatprep.mubr.f32.mxu0 %v650_v42  ;;  %3719 = vmatprep.mubr.f32.mxu1 %v1162_v43  ;;  %v1173_v48 = vld [vmem:[%s4892_s26 + $0x1e30] sm:$0xff]  ;;  %v664_v49 = vld [vmem:[%s4892_s26 + $0xe48] sm:$0xff] }
 0x404   : > { %4063 = vst.msk [vmem:[%s5255_s22 + $0x538] sm:$0xff] %vm3895_vm0, %v2172_v46  ;;  %4319 = vst.msk [vmem:[%s5255_s22 + $0xd38] sm:$0xff] %vm3895_vm0, %v3452_v47  ;;  %v661_v47 = vld [vmem:[%s4892_s26 + $0xe30] sm:$0xff] }
 0x405   : > { %v2176_v54 = vpop.f32.mrb[80].mxu0  ;;  %v3456_v55 = vpop.f32.mrb[80].mxu1 }
 0x406   : > { %v2177_v56 = vadd.f32 %v6865_v38, %v2176_v54  ;;  %v3457_v57 = vadd.f32 %v6865_v38, %v3456_v55  ;;  %v2178_v58 = vpop.f32.mrb[81].mxu0  ;;  %2440 = vmatmul.mubr.f32.gmra.mrb[186].mxu0 %v649_v50  ;;  %v3458_v59 = vpop.f32.mrb[81].mxu1  ;;  %3720 = vmatmul.mubr.f32.gmra.mrb[186].mxu1 %v1161_v51  ;;  %v1176_v50 = vld [vmem:[%s4892_s26 + $0x1e48] sm:$0xff] }
 0x407   : > { %2444 = vmatprep.mubr.f32.mxu0 %v652_v52  ;;  %3724 = vmatprep.mubr.f32.mxu1 %v1164_v53  ;;  %v1175_v58 = vld [vmem:[%s4892_s26 + $0x1e40] sm:$0xff]  ;;  %v666_v59 = vld [vmem:[%s4892_s26 + $0xe58] sm:$0xff] }
 0x408   : > { %4064 = vst.msk [vmem:[%s5255_s22 + $0x540] sm:$0xff] %vm3895_vm0, %v2177_v56  ;;  %4320 = vst.msk [vmem:[%s5255_s22 + $0xd40] sm:$0xff] %vm3895_vm0, %v3457_v57  ;;  %v663_v57 = vld [vmem:[%s4892_s26 + $0xe40] sm:$0xff] }
 0x409   : > { %v2181_v0 = vpop.f32.mrb[82].mxu0  ;;  %v3461_v1 = vpop.f32.mrb[82].mxu1 }
 0x40a   : > { %v2182_v2 = vadd.f32 %v6865_v38, %v2181_v0  ;;  %v3462_v3 = vadd.f32 %v6865_v38, %v3461_v1  ;;  %v2183_v4 = vpop.f32.mrb[83].mxu0  ;;  %2445 = vmatmul.mubr.f32.gmra.mrb[188].mxu0 %v651_v60  ;;  %v3463_v5 = vpop.f32.mrb[83].mxu1  ;;  %3725 = vmatmul.mubr.f32.gmra.mrb[188].mxu1 %v1163_v61  ;;  %v1178_v60 = vld [vmem:[%s4892_s26 + $0x1e58] sm:$0xff] }
 0x40b   : > { %2449 = vmatprep.mubr.f32.mxu0 %v654_v62  ;;  %3729 = vmatprep.mubr.f32.mxu1 %v1166_v63  ;;  %v1177_v4 = vld [vmem:[%s4892_s26 + $0x1e50] sm:$0xff]  ;;  %v668_v5 = vld [vmem:[%s4892_s26 + $0xe68] sm:$0xff] }
 0x40c   : > { %4065 = vst.msk [vmem:[%s5255_s22 + $0x548] sm:$0xff] %vm3895_vm0, %v2182_v2  ;;  %4321 = vst.msk [vmem:[%s5255_s22 + $0xd48] sm:$0xff] %vm3895_vm0, %v3462_v3  ;;  %v665_v3 = vld [vmem:[%s4892_s26 + $0xe50] sm:$0xff] }
 0x40d   : > { %v2186_v11 = vpop.f32.mrb[84].mxu0  ;;  %v3466_v12 = vpop.f32.mrb[84].mxu1 }
 0x40e   : > { %v2187_v13 = vadd.f32 %v6865_v38, %v2186_v11  ;;  %v3467_v14 = vadd.f32 %v6865_v38, %v3466_v12  ;;  %v2188_v15 = vpop.f32.mrb[85].mxu0  ;;  %2450 = vmatmul.mubr.f32.gmra.mrb[190].mxu0 %v653_v6  ;;  %v3468_v16 = vpop.f32.mrb[85].mxu1  ;;  %3730 = vmatmul.mubr.f32.gmra.mrb[190].mxu1 %v1165_v8  ;;  %v1180_v6 = vld [vmem:[%s4892_s26 + $0x1e68] sm:$0xff] }
 0x40f   : > { %2454 = vmatprep.mubr.f32.mxu0 %v656_v9  ;;  %3734 = vmatprep.mubr.f32.mxu1 %v1168_v10  ;;  %v1179_v15 = vld [vmem:[%s4892_s26 + $0x1e60] sm:$0xff]  ;;  %v670_v16 = vld [vmem:[%s4892_s26 + $0xe78] sm:$0xff] }
 0x410   : > { %4066 = vst.msk [vmem:[%s5255_s22 + $0x550] sm:$0xff] %vm3895_vm0, %v2187_v13  ;;  %4322 = vst.msk [vmem:[%s5255_s22 + $0xd50] sm:$0xff] %vm3895_vm0, %v3467_v14  ;;  %v667_v14 = vld [vmem:[%s4892_s26 + $0xe60] sm:$0xff] }
 0x411   : > { %v2191_v21 = vpop.f32.mrb[86].mxu0  ;;  %v3471_v18 = vpop.f32.mrb[86].mxu1 }
 0x412   : > { %v2192_v22 = vadd.f32 %v6865_v38, %v2191_v21  ;;  %v3472_v24 = vadd.f32 %v6865_v38, %v3471_v18  ;;  %v2193_v25 = vpop.f32.mrb[87].mxu0  ;;  %2455 = vmatmul.mubr.f32.gmra.mrb[192].mxu0 %v655_v7  ;;  %v3473_v26 = vpop.f32.mrb[87].mxu1  ;;  %3735 = vmatmul.mubr.f32.gmra.mrb[192].mxu1 %v1167_v17  ;;  %v1182_v7 = vld [vmem:[%s4892_s26 + $0x1e78] sm:$0xff] }
 0x413   : > { %2459 = vmatprep.mubr.f32.mxu0 %v658_v19  ;;  %3739 = vmatprep.mubr.f32.mxu1 %v1170_v20  ;;  %v1181_v25 = vld [vmem:[%s4892_s26 + $0x1e70] sm:$0xff]  ;;  %v672_v26 = vld [vmem:[%s4892_s26 + $0xe88] sm:$0xff] }
 0x414   : > { %4067 = vst.msk [vmem:[%s5255_s22 + $0x558] sm:$0xff] %vm3895_vm0, %v2192_v22  ;;  %4323 = vst.msk [vmem:[%s5255_s22 + $0xd58] sm:$0xff] %vm3895_vm0, %v3472_v24  ;;  %v669_v24 = vld [vmem:[%s4892_s26 + $0xe70] sm:$0xff] }
 0x415   : > { %v2196_v31 = vpop.f32.mrb[88].mxu0  ;;  %v3476_v28 = vpop.f32.mrb[88].mxu1 }
 0x416   : > { %v2197_v32 = vadd.f32 %v6865_v38, %v2196_v31  ;;  %v3477_v34 = vadd.f32 %v6865_v38, %v3476_v28  ;;  %v2198_v35 = vpop.f32.mrb[89].mxu0  ;;  %2460 = vmatmul.mubr.f32.gmra.mrb[194].mxu0 %v657_v23  ;;  %v3478_v36 = vpop.f32.mrb[89].mxu1  ;;  %3740 = vmatmul.mubr.f32.gmra.mrb[194].mxu1 %v1169_v27  ;;  %v1184_v23 = vld [vmem:[%s4892_s26 + $0x1e88] sm:$0xff] }
 0x417   : > { %2464 = vmatprep.mubr.f32.mxu0 %v660_v29  ;;  %3744 = vmatprep.mubr.f32.mxu1 %v1172_v30  ;;  %v1183_v35 = vld [vmem:[%s4892_s26 + $0x1e80] sm:$0xff]  ;;  %v674_v36 = vld [vmem:[%s4892_s26 + $0xe98] sm:$0xff] }
 0x418   : > { %4068 = vst.msk [vmem:[%s5255_s22 + $0x560] sm:$0xff] %vm3895_vm0, %v2197_v32  ;;  %4324 = vst.msk [vmem:[%s5255_s22 + $0xd60] sm:$0xff] %vm3895_vm0, %v3477_v34  ;;  %v671_v34 = vld [vmem:[%s4892_s26 + $0xe80] sm:$0xff] }
 0x419   : > { %v2201_v41 = vpop.f32.mrb[90].mxu0  ;;  %v3481_v42 = vpop.f32.mrb[90].mxu1 }
 0x41a   : > { %v2202_v43 = vadd.f32 %v6865_v38, %v2201_v41  ;;  %v3482_v44 = vadd.f32 %v6865_v38, %v3481_v42  ;;  %v2203_v45 = vpop.f32.mrb[91].mxu0  ;;  %2465 = vmatmul.mubr.f32.gmra.mrb[196].mxu0 %v659_v33  ;;  %v3483_v46 = vpop.f32.mrb[91].mxu1  ;;  %3745 = vmatmul.mubr.f32.gmra.mrb[196].mxu1 %v1171_v37  ;;  %v1186_v33 = vld [vmem:[%s4892_s26 + $0x1e98] sm:$0xff] }
 0x41b   : > { %2469 = vmatprep.mubr.f32.mxu0 %v662_v39  ;;  %3749 = vmatprep.mubr.f32.mxu1 %v1174_v40  ;;  %v1185_v45 = vld [vmem:[%s4892_s26 + $0x1e90] sm:$0xff]  ;;  %v676_v46 = vld [vmem:[%s4892_s26 + $0xea8] sm:$0xff] }
 0x41c   : > { %4069 = vst.msk [vmem:[%s5255_s22 + $0x568] sm:$0xff] %vm3895_vm0, %v2202_v43  ;;  %4325 = vst.msk [vmem:[%s5255_s22 + $0xd68] sm:$0xff] %vm3895_vm0, %v3482_v44  ;;  %v673_v44 = vld [vmem:[%s4892_s26 + $0xe90] sm:$0xff] }
 0x41d   : > { %v2206_v51 = vpop.f32.mrb[92].mxu0  ;;  %v3486_v52 = vpop.f32.mrb[92].mxu1 }
 0x41e   : > { %v2207_v53 = vadd.f32 %v6865_v38, %v2206_v51  ;;  %v3487_v54 = vadd.f32 %v6865_v38, %v3486_v52  ;;  %v2208_v55 = vpop.f32.mrb[93].mxu0  ;;  %2470 = vmatmul.mubr.f32.gmra.mrb[198].mxu0 %v661_v47  ;;  %v3488_v56 = vpop.f32.mrb[93].mxu1  ;;  %3750 = vmatmul.mubr.f32.gmra.mrb[198].mxu1 %v1173_v48  ;;  %v1188_v47 = vld [vmem:[%s4892_s26 + $0x1ea8] sm:$0xff] }
 0x41f   : > { %2474 = vmatprep.mubr.f32.mxu0 %v664_v49  ;;  %3754 = vmatprep.mubr.f32.mxu1 %v1176_v50  ;;  %v1187_v55 = vld [vmem:[%s4892_s26 + $0x1ea0] sm:$0xff]  ;;  %v678_v56 = vld [vmem:[%s4892_s26 + $0xeb8] sm:$0xff] }
 0x420   : > { %4070 = vst.msk [vmem:[%s5255_s22 + $0x570] sm:$0xff] %vm3895_vm0, %v2207_v53  ;;  %4326 = vst.msk [vmem:[%s5255_s22 + $0xd70] sm:$0xff] %vm3895_vm0, %v3487_v54  ;;  %v675_v54 = vld [vmem:[%s4892_s26 + $0xea0] sm:$0xff] }
 0x421   : > { %v2211_v61 = vpop.f32.mrb[94].mxu0  ;;  %v3491_v62 = vpop.f32.mrb[94].mxu1 }
 0x422   : > { %v2212_v63 = vadd.f32 %v6865_v38, %v2211_v61  ;;  %v3492_v0 = vadd.f32 %v6865_v38, %v3491_v62  ;;  %v2213_v1 = vpop.f32.mrb[95].mxu0  ;;  %2475 = vmatmul.mubr.f32.gmra.mrb[200].mxu0 %v663_v57  ;;  %v3493_v2 = vpop.f32.mrb[95].mxu1  ;;  %3755 = vmatmul.mubr.f32.gmra.mrb[200].mxu1 %v1175_v58  ;;  %v1190_v57 = vld [vmem:[%s4892_s26 + $0x1eb8] sm:$0xff] }
 0x423   : > { %2479 = vmatprep.mubr.f32.mxu0 %v666_v59  ;;  %3759 = vmatprep.mubr.f32.mxu1 %v1178_v60  ;;  %v1189_v1 = vld [vmem:[%s4892_s26 + $0x1eb0] sm:$0xff]  ;;  %v680_v2 = vld [vmem:[%s4892_s26 + $0xec8] sm:$0xff] }
 0x424   : > { %4071 = vst.msk [vmem:[%s5255_s22 + $0x578] sm:$0xff] %vm3895_vm0, %v2212_v63  ;;  %4327 = vst.msk [vmem:[%s5255_s22 + $0xd78] sm:$0xff] %vm3895_vm0, %v3492_v0  ;;  %v677_v0 = vld [vmem:[%s4892_s26 + $0xeb0] sm:$0xff] }
 0x425   : > { %v2216_v8 = vpop.f32.mrb[96].mxu0  ;;  %v3496_v9 = vpop.f32.mrb[96].mxu1 }
 0x426   : > { %v2217_v10 = vadd.f32 %v6865_v38, %v2216_v8  ;;  %v3497_v11 = vadd.f32 %v6865_v38, %v3496_v9  ;;  %v2218_v12 = vpop.f32.mrb[97].mxu0  ;;  %2480 = vmatmul.mubr.f32.gmra.mrb[202].mxu0 %v665_v3  ;;  %v3498_v13 = vpop.f32.mrb[97].mxu1  ;;  %3760 = vmatmul.mubr.f32.gmra.mrb[202].mxu1 %v1177_v4  ;;  %v1192_v3 = vld [vmem:[%s4892_s26 + $0x1ec8] sm:$0xff] }
 0x427   : > { %2484 = vmatprep.mubr.f32.mxu0 %v668_v5  ;;  %3764 = vmatprep.mubr.f32.mxu1 %v1180_v6  ;;  %v1191_v12 = vld [vmem:[%s4892_s26 + $0x1ec0] sm:$0xff]  ;;  %v682_v13 = vld [vmem:[%s4892_s26 + $0xed8] sm:$0xff] }
 0x428   : > { %4072 = vst.msk [vmem:[%s5255_s22 + $0x580] sm:$0xff] %vm3895_vm0, %v2217_v10  ;;  %4328 = vst.msk [vmem:[%s5255_s22 + $0xd80] sm:$0xff] %vm3895_vm0, %v3497_v11  ;;  %v679_v11 = vld [vmem:[%s4892_s26 + $0xec0] sm:$0xff] }
 0x429   : > { %v2221_v17 = vpop.f32.mrb[98].mxu0  ;;  %v3501_v19 = vpop.f32.mrb[98].mxu1 }
 0x42a   : > { %v2222_v20 = vadd.f32 %v6865_v38, %v2221_v17  ;;  %v3502_v21 = vadd.f32 %v6865_v38, %v3501_v19  ;;  %v2223_v18 = vpop.f32.mrb[99].mxu0  ;;  %2485 = vmatmul.mubr.f32.gmra.mrb[204].mxu0 %v667_v14  ;;  %v3503_v22 = vpop.f32.mrb[99].mxu1  ;;  %3765 = vmatmul.mubr.f32.gmra.mrb[204].mxu1 %v1179_v15  ;;  %v1194_v14 = vld [vmem:[%s4892_s26 + $0x1ed8] sm:$0xff] }
 0x42b   : > { %2489 = vmatprep.mubr.f32.mxu0 %v670_v16  ;;  %3769 = vmatprep.mubr.f32.mxu1 %v1182_v7  ;;  %v1193_v18 = vld [vmem:[%s4892_s26 + $0x1ed0] sm:$0xff]  ;;  %v684_v22 = vld [vmem:[%s4892_s26 + $0xee8] sm:$0xff] }
 0x42c   : > { %4073 = vst.msk [vmem:[%s5255_s22 + $0x588] sm:$0xff] %vm3895_vm0, %v2222_v20  ;;  %4329 = vst.msk [vmem:[%s5255_s22 + $0xd88] sm:$0xff] %vm3895_vm0, %v3502_v21  ;;  %v681_v21 = vld [vmem:[%s4892_s26 + $0xed0] sm:$0xff] }
 0x42d   : > { %v2226_v27 = vpop.f32.mrb[100].mxu0  ;;  %v3506_v29 = vpop.f32.mrb[100].mxu1 }
 0x42e   : > { %v2227_v30 = vadd.f32 %v6865_v38, %v2226_v27  ;;  %v3507_v31 = vadd.f32 %v6865_v38, %v3506_v29  ;;  %v2228_v28 = vpop.f32.mrb[101].mxu0  ;;  %2490 = vmatmul.mubr.f32.gmra.mrb[206].mxu0 %v669_v24  ;;  %v3508_v32 = vpop.f32.mrb[101].mxu1  ;;  %3770 = vmatmul.mubr.f32.gmra.mrb[206].mxu1 %v1181_v25  ;;  %v1196_v24 = vld [vmem:[%s4892_s26 + $0x1ee8] sm:$0xff] }
 0x42f   : > { %2494 = vmatprep.mubr.f32.mxu0 %v672_v26  ;;  %3774 = vmatprep.mubr.f32.mxu1 %v1184_v23  ;;  %v1195_v28 = vld [vmem:[%s4892_s26 + $0x1ee0] sm:$0xff]  ;;  %v686_v32 = vld [vmem:[%s4892_s26 + $0xef8] sm:$0xff] }
 0x430   : > { %4074 = vst.msk [vmem:[%s5255_s22 + $0x590] sm:$0xff] %vm3895_vm0, %v2227_v30  ;;  %4330 = vst.msk [vmem:[%s5255_s22 + $0xd90] sm:$0xff] %vm3895_vm0, %v3507_v31  ;;  %v683_v31 = vld [vmem:[%s4892_s26 + $0xee0] sm:$0xff] }
 0x431   : > { %v2231_v37 = vpop.f32.mrb[102].mxu0  ;;  %v3511_v39 = vpop.f32.mrb[102].mxu1 }
 0x432   : > { %v2232_v40 = vadd.f32 %v6865_v38, %v2231_v37  ;;  %v3512_v41 = vadd.f32 %v6865_v38, %v3511_v39  ;;  %v2233_v42 = vpop.f32.mrb[103].mxu0  ;;  %2495 = vmatmul.mubr.f32.gmra.mrb[208].mxu0 %v671_v34  ;;  %v3513_v43 = vpop.f32.mrb[103].mxu1  ;;  %3775 = vmatmul.mubr.f32.gmra.mrb[208].mxu1 %v1183_v35  ;;  %v1198_v34 = vld [vmem:[%s4892_s26 + $0x1ef8] sm:$0xff] }
 0x433   : > { %2499 = vmatprep.mubr.f32.mxu0 %v674_v36  ;;  %3779 = vmatprep.mubr.f32.mxu1 %v1186_v33  ;;  %v1197_v42 = vld [vmem:[%s4892_s26 + $0x1ef0] sm:$0xff]  ;;  %v688_v43 = vld [vmem:[%s4892_s26 + $0xf08] sm:$0xff] }
 0x434   : > { %4075 = vst.msk [vmem:[%s5255_s22 + $0x598] sm:$0xff] %vm3895_vm0, %v2232_v40  ;;  %4331 = vst.msk [vmem:[%s5255_s22 + $0xd98] sm:$0xff] %vm3895_vm0, %v3512_v41  ;;  %v685_v41 = vld [vmem:[%s4892_s26 + $0xef0] sm:$0xff] }
 0x435   : > { %v2236_v48 = vpop.f32.mrb[104].mxu0  ;;  %v3516_v49 = vpop.f32.mrb[104].mxu1 }
 0x436   : > { %v2237_v50 = vadd.f32 %v6865_v38, %v2236_v48  ;;  %v3517_v51 = vadd.f32 %v6865_v38, %v3516_v49  ;;  %v2238_v52 = vpop.f32.mrb[105].mxu0  ;;  %2500 = vmatmul.mubr.f32.gmra.mrb[210].mxu0 %v673_v44  ;;  %v3518_v53 = vpop.f32.mrb[105].mxu1  ;;  %3780 = vmatmul.mubr.f32.gmra.mrb[210].mxu1 %v1185_v45  ;;  %v1200_v44 = vld [vmem:[%s4892_s26 + $0x1f08] sm:$0xff] }
 0x437   : > { %2504 = vmatprep.mubr.f32.mxu0 %v676_v46  ;;  %3784 = vmatprep.mubr.f32.mxu1 %v1188_v47  ;;  %v1199_v52 = vld [vmem:[%s4892_s26 + $0x1f00] sm:$0xff]  ;;  %v690_v53 = vld [vmem:[%s4892_s26 + $0xf18] sm:$0xff] }
 0x438   : > { %4076 = vst.msk [vmem:[%s5255_s22 + $0x5a0] sm:$0xff] %vm3895_vm0, %v2237_v50  ;;  %4332 = vst.msk [vmem:[%s5255_s22 + $0xda0] sm:$0xff] %vm3895_vm0, %v3517_v51  ;;  %v687_v51 = vld [vmem:[%s4892_s26 + $0xf00] sm:$0xff] }
 0x439   : > { %v2241_v58 = vpop.f32.mrb[106].mxu0  ;;  %v3521_v59 = vpop.f32.mrb[106].mxu1 }
 0x43a   : > { %v2242_v60 = vadd.f32 %v6865_v38, %v2241_v58  ;;  %v3522_v61 = vadd.f32 %v6865_v38, %v3521_v59  ;;  %v2243_v62 = vpop.f32.mrb[107].mxu0  ;;  %2505 = vmatmul.mubr.f32.gmra.mrb[212].mxu0 %v675_v54  ;;  %v3523_v63 = vpop.f32.mrb[107].mxu1  ;;  %3785 = vmatmul.mubr.f32.gmra.mrb[212].mxu1 %v1187_v55  ;;  %v1202_v54 = vld [vmem:[%s4892_s26 + $0x1f18] sm:$0xff] }
 0x43b   : > { %2509 = vmatprep.mubr.f32.mxu0 %v678_v56  ;;  %3789 = vmatprep.mubr.f32.mxu1 %v1190_v57  ;;  %v1201_v62 = vld [vmem:[%s4892_s26 + $0x1f10] sm:$0xff]  ;;  %v692_v63 = vld [vmem:[%s4892_s26 + $0xf28] sm:$0xff] }
 0x43c   : > { %4077 = vst.msk [vmem:[%s5255_s22 + $0x5a8] sm:$0xff] %vm3895_vm0, %v2242_v60  ;;  %4333 = vst.msk [vmem:[%s5255_s22 + $0xda8] sm:$0xff] %vm3895_vm0, %v3522_v61  ;;  %v689_v61 = vld [vmem:[%s4892_s26 + $0xf10] sm:$0xff] }
 0x43d   : > { %v2246_v4 = vpop.f32.mrb[108].mxu0  ;;  %v3526_v5 = vpop.f32.mrb[108].mxu1 }
 0x43e   : > { %v2247_v6 = vadd.f32 %v6865_v38, %v2246_v4  ;;  %v3527_v8 = vadd.f32 %v6865_v38, %v3526_v5  ;;  %v2248_v9 = vpop.f32.mrb[109].mxu0  ;;  %2510 = vmatmul.mubr.f32.gmra.mrb[214].mxu0 %v677_v0  ;;  %v3528_v10 = vpop.f32.mrb[109].mxu1  ;;  %3790 = vmatmul.mubr.f32.gmra.mrb[214].mxu1 %v1189_v1  ;;  %v1204_v0 = vld [vmem:[%s4892_s26 + $0x1f28] sm:$0xff] }
 0x43f   : > { %2514 = vmatprep.mubr.f32.mxu0 %v680_v2  ;;  %3794 = vmatprep.mubr.f32.mxu1 %v1192_v3  ;;  %v1203_v9 = vld [vmem:[%s4892_s26 + $0x1f20] sm:$0xff]  ;;  %v694_v10 = vld [vmem:[%s4892_s26 + $0xf38] sm:$0xff] }
 0x440   : > { %4078 = vst.msk [vmem:[%s5255_s22 + $0x5b0] sm:$0xff] %vm3895_vm0, %v2247_v6  ;;  %4334 = vst.msk [vmem:[%s5255_s22 + $0xdb0] sm:$0xff] %vm3895_vm0, %v3527_v8  ;;  %v691_v8 = vld [vmem:[%s4892_s26 + $0xf20] sm:$0xff] }
 0x441   : > { %v2251_v15 = vpop.f32.mrb[110].mxu0  ;;  %v3531_v16 = vpop.f32.mrb[110].mxu1 }
 0x442   : > { %v2252_v7 = vadd.f32 %v6865_v38, %v2251_v15  ;;  %v3532_v17 = vadd.f32 %v6865_v38, %v3531_v16  ;;  %v2253_v19 = vpop.f32.mrb[111].mxu0  ;;  %2515 = vmatmul.mubr.f32.gmra.mrb[216].mxu0 %v679_v11  ;;  %v3533_v20 = vpop.f32.mrb[111].mxu1  ;;  %3795 = vmatmul.mubr.f32.gmra.mrb[216].mxu1 %v1191_v12  ;;  %v1206_v11 = vld [vmem:[%s4892_s26 + $0x1f38] sm:$0xff] }
 0x443   : > { %2519 = vmatprep.mubr.f32.mxu0 %v682_v13  ;;  %3799 = vmatprep.mubr.f32.mxu1 %v1194_v14  ;;  %v1205_v19 = vld [vmem:[%s4892_s26 + $0x1f30] sm:$0xff]  ;;  %v696_v20 = vld [vmem:[%s4892_s26 + $0xf48] sm:$0xff] }
 0x444   : > { %4079 = vst.msk [vmem:[%s5255_s22 + $0x5b8] sm:$0xff] %vm3895_vm0, %v2252_v7  ;;  %4335 = vst.msk [vmem:[%s5255_s22 + $0xdb8] sm:$0xff] %vm3895_vm0, %v3532_v17  ;;  %v693_v17 = vld [vmem:[%s4892_s26 + $0xf30] sm:$0xff] }
 0x445   : > { %v2256_v25 = vpop.f32.mrb[112].mxu0  ;;  %v3536_v26 = vpop.f32.mrb[112].mxu1 }
 0x446   : > { %v2257_v23 = vadd.f32 %v6865_v38, %v2256_v25  ;;  %v3537_v27 = vadd.f32 %v6865_v38, %v3536_v26  ;;  %v2258_v29 = vpop.f32.mrb[113].mxu0  ;;  %2520 = vmatmul.mubr.f32.gmra.mrb[218].mxu0 %v681_v21  ;;  %v3538_v30 = vpop.f32.mrb[113].mxu1  ;;  %3800 = vmatmul.mubr.f32.gmra.mrb[218].mxu1 %v1193_v18  ;;  %v1208_v21 = vld [vmem:[%s4892_s26 + $0x1f48] sm:$0xff] }
 0x447   : > { %2524 = vmatprep.mubr.f32.mxu0 %v684_v22  ;;  %3804 = vmatprep.mubr.f32.mxu1 %v1196_v24  ;;  %v1207_v29 = vld [vmem:[%s4892_s26 + $0x1f40] sm:$0xff]  ;;  %v698_v30 = vld [vmem:[%s4892_s26 + $0xf58] sm:$0xff] }
 0x448   : > { %4080 = vst.msk [vmem:[%s5255_s22 + $0x5c0] sm:$0xff] %vm3895_vm0, %v2257_v23  ;;  %4336 = vst.msk [vmem:[%s5255_s22 + $0xdc0] sm:$0xff] %vm3895_vm0, %v3537_v27  ;;  %v695_v27 = vld [vmem:[%s4892_s26 + $0xf40] sm:$0xff] }
 0x449   : > { %v2261_v35 = vpop.f32.mrb[114].mxu0  ;;  %v3541_v36 = vpop.f32.mrb[114].mxu1 }
 0x44a   : > { %v2262_v33 = vadd.f32 %v6865_v38, %v2261_v35  ;;  %v3542_v37 = vadd.f32 %v6865_v38, %v3541_v36  ;;  %v2263_v39 = vpop.f32.mrb[115].mxu0  ;;  %2525 = vmatmul.mubr.f32.gmra.mrb[220].mxu0 %v683_v31  ;;  %v3543_v40 = vpop.f32.mrb[115].mxu1  ;;  %3805 = vmatmul.mubr.f32.gmra.mrb[220].mxu1 %v1195_v28  ;;  %v1210_v31 = vld [vmem:[%s4892_s26 + $0x1f58] sm:$0xff] }
 0x44b   : > { %2529 = vmatprep.mubr.f32.mxu0 %v686_v32  ;;  %3809 = vmatprep.mubr.f32.mxu1 %v1198_v34  ;;  %v1209_v39 = vld [vmem:[%s4892_s26 + $0x1f50] sm:$0xff]  ;;  %v700_v40 = vld [vmem:[%s4892_s26 + $0xf68] sm:$0xff] }
 0x44c   : > { %4081 = vst.msk [vmem:[%s5255_s22 + $0x5c8] sm:$0xff] %vm3895_vm0, %v2262_v33  ;;  %4337 = vst.msk [vmem:[%s5255_s22 + $0xdc8] sm:$0xff] %vm3895_vm0, %v3542_v37  ;;  %v697_v37 = vld [vmem:[%s4892_s26 + $0xf50] sm:$0xff] }
 0x44d   : > { %v2266_v45 = vpop.f32.mrb[116].mxu0  ;;  %v3546_v46 = vpop.f32.mrb[116].mxu1 }
 0x44e   : > { %v2267_v47 = vadd.f32 %v6865_v38, %v2266_v45  ;;  %v3547_v48 = vadd.f32 %v6865_v38, %v3546_v46  ;;  %v2268_v49 = vpop.f32.mrb[117].mxu0  ;;  %2530 = vmatmul.mubr.f32.gmra.mrb[222].mxu0 %v685_v41  ;;  %v3548_v50 = vpop.f32.mrb[117].mxu1  ;;  %3810 = vmatmul.mubr.f32.gmra.mrb[222].mxu1 %v1197_v42  ;;  %v1212_v41 = vld [vmem:[%s4892_s26 + $0x1f68] sm:$0xff] }
 0x44f   : > { %2534 = vmatprep.mubr.f32.mxu0 %v688_v43  ;;  %3814 = vmatprep.mubr.f32.mxu1 %v1200_v44  ;;  %v7187_v43 = vld [vmem:[#allocation4] ss:$0 sm:$0xff]  ;;  %v702_v50 = vld [vmem:[%s4892_s26 + $0xf78] sm:$0xff] }
 0x450   : > { %4082 = vst.msk [vmem:[%s5255_s22 + $0x5d0] sm:$0xff] %vm3895_vm0, %v2267_v47  ;;  %4338 = vst.msk [vmem:[%s5255_s22 + $0xdd0] sm:$0xff] %vm3895_vm0, %v3547_v48  ;;  %v699_v48 = vld [vmem:[%s4892_s26 + $0xf60] sm:$0xff] }
 0x451   : > { %v2271_v55 = vpop.f32.mrb[118].mxu0  ;;  %v3551_v56 = vpop.f32.mrb[118].mxu1  ;;  %v1211_v49 = vld [vmem:[%s4892_s26 + $0x1f60] sm:$0xff] }
 0x452   : > { %v2272_v57 = vadd.f32 %v6865_v38, %v2271_v55  ;;  %v3552_v58 = vadd.f32 %v6865_v38, %v3551_v56  ;;  %v2273_v59 = vpop.f32.mrb[119].mxu0  ;;  %2535 = vmatmul.mubr.f32.gmra.mrb[224].mxu0 %v687_v51  ;;  %v3553_v60 = vpop.f32.mrb[119].mxu1  ;;  %3815 = vmatmul.mubr.f32.gmra.mrb[224].mxu1 %v1199_v52  ;;  %v1214_v51 = vld [vmem:[%s4892_s26 + $0x1f78] sm:$0xff] }
 0x453   : > { %2539 = vmatprep.mubr.f32.mxu0 %v690_v53  ;;  %3819 = vmatprep.mubr.f32.mxu1 %v1202_v54  ;;  %v1213_v59 = vld [vmem:[%s4892_s26 + $0x1f70] sm:$0xff]  ;;  %v704_v60 = vld [vmem:[%s4892_s26 + $0xf88] sm:$0xff] }
 0x454   : > { %4083 = vst.msk [vmem:[%s5255_s22 + $0x5d8] sm:$0xff] %vm3895_vm0, %v2272_v57  ;;  %4339 = vst.msk [vmem:[%s5255_s22 + $0xdd8] sm:$0xff] %vm3895_vm0, %v3552_v58  ;;  %v701_v58 = vld [vmem:[%s4892_s26 + $0xf70] sm:$0xff] }
 0x455   : > { %v2276_v1 = vpop.f32.mrb[120].mxu0  ;;  %v3556_v2 = vpop.f32.mrb[120].mxu1 }
 0x456   : > { %v2277_v3 = vadd.f32 %v6865_v38, %v2276_v1  ;;  %v3557_v4 = vadd.f32 %v6865_v38, %v3556_v2  ;;  %v2278_v5 = vpop.f32.mrb[121].mxu0  ;;  %2540 = vmatmul.mubr.f32.gmra.mrb[226].mxu0 %v689_v61  ;;  %v3558_v6 = vpop.f32.mrb[121].mxu1  ;;  %3820 = vmatmul.mubr.f32.gmra.mrb[226].mxu1 %v1201_v62  ;;  %v1216_v61 = vld [vmem:[%s4892_s26 + $0x1f88] sm:$0xff] }
 0x457   : > { %2544 = vmatprep.mubr.f32.mxu0 %v692_v63  ;;  %3824 = vmatprep.mubr.f32.mxu1 %v1204_v0  ;;  %v1215_v5 = vld [vmem:[%s4892_s26 + $0x1f80] sm:$0xff]  ;;  %v706_v6 = vld [vmem:[%s4892_s26 + $0xf98] sm:$0xff] }
 0x458   : > { %4084 = vst.msk [vmem:[%s5255_s22 + $0x5e0] sm:$0xff] %vm3895_vm0, %v2277_v3  ;;  %4340 = vst.msk [vmem:[%s5255_s22 + $0xde0] sm:$0xff] %vm3895_vm0, %v3557_v4  ;;  %v703_v4 = vld [vmem:[%s4892_s26 + $0xf80] sm:$0xff] }
 0x459   : > { %v2281_v12 = vpop.f32.mrb[122].mxu0  ;;  %v3561_v13 = vpop.f32.mrb[122].mxu1 }
 0x45a   : > { %v2282_v14 = vadd.f32 %v6865_v38, %v2281_v12  ;;  %v3562_v15 = vadd.f32 %v6865_v38, %v3561_v13  ;;  %v2283_v16 = vpop.f32.mrb[123].mxu0  ;;  %2545 = vmatmul.mubr.f32.gmra.mrb[228].mxu0 %v691_v8  ;;  %v3563_v7 = vpop.f32.mrb[123].mxu1  ;;  %3825 = vmatmul.mubr.f32.gmra.mrb[228].mxu1 %v1203_v9  ;;  %v1218_v8 = vld [vmem:[%s4892_s26 + $0x1f98] sm:$0xff] }
 0x45b   : > { %2549 = vmatprep.mubr.f32.mxu0 %v694_v10  ;;  %3829 = vmatprep.mubr.f32.mxu1 %v1206_v11  ;;  %v1217_v16 = vld [vmem:[%s4892_s26 + $0x1f90] sm:$0xff]  ;;  %v708_v7 = vld [vmem:[%s4892_s26 + $0xfa8] sm:$0xff] }
 0x45c   : > { %4085 = vst.msk [vmem:[%s5255_s22 + $0x5e8] sm:$0xff] %vm3895_vm0, %v2282_v14  ;;  %4341 = vst.msk [vmem:[%s5255_s22 + $0xde8] sm:$0xff] %vm3895_vm0, %v3562_v15  ;;  %v705_v15 = vld [vmem:[%s4892_s26 + $0xf90] sm:$0xff] }
 0x45d   : > { %v2286_v18 = vpop.f32.mrb[124].mxu0  ;;  %v3566_v22 = vpop.f32.mrb[124].mxu1 }
 0x45e   : > { %v2287_v24 = vadd.f32 %v6865_v38, %v2286_v18  ;;  %v3567_v25 = vadd.f32 %v6865_v38, %v3566_v22  ;;  %v2288_v26 = vpop.f32.mrb[125].mxu0  ;;  %2550 = vmatmul.mubr.f32.gmra.mrb[230].mxu0 %v693_v17  ;;  %v3568_v23 = vpop.f32.mrb[125].mxu1  ;;  %3830 = vmatmul.mubr.f32.gmra.mrb[230].mxu1 %v1205_v19  ;;  %v1220_v17 = vld [vmem:[%s4892_s26 + $0x1fa8] sm:$0xff] }
 0x45f   : > { %2554 = vmatprep.mubr.f32.mxu0 %v696_v20  ;;  %3834 = vmatprep.mubr.f32.mxu1 %v1208_v21  ;;  %v1219_v26 = vld [vmem:[%s4892_s26 + $0x1fa0] sm:$0xff]  ;;  %v710_v23 = vld [vmem:[%s4892_s26 + $0xfb8] sm:$0xff] }
 0x460   : > { %4086 = vst.msk [vmem:[%s5255_s22 + $0x5f0] sm:$0xff] %vm3895_vm0, %v2287_v24  ;;  %4342 = vst.msk [vmem:[%s5255_s22 + $0xdf0] sm:$0xff] %vm3895_vm0, %v3567_v25  ;;  %v707_v25 = vld [vmem:[%s4892_s26 + $0xfa0] sm:$0xff] }
 0x461   : > { %v2291_v28 = vpop.f32.mrb[126].mxu0  ;;  %v3571_v32 = vpop.f32.mrb[126].mxu1 }
 0x462   : > { %v2292_v34 = vadd.f32 %v6865_v38, %v2291_v28  ;;  %v3572_v35 = vadd.f32 %v6865_v38, %v3571_v32  ;;  %v2293_v36 = vpop.f32.mrb[127].mxu0  ;;  %2555 = vmatmul.mubr.f32.gmra.mrb[232].mxu0 %v695_v27  ;;  %v3573_v33 = vpop.f32.mrb[127].mxu1  ;;  %3835 = vmatmul.mubr.f32.gmra.mrb[232].mxu1 %v1207_v29  ;;  %v1222_v27 = vld [vmem:[%s4892_s26 + $0x1fb8] sm:$0xff] }
 0x463   : > { %2559 = vmatprep.mubr.f32.mxu0 %v698_v30  ;;  %3839 = vmatprep.mubr.f32.mxu1 %v1210_v31  ;;  %v1221_v36 = vld [vmem:[%s4892_s26 + $0x1fb0] sm:$0xff]  ;;  %v712_v33 = vld [vmem:[%s4892_s26 + $0xfc8] sm:$0xff] }
 0x464   : > { %4087 = vst.msk [vmem:[%s5255_s22 + $0x5f8] sm:$0xff] %vm3895_vm0, %v2292_v34  ;;  %4343 = vst.msk [vmem:[%s5255_s22 + $0xdf8] sm:$0xff] %vm3895_vm0, %v3572_v35  ;;  %v709_v35 = vld [vmem:[%s4892_s26 + $0xfb0] sm:$0xff] }
 0x465   : > { %v2296_v38 = vpop.f32.mrb[128].mxu0  ;;  %v3576_v42 = vpop.f32.mrb[128].mxu1 }
 0x466   : > { %v2297_v44 = vadd.f32 %v7187_v43, %v2296_v38  ;;  %v3577_v45 = vadd.f32 %v7187_v43, %v3576_v42  ;;  %v2298_v46 = vpop.f32.mrb[129].mxu0  ;;  %2560 = vmatmul.mubr.f32.gmra.mrb[234].mxu0 %v697_v37  ;;  %v3578_v47 = vpop.f32.mrb[129].mxu1  ;;  %3840 = vmatmul.mubr.f32.gmra.mrb[234].mxu1 %v1209_v39  ;;  %v1224_v37 = vld [vmem:[%s4892_s26 + $0x1fc8] sm:$0xff] }
 0x467   : > { %2564 = vmatprep.mubr.f32.mxu0 %v700_v40  ;;  %3844 = vmatprep.mubr.f32.mxu1 %v1212_v41  ;;  %v1223_v46 = vld [vmem:[%s4892_s26 + $0x1fc0] sm:$0xff]  ;;  %v714_v47 = vld [vmem:[%s4892_s26 + $0xfd8] sm:$0xff] }
 0x468   : > { %4088 = vst.msk [vmem:[%s5255_s22 + $0x600] sm:$0xff] %vm3895_vm0, %v2297_v44  ;;  %4344 = vst.msk [vmem:[%s5255_s22 + $0xe00] sm:$0xff] %vm3895_vm0, %v3577_v45  ;;  %v711_v45 = vld [vmem:[%s4892_s26 + $0xfc0] sm:$0xff] }
 0x469   : > { %v2301_v52 = vpop.f32.mrb[130].mxu0  ;;  %v3581_v53 = vpop.f32.mrb[130].mxu1 }
 0x46a   : > { %v2302_v54 = vadd.f32 %v7187_v43, %v2301_v52  ;;  %v3582_v55 = vadd.f32 %v7187_v43, %v3581_v53  ;;  %v2303_v56 = vpop.f32.mrb[131].mxu0  ;;  %2565 = vmatmul.mubr.f32.gmra.mrb[236].mxu0 %v699_v48  ;;  %v3583_v57 = vpop.f32.mrb[131].mxu1  ;;  %3845 = vmatmul.mubr.f32.gmra.mrb[236].mxu1 %v1211_v49  ;;  %v1226_v48 = vld [vmem:[%s4892_s26 + $0x1fd8] sm:$0xff] }
 0x46b   : > { %2569 = vmatprep.mubr.f32.mxu0 %v702_v50  ;;  %3849 = vmatprep.mubr.f32.mxu1 %v1214_v51  ;;  %v1225_v56 = vld [vmem:[%s4892_s26 + $0x1fd0] sm:$0xff]  ;;  %v716_v57 = vld [vmem:[%s4892_s26 + $0xfe8] sm:$0xff] }
 0x46c   : > { %4089 = vst.msk [vmem:[%s5255_s22 + $0x608] sm:$0xff] %vm3895_vm0, %v2302_v54  ;;  %4345 = vst.msk [vmem:[%s5255_s22 + $0xe08] sm:$0xff] %vm3895_vm0, %v3582_v55  ;;  %v713_v55 = vld [vmem:[%s4892_s26 + $0xfd0] sm:$0xff] }
 0x46d   : > { %v2306_v62 = vpop.f32.mrb[132].mxu0  ;;  %v3586_v63 = vpop.f32.mrb[132].mxu1 }
 0x46e   : > { %v2307_v0 = vadd.f32 %v7187_v43, %v2306_v62  ;;  %v3587_v1 = vadd.f32 %v7187_v43, %v3586_v63  ;;  %v2308_v2 = vpop.f32.mrb[133].mxu0  ;;  %2570 = vmatmul.mubr.f32.gmra.mrb[238].mxu0 %v701_v58  ;;  %v3588_v3 = vpop.f32.mrb[133].mxu1  ;;  %3850 = vmatmul.mubr.f32.gmra.mrb[238].mxu1 %v1213_v59  ;;  %v1228_v58 = vld [vmem:[%s4892_s26 + $0x1fe8] sm:$0xff] }
 0x46f   : > { %2574 = vmatprep.mubr.f32.mxu0 %v704_v60  ;;  %3854 = vmatprep.mubr.f32.mxu1 %v1216_v61  ;;  %v1227_v2 = vld [vmem:[%s4892_s26 + $0x1fe0] sm:$0xff]  ;;  %v718_v3 = vld [vmem:[%s4892_s26 + $0xff8] sm:$0xff] }
 0x470   : > { %4090 = vst.msk [vmem:[%s5255_s22 + $0x610] sm:$0xff] %vm3895_vm0, %v2307_v0  ;;  %4346 = vst.msk [vmem:[%s5255_s22 + $0xe10] sm:$0xff] %vm3895_vm0, %v3587_v1  ;;  %v715_v1 = vld [vmem:[%s4892_s26 + $0xfe0] sm:$0xff] }
 0x471   : > { %v2311_v9 = vpop.f32.mrb[134].mxu0  ;;  %v3591_v10 = vpop.f32.mrb[134].mxu1 }
 0x472   : > { %v2312_v11 = vadd.f32 %v7187_v43, %v2311_v9  ;;  %v3592_v12 = vadd.f32 %v7187_v43, %v3591_v10  ;;  %v2313_v13 = vpop.f32.mrb[135].mxu0  ;;  %2575 = vmatmul.mubr.f32.gmra.mrb[240].mxu0 %v703_v4  ;;  %v3593_v14 = vpop.f32.mrb[135].mxu1  ;;  %3855 = vmatmul.mubr.f32.gmra.mrb[240].mxu1 %v1215_v5  ;;  %v1230_v4 = vld [vmem:[%s4892_s26 + $0x1ff8] sm:$0xff] }
 0x473   : > { %2579 = vmatprep.mubr.f32.mxu0 %v706_v6  ;;  %3859 = vmatprep.mubr.f32.mxu1 %v1218_v8  ;;  %v1229_v13 = vld [vmem:[%s4892_s26 + $0x1ff0] sm:$0xff] }
 0x474   : > { %4091 = vst.msk [vmem:[%s5255_s22 + $0x618] sm:$0xff] %vm3895_vm0, %v2312_v11  ;;  %4347 = vst.msk [vmem:[%s5255_s22 + $0xe18] sm:$0xff] %vm3895_vm0, %v3592_v12  ;;  %v717_v12 = vld [vmem:[%s4892_s26 + $0xff0] sm:$0xff] }
 0x475   : > { %v2316_v19 = vpop.f32.mrb[136].mxu0  ;;  %v3596_v20 = vpop.f32.mrb[136].mxu1 }
 0x476   : > { %v2317_v21 = vadd.f32 %v7187_v43, %v2316_v19  ;;  %v3597_v18 = vadd.f32 %v7187_v43, %v3596_v20  ;;  %v2318_v22 = vpop.f32.mrb[137].mxu0  ;;  %2580 = vmatmul.mubr.f32.gmra.mrb[242].mxu0 %v705_v15  ;;  %v3598_v24 = vpop.f32.mrb[137].mxu1  ;;  %3860 = vmatmul.mubr.f32.gmra.mrb[242].mxu1 %v1217_v16 }
 0x477   : > { %2584 = vmatprep.mubr.f32.mxu0 %v708_v7  ;;  %3864 = vmatprep.mubr.f32.mxu1 %v1220_v17 }
 0x478   : > { %4092 = vst.msk [vmem:[%s5255_s22 + $0x620] sm:$0xff] %vm3895_vm0, %v2317_v21  ;;  %4348 = vst.msk [vmem:[%s5255_s22 + $0xe20] sm:$0xff] %vm3895_vm0, %v3597_v18 }
 0x479   : > { %v2321_v29 = vpop.f32.mrb[138].mxu0  ;;  %v3601_v30 = vpop.f32.mrb[138].mxu1 }
 0x47a   : > { %v2322_v31 = vadd.f32 %v7187_v43, %v2321_v29  ;;  %v3602_v28 = vadd.f32 %v7187_v43, %v3601_v30  ;;  %v2323_v32 = vpop.f32.mrb[139].mxu0  ;;  %2585 = vmatmul.mubr.f32.gmra.mrb[244].mxu0 %v707_v25  ;;  %v3603_v34 = vpop.f32.mrb[139].mxu1  ;;  %3865 = vmatmul.mubr.f32.gmra.mrb[244].mxu1 %v1219_v26 }
 0x47b   : > { %2589 = vmatprep.mubr.f32.mxu0 %v710_v23  ;;  %3869 = vmatprep.mubr.f32.mxu1 %v1222_v27 }
 0x47c   : > { %4093 = vst.msk [vmem:[%s5255_s22 + $0x628] sm:$0xff] %vm3895_vm0, %v2322_v31  ;;  %4349 = vst.msk [vmem:[%s5255_s22 + $0xe28] sm:$0xff] %vm3895_vm0, %v3602_v28 }
 0x47d   : > { %v2326_v39 = vpop.f32.mrb[140].mxu0  ;;  %v3606_v40 = vpop.f32.mrb[140].mxu1 }
 0x47e   : > { %v2327_v41 = vadd.f32 %v7187_v43, %v2326_v39  ;;  %v3607_v38 = vadd.f32 %v7187_v43, %v3606_v40  ;;  %v2328_v42 = vpop.f32.mrb[141].mxu0  ;;  %2590 = vmatmul.mubr.f32.gmra.mrb[246].mxu0 %v709_v35  ;;  %v3608_v44 = vpop.f32.mrb[141].mxu1  ;;  %3870 = vmatmul.mubr.f32.gmra.mrb[246].mxu1 %v1221_v36 }
 0x47f   : > { %2594 = vmatprep.mubr.f32.mxu0 %v712_v33  ;;  %3874 = vmatprep.mubr.f32.mxu1 %v1224_v37 }
 0x480   : > { %4094 = vst.msk [vmem:[%s5255_s22 + $0x630] sm:$0xff] %vm3895_vm0, %v2327_v41  ;;  %4350 = vst.msk [vmem:[%s5255_s22 + $0xe30] sm:$0xff] %vm3895_vm0, %v3607_v38 }
 0x481   : > { %v2331_v49 = vpop.f32.mrb[142].mxu0  ;;  %v3611_v50 = vpop.f32.mrb[142].mxu1 }
 0x482   : > { %v2332_v51 = vadd.f32 %v7187_v43, %v2331_v49  ;;  %v3612_v52 = vadd.f32 %v7187_v43, %v3611_v50  ;;  %v2333_v53 = vpop.f32.mrb[143].mxu0  ;;  %2595 = vmatmul.mubr.f32.gmra.mrb[248].mxu0 %v711_v45  ;;  %v3613_v54 = vpop.f32.mrb[143].mxu1  ;;  %3875 = vmatmul.mubr.f32.gmra.mrb[248].mxu1 %v1223_v46 }
 0x483   : > { %2599 = vmatprep.mubr.f32.mxu0 %v714_v47  ;;  %3879 = vmatprep.mubr.f32.mxu1 %v1226_v48 }
 0x484   : > { %4095 = vst.msk [vmem:[%s5255_s22 + $0x638] sm:$0xff] %vm3895_vm0, %v2332_v51  ;;  %4351 = vst.msk [vmem:[%s5255_s22 + $0xe38] sm:$0xff] %vm3895_vm0, %v3612_v52 }
 0x485   : > { %v2336_v59 = vpop.f32.mrb[144].mxu0  ;;  %v3616_v60 = vpop.f32.mrb[144].mxu1 }
 0x486   : > { %v2337_v61 = vadd.f32 %v7187_v43, %v2336_v59  ;;  %v3617_v62 = vadd.f32 %v7187_v43, %v3616_v60  ;;  %v2338_v63 = vpop.f32.mrb[145].mxu0  ;;  %2600 = vmatmul.mubr.f32.gmra.mrb[250].mxu0 %v713_v55  ;;  %v3618_v0 = vpop.f32.mrb[145].mxu1  ;;  %3880 = vmatmul.mubr.f32.gmra.mrb[250].mxu1 %v1225_v56 }
 0x487   : > { %2604 = vmatprep.mubr.f32.mxu0 %v716_v57  ;;  %3884 = vmatprep.mubr.f32.mxu1 %v1228_v58 }
 0x488   : > { %4096 = vst.msk [vmem:[%s5255_s22 + $0x640] sm:$0xff] %vm3895_vm0, %v2337_v61  ;;  %4352 = vst.msk [vmem:[%s5255_s22 + $0xe40] sm:$0xff] %vm3895_vm0, %v3617_v62 }
 0x489   : > { %v2341_v5 = vpop.f32.mrb[146].mxu0  ;;  %v3621_v6 = vpop.f32.mrb[146].mxu1 }
 0x48a   : > { %v2342_v8 = vadd.f32 %v7187_v43, %v2341_v5  ;;  %v3622_v9 = vadd.f32 %v7187_v43, %v3621_v6  ;;  %v2343_v10 = vpop.f32.mrb[147].mxu0  ;;  %2605 = vmatmul.mubr.f32.gmra.mrb[252].mxu0 %v715_v1  ;;  %v3623_v11 = vpop.f32.mrb[147].mxu1  ;;  %3885 = vmatmul.mubr.f32.gmra.mrb[252].mxu1 %v1227_v2 }
 0x48b   : > { %2609 = vmatprep.mubr.f32.mxu0 %v718_v3  ;;  %3889 = vmatprep.mubr.f32.mxu1 %v1230_v4 }
 0x48c   : > { %4097 = vst.msk [vmem:[%s5255_s22 + $0x648] sm:$0xff] %vm3895_vm0, %v2342_v8  ;;  %4353 = vst.msk [vmem:[%s5255_s22 + $0xe48] sm:$0xff] %vm3895_vm0, %v3622_v9 }
 0x48d   : > { %v2346_v14 = vpop.f32.mrb[148].mxu0  ;;  %v3626_v15 = vpop.f32.mrb[148].mxu1 }
 0x48e   : > { %v2347_v16 = vadd.f32 %v7187_v43, %v2346_v14  ;;  %v3627_v7 = vadd.f32 %v7187_v43, %v3626_v15  ;;  %v2348_v17 = vpop.f32.mrb[149].mxu0  ;;  %2610 = vmatmul.mubr.f32.gmra.mrb[254].mxu0 %v717_v12  ;;  %v3628_v19 = vpop.f32.mrb[149].mxu1  ;;  %3890 = vmatmul.mubr.f32.gmra.mrb[254].mxu1 %v1229_v13 }
 0x490   : > { %4098 = vst.msk [vmem:[%s5255_s22 + $0x650] sm:$0xff] %vm3895_vm0, %v2347_v16  ;;  %4354 = vst.msk [vmem:[%s5255_s22 + $0xe50] sm:$0xff] %vm3895_vm0, %v3627_v7 }
 0x491   : > { %v2351_v20 = vpop.f32.mrb[150].mxu0  ;;  %v3631_v21 = vpop.f32.mrb[150].mxu1 }
 0x492   : > { %v2352_v18 = vadd.f32 %v7187_v43, %v2351_v20  ;;  %v3632_v22 = vadd.f32 %v7187_v43, %v3631_v21  ;;  %v2353_v24 = vpop.f32.mrb[151].mxu0  ;;  %v3633_v25 = vpop.f32.mrb[151].mxu1 }
 0x494   : > { %4099 = vst.msk [vmem:[%s5255_s22 + $0x658] sm:$0xff] %vm3895_vm0, %v2352_v18  ;;  %4355 = vst.msk [vmem:[%s5255_s22 + $0xe58] sm:$0xff] %vm3895_vm0, %v3632_v22 }
 0x495   : > { %v2356_v26 = vpop.f32.mrb[152].mxu0  ;;  %v3636_v23 = vpop.f32.mrb[152].mxu1 }
 0x496   : > { %v2357_v27 = vadd.f32 %v7187_v43, %v2356_v26  ;;  %v3637_v29 = vadd.f32 %v7187_v43, %v3636_v23  ;;  %v2358_v30 = vpop.f32.mrb[153].mxu0  ;;  %v3638_v31 = vpop.f32.mrb[153].mxu1 }
 0x498   : > { %4100 = vst.msk [vmem:[%s5255_s22 + $0x660] sm:$0xff] %vm3895_vm0, %v2357_v27  ;;  %4356 = vst.msk [vmem:[%s5255_s22 + $0xe60] sm:$0xff] %vm3895_vm0, %v3637_v29 }
 0x499   : > { %v2361_v28 = vpop.f32.mrb[154].mxu0  ;;  %v3641_v32 = vpop.f32.mrb[154].mxu1 }
 0x49a   : > { %v2362_v34 = vadd.f32 %v7187_v43, %v2361_v28  ;;  %v3642_v35 = vadd.f32 %v7187_v43, %v3641_v32  ;;  %v2363_v36 = vpop.f32.mrb[155].mxu0  ;;  %v3643_v33 = vpop.f32.mrb[155].mxu1 }
 0x49c   : > { %4101 = vst.msk [vmem:[%s5255_s22 + $0x668] sm:$0xff] %vm3895_vm0, %v2362_v34  ;;  %4357 = vst.msk [vmem:[%s5255_s22 + $0xe68] sm:$0xff] %vm3895_vm0, %v3642_v35 }
 0x49d   : > { %v2366_v37 = vpop.f32.mrb[156].mxu0  ;;  %v3646_v39 = vpop.f32.mrb[156].mxu1 }
 0x49e   : > { %v2367_v40 = vadd.f32 %v7187_v43, %v2366_v37  ;;  %v3647_v41 = vadd.f32 %v7187_v43, %v3646_v39  ;;  %v2368_v38 = vpop.f32.mrb[157].mxu0  ;;  %v3648_v42 = vpop.f32.mrb[157].mxu1 }
 0x4a0   : > { %4102 = vst.msk [vmem:[%s5255_s22 + $0x670] sm:$0xff] %vm3895_vm0, %v2367_v40  ;;  %4358 = vst.msk [vmem:[%s5255_s22 + $0xe70] sm:$0xff] %vm3895_vm0, %v3647_v41 }
 0x4a1   : > { %v2371_v44 = vpop.f32.mrb[158].mxu0  ;;  %v3651_v45 = vpop.f32.mrb[158].mxu1 }
 0x4a2   : > { %v2372_v46 = vadd.f32 %v7187_v43, %v2371_v44  ;;  %v3652_v47 = vadd.f32 %v7187_v43, %v3651_v45  ;;  %v2373_v48 = vpop.f32.mrb[159].mxu0  ;;  %v3653_v49 = vpop.f32.mrb[159].mxu1 }
 0x4a4   : > { %4103 = vst.msk [vmem:[%s5255_s22 + $0x678] sm:$0xff] %vm3895_vm0, %v2372_v46  ;;  %4359 = vst.msk [vmem:[%s5255_s22 + $0xe78] sm:$0xff] %vm3895_vm0, %v3652_v47 }
 0x4a5   : > { %v2376_v50 = vpop.f32.mrb[160].mxu0  ;;  %v3656_v51 = vpop.f32.mrb[160].mxu1 }
 0x4a6   : > { %v2377_v52 = vadd.f32 %v7187_v43, %v2376_v50  ;;  %v3657_v53 = vadd.f32 %v7187_v43, %v3656_v51  ;;  %v2378_v54 = vpop.f32.mrb[161].mxu0  ;;  %v3658_v55 = vpop.f32.mrb[161].mxu1 }
 0x4a8   : > { %4104 = vst.msk [vmem:[%s5255_s22 + $0x680] sm:$0xff] %vm3895_vm0, %v2377_v52  ;;  %4360 = vst.msk [vmem:[%s5255_s22 + $0xe80] sm:$0xff] %vm3895_vm0, %v3657_v53 }
 0x4a9   : > { %v2381_v56 = vpop.f32.mrb[162].mxu0  ;;  %v3661_v57 = vpop.f32.mrb[162].mxu1 }
 0x4aa   : > { %v2382_v58 = vadd.f32 %v7187_v43, %v2381_v56  ;;  %v3662_v59 = vadd.f32 %v7187_v43, %v3661_v57  ;;  %v2383_v60 = vpop.f32.mrb[163].mxu0  ;;  %v3663_v61 = vpop.f32.mrb[163].mxu1 }
 0x4ac   : > { %4105 = vst.msk [vmem:[%s5255_s22 + $0x688] sm:$0xff] %vm3895_vm0, %v2382_v58  ;;  %4361 = vst.msk [vmem:[%s5255_s22 + $0xe88] sm:$0xff] %vm3895_vm0, %v3662_v59 }
 0x4ad   : > { %v2386_v62 = vpop.f32.mrb[164].mxu0  ;;  %v3666_v63 = vpop.f32.mrb[164].mxu1 }
 0x4ae   : > { %v2387_v0 = vadd.f32 %v7187_v43, %v2386_v62  ;;  %v3667_v1 = vadd.f32 %v7187_v43, %v3666_v63  ;;  %v2388_v2 = vpop.f32.mrb[165].mxu0  ;;  %v3668_v3 = vpop.f32.mrb[165].mxu1 }
 0x4b0   : > { %4106 = vst.msk [vmem:[%s5255_s22 + $0x690] sm:$0xff] %vm3895_vm0, %v2387_v0  ;;  %4362 = vst.msk [vmem:[%s5255_s22 + $0xe90] sm:$0xff] %vm3895_vm0, %v3667_v1 }
 0x4b1   : > { %v2391_v4 = vpop.f32.mrb[166].mxu0  ;;  %v3671_v5 = vpop.f32.mrb[166].mxu1 }
 0x4b2   : > { %v2392_v6 = vadd.f32 %v7187_v43, %v2391_v4  ;;  %v3672_v8 = vadd.f32 %v7187_v43, %v3671_v5  ;;  %v2393_v9 = vpop.f32.mrb[167].mxu0  ;;  %v3673_v10 = vpop.f32.mrb[167].mxu1 }
 0x4b4   : > { %4107 = vst.msk [vmem:[%s5255_s22 + $0x698] sm:$0xff] %vm3895_vm0, %v2392_v6  ;;  %4363 = vst.msk [vmem:[%s5255_s22 + $0xe98] sm:$0xff] %vm3895_vm0, %v3672_v8 }
 0x4b5   : > { %v2396_v11 = vpop.f32.mrb[168].mxu0  ;;  %v3676_v12 = vpop.f32.mrb[168].mxu1 }
 0x4b6   : > { %v2397_v13 = vadd.f32 %v7187_v43, %v2396_v11  ;;  %v3677_v14 = vadd.f32 %v7187_v43, %v3676_v12  ;;  %v2398_v15 = vpop.f32.mrb[169].mxu0  ;;  %v3678_v16 = vpop.f32.mrb[169].mxu1 }
 0x4b8   : > { %4108 = vst.msk [vmem:[%s5255_s22 + $0x6a0] sm:$0xff] %vm3895_vm0, %v2397_v13  ;;  %4364 = vst.msk [vmem:[%s5255_s22 + $0xea0] sm:$0xff] %vm3895_vm0, %v3677_v14 }
 0x4b9   : > { %v2401_v7 = vpop.f32.mrb[170].mxu0  ;;  %v3681_v17 = vpop.f32.mrb[170].mxu1 }
 0x4ba   : > { %v2402_v19 = vadd.f32 %v7187_v43, %v2401_v7  ;;  %v3682_v20 = vadd.f32 %v7187_v43, %v3681_v17  ;;  %v2403_v21 = vpop.f32.mrb[171].mxu0  ;;  %v3683_v18 = vpop.f32.mrb[171].mxu1 }
 0x4bc   : > { %4109 = vst.msk [vmem:[%s5255_s22 + $0x6a8] sm:$0xff] %vm3895_vm0, %v2402_v19  ;;  %4365 = vst.msk [vmem:[%s5255_s22 + $0xea8] sm:$0xff] %vm3895_vm0, %v3682_v20 }
 0x4bd   : > { %v2406_v22 = vpop.f32.mrb[172].mxu0  ;;  %v3686_v24 = vpop.f32.mrb[172].mxu1 }
 0x4be   : > { %v2407_v25 = vadd.f32 %v7187_v43, %v2406_v22  ;;  %v3687_v26 = vadd.f32 %v7187_v43, %v3686_v24  ;;  %v2408_v23 = vpop.f32.mrb[173].mxu0  ;;  %v3688_v27 = vpop.f32.mrb[173].mxu1 }
 0x4c0   : > { %4110 = vst.msk [vmem:[%s5255_s22 + $0x6b0] sm:$0xff] %vm3895_vm0, %v2407_v25  ;;  %4366 = vst.msk [vmem:[%s5255_s22 + $0xeb0] sm:$0xff] %vm3895_vm0, %v3687_v26 }
 0x4c1   : > { %v2411_v29 = vpop.f32.mrb[174].mxu0  ;;  %v3691_v30 = vpop.f32.mrb[174].mxu1 }
 0x4c2   : > { %v2412_v31 = vadd.f32 %v7187_v43, %v2411_v29  ;;  %v3692_v28 = vadd.f32 %v7187_v43, %v3691_v30  ;;  %v2413_v32 = vpop.f32.mrb[175].mxu0  ;;  %v3693_v34 = vpop.f32.mrb[175].mxu1 }
 0x4c4   : > { %4111 = vst.msk [vmem:[%s5255_s22 + $0x6b8] sm:$0xff] %vm3895_vm0, %v2412_v31  ;;  %4367 = vst.msk [vmem:[%s5255_s22 + $0xeb8] sm:$0xff] %vm3895_vm0, %v3692_v28 }
 0x4c5   : > { %v2416_v35 = vpop.f32.mrb[176].mxu0  ;;  %v3696_v36 = vpop.f32.mrb[176].mxu1 }
 0x4c6   : > { %v2417_v33 = vadd.f32 %v7187_v43, %v2416_v35  ;;  %v3697_v37 = vadd.f32 %v7187_v43, %v3696_v36  ;;  %v2418_v39 = vpop.f32.mrb[177].mxu0  ;;  %v3698_v40 = vpop.f32.mrb[177].mxu1 }
 0x4c8   : > { %4112 = vst.msk [vmem:[%s5255_s22 + $0x6c0] sm:$0xff] %vm3895_vm0, %v2417_v33  ;;  %4368 = vst.msk [vmem:[%s5255_s22 + $0xec0] sm:$0xff] %vm3895_vm0, %v3697_v37 }
 0x4c9   : > { %v2421_v41 = vpop.f32.mrb[178].mxu0  ;;  %v3701_v38 = vpop.f32.mrb[178].mxu1 }
 0x4ca   : > { %v2422_v42 = vadd.f32 %v7187_v43, %v2421_v41  ;;  %v3702_v44 = vadd.f32 %v7187_v43, %v3701_v38  ;;  %v2423_v45 = vpop.f32.mrb[179].mxu0  ;;  %v3703_v46 = vpop.f32.mrb[179].mxu1 }
 0x4cc   : > { %4113 = vst.msk [vmem:[%s5255_s22 + $0x6c8] sm:$0xff] %vm3895_vm0, %v2422_v42  ;;  %4369 = vst.msk [vmem:[%s5255_s22 + $0xec8] sm:$0xff] %vm3895_vm0, %v3702_v44 }
 0x4cd   : > { %v2426_v47 = vpop.f32.mrb[180].mxu0  ;;  %v3706_v48 = vpop.f32.mrb[180].mxu1 }
 0x4ce   : > { %v2427_v49 = vadd.f32 %v7187_v43, %v2426_v47  ;;  %v3707_v50 = vadd.f32 %v7187_v43, %v3706_v48  ;;  %v2428_v51 = vpop.f32.mrb[181].mxu0  ;;  %v3708_v52 = vpop.f32.mrb[181].mxu1 }
 0x4d0   : > { %4114 = vst.msk [vmem:[%s5255_s22 + $0x6d0] sm:$0xff] %vm3895_vm0, %v2427_v49  ;;  %4370 = vst.msk [vmem:[%s5255_s22 + $0xed0] sm:$0xff] %vm3895_vm0, %v3707_v50 }
 0x4d1   : > { %v2431_v53 = vpop.f32.mrb[182].mxu0  ;;  %v3711_v54 = vpop.f32.mrb[182].mxu1 }
 0x4d2   : > { %v2432_v55 = vadd.f32 %v7187_v43, %v2431_v53  ;;  %v3712_v56 = vadd.f32 %v7187_v43, %v3711_v54  ;;  %v2433_v57 = vpop.f32.mrb[183].mxu0  ;;  %v3713_v58 = vpop.f32.mrb[183].mxu1 }
 0x4d4   : > { %4115 = vst.msk [vmem:[%s5255_s22 + $0x6d8] sm:$0xff] %vm3895_vm0, %v2432_v55  ;;  %4371 = vst.msk [vmem:[%s5255_s22 + $0xed8] sm:$0xff] %vm3895_vm0, %v3712_v56 }
 0x4d5   : > { %v2436_v59 = vpop.f32.mrb[184].mxu0  ;;  %v3716_v60 = vpop.f32.mrb[184].mxu1 }
 0x4d6   : > { %v2437_v61 = vadd.f32 %v7187_v43, %v2436_v59  ;;  %v3717_v62 = vadd.f32 %v7187_v43, %v3716_v60  ;;  %v2438_v63 = vpop.f32.mrb[185].mxu0  ;;  %v3718_v0 = vpop.f32.mrb[185].mxu1 }
 0x4d8   : > { %4116 = vst.msk [vmem:[%s5255_s22 + $0x6e0] sm:$0xff] %vm3895_vm0, %v2437_v61  ;;  %4372 = vst.msk [vmem:[%s5255_s22 + $0xee0] sm:$0xff] %vm3895_vm0, %v3717_v62 }
 0x4d9   : > { %v2441_v1 = vpop.f32.mrb[186].mxu0  ;;  %v3721_v2 = vpop.f32.mrb[186].mxu1 }
 0x4da   : > { %v2442_v3 = vadd.f32 %v7187_v43, %v2441_v1  ;;  %v3722_v4 = vadd.f32 %v7187_v43, %v3721_v2  ;;  %v2443_v5 = vpop.f32.mrb[187].mxu0  ;;  %v3723_v6 = vpop.f32.mrb[187].mxu1 }
 0x4dc   : > { %4117 = vst.msk [vmem:[%s5255_s22 + $0x6e8] sm:$0xff] %vm3895_vm0, %v2442_v3  ;;  %4373 = vst.msk [vmem:[%s5255_s22 + $0xee8] sm:$0xff] %vm3895_vm0, %v3722_v4 }
 0x4dd   : > { %v2446_v8 = vpop.f32.mrb[188].mxu0  ;;  %v3726_v9 = vpop.f32.mrb[188].mxu1 }
 0x4de   : > { %v2447_v10 = vadd.f32 %v7187_v43, %v2446_v8  ;;  %v3727_v11 = vadd.f32 %v7187_v43, %v3726_v9  ;;  %v2448_v12 = vpop.f32.mrb[189].mxu0  ;;  %v3728_v13 = vpop.f32.mrb[189].mxu1 }
 0x4e0   : > { %4118 = vst.msk [vmem:[%s5255_s22 + $0x6f0] sm:$0xff] %vm3895_vm0, %v2447_v10  ;;  %4374 = vst.msk [vmem:[%s5255_s22 + $0xef0] sm:$0xff] %vm3895_vm0, %v3727_v11 }
 0x4e1   : > { %v2451_v14 = vpop.f32.mrb[190].mxu0  ;;  %v3731_v15 = vpop.f32.mrb[190].mxu1 }
 0x4e2   : > { %v2452_v16 = vadd.f32 %v7187_v43, %v2451_v14  ;;  %v3732_v7 = vadd.f32 %v7187_v43, %v3731_v15  ;;  %v2453_v17 = vpop.f32.mrb[191].mxu0  ;;  %v3733_v19 = vpop.f32.mrb[191].mxu1 }
 0x4e4   : > { %4119 = vst.msk [vmem:[%s5255_s22 + $0x6f8] sm:$0xff] %vm3895_vm0, %v2452_v16  ;;  %4375 = vst.msk [vmem:[%s5255_s22 + $0xef8] sm:$0xff] %vm3895_vm0, %v3732_v7 }
 0x4e5   : > { %v2456_v20 = vpop.f32.mrb[192].mxu0  ;;  %v3736_v21 = vpop.f32.mrb[192].mxu1 }
 0x4e6   : > { %v2457_v18 = vadd.f32 %v7187_v43, %v2456_v20  ;;  %v3737_v22 = vadd.f32 %v7187_v43, %v3736_v21  ;;  %v2458_v24 = vpop.f32.mrb[193].mxu0  ;;  %v3738_v25 = vpop.f32.mrb[193].mxu1 }
 0x4e8   : > { %4120 = vst.msk [vmem:[%s5255_s22 + $0x700] sm:$0xff] %vm3895_vm0, %v2457_v18  ;;  %4376 = vst.msk [vmem:[%s5255_s22 + $0xf00] sm:$0xff] %vm3895_vm0, %v3737_v22 }
 0x4e9   : > { %v2461_v26 = vpop.f32.mrb[194].mxu0  ;;  %v3741_v23 = vpop.f32.mrb[194].mxu1 }
 0x4ea   : > { %v2462_v27 = vadd.f32 %v7187_v43, %v2461_v26  ;;  %v3742_v29 = vadd.f32 %v7187_v43, %v3741_v23  ;;  %v2463_v30 = vpop.f32.mrb[195].mxu0  ;;  %v3743_v31 = vpop.f32.mrb[195].mxu1 }
 0x4ec   : > { %4121 = vst.msk [vmem:[%s5255_s22 + $0x708] sm:$0xff] %vm3895_vm0, %v2462_v27  ;;  %4377 = vst.msk [vmem:[%s5255_s22 + $0xf08] sm:$0xff] %vm3895_vm0, %v3742_v29 }
 0x4ed   : > { %v2466_v28 = vpop.f32.mrb[196].mxu0  ;;  %v3746_v32 = vpop.f32.mrb[196].mxu1 }
 0x4ee   : > { %v2467_v34 = vadd.f32 %v7187_v43, %v2466_v28  ;;  %v3747_v35 = vadd.f32 %v7187_v43, %v3746_v32  ;;  %v2468_v36 = vpop.f32.mrb[197].mxu0  ;;  %v3748_v33 = vpop.f32.mrb[197].mxu1 }
 0x4f0   : > { %4122 = vst.msk [vmem:[%s5255_s22 + $0x710] sm:$0xff] %vm3895_vm0, %v2467_v34  ;;  %4378 = vst.msk [vmem:[%s5255_s22 + $0xf10] sm:$0xff] %vm3895_vm0, %v3747_v35 }
 0x4f1   : > { %v2471_v37 = vpop.f32.mrb[198].mxu0  ;;  %v3751_v39 = vpop.f32.mrb[198].mxu1 }
 0x4f2   : > { %v2472_v40 = vadd.f32 %v7187_v43, %v2471_v37  ;;  %v3752_v41 = vadd.f32 %v7187_v43, %v3751_v39  ;;  %v2473_v38 = vpop.f32.mrb[199].mxu0  ;;  %v3753_v42 = vpop.f32.mrb[199].mxu1 }
 0x4f4   : > { %4123 = vst.msk [vmem:[%s5255_s22 + $0x718] sm:$0xff] %vm3895_vm0, %v2472_v40  ;;  %4379 = vst.msk [vmem:[%s5255_s22 + $0xf18] sm:$0xff] %vm3895_vm0, %v3752_v41 }
 0x4f5   : > { %v2476_v44 = vpop.f32.mrb[200].mxu0  ;;  %v3756_v45 = vpop.f32.mrb[200].mxu1 }
 0x4f6   : > { %v2477_v46 = vadd.f32 %v7187_v43, %v2476_v44  ;;  %v3757_v47 = vadd.f32 %v7187_v43, %v3756_v45  ;;  %v2478_v48 = vpop.f32.mrb[201].mxu0  ;;  %v3758_v49 = vpop.f32.mrb[201].mxu1 }
 0x4f8   : > { %4124 = vst.msk [vmem:[%s5255_s22 + $0x720] sm:$0xff] %vm3895_vm0, %v2477_v46  ;;  %4380 = vst.msk [vmem:[%s5255_s22 + $0xf20] sm:$0xff] %vm3895_vm0, %v3757_v47 }
 0x4f9   : > { %v2481_v50 = vpop.f32.mrb[202].mxu0  ;;  %v3761_v51 = vpop.f32.mrb[202].mxu1 }
 0x4fa   : > { %v2482_v52 = vadd.f32 %v7187_v43, %v2481_v50  ;;  %v3762_v53 = vadd.f32 %v7187_v43, %v3761_v51  ;;  %v2483_v54 = vpop.f32.mrb[203].mxu0  ;;  %v3763_v55 = vpop.f32.mrb[203].mxu1 }
 0x4fc   : > { %4125 = vst.msk [vmem:[%s5255_s22 + $0x728] sm:$0xff] %vm3895_vm0, %v2482_v52  ;;  %4381 = vst.msk [vmem:[%s5255_s22 + $0xf28] sm:$0xff] %vm3895_vm0, %v3762_v53 }
 0x4fd   : > { %v2486_v56 = vpop.f32.mrb[204].mxu0  ;;  %v3766_v57 = vpop.f32.mrb[204].mxu1 }
 0x4fe   : > { %v2487_v58 = vadd.f32 %v7187_v43, %v2486_v56  ;;  %v3767_v59 = vadd.f32 %v7187_v43, %v3766_v57  ;;  %v2488_v60 = vpop.f32.mrb[205].mxu0  ;;  %v3768_v61 = vpop.f32.mrb[205].mxu1 }
 0x500   : > { %4126 = vst.msk [vmem:[%s5255_s22 + $0x730] sm:$0xff] %vm3895_vm0, %v2487_v58  ;;  %4382 = vst.msk [vmem:[%s5255_s22 + $0xf30] sm:$0xff] %vm3895_vm0, %v3767_v59 }
 0x501   : > { %v2491_v62 = vpop.f32.mrb[206].mxu0  ;;  %v3771_v63 = vpop.f32.mrb[206].mxu1 }
 0x502   : > { %v2492_v0 = vadd.f32 %v7187_v43, %v2491_v62  ;;  %v3772_v1 = vadd.f32 %v7187_v43, %v3771_v63  ;;  %v2493_v2 = vpop.f32.mrb[207].mxu0  ;;  %v3773_v3 = vpop.f32.mrb[207].mxu1 }
 0x504   : > { %4127 = vst.msk [vmem:[%s5255_s22 + $0x738] sm:$0xff] %vm3895_vm0, %v2492_v0  ;;  %4383 = vst.msk [vmem:[%s5255_s22 + $0xf38] sm:$0xff] %vm3895_vm0, %v3772_v1 }
 0x505   : > { %v2496_v4 = vpop.f32.mrb[208].mxu0  ;;  %v3776_v5 = vpop.f32.mrb[208].mxu1 }
 0x506   : > { %v2497_v6 = vadd.f32 %v7187_v43, %v2496_v4  ;;  %v3777_v8 = vadd.f32 %v7187_v43, %v3776_v5  ;;  %v2498_v9 = vpop.f32.mrb[209].mxu0  ;;  %v3778_v10 = vpop.f32.mrb[209].mxu1 }
 0x508   : > { %4128 = vst.msk [vmem:[%s5255_s22 + $0x740] sm:$0xff] %vm3895_vm0, %v2497_v6  ;;  %4384 = vst.msk [vmem:[%s5255_s22 + $0xf40] sm:$0xff] %vm3895_vm0, %v3777_v8 }
 0x509   : > { %v2501_v11 = vpop.f32.mrb[210].mxu0  ;;  %v3781_v12 = vpop.f32.mrb[210].mxu1 }
 0x50a   : > { %v2502_v13 = vadd.f32 %v7187_v43, %v2501_v11  ;;  %v3782_v14 = vadd.f32 %v7187_v43, %v3781_v12  ;;  %v2503_v15 = vpop.f32.mrb[211].mxu0  ;;  %v3783_v16 = vpop.f32.mrb[211].mxu1 }
 0x50c   : > { %4129 = vst.msk [vmem:[%s5255_s22 + $0x748] sm:$0xff] %vm3895_vm0, %v2502_v13  ;;  %4385 = vst.msk [vmem:[%s5255_s22 + $0xf48] sm:$0xff] %vm3895_vm0, %v3782_v14 }
 0x50d   : > { %v2506_v7 = vpop.f32.mrb[212].mxu0  ;;  %v3786_v17 = vpop.f32.mrb[212].mxu1 }
 0x50e   : > { %v2507_v19 = vadd.f32 %v7187_v43, %v2506_v7  ;;  %v3787_v20 = vadd.f32 %v7187_v43, %v3786_v17  ;;  %v2508_v21 = vpop.f32.mrb[213].mxu0  ;;  %v3788_v18 = vpop.f32.mrb[213].mxu1 }
 0x510   : > { %4130 = vst.msk [vmem:[%s5255_s22 + $0x750] sm:$0xff] %vm3895_vm0, %v2507_v19  ;;  %4386 = vst.msk [vmem:[%s5255_s22 + $0xf50] sm:$0xff] %vm3895_vm0, %v3787_v20 }
 0x511   : > { %v2511_v22 = vpop.f32.mrb[214].mxu0  ;;  %v3791_v24 = vpop.f32.mrb[214].mxu1 }
 0x512   : > { %v2512_v25 = vadd.f32 %v7187_v43, %v2511_v22  ;;  %v3792_v26 = vadd.f32 %v7187_v43, %v3791_v24  ;;  %v2513_v23 = vpop.f32.mrb[215].mxu0  ;;  %v3793_v27 = vpop.f32.mrb[215].mxu1 }
 0x513   : > { %v7551_v27 = vld [vmem:[#allocation4] ss:$0 sm:$0xff] }
 0x514   : > { %4131 = vst.msk [vmem:[%s5255_s22 + $0x758] sm:$0xff] %vm3895_vm0, %v2512_v25  ;;  %4387 = vst.msk [vmem:[%s5255_s22 + $0xf58] sm:$0xff] %vm3895_vm0, %v3792_v26 }
 0x515   : > { %v2516_v29 = vpop.f32.mrb[216].mxu0  ;;  %v3796_v30 = vpop.f32.mrb[216].mxu1 }
 0x516   : > { %v2517_v31 = vadd.f32 %v7187_v43, %v2516_v29  ;;  %v3797_v28 = vadd.f32 %v7187_v43, %v3796_v30  ;;  %v2518_v32 = vpop.f32.mrb[217].mxu0  ;;  %v3798_v34 = vpop.f32.mrb[217].mxu1 }
 0x518   : > { %4132 = vst.msk [vmem:[%s5255_s22 + $0x760] sm:$0xff] %vm3895_vm0, %v2517_v31  ;;  %4388 = vst.msk [vmem:[%s5255_s22 + $0xf60] sm:$0xff] %vm3895_vm0, %v3797_v28 }
 0x519   : > { %v2521_v35 = vpop.f32.mrb[218].mxu0  ;;  %v3801_v36 = vpop.f32.mrb[218].mxu1 }
 0x51a   : > { %v2522_v33 = vadd.f32 %v7187_v43, %v2521_v35  ;;  %v3802_v37 = vadd.f32 %v7187_v43, %v3801_v36  ;;  %v2523_v39 = vpop.f32.mrb[219].mxu0  ;;  %v3803_v40 = vpop.f32.mrb[219].mxu1 }
 0x51c   : > { %4133 = vst.msk [vmem:[%s5255_s22 + $0x768] sm:$0xff] %vm3895_vm0, %v2522_v33  ;;  %4389 = vst.msk [vmem:[%s5255_s22 + $0xf68] sm:$0xff] %vm3895_vm0, %v3802_v37 }
 0x51d   : > { %v2526_v41 = vpop.f32.mrb[220].mxu0  ;;  %v3806_v38 = vpop.f32.mrb[220].mxu1 }
 0x51e   : > { %v2527_v42 = vadd.f32 %v7187_v43, %v2526_v41  ;;  %v3807_v44 = vadd.f32 %v7187_v43, %v3806_v38  ;;  %v2528_v45 = vpop.f32.mrb[221].mxu0  ;;  %v3808_v46 = vpop.f32.mrb[221].mxu1 }
 0x520   : > { %4134 = vst.msk [vmem:[%s5255_s22 + $0x770] sm:$0xff] %vm3895_vm0, %v2527_v42  ;;  %4390 = vst.msk [vmem:[%s5255_s22 + $0xf70] sm:$0xff] %vm3895_vm0, %v3807_v44 }
 0x521   : > { %v2531_v47 = vpop.f32.mrb[222].mxu0  ;;  %v3811_v48 = vpop.f32.mrb[222].mxu1 }
 0x522   : > { %v2532_v49 = vadd.f32 %v7187_v43, %v2531_v47  ;;  %v3812_v50 = vadd.f32 %v7187_v43, %v3811_v48  ;;  %v2533_v51 = vpop.f32.mrb[223].mxu0  ;;  %v3813_v52 = vpop.f32.mrb[223].mxu1 }
 0x524   : > { %4135 = vst.msk [vmem:[%s5255_s22 + $0x778] sm:$0xff] %vm3895_vm0, %v2532_v49  ;;  %4391 = vst.msk [vmem:[%s5255_s22 + $0xf78] sm:$0xff] %vm3895_vm0, %v3812_v50 }
 0x525   : > { %v2536_v53 = vpop.f32.mrb[224].mxu0  ;;  %v3816_v54 = vpop.f32.mrb[224].mxu1 }
 0x526   : > { %v2537_v55 = vadd.f32 %v7187_v43, %v2536_v53  ;;  %v3817_v56 = vadd.f32 %v7187_v43, %v3816_v54  ;;  %v2538_v57 = vpop.f32.mrb[225].mxu0  ;;  %v3818_v58 = vpop.f32.mrb[225].mxu1 }
 0x528   : > { %4136 = vst.msk [vmem:[%s5255_s22 + $0x780] sm:$0xff] %vm3895_vm0, %v2537_v55  ;;  %4392 = vst.msk [vmem:[%s5255_s22 + $0xf80] sm:$0xff] %vm3895_vm0, %v3817_v56 }
 0x529   : > { %v2541_v59 = vpop.f32.mrb[226].mxu0  ;;  %v3821_v60 = vpop.f32.mrb[226].mxu1 }
 0x52a   : > { %v2542_v61 = vadd.f32 %v7187_v43, %v2541_v59  ;;  %v3822_v62 = vadd.f32 %v7187_v43, %v3821_v60  ;;  %v2543_v63 = vpop.f32.mrb[227].mxu0  ;;  %v3823_v0 = vpop.f32.mrb[227].mxu1 }
 0x52c   : > { %4137 = vst.msk [vmem:[%s5255_s22 + $0x788] sm:$0xff] %vm3895_vm0, %v2542_v61  ;;  %4393 = vst.msk [vmem:[%s5255_s22 + $0xf88] sm:$0xff] %vm3895_vm0, %v3822_v62 }
 0x52d   : > { %v2546_v1 = vpop.f32.mrb[228].mxu0  ;;  %v3826_v2 = vpop.f32.mrb[228].mxu1 }
 0x52e   : > { %v2547_v3 = vadd.f32 %v7187_v43, %v2546_v1  ;;  %v3827_v4 = vadd.f32 %v7187_v43, %v3826_v2  ;;  %v2548_v5 = vpop.f32.mrb[229].mxu0  ;;  %v3828_v6 = vpop.f32.mrb[229].mxu1 }
 0x530   : > { %4138 = vst.msk [vmem:[%s5255_s22 + $0x790] sm:$0xff] %vm3895_vm0, %v2547_v3  ;;  %4394 = vst.msk [vmem:[%s5255_s22 + $0xf90] sm:$0xff] %vm3895_vm0, %v3827_v4 }
 0x531   : > { %v2551_v8 = vpop.f32.mrb[230].mxu0  ;;  %v3831_v9 = vpop.f32.mrb[230].mxu1 }
 0x532   : > { %v2552_v10 = vadd.f32 %v7187_v43, %v2551_v8  ;;  %v3832_v11 = vadd.f32 %v7187_v43, %v3831_v9  ;;  %v2553_v12 = vpop.f32.mrb[231].mxu0  ;;  %v3833_v13 = vpop.f32.mrb[231].mxu1 }
 0x534   : > { %4139 = vst.msk [vmem:[%s5255_s22 + $0x798] sm:$0xff] %vm3895_vm0, %v2552_v10  ;;  %4395 = vst.msk [vmem:[%s5255_s22 + $0xf98] sm:$0xff] %vm3895_vm0, %v3832_v11 }
 0x535   : > { %v2556_v14 = vpop.f32.mrb[232].mxu0  ;;  %v3836_v15 = vpop.f32.mrb[232].mxu1 }
 0x536   : > { %v2557_v16 = vadd.f32 %v7187_v43, %v2556_v14  ;;  %v3837_v7 = vadd.f32 %v7187_v43, %v3836_v15  ;;  %v2558_v17 = vpop.f32.mrb[233].mxu0  ;;  %v3838_v19 = vpop.f32.mrb[233].mxu1 }
 0x538   : > { %4140 = vst.msk [vmem:[%s5255_s22 + $0x7a0] sm:$0xff] %vm3895_vm0, %v2557_v16  ;;  %4396 = vst.msk [vmem:[%s5255_s22 + $0xfa0] sm:$0xff] %vm3895_vm0, %v3837_v7 }
 0x539   : > { %v2561_v20 = vpop.f32.mrb[234].mxu0  ;;  %v3841_v21 = vpop.f32.mrb[234].mxu1 }
 0x53a   : > { %v2562_v18 = vadd.f32 %v7187_v43, %v2561_v20  ;;  %v3842_v22 = vadd.f32 %v7187_v43, %v3841_v21  ;;  %v2563_v24 = vpop.f32.mrb[235].mxu0  ;;  %v3843_v25 = vpop.f32.mrb[235].mxu1 }
 0x53c   : > { %4141 = vst.msk [vmem:[%s5255_s22 + $0x7a8] sm:$0xff] %vm3895_vm0, %v2562_v18  ;;  %4397 = vst.msk [vmem:[%s5255_s22 + $0xfa8] sm:$0xff] %vm3895_vm0, %v3842_v22 }
 0x53d   : > { %v2566_v26 = vpop.f32.mrb[236].mxu0  ;;  %v3846_v23 = vpop.f32.mrb[236].mxu1 }
 0x53e   : > { %v2567_v29 = vadd.f32 %v7551_v27, %v2566_v26  ;;  %v3847_v30 = vadd.f32 %v7551_v27, %v3846_v23  ;;  %v2568_v31 = vpop.f32.mrb[237].mxu0  ;;  %v3848_v28 = vpop.f32.mrb[237].mxu1 }
 0x540   : > { %4142 = vst.msk [vmem:[%s5255_s22 + $0x7b0] sm:$0xff] %vm3895_vm0, %v2567_v29  ;;  %4398 = vst.msk [vmem:[%s5255_s22 + $0xfb0] sm:$0xff] %vm3895_vm0, %v3847_v30 }
 0x541   : > { %v2571_v43 = vpop.f32.mrb[238].mxu0  ;;  %v3851_v32 = vpop.f32.mrb[238].mxu1 }
 0x542   : > { %v2572_v34 = vadd.f32 %v7551_v27, %v2571_v43  ;;  %v3852_v35 = vadd.f32 %v7551_v27, %v3851_v32  ;;  %v2573_v36 = vpop.f32.mrb[239].mxu0  ;;  %v3853_v33 = vpop.f32.mrb[239].mxu1 }
 0x544   : > { %4143 = vst.msk [vmem:[%s5255_s22 + $0x7b8] sm:$0xff] %vm3895_vm0, %v2572_v34  ;;  %4399 = vst.msk [vmem:[%s5255_s22 + $0xfb8] sm:$0xff] %vm3895_vm0, %v3852_v35 }
 0x545   : > { %v2576_v37 = vpop.f32.mrb[240].mxu0  ;;  %v3856_v39 = vpop.f32.mrb[240].mxu1 }
 0x546   : > { %v2577_v40 = vadd.f32 %v7551_v27, %v2576_v37  ;;  %v3857_v41 = vadd.f32 %v7551_v27, %v3856_v39  ;;  %v2578_v38 = vpop.f32.mrb[241].mxu0  ;;  %v3858_v42 = vpop.f32.mrb[241].mxu1 }
 0x548   : > { %4144 = vst.msk [vmem:[%s5255_s22 + $0x7c0] sm:$0xff] %vm3895_vm0, %v2577_v40  ;;  %4400 = vst.msk [vmem:[%s5255_s22 + $0xfc0] sm:$0xff] %vm3895_vm0, %v3857_v41 }
 0x549   : > { %v2581_v44 = vpop.f32.mrb[242].mxu0  ;;  %v3861_v45 = vpop.f32.mrb[242].mxu1 }
 0x54a   : > { %v2582_v46 = vadd.f32 %v7551_v27, %v2581_v44  ;;  %v3862_v47 = vadd.f32 %v7551_v27, %v3861_v45  ;;  %v2583_v48 = vpop.f32.mrb[243].mxu0  ;;  %v3863_v49 = vpop.f32.mrb[243].mxu1 }
 0x54c   : > { %4145 = vst.msk [vmem:[%s5255_s22 + $0x7c8] sm:$0xff] %vm3895_vm0, %v2582_v46  ;;  %4401 = vst.msk [vmem:[%s5255_s22 + $0xfc8] sm:$0xff] %vm3895_vm0, %v3862_v47 }
 0x54d   : > { %v2586_v50 = vpop.f32.mrb[244].mxu0  ;;  %v3866_v51 = vpop.f32.mrb[244].mxu1 }
 0x54e   : > { %v2587_v52 = vadd.f32 %v7551_v27, %v2586_v50  ;;  %v3867_v53 = vadd.f32 %v7551_v27, %v3866_v51  ;;  %v2588_v54 = vpop.f32.mrb[245].mxu0  ;;  %v3868_v55 = vpop.f32.mrb[245].mxu1 }
 0x550   : > { %4146 = vst.msk [vmem:[%s5255_s22 + $0x7d0] sm:$0xff] %vm3895_vm0, %v2587_v52  ;;  %4402 = vst.msk [vmem:[%s5255_s22 + $0xfd0] sm:$0xff] %vm3895_vm0, %v3867_v53 }
 0x551   : > { %v2591_v56 = vpop.f32.mrb[246].mxu0  ;;  %v3871_v57 = vpop.f32.mrb[246].mxu1 }
 0x552   : > { %v2592_v58 = vadd.f32 %v7551_v27, %v2591_v56  ;;  %v3872_v59 = vadd.f32 %v7551_v27, %v3871_v57  ;;  %v2593_v60 = vpop.f32.mrb[247].mxu0  ;;  %v3873_v61 = vpop.f32.mrb[247].mxu1 }
 0x554   : > { %4147 = vst.msk [vmem:[%s5255_s22 + $0x7d8] sm:$0xff] %vm3895_vm0, %v2592_v58  ;;  %4403 = vst.msk [vmem:[%s5255_s22 + $0xfd8] sm:$0xff] %vm3895_vm0, %v3872_v59 }
 0x555   : > { %v2596_v62 = vpop.f32.mrb[248].mxu0  ;;  %v3876_v63 = vpop.f32.mrb[248].mxu1 }
 0x556   : > { %v2597_v0 = vadd.f32 %v7551_v27, %v2596_v62  ;;  %v3877_v1 = vadd.f32 %v7551_v27, %v3876_v63  ;;  %v2598_v2 = vpop.f32.mrb[249].mxu0  ;;  %v3878_v3 = vpop.f32.mrb[249].mxu1 }
 0x558   : > { %4148 = vst.msk [vmem:[%s5255_s22 + $0x7e0] sm:$0xff] %vm3895_vm0, %v2597_v0  ;;  %4404 = vst.msk [vmem:[%s5255_s22 + $0xfe0] sm:$0xff] %vm3895_vm0, %v3877_v1 }
 0x559   : > { %v2601_v4 = vpop.f32.mrb[250].mxu0  ;;  %v3881_v5 = vpop.f32.mrb[250].mxu1 }
 0x55a   : > { %v2602_v6 = vadd.f32 %v7551_v27, %v2601_v4  ;;  %v3882_v8 = vadd.f32 %v7551_v27, %v3881_v5  ;;  %v2603_v9 = vpop.f32.mrb[251].mxu0  ;;  %v3883_v10 = vpop.f32.mrb[251].mxu1 }
 0x55c   : > { %4149 = vst.msk [vmem:[%s5255_s22 + $0x7e8] sm:$0xff] %vm3895_vm0, %v2602_v6  ;;  %4405 = vst.msk [vmem:[%s5255_s22 + $0xfe8] sm:$0xff] %vm3895_vm0, %v3882_v8 }
 0x55d   : > { %v2606_v11 = vpop.f32.mrb[252].mxu0  ;;  %v3886_v12 = vpop.f32.mrb[252].mxu1 }
 0x55e   : > { %v2607_v13 = vadd.f32 %v7551_v27, %v2606_v11  ;;  %v3887_v14 = vadd.f32 %v7551_v27, %v3886_v12  ;;  %v2608_v15 = vpop.f32.mrb[253].mxu0  ;;  %v3888_v16 = vpop.f32.mrb[253].mxu1 }
 0x560   : > { %4150 = vst.msk [vmem:[%s5255_s22 + $0x7f0] sm:$0xff] %vm3895_vm0, %v2607_v13  ;;  %4406 = vst.msk [vmem:[%s5255_s22 + $0xff0] sm:$0xff] %vm3895_vm0, %v3887_v14 }
 0x561   : > { %v2611_v7 = vpop.f32.mrb[254].mxu0  ;;  %v3891_v17 = vpop.f32.mrb[254].mxu1 }
 0x562   : > { %v2612_v19 = vadd.f32 %v7551_v27, %v2611_v7  ;;  %v3892_v20 = vadd.f32 %v7551_v27, %v3891_v17  ;;  %v2613_v21 = vpop.f32.mrb[255].mxu0  ;;  %v3893_v18 = vpop.f32.mrb[255].mxu1 }
 0x564   : > { %4151 = vst.msk [vmem:[%s5255_s22 + $0x7f8] sm:$0xff] %vm3895_vm0, %v2612_v19  ;;  %4407 = vst.msk [vmem:[%s5255_s22 + $0xff8] sm:$0xff] %vm3895_vm0, %v3892_v20 }
 0x565 PF: > { %p14_p3 = scmp.ge.s32.totalorder %s4787_s17, 4   ;;  %s7645_s12 = smov %s4732_s13 }
 0x566   : > { %s7646_s13 = smov %s4736_s14  ;;  %s7647_s14 = smov %s4797_s20 }
 0x567   : > { %s7648_s15 = smov %s4787_s17  ;;  %16 = sbr.rel (!%p14_p3) target bundleno = 4 (0x4), region = 76 }
 0x56e   :  { %4430 = vsyncpa [#allocation3], 1 }
 0x56f   :  { %4432 = vsyncpa [#allocation3 + $0x1], 1 }
 0x570   :  { %4433 = vsyncpa [#allocation5], 1 }

</bundles_post_ra>
